<compile_context>
chip_gen: v5e
topology: v5e:2x2
jax: 0.10.0
libtpu: 0.0.40
codegen_flags: <defaults>
</compile_context>

<pallas_src>
import jax
import jax.numpy as jnp
from jax.experimental import pallas as pl
from jax.experimental.pallas import tpu as pltpu


def _round_up(x, m):
    return ((x + m - 1) // m) * m


def _choose_tk(k_dim):
    # largest multiple-of-128 K tile that divides K; else one full-K block.
    for cand in (1536, 1152, 1024, 896, 768, 640, 512, 384, 256, 128):
        if cand <= k_dim and k_dim % cand == 0:
            return cand
    return k_dim


def _choose_tm(m_dim, cap=1024):
    if m_dim <= cap:
        return m_dim                      # single full-M block: no ragged edge
    for cand in range(cap, 127, -8):      # largest multiple-of-8 divisor <= cap
        if m_dim % cand == 0:
            return cand
    return cap                            # ragged edge handled by the in-kernel row mask


def _choose_tn(n_pad, m_blocks, cap=512):
    t = min(cap, n_pad)
    while n_pad % t != 0:
        t -= 128
    # v7x megacore: if the M axis has a single block, split N so both TensorCores get work.
    if m_blocks == 1 and n_pad // t < 2 and n_pad >= 256:
        t = max(128, n_pad // 2)
    return t


# --------------- Pallas MXU matmul with fused BN batch-statistics epilogue ---------------
def _make_matmul_stats_kernel(tm, m_true, n_keep):
    def kernel(a_ref, b_ref, o_ref, st_ref, acc_ref):
        # program_id / num_programs only at the top level (interpret-mode safe).
        k = pl.program_id(2)
        last_k = pl.num_programs(2) - 1
        row_base = pl.program_id(0) * tm

        @pl.when(k == 0)
        def _():
            acc_ref[...] = jnp.zeros_like(acc_ref)

        acc_ref[...] += jnp.dot(a_ref[...], b_ref[...],
                                preferred_element_type=jnp.float32)

        @pl.when(k == last_k)
        def _():
            acc = acc_ref[...][:, :n_keep]            # drop Cout padding inside the kernel
            o_ref[...] = acc.astype(o_ref.dtype)      # bf16 writeback
            # Mask rows past the true M (ragged edge tile) before the stats reduction.
            row = jax.lax.broadcasted_iota(jnp.int32, acc.shape, 0) + row_base
            acc_m = jnp.where(row < m_true, acc, 0.0)
            st_ref[0] = jnp.concatenate(
                [jnp.sum(acc_m, axis=0, keepdims=True),
                 jnp.sum(acc_m * acc_m, axis=0, keepdims=True)], axis=0)

    return kernel


def matmul_stats_pallas(a_bf16, b_mat_bf16, n_out):
    """y = (A @ B)[:, :n_out] (bf16 in, f32 acc, bf16 out) + f32 per-column sum / sum-of-sq."""
    m_dim, k_dim = a_bf16.shape
    k2, n_pad = b_mat_bf16.shape
    assert k_dim == k2 and n_pad % 128 == 0 and n_out <= n_pad
    tm = _choose_tm(m_dim)
    gm = pl.cdiv(m_dim, tm)
    tn = _choose_tn(n_pad, gm)
    tk = _choose_tk(k_dim)
    gn = n_pad // tn
    gk = k_dim // tk
    if n_out < n_pad:
        assert gn == 1
        n_keep = n_out
    else:
        n_keep = tn

    kernel = _make_matmul_stats_kernel(tm, m_dim, n_keep)
    y, stats = pl.pallas_call(
        kernel,
        out_shape=(jax.ShapeDtypeStruct((m_dim, n_out), jnp.bfloat16),
                   jax.ShapeDtypeStruct((gm, 2, n_out), jnp.float32)),
        grid_spec=pltpu.PrefetchScalarGridSpec(
            num_scalar_prefetch=0,
            grid=(gm, gn, gk),
            in_specs=[pl.BlockSpec((tm, tk), lambda i, j, k: (i, k)),
                      pl.BlockSpec((tk, tn), lambda i, j, k: (k, j))],
            out_specs=[pl.BlockSpec((tm, n_keep), lambda i, j, k: (i, j)),
                       pl.BlockSpec((1, 2, n_keep), lambda i, j, k: (i, 0, j))],
            scratch_shapes=[pltpu.VMEM((tm, tn), jnp.float32)]),
        compiler_params=pltpu.CompilerParams(
            dimension_semantics=("parallel", "parallel", "arbitrary"),
            vmem_limit_bytes=32 * 1024 * 1024),
    )(a_bf16, b_mat_bf16)
    ch = jnp.sum(stats, axis=0)            # (2, n_out): tiny glue reduction over M tiles
    return y, ch[0], ch[1]


# ------------------------- Conv2d (im2col in bf16) + fused BN stats -------------------------
def conv2d_bn_stats_pallas(x_nhwc, w_mat, cout, kh, kw, stride, padding, k_pad=None):
    n, h, w, cin = x_nhwc.shape
    ho = (h + 2 * padding - kh) // stride + 1
    wo = (w + 2 * padding - kw) // stride + 1
    xb = x_nhwc.astype(jnp.bfloat16)
    if kh == 1 and kw == 1 and padding == 0:
        patches = xb[:, ::stride, ::stride, :]
        kdim = cin
    else:
        xp = jnp.pad(xb, ((0, 0), (padding, padding), (padding, padding), (0, 0)))
        cols = []
        for dh in range(kh):
            for dw in range(kw):
                cols.append(xp[:, dh:dh + stride * (ho - 1) + 1:stride,
                               dw:dw + stride * (wo - 1) + 1:stride, :])
        kdim = kh * kw * cin
        if k_pad is not None and k_pad > kdim:     # lane-dense K for the stem conv
            cols.append(jnp.zeros((n, ho, wo, k_pad - kdim), jnp.bfloat16))
            kdim = k_pad
        patches = jnp.concatenate(cols, axis=-1)
    m_dim = n * ho * wo
    a = patches.reshape(m_dim, kdim)
    assert w_mat.shape[0] == kdim, (w_mat.shape, kdim)
    y, csum, cssq = matmul_stats_pallas(a, w_mat, cout)
    return y, csum, cssq, (n, ho, wo)


# ----------------------------- BN scale/shift from batch stats (glue) -----------------------------
def _bn_scale_shift(csum, cssq, gamma, beta, count, eps=1e-5):
    inv = 1.0 / float(count)
    mean = csum * inv
    var = jnp.maximum(cssq * inv - mean * mean, 0.0)   # biased batch variance
    scale = gamma * jax.lax.rsqrt(var + eps)
    shift = beta - mean * scale
    return scale.reshape(1, -1), shift.reshape(1, -1)


# ----------------- Pallas BN apply (affine + optional (BN'd) residual + ReLU) -----------------
def _make_bn_apply_kernel(has_res, res_bn, relu):
    def kernel(*refs):
        it = iter(refs)
        x_ref = next(it)
        r_ref = next(it) if has_res else None
        sc_ref = next(it)
        sh_ref = next(it)
        rsc_ref = next(it) if res_bn else None
        rsh_ref = next(it) if res_bn else None
        o_ref = next(it)
        y = x_ref[...].astype(jnp.float32) * sc_ref[...] + sh_ref[...]
        if has_res:
            r = r_ref[...].astype(jnp.float32)
            if res_bn:
                r = r * rsc_ref[...] + rsh_ref[...]
            y = y + r
        if relu:
            y = jnp.maximum(y, 0.0)
        o_ref[...] = y.astype(o_ref.dtype)

    return kernel


def batchnorm_apply_pallas(x2d, scale, shift, residual2d=None, res_scale=None,
                           res_shift=None, relu=False):
    m_orig, c_orig = x2d.shape
    m_dim, c = m_orig, c_orig
    # Lane-dense folding for narrow channel counts (c=64): view (m, c) as (m/f, 128).
    if c < 128 and 128 % c == 0 and m_dim % (128 // c) == 0:
        f = 128 // c
        m_dim, c = m_dim // f, c * f
        x2d = x2d.reshape(m_dim, c)
        scale = jnp.tile(scale, (1, f))
        shift = jnp.tile(shift, (1, f))
        if residual2d is not None:
            residual2d = residual2d.reshape(m_dim, c)
        if res_scale is not None:
            res_scale = jnp.tile(res_scale, (1, f))
            res_shift = jnp.tile(res_shift, (1, f))

    cap = max(256, (4096 * 64) // c)       # bigger M tiles when C is small
    tm = m_dim if m_dim <= cap else cap
    gm = pl.cdiv(m_dim, tm)

    big_spec = pl.BlockSpec((tm, c), lambda i: (i, 0))
    vec_spec = pl.BlockSpec((1, c), lambda i: (0, 0))
    args, in_specs = [x2d], [big_spec]
    if residual2d is not None:
        args.append(residual2d)
        in_specs.append(big_spec)
    args += [scale, shift]
    in_specs += [vec_spec, vec_spec]
    if res_scale is not None:
        args += [res_scale, res_shift]
        in_specs += [vec_spec, vec_spec]

    kernel = _make_bn_apply_kernel(residual2d is not None, res_scale is not None, relu)
    out = pl.pallas_call(
        kernel,
        out_shape=jax.ShapeDtypeStruct((m_dim, c), jnp.bfloat16),
        grid_spec=pltpu.PrefetchScalarGridSpec(
            num_scalar_prefetch=0,
            grid=(gm,),
            in_specs=in_specs,
            out_specs=big_spec),
        compiler_params=pltpu.CompilerParams(dimension_semantics=("parallel",)),
    )(*args)
    return out.reshape(m_orig, c_orig)     # linear-order-preserving reshape (no extra pass)


# ----------------- Pallas MaxPool(kernel=3, stride=2, pad=1) via parity split -----------------
def _maxpool_kernel(a_ref, b_ref, c_ref, d_ref, o_ref):
    ho = o_ref.shape[1]
    wo = o_ref.shape[2]
    m = d_ref[0]
    m = jnp.maximum(m, a_ref[0, 0:ho, 0:wo, :])
    m = jnp.maximum(m, a_ref[0, 0:ho, 1:wo + 1, :])
    m = jnp.maximum(m, a_ref[0, 1:ho + 1, 0:wo, :])
    m = jnp.maximum(m, a_ref[0, 1:ho + 1, 1:wo + 1, :])
    m = jnp.maximum(m, b_ref[0, 0:ho, :, :])
    m = jnp.maximum(m, b_ref[0, 1:ho + 1, :, :])
    m = jnp.maximum(m, c_ref[0, :, 0:wo, :])
    m = jnp.maximum(m, c_ref[0, :, 1:wo + 1, :])
    o_ref[0] = m


def maxpool_pallas(x_nhwc):
    n, h, w, c = x_nhwc.shape
    ho = (h - 1) // 2 + 1
    wo = (w - 1) // 2 + 1
    xp = jnp.pad(x_nhwc.astype(jnp.bfloat16),
                 ((0, 0), (1, 1), (1, 1), (0, 0)), constant_values=-1e30)
    # even/odd split along H and W: 4 views, ~1x input HBM traffic instead of a 9x stack
    a = xp[:, 0:2 * ho + 1:2, 0:2 * wo + 1:2, :]
    b = xp[:, 0:2 * ho + 1:2, 1:2 * wo:2, :]
    cc = xp[:, 1:2 * ho:2, 0:2 * wo + 1:2, :]
    d = xp[:, 1:2 * ho:2, 1:2 * wo:2, :]
    out = pl.pallas_call(
        _maxpool_kernel,
        out_shape=jax.ShapeDtypeStruct((n, ho, wo, c), jnp.bfloat16),
        grid_spec=pltpu.PrefetchScalarGridSpec(
            num_scalar_prefetch=0,
            grid=(n,),
            in_specs=[pl.BlockSpec((1, ho + 1, wo + 1, c), lambda i: (i, 0, 0, 0)),
                      pl.BlockSpec((1, ho + 1, wo, c), lambda i: (i, 0, 0, 0)),
                      pl.BlockSpec((1, ho, wo + 1, c), lambda i: (i, 0, 0, 0)),
                      pl.BlockSpec((1, ho, wo, c), lambda i: (i, 0, 0, 0))],
            out_specs=pl.BlockSpec((1, ho, wo, c), lambda i: (i, 0, 0, 0))),
        compiler_params=pltpu.CompilerParams(dimension_semantics=("parallel",)),
    )(a, b, cc, d)
    return out


# ------------------------------------ ResNet-18 params ------------------------------------
def init_resnet18_params(key):
    counter = [0]

    def nk():
        counter[0] += 1
        return jax.random.fold_in(key, counter[0])

    def conv_w(cout, cin, k1, k2, k_pad=None):
        # nn.init.normal_(m.weight, mean=0, std=0.001); stored matmul-ready (K[_pad], Cout_pad) bf16
        w = 0.001 * jax.random.normal(nk(), (cout, cin, k1, k2), jnp.float32)
        wm = jnp.transpose(w, (2, 3, 1, 0)).reshape(k1 * k2 * cin, cout)
        if k_pad is not None and k_pad > wm.shape[0]:
            wm = jnp.pad(wm, ((0, k_pad - wm.shape[0]), (0, 0)))
        n_pad = _round_up(cout, 128)
        wm = jnp.pad(wm, ((0, 0), (0, n_pad - cout)))
        return wm.astype(jnp.bfloat16)

    def bn_gb(c):
        # nn.init.constant_(weight, 1); nn.init.constant_(bias, 0)
        return jnp.ones((c,), jnp.float32), jnp.zeros((c,), jnp.float32)

    g, b = bn_gb(64)
    params = {'conv1_w': conv_w(64, 3, 7, 7, k_pad=256), 'bn1_g': g, 'bn1_b': b, 'layers': []}
    inplanes = 64
    for planes, nblocks, stride in [(64, 2, 1), (128, 2, 2), (256, 2, 2), (512, 2, 2)]:
        layer = []
        for bi in range(nblocks):
            s = stride if bi == 0 else 1
            g1, b1 = bn_gb(planes)
            g2, b2 = bn_gb(planes)
            blk = {'conv1_w': conv_w(planes, inplanes, 3, 3), 'bn1_g': g1, 'bn1_b': b1,
                   'conv2_w': conv_w(planes, planes, 3, 3), 'bn2_g': g2, 'bn2_b': b2}
            if s != 1 or inplanes != planes:                  # BasicBlock.expansion == 1
                gd, bd = bn_gb(planes)
                blk['down_w'] = conv_w(planes, inplanes, 1, 1)
                blk['down_bn_g'] = gd
                blk['down_bn_b'] = bd
            inplanes = planes
            layer.append(blk)
        params['layers'].append(layer)
    return params


# -------------------------------------- Forward pass --------------------------------------
def _basic_block(x_nhwc, blk, stride):
    planes = blk['bn1_g'].shape[0]
    y1, s1, q1, (n, ho, wo) = conv2d_bn_stats_pallas(x_nhwc, blk['conv1_w'], planes, 3, 3, stride, 1)
    m = n * ho * wo
    sc1, sh1 = _bn_scale_shift(s1, q1, blk['bn1_g'], blk['bn1_b'], m)
    h1 = batchnorm_apply_pallas(y1, sc1, sh1, relu=True).reshape(n, ho, wo, planes)

    y2, s2, q2, _ = conv2d_bn_stats_pallas(h1, blk['conv2_w'], planes, 3, 3, 1, 1)
    sc2, sh2 = _bn_scale_shift(s2, q2, blk['bn2_g'], blk['bn2_b'], m)

    if 'down_w' in blk:
        # downsample conv; its BN is fused into the bn2 + residual + ReLU kernel below
        yd, sd, qd, _ = conv2d_bn_stats_pallas(x_nhwc, blk['down_w'], planes, 1, 1, stride, 0)
        scd, shd = _bn_scale_shift(sd, qd, blk['down_bn_g'], blk['down_bn_b'], m)
        out = batchnorm_apply_pallas(y2, sc2, sh2, residual2d=yd,
                                     res_scale=scd, res_shift=shd, relu=True)
    else:
        res = x_nhwc.reshape(m, planes)
        out = batchnorm_apply_pallas(y2, sc2, sh2, residual2d=res, relu=True)
    return out.reshape(n, ho, wo, planes)


@jax.jit
def resnet_backbone_forward(x_nchw, params):
    # layout: NCHW (PyTorch) -> internal NHWC bf16 (channels on lanes) -> NCHW f32
    x = jnp.transpose(x_nchw, (0, 2, 3, 1)).astype(jnp.bfloat16)

    y, s, q, (n, ho, wo) = conv2d_bn_stats_pallas(x, params['conv1_w'], 64, 7, 7, 2, 3, k_pad=256)
    m = n * ho * wo
    sc, sh = _bn_scale_shift(s, q, params['bn1_g'], params['bn1_b'], m)
    h = batchnorm_apply_pallas(y, sc, sh, relu=True).reshape(n, ho, wo, 64)
    h = maxpool_pallas(h)

    strides = [1, 2, 2, 2]
    for li, layer in enumerate(params['layers']):
        for bi, blk in enumerate(layer):
            s_ = strides[li] if bi == 0 else 1
            h = _basic_block(h, blk, s_)
    return jnp.transpose(h, (0, 3, 1, 2)).astype(jnp.float32)


if __name__ == "__main__":
    key = jax.random.PRNGKey(0)
    params = init_resnet18_params(key)
    x = jax.random.normal(jax.random.fold_in(key, 12345), (2, 3, 16, 16), jnp.float32)
    out = resnet_backbone_forward(x, params)
    out = jax.block_until_ready(out)
    assert out.shape == (2, 512, 1, 1), out.shape
    assert bool(jnp.all(jnp.isfinite(out)))
    print("KERNEL_OK")
</pallas_src>

<mosaic_0001>
module attributes {stable_mosaic.version = 11 : i64} {
  func.func @kernel(%arg0: i32, %arg1: i32, %arg2: i32, %arg3: memref<128x256xbf16, #tpu.memory_space<vmem>>, %arg4: memref<256x128xbf16, #tpu.memory_space<vmem>>, %arg5: memref<128x64xbf16, #tpu.memory_space<vmem>>, %arg6: memref<1x2x64xf32, #tpu.memory_space<vmem>>, %arg7: memref<128x128xf32, #tpu.memory_space<vmem>>) attributes {dimension_semantics = [#tpu.dimension_semantics<parallel>, #tpu.dimension_semantics<parallel>, #tpu.dimension_semantics<arbitrary>], iteration_bounds = array<i64: 1, 1, 1>, scalar_prefetch = 0 : i64, scratch_operands = 1 : i64, tpu.core_type = #tpu.core_type<tc>, window_params = [{transform_indices = @transform_0, window_bounds = array<i64: 128, 256>}, {transform_indices = @transform_1, window_bounds = array<i64: 256, 128>}, {transform_indices = @transform_2, window_bounds = array<i64: 128, 64>}, {transform_indices = @transform_3, window_bounds = array<i64: 1, 2, 64>}]} {
    %c128_i32 = arith.constant 128 : i32
    %0 = arith.muli %arg0, %c128_i32 : i32
    %c0_i32 = arith.constant 0 : i32
    %1 = arith.cmpi eq, %arg2, %c0_i32 : i32
    %2 = arith.extui %1 : i1 to i32
    %c0_i32_0 = arith.constant 0 : i32
    %3 = arith.cmpi ne, %2, %c0_i32_0 : i32
    scf.if %3 {
      %cst_10 = arith.constant 0.000000e+00 : f32
      %13 = vector.broadcast %cst_10 : f32 to vector<128x128xf32>
      %c0_11 = arith.constant 0 : index
      %c0_12 = arith.constant 0 : index
      %14 = vector.load %arg7[%c0_11, %c0_12] : memref<128x128xf32, #tpu.memory_space<vmem>>, vector<128x128xf32>
      tpu.vector_store %arg7[%c0_11, %c0_12], %13 {strides = array<i32>} : memref<128x128xf32, #tpu.memory_space<vmem>>, vector<128x128xf32>,
    } else {
    }
    %c0 = arith.constant 0 : index
    %c0_1 = arith.constant 0 : index
    %4 = vector.load %arg7[%c0, %c0_1] : memref<128x128xf32, #tpu.memory_space<vmem>>, vector<128x128xf32>
    %c0_2 = arith.constant 0 : index
    %c0_3 = arith.constant 0 : index
    %5 = vector.load %arg3[%c0_2, %c0_3] : memref<128x256xbf16, #tpu.memory_space<vmem>>, vector<128x256xbf16>
    %c0_4 = arith.constant 0 : index
    %c0_5 = arith.constant 0 : index
    %6 = vector.load %arg4[%c0_4, %c0_5] : memref<256x128xbf16, #tpu.memory_space<vmem>>, vector<256x128xbf16>
    %cst = arith.constant dense<0.000000e+00> : vector<128x128xf32>
    %7 = tpu.matmul %5, %6, %cst {dimension_numbers = #tpu.dot_dimension_numbers<[1], [0], [0], [1], [0, 0, 1, 1], [], []>} : vector<128x256xbf16>, vector<256x128xbf16>, vector<128x128xf32> -> vector<128x128xf32>
    %8 = arith.addf %4, %7 : vector<128x128xf32>
    %c0_6 = arith.constant 0 : index
    %c0_7 = arith.constant 0 : index
    %9 = vector.load %arg7[%c0_6, %c0_7] : memref<128x128xf32, #tpu.memory_space<vmem>>, vector<128x128xf32>
    tpu.vector_store %arg7[%c0_6, %c0_7], %8 {strides = array<i32>} : memref<128x128xf32, #tpu.memory_space<vmem>>, vector<128x128xf32>,
    %c0_i32_8 = arith.constant 0 : i32
    %10 = arith.cmpi eq, %arg2, %c0_i32_8 : i32
    %11 = arith.extui %10 : i1 to i32
    %c0_i32_9 = arith.constant 0 : i32
    %12 = arith.cmpi ne, %11, %c0_i32_9 : i32
    scf.if %12 {
      %c0_10 = arith.constant 0 : index
      %c0_11 = arith.constant 0 : index
      %13 = vector.load %arg7[%c0_10, %c0_11] : memref<128x128xf32, #tpu.memory_space<vmem>>, vector<128x128xf32>
      %14 = vector.extract_strided_slice %13 {offsets = [0, 0], sizes = [128, 64], strides = [1, 1]} : vector<128x128xf32> to vector<128x64xf32>
      %15 = arith.truncf %14 : vector<128x64xf32> to vector<128x64xbf16>
      %c0_12 = arith.constant 0 : index
      %c0_13 = arith.constant 0 : index
      %16 = vector.load %arg5[%c0_12, %c0_13] : memref<128x64xbf16, #tpu.memory_space<vmem>>, vector<128x64xbf16>
      tpu.vector_store %arg5[%c0_12, %c0_13], %15 {strides = array<i32>} : memref<128x64xbf16, #tpu.memory_space<vmem>>, vector<128x64xbf16>,
      %17 = tpu.iota {dimensions = array<i32: 0>} : vector<128x64xi32>
      %18 = vector.broadcast %0 : i32 to vector<128x64xi32>
      %19 = arith.addi %17, %18 : vector<128x64xi32>
      %c128_i32_14 = arith.constant 128 : i32
      %20 = vector.broadcast %c128_i32_14 : i32 to vector<128x64xi32>
      %21 = arith.cmpi slt, %19, %20 : vector<128x64xi32>
      %cst_15 = arith.constant 0.000000e+00 : f32
      %22 = vector.broadcast %cst_15 : f32 to vector<128x64xf32>
      %23 = arith.select %21, %14, %22 : vector<128x64xi1>, vector<128x64xf32>
      %cst_16 = arith.constant dense<0.000000e+00> : vector<64xf32>
      %24 = vector.multi_reduction <add>, %23, %cst_16 [0] : vector<128x64xf32> to vector<64xf32>
      %25 = vector.shape_cast %24 : vector<64xf32> to vector<1x64xf32>
      %26 = arith.mulf %23, %23 : vector<128x64xf32>
      %cst_17 = arith.constant dense<0.000000e+00> : vector<64xf32>
      %27 = vector.multi_reduction <add>, %26, %cst_17 [0] : vector<128x64xf32> to vector<64xf32>
      %28 = vector.shape_cast %27 : vector<64xf32> to vector<1x64xf32>
      %29 = tpu.concatenate %25, %28 in 0 : vector<1x64xf32>, vector<1x64xf32> -> vector<2x64xf32>
      %c0_18 = arith.constant 0 : index
      %c0_19 = arith.constant 0 : index
      %c0_20 = arith.constant 0 : index
      %30 = vector.load %arg6[%c0_18, %c0_19, %c0_20] : memref<1x2x64xf32, #tpu.memory_space<vmem>>, vector<1x2x64xf32>
      %31 = vector.shape_cast %30 : vector<1x2x64xf32> to vector<2x64xf32>
      %32 = vector.shape_cast %29 : vector<2x64xf32> to vector<1x2x64xf32>
      tpu.vector_store %arg6[%c0_18, %c0_19, %c0_20], %32 {strides = array<i32>} : memref<1x2x64xf32, #tpu.memory_space<vmem>>, vector<1x2x64xf32>,
    } else {
    }
    return
  }
  func.func @transform_0(%arg0: i32, %arg1: i32, %arg2: i32) -> (i32, i32) {
    %c0_i32 = arith.constant 0 : i32
    return %arg0, %arg2 : i32, i32
  }
  func.func @transform_1(%arg0: i32, %arg1: i32, %arg2: i32) -> (i32, i32) {
    %c0_i32 = arith.constant 0 : i32
    return %arg2, %arg1 : i32, i32
  }
  func.func @transform_2(%arg0: i32, %arg1: i32, %arg2: i32) -> (i32, i32) {
    %c0_i32 = arith.constant 0 : i32
    return %arg0, %arg1 : i32, i32
  }
  func.func @transform_3(%arg0: i32, %arg1: i32, %arg2: i32) -> (i32, i32, i32) {
    %c0_i32 = arith.constant 0 : i32
    %c0_i32_0 = arith.constant 0 : i32
    return %arg0, %c0_i32, %arg1 : i32, i32, i32
  }
}

module attributes {stable_mosaic.version = 11 : i64} {
  func.func @kernel(%arg0: i32, %arg1: memref<64x128xbf16, #tpu.memory_space<vmem>>, %arg2: memref<1x128xf32, #tpu.memory_space<vmem>>, %arg3: memref<1x128xf32, #tpu.memory_space<vmem>>, %arg4: memref<64x128xbf16, #tpu.memory_space<vmem>>) attributes {dimension_semantics = [#tpu.dimension_semantics<parallel>], iteration_bounds = array<i64: 1>, scalar_prefetch = 0 : i64, scratch_operands = 0 : i64, tpu.core_type = #tpu.core_type<tc>, window_params = [{transform_indices = @transform_0, window_bounds = array<i64: 64, 128>}, {pipeline_mode = #tpu.pipeline_mode<synchronous>, transform_indices = @transform_1, window_bounds = array<i64: 1, 128>}, {pipeline_mode = #tpu.pipeline_mode<synchronous>, transform_indices = @transform_2, window_bounds = array<i64: 1, 128>}, {transform_indices = @transform_3, window_bounds = array<i64: 64, 128>}]} {
    %c0 = arith.constant 0 : index
    %c0_0 = arith.constant 0 : index
    %0 = vector.load %arg1[%c0, %c0_0] : memref<64x128xbf16, #tpu.memory_space<vmem>>, vector<64x128xbf16>
    %1 = arith.extf %0 : vector<64x128xbf16> to vector<64x128xf32>
    %c0_1 = arith.constant 0 : index
    %c0_2 = arith.constant 0 : index
    %2 = vector.load %arg2[%c0_1, %c0_2] : memref<1x128xf32, #tpu.memory_space<vmem>>, vector<1x128xf32>
    %3 = vector.broadcast %2 : vector<1x128xf32> to vector<64x128xf32>
    %4 = arith.mulf %1, %3 : vector<64x128xf32>
    %c0_3 = arith.constant 0 : index
    %c0_4 = arith.constant 0 : index
    %5 = vector.load %arg3[%c0_3, %c0_4] : memref<1x128xf32, #tpu.memory_space<vmem>>, vector<1x128xf32>
    %6 = vector.broadcast %5 : vector<1x128xf32> to vector<64x128xf32>
    %7 = arith.addf %4, %6 : vector<64x128xf32>
    %cst = arith.constant 0.000000e+00 : f32
    %8 = vector.broadcast %cst : f32 to vector<64x128xf32>
    %9 = arith.maximumf %7, %8 : vector<64x128xf32>
    %10 = arith.truncf %9 : vector<64x128xf32> to vector<64x128xbf16>
    %c0_5 = arith.constant 0 : index
    %c0_6 = arith.constant 0 : index
    %11 = vector.load %arg4[%c0_5, %c0_6] : memref<64x128xbf16, #tpu.memory_space<vmem>>, vector<64x128xbf16>
    tpu.vector_store %arg4[%c0_5, %c0_6], %10 {strides = array<i32>} : memref<64x128xbf16, #tpu.memory_space<vmem>>, vector<64x128xbf16>,
    return
  }
  func.func @transform_0(%arg0: i32) -> (i32, i32) {
    %c0_i32 = arith.constant 0 : i32
    %c0_i32_0 = arith.constant 0 : i32
    return %arg0, %c0_i32 : i32, i32
  }
  func.func @transform_1(%arg0: i32) -> (i32, i32) {
    %c0_i32 = arith.constant 0 : i32
    %c0_i32_0 = arith.constant 0 : i32
    %c0_i32_1 = arith.constant 0 : i32
    return %c0_i32, %c0_i32_0 : i32, i32
  }
  func.func @transform_2(%arg0: i32) -> (i32, i32) {
    %c0_i32 = arith.constant 0 : i32
    %c0_i32_0 = arith.constant 0 : i32
    %c0_i32_1 = arith.constant 0 : i32
    return %c0_i32, %c0_i32_0 : i32, i32
  }
  func.func @transform_3(%arg0: i32) -> (i32, i32) {
    %c0_i32 = arith.constant 0 : i32
    %c0_i32_0 = arith.constant 0 : i32
    return %arg0, %c0_i32 : i32, i32
  }
}

module attributes {stable_mosaic.version = 11 : i64} {
  func.func @_maxpool_kernel(%arg0: i32, %arg1: memref<1x5x5x64xbf16, #tpu.memory_space<vmem>>, %arg2: memref<1x5x4x64xbf16, #tpu.memory_space<vmem>>, %arg3: memref<1x4x5x64xbf16, #tpu.memory_space<vmem>>, %arg4: memref<1x4x4x64xbf16, #tpu.memory_space<vmem>>, %arg5: memref<1x4x4x64xbf16, #tpu.memory_space<vmem>>) attributes {dimension_semantics = [#tpu.dimension_semantics<parallel>], iteration_bounds = array<i64: 2>, scalar_prefetch = 0 : i64, scratch_operands = 0 : i64, tpu.core_type = #tpu.core_type<tc>, window_params = [{transform_indices = @transform_0, window_bounds = array<i64: 1, 5, 5, 64>}, {transform_indices = @transform_1, window_bounds = array<i64: 1, 5, 4, 64>}, {transform_indices = @transform_2, window_bounds = array<i64: 1, 4, 5, 64>}, {transform_indices = @transform_3, window_bounds = array<i64: 1, 4, 4, 64>}, {transform_indices = @transform_4, window_bounds = array<i64: 1, 4, 4, 64>}]} {
    %c0 = arith.constant 0 : index
    %c0_0 = arith.constant 0 : index
    %c0_1 = arith.constant 0 : index
    %c0_2 = arith.constant 0 : index
    %0 = vector.load %arg4[%c0, %c0_0, %c0_1, %c0_2] : memref<1x4x4x64xbf16, #tpu.memory_space<vmem>>, vector<1x4x4x64xbf16>
    %1 = vector.shape_cast %0 : vector<1x4x4x64xbf16> to vector<4x4x64xbf16>
    %c0_3 = arith.constant 0 : index
    %c0_4 = arith.constant 0 : index
    %c0_5 = arith.constant 0 : index
    %c0_6 = arith.constant 0 : index
    %2 = vector.load %arg1[%c0_3, %c0_4, %c0_5, %c0_6] : memref<1x5x5x64xbf16, #tpu.memory_space<vmem>>, vector<1x4x4x64xbf16>
    %3 = vector.shape_cast %2 : vector<1x4x4x64xbf16> to vector<4x4x64xbf16>
    %4 = arith.maximumf %1, %3 : vector<4x4x64xbf16>
    %c0_7 = arith.constant 0 : index
    %c0_8 = arith.constant 0 : index
    %c1 = arith.constant 1 : index
    %c0_9 = arith.constant 0 : index
    %5 = vector.load %arg1[%c0_7, %c0_8, %c1, %c0_9] : memref<1x5x5x64xbf16, #tpu.memory_space<vmem>>, vector<1x4x4x64xbf16>
    %6 = vector.shape_cast %5 : vector<1x4x4x64xbf16> to vector<4x4x64xbf16>
    %7 = arith.maximumf %4, %6 : vector<4x4x64xbf16>
    %c0_10 = arith.constant 0 : index
    %c1_11 = arith.constant 1 : index
    %c0_12 = arith.constant 0 : index
    %c0_13 = arith.constant 0 : index
    %8 = vector.load %arg1[%c0_10, %c1_11, %c0_12, %c0_13] : memref<1x5x5x64xbf16, #tpu.memory_space<vmem>>, vector<1x4x4x64xbf16>
    %9 = vector.shape_cast %8 : vector<1x4x4x64xbf16> to vector<4x4x64xbf16>
    %10 = arith.maximumf %7, %9 : vector<4x4x64xbf16>
    %c0_14 = arith.constant 0 : index
    %c1_15 = arith.constant 1 : index
    %c1_16 = arith.constant 1 : index
    %c0_17 = arith.constant 0 : index
    %11 = vector.load %arg1[%c0_14, %c1_15, %c1_16, %c0_17] : memref<1x5x5x64xbf16, #tpu.memory_space<vmem>>, vector<1x4x4x64xbf16>
    %12 = vector.shape_cast %11 : vector<1x4x4x64xbf16> to vector<4x4x64xbf16>
    %13 = arith.maximumf %10, %12 : vector<4x4x64xbf16>
    %c0_18 = arith.constant 0 : index
    %c0_19 = arith.constant 0 : index
    %c0_20 = arith.constant 0 : index
    %c0_21 = arith.constant 0 : index
    %14 = vector.load %arg2[%c0_18, %c0_19, %c0_20, %c0_21] : memref<1x5x4x64xbf16, #tpu.memory_space<vmem>>, vector<1x4x4x64xbf16>
    %15 = vector.shape_cast %14 : vector<1x4x4x64xbf16> to vector<4x4x64xbf16>
    %16 = arith.maximumf %13, %15 : vector<4x4x64xbf16>
    %c0_22 = arith.constant 0 : index
    %c1_23 = arith.constant 1 : index
    %c0_24 = arith.constant 0 : index
    %c0_25 = arith.constant 0 : index
    %17 = vector.load %arg2[%c0_22, %c1_23, %c0_24, %c0_25] : memref<1x5x4x64xbf16, #tpu.memory_space<vmem>>, vector<1x4x4x64xbf16>
    %18 = vector.shape_cast %17 : vector<1x4x4x64xbf16> to vector<4x4x64xbf16>
    %19 = arith.maximumf %16, %18 : vector<4x4x64xbf16>
    %c0_26 = arith.constant 0 : index
    %c0_27 = arith.constant 0 : index
    %c0_28 = arith.constant 0 : index
    %c0_29 = arith.constant 0 : index
    %20 = vector.load %arg3[%c0_26, %c0_27, %c0_28, %c0_29] : memref<1x4x5x64xbf16, #tpu.memory_space<vmem>>, vector<1x4x4x64xbf16>
    %21 = vector.shape_cast %20 : vector<1x4x4x64xbf16> to vector<4x4x64xbf16>
    %22 = arith.maximumf %19, %21 : vector<4x4x64xbf16>
    %c0_30 = arith.constant 0 : index
    %c0_31 = arith.constant 0 : index
    %c1_32 = arith.constant 1 : index
    %c0_33 = arith.constant 0 : index
    %23 = vector.load %arg3[%c0_30, %c0_31, %c1_32, %c0_33] : memref<1x4x5x64xbf16, #tpu.memory_space<vmem>>, vector<1x4x4x64xbf16>
    %24 = vector.shape_cast %23 : vector<1x4x4x64xbf16> to vector<4x4x64xbf16>
    %25 = arith.maximumf %22, %24 : vector<4x4x64xbf16>
    %c0_34 = arith.constant 0 : index
    %c0_35 = arith.constant 0 : index
    %c0_36 = arith.constant 0 : index
    %c0_37 = arith.constant 0 : index
    %26 = vector.load %arg5[%c0_34, %c0_35, %c0_36, %c0_37] : memref<1x4x4x64xbf16, #tpu.memory_space<vmem>>, vector<1x4x4x64xbf16>
    %27 = vector.shape_cast %26 : vector<1x4x4x64xbf16> to vector<4x4x64xbf16>
    %28 = vector.shape_cast %25 : vector<4x4x64xbf16> to vector<1x4x4x64xbf16>
    tpu.vector_store %arg5[%c0_34, %c0_35, %c0_36, %c0_37], %28 {strides = array<i32>} : memref<1x4x4x64xbf16, #tpu.memory_space<vmem>>, vector<1x4x4x64xbf16>,
    return
  }
  func.func @transform_0(%arg0: i32) -> (i32, i32, i32, i32) {
    %c0_i32 = arith.constant 0 : i32
    %c0_i32_0 = arith.constant 0 : i32
    %c0_i32_1 = arith.constant 0 : i32
    %c0_i32_2 = arith.constant 0 : i32
    return %arg0, %c0_i32, %c0_i32_0, %c0_i32_1 : i32, i32, i32, i32
  }
  func.func @transform_1(%arg0: i32) -> (i32, i32, i32, i32) {
    %c0_i32 = arith.constant 0 : i32
    %c0_i32_0 = arith.constant 0 : i32
    %c0_i32_1 = arith.constant 0 : i32
    %c0_i32_2 = arith.constant 0 : i32
    return %arg0, %c0_i32, %c0_i32_0, %c0_i32_1 : i32, i32, i32, i32
  }
  func.func @transform_2(%arg0: i32) -> (i32, i32, i32, i32) {
    %c0_i32 = arith.constant 0 : i32
    %c0_i32_0 = arith.constant 0 : i32
    %c0_i32_1 = arith.constant 0 : i32
    %c0_i32_2 = arith.constant 0 : i32
    return %arg0, %c0_i32, %c0_i32_0, %c0_i32_1 : i32, i32, i32, i32
  }
  func.func @transform_3(%arg0: i32) -> (i32, i32, i32, i32) {
    %c0_i32 = arith.constant 0 : i32
    %c0_i32_0 = arith.constant 0 : i32
    %c0_i32_1 = arith.constant 0 : i32
    %c0_i32_2 = arith.constant 0 : i32
    return %arg0, %c0_i32, %c0_i32_0, %c0_i32_1 : i32, i32, i32, i32
  }
  func.func @transform_4(%arg0: i32) -> (i32, i32, i32, i32) {
    %c0_i32 = arith.constant 0 : i32
    %c0_i32_0 = arith.constant 0 : i32
    %c0_i32_1 = arith.constant 0 : i32
    %c0_i32_2 = arith.constant 0 : i32
    return %arg0, %c0_i32, %c0_i32_0, %c0_i32_1 : i32, i32, i32, i32
  }
}

module attributes {stable_mosaic.version = 11 : i64} {
  func.func @kernel(%arg0: i32, %arg1: i32, %arg2: i32, %arg3: memref<32x576xbf16, #tpu.memory_space<vmem>>, %arg4: memref<576x128xbf16, #tpu.memory_space<vmem>>, %arg5: memref<32x64xbf16, #tpu.memory_space<vmem>>, %arg6: memref<1x2x64xf32, #tpu.memory_space<vmem>>, %arg7: memref<32x128xf32, #tpu.memory_space<vmem>>) attributes {dimension_semantics = [#tpu.dimension_semantics<parallel>, #tpu.dimension_semantics<parallel>, #tpu.dimension_semantics<arbitrary>], iteration_bounds = array<i64: 1, 1, 1>, scalar_prefetch = 0 : i64, scratch_operands = 1 : i64, tpu.core_type = #tpu.core_type<tc>, window_params = [{transform_indices = @transform_0, window_bounds = array<i64: 32, 576>}, {transform_indices = @transform_1, window_bounds = array<i64: 576, 128>}, {transform_indices = @transform_2, window_bounds = array<i64: 32, 64>}, {transform_indices = @transform_3, window_bounds = array<i64: 1, 2, 64>}]} {
    %c32_i32 = arith.constant 32 : i32
    %0 = arith.muli %arg0, %c32_i32 : i32
    %c0_i32 = arith.constant 0 : i32
    %1 = arith.cmpi eq, %arg2, %c0_i32 : i32
    %2 = arith.extui %1 : i1 to i32
    %c0_i32_0 = arith.constant 0 : i32
    %3 = arith.cmpi ne, %2, %c0_i32_0 : i32
    scf.if %3 {
      %cst_10 = arith.constant 0.000000e+00 : f32
      %13 = vector.broadcast %cst_10 : f32 to vector<32x128xf32>
      %c0_11 = arith.constant 0 : index
      %c0_12 = arith.constant 0 : index
      %14 = vector.load %arg7[%c0_11, %c0_12] : memref<32x128xf32, #tpu.memory_space<vmem>>, vector<32x128xf32>
      tpu.vector_store %arg7[%c0_11, %c0_12], %13 {strides = array<i32>} : memref<32x128xf32, #tpu.memory_space<vmem>>, vector<32x128xf32>,
    } else {
    }
    %c0 = arith.constant 0 : index
    %c0_1 = arith.constant 0 : index
    %4 = vector.load %arg7[%c0, %c0_1] : memref<32x128xf32, #tpu.memory_space<vmem>>, vector<32x128xf32>
    %c0_2 = arith.constant 0 : index
    %c0_3 = arith.constant 0 : index
    %5 = vector.load %arg3[%c0_2, %c0_3] : memref<32x576xbf16, #tpu.memory_space<vmem>>, vector<32x576xbf16>
    %c0_4 = arith.constant 0 : index
    %c0_5 = arith.constant 0 : index
    %6 = vector.load %arg4[%c0_4, %c0_5] : memref<576x128xbf16, #tpu.memory_space<vmem>>, vector<576x128xbf16>
    %cst = arith.constant dense<0.000000e+00> : vector<32x128xf32>
    %7 = tpu.matmul %5, %6, %cst {dimension_numbers = #tpu.dot_dimension_numbers<[1], [0], [0], [1], [0, 0, 1, 1], [], []>} : vector<32x576xbf16>, vector<576x128xbf16>, vector<32x128xf32> -> vector<32x128xf32>
    %8 = arith.addf %4, %7 : vector<32x128xf32>
    %c0_6 = arith.constant 0 : index
    %c0_7 = arith.constant 0 : index
    %9 = vector.load %arg7[%c0_6, %c0_7] : memref<32x128xf32, #tpu.memory_space<vmem>>, vector<32x128xf32>
    tpu.vector_store %arg7[%c0_6, %c0_7], %8 {strides = array<i32>} : memref<32x128xf32, #tpu.memory_space<vmem>>, vector<32x128xf32>,
    %c0_i32_8 = arith.constant 0 : i32
    %10 = arith.cmpi eq, %arg2, %c0_i32_8 : i32
    %11 = arith.extui %10 : i1 to i32
    %c0_i32_9 = arith.constant 0 : i32
    %12 = arith.cmpi ne, %11, %c0_i32_9 : i32
    scf.if %12 {
      %c0_10 = arith.constant 0 : index
      %c0_11 = arith.constant 0 : index
      %13 = vector.load %arg7[%c0_10, %c0_11] : memref<32x128xf32, #tpu.memory_space<vmem>>, vector<32x128xf32>
      %14 = vector.extract_strided_slice %13 {offsets = [0, 0], sizes = [32, 64], strides = [1, 1]} : vector<32x128xf32> to vector<32x64xf32>
      %15 = arith.truncf %14 : vector<32x64xf32> to vector<32x64xbf16>
      %c0_12 = arith.constant 0 : index
      %c0_13 = arith.constant 0 : index
      %16 = vector.load %arg5[%c0_12, %c0_13] : memref<32x64xbf16, #tpu.memory_space<vmem>>, vector<32x64xbf16>
      tpu.vector_store %arg5[%c0_12, %c0_13], %15 {strides = array<i32>} : memref<32x64xbf16, #tpu.memory_space<vmem>>, vector<32x64xbf16>,
      %17 = tpu.iota {dimensions = array<i32: 0>} : vector<32x64xi32>
      %18 = vector.broadcast %0 : i32 to vector<32x64xi32>
      %19 = arith.addi %17, %18 : vector<32x64xi32>
      %c32_i32_14 = arith.constant 32 : i32
      %20 = vector.broadcast %c32_i32_14 : i32 to vector<32x64xi32>
      %21 = arith.cmpi slt, %19, %20 : vector<32x64xi32>
      %cst_15 = arith.constant 0.000000e+00 : f32
      %22 = vector.broadcast %cst_15 : f32 to vector<32x64xf32>
      %23 = arith.select %21, %14, %22 : vector<32x64xi1>, vector<32x64xf32>
      %cst_16 = arith.constant dense<0.000000e+00> : vector<64xf32>
      %24 = vector.multi_reduction <add>, %23, %cst_16 [0] : vector<32x64xf32> to vector<64xf32>
      %25 = vector.shape_cast %24 : vector<64xf32> to vector<1x64xf32>
      %26 = arith.mulf %23, %23 : vector<32x64xf32>
      %cst_17 = arith.constant dense<0.000000e+00> : vector<64xf32>
      %27 = vector.multi_reduction <add>, %26, %cst_17 [0] : vector<32x64xf32> to vector<64xf32>
      %28 = vector.shape_cast %27 : vector<64xf32> to vector<1x64xf32>
      %29 = tpu.concatenate %25, %28 in 0 : vector<1x64xf32>, vector<1x64xf32> -> vector<2x64xf32>
      %c0_18 = arith.constant 0 : index
      %c0_19 = arith.constant 0 : index
      %c0_20 = arith.constant 0 : index
      %30 = vector.load %arg6[%c0_18, %c0_19, %c0_20] : memref<1x2x64xf32, #tpu.memory_space<vmem>>, vector<1x2x64xf32>
      %31 = vector.shape_cast %30 : vector<1x2x64xf32> to vector<2x64xf32>
      %32 = vector.shape_cast %29 : vector<2x64xf32> to vector<1x2x64xf32>
      tpu.vector_store %arg6[%c0_18, %c0_19, %c0_20], %32 {strides = array<i32>} : memref<1x2x64xf32, #tpu.memory_space<vmem>>, vector<1x2x64xf32>,
    } else {
    }
    return
  }
  func.func @transform_0(%arg0: i32, %arg1: i32, %arg2: i32) -> (i32, i32) {
    %c0_i32 = arith.constant 0 : i32
    return %arg0, %arg2 : i32, i32
  }
  func.func @transform_1(%arg0: i32, %arg1: i32, %arg2: i32) -> (i32, i32) {
    %c0_i32 = arith.constant 0 : i32
    return %arg2, %arg1 : i32, i32
  }
  func.func @transform_2(%arg0: i32, %arg1: i32, %arg2: i32) -> (i32, i32) {
    %c0_i32 = arith.constant 0 : i32
    return %arg0, %arg1 : i32, i32
  }
  func.func @transform_3(%arg0: i32, %arg1: i32, %arg2: i32) -> (i32, i32, i32) {
    %c0_i32 = arith.constant 0 : i32
    %c0_i32_0 = arith.constant 0 : i32
    return %arg0, %c0_i32, %arg1 : i32, i32, i32
  }
}

module attributes {stable_mosaic.version = 11 : i64} {
  func.func @kernel(%arg0: i32, %arg1: memref<16x128xbf16, #tpu.memory_space<vmem>>, %arg2: memref<1x128xf32, #tpu.memory_space<vmem>>, %arg3: memref<1x128xf32, #tpu.memory_space<vmem>>, %arg4: memref<16x128xbf16, #tpu.memory_space<vmem>>) attributes {dimension_semantics = [#tpu.dimension_semantics<parallel>], iteration_bounds = array<i64: 1>, scalar_prefetch = 0 : i64, scratch_operands = 0 : i64, tpu.core_type = #tpu.core_type<tc>, window_params = [{transform_indices = @transform_0, window_bounds = array<i64: 16, 128>}, {pipeline_mode = #tpu.pipeline_mode<synchronous>, transform_indices = @transform_1, window_bounds = array<i64: 1, 128>}, {pipeline_mode = #tpu.pipeline_mode<synchronous>, transform_indices = @transform_2, window_bounds = array<i64: 1, 128>}, {transform_indices = @transform_3, window_bounds = array<i64: 16, 128>}]} {
    %c0 = arith.constant 0 : index
    %c0_0 = arith.constant 0 : index
    %0 = vector.load %arg1[%c0, %c0_0] : memref<16x128xbf16, #tpu.memory_space<vmem>>, vector<16x128xbf16>
    %1 = arith.extf %0 : vector<16x128xbf16> to vector<16x128xf32>
    %c0_1 = arith.constant 0 : index
    %c0_2 = arith.constant 0 : index
    %2 = vector.load %arg2[%c0_1, %c0_2] : memref<1x128xf32, #tpu.memory_space<vmem>>, vector<1x128xf32>
    %3 = vector.broadcast %2 : vector<1x128xf32> to vector<16x128xf32>
    %4 = arith.mulf %1, %3 : vector<16x128xf32>
    %c0_3 = arith.constant 0 : index
    %c0_4 = arith.constant 0 : index
    %5 = vector.load %arg3[%c0_3, %c0_4] : memref<1x128xf32, #tpu.memory_space<vmem>>, vector<1x128xf32>
    %6 = vector.broadcast %5 : vector<1x128xf32> to vector<16x128xf32>
    %7 = arith.addf %4, %6 : vector<16x128xf32>
    %cst = arith.constant 0.000000e+00 : f32
    %8 = vector.broadcast %cst : f32 to vector<16x128xf32>
    %9 = arith.maximumf %7, %8 : vector<16x128xf32>
    %10 = arith.truncf %9 : vector<16x128xf32> to vector<16x128xbf16>
    %c0_5 = arith.constant 0 : index
    %c0_6 = arith.constant 0 : index
    %11 = vector.load %arg4[%c0_5, %c0_6] : memref<16x128xbf16, #tpu.memory_space<vmem>>, vector<16x128xbf16>
    tpu.vector_store %arg4[%c0_5, %c0_6], %10 {strides = array<i32>} : memref<16x128xbf16, #tpu.memory_space<vmem>>, vector<16x128xbf16>,
    return
  }
  func.func @transform_0(%arg0: i32) -> (i32, i32) {
    %c0_i32 = arith.constant 0 : i32
    %c0_i32_0 = arith.constant 0 : i32
    return %arg0, %c0_i32 : i32, i32
  }
  func.func @transform_1(%arg0: i32) -> (i32, i32) {
    %c0_i32 = arith.constant 0 : i32
    %c0_i32_0 = arith.constant 0 : i32
    %c0_i32_1 = arith.constant 0 : i32
    return %c0_i32, %c0_i32_0 : i32, i32
  }
  func.func @transform_2(%arg0: i32) -> (i32, i32) {
    %c0_i32 = arith.constant 0 : i32
    %c0_i32_0 = arith.constant 0 : i32
    %c0_i32_1 = arith.constant 0 : i32
    return %c0_i32, %c0_i32_0 : i32, i32
  }
  func.func @transform_3(%arg0: i32) -> (i32, i32) {
    %c0_i32 = arith.constant 0 : i32
    %c0_i32_0 = arith.constant 0 : i32
    return %arg0, %c0_i32 : i32, i32
  }
}

module attributes {stable_mosaic.version = 11 : i64} {
  func.func @kernel(%arg0: i32, %arg1: memref<16x128xbf16, #tpu.memory_space<vmem>>, %arg2: memref<16x128xbf16, #tpu.memory_space<vmem>>, %arg3: memref<1x128xf32, #tpu.memory_space<vmem>>, %arg4: memref<1x128xf32, #tpu.memory_space<vmem>>, %arg5: memref<16x128xbf16, #tpu.memory_space<vmem>>) attributes {dimension_semantics = [#tpu.dimension_semantics<parallel>], iteration_bounds = array<i64: 1>, scalar_prefetch = 0 : i64, scratch_operands = 0 : i64, tpu.core_type = #tpu.core_type<tc>, window_params = [{transform_indices = @transform_0, window_bounds = array<i64: 16, 128>}, {transform_indices = @transform_1, window_bounds = array<i64: 16, 128>}, {pipeline_mode = #tpu.pipeline_mode<synchronous>, transform_indices = @transform_2, window_bounds = array<i64: 1, 128>}, {pipeline_mode = #tpu.pipeline_mode<synchronous>, transform_indices = @transform_3, window_bounds = array<i64: 1, 128>}, {transform_indices = @transform_4, window_bounds = array<i64: 16, 128>}]} {
    %c0 = arith.constant 0 : index
    %c0_0 = arith.constant 0 : index
    %0 = vector.load %arg1[%c0, %c0_0] : memref<16x128xbf16, #tpu.memory_space<vmem>>, vector<16x128xbf16>
    %1 = arith.extf %0 : vector<16x128xbf16> to vector<16x128xf32>
    %c0_1 = arith.constant 0 : index
    %c0_2 = arith.constant 0 : index
    %2 = vector.load %arg3[%c0_1, %c0_2] : memref<1x128xf32, #tpu.memory_space<vmem>>, vector<1x128xf32>
    %3 = vector.broadcast %2 : vector<1x128xf32> to vector<16x128xf32>
    %4 = arith.mulf %1, %3 : vector<16x128xf32>
    %c0_3 = arith.constant 0 : index
    %c0_4 = arith.constant 0 : index
    %5 = vector.load %arg4[%c0_3, %c0_4] : memref<1x128xf32, #tpu.memory_space<vmem>>, vector<1x128xf32>
    %6 = vector.broadcast %5 : vector<1x128xf32> to vector<16x128xf32>
    %7 = arith.addf %4, %6 : vector<16x128xf32>
    %c0_5 = arith.constant 0 : index
    %c0_6 = arith.constant 0 : index
    %8 = vector.load %arg2[%c0_5, %c0_6] : memref<16x128xbf16, #tpu.memory_space<vmem>>, vector<16x128xbf16>
    %9 = arith.extf %8 : vector<16x128xbf16> to vector<16x128xf32>
    %10 = arith.addf %7, %9 : vector<16x128xf32>
    %cst = arith.constant 0.000000e+00 : f32
    %11 = vector.broadcast %cst : f32 to vector<16x128xf32>
    %12 = arith.maximumf %10, %11 : vector<16x128xf32>
    %13 = arith.truncf %12 : vector<16x128xf32> to vector<16x128xbf16>
    %c0_7 = arith.constant 0 : index
    %c0_8 = arith.constant 0 : index
    %14 = vector.load %arg5[%c0_7, %c0_8] : memref<16x128xbf16, #tpu.memory_space<vmem>>, vector<16x128xbf16>
    tpu.vector_store %arg5[%c0_7, %c0_8], %13 {strides = array<i32>} : memref<16x128xbf16, #tpu.memory_space<vmem>>, vector<16x128xbf16>,
    return
  }
  func.func @transform_0(%arg0: i32) -> (i32, i32) {
    %c0_i32 = arith.constant 0 : i32
    %c0_i32_0 = arith.constant 0 : i32
    return %arg0, %c0_i32 : i32, i32
  }
  func.func @transform_1(%arg0: i32) -> (i32, i32) {
    %c0_i32 = arith.constant 0 : i32
    %c0_i32_0 = arith.constant 0 : i32
    return %arg0, %c0_i32 : i32, i32
  }
  func.func @transform_2(%arg0: i32) -> (i32, i32) {
    %c0_i32 = arith.constant 0 : i32
    %c0_i32_0 = arith.constant 0 : i32
    %c0_i32_1 = arith.constant 0 : i32
    return %c0_i32, %c0_i32_0 : i32, i32
  }
  func.func @transform_3(%arg0: i32) -> (i32, i32) {
    %c0_i32 = arith.constant 0 : i32
    %c0_i32_0 = arith.constant 0 : i32
    %c0_i32_1 = arith.constant 0 : i32
    return %c0_i32, %c0_i32_0 : i32, i32
  }
  func.func @transform_4(%arg0: i32) -> (i32, i32) {
    %c0_i32 = arith.constant 0 : i32
    %c0_i32_0 = arith.constant 0 : i32
    return %arg0, %c0_i32 : i32, i32
  }
}

module attributes {stable_mosaic.version = 11 : i64} {
  func.func @kernel(%arg0: i32, %arg1: i32, %arg2: i32, %arg3: memref<8x64xbf16, #tpu.memory_space<vmem>>, %arg4: memref<64x128xbf16, #tpu.memory_space<vmem>>, %arg5: memref<8x128xbf16, #tpu.memory_space<vmem>>, %arg6: memref<1x2x128xf32, #tpu.memory_space<vmem>>, %arg7: memref<8x128xf32, #tpu.memory_space<vmem>>) attributes {dimension_semantics = [#tpu.dimension_semantics<parallel>, #tpu.dimension_semantics<parallel>, #tpu.dimension_semantics<arbitrary>], iteration_bounds = array<i64: 1, 1, 1>, scalar_prefetch = 0 : i64, scratch_operands = 1 : i64, tpu.core_type = #tpu.core_type<tc>, window_params = [{transform_indices = @transform_0, window_bounds = array<i64: 8, 64>}, {transform_indices = @transform_1, window_bounds = array<i64: 64, 128>}, {transform_indices = @transform_2, window_bounds = array<i64: 8, 128>}, {transform_indices = @transform_3, window_bounds = array<i64: 1, 2, 128>}]} {
    %c8_i32 = arith.constant 8 : i32
    %0 = arith.muli %arg0, %c8_i32 : i32
    %c0_i32 = arith.constant 0 : i32
    %1 = arith.cmpi eq, %arg2, %c0_i32 : i32
    %2 = arith.extui %1 : i1 to i32
    %c0_i32_0 = arith.constant 0 : i32
    %3 = arith.cmpi ne, %2, %c0_i32_0 : i32
    scf.if %3 {
      %cst_10 = arith.constant 0.000000e+00 : f32
      %13 = vector.broadcast %cst_10 : f32 to vector<8x128xf32>
      %c0_11 = arith.constant 0 : index
      %c0_12 = arith.constant 0 : index
      %14 = vector.load %arg7[%c0_11, %c0_12] : memref<8x128xf32, #tpu.memory_space<vmem>>, vector<8x128xf32>
      tpu.vector_store %arg7[%c0_11, %c0_12], %13 {strides = array<i32>} : memref<8x128xf32, #tpu.memory_space<vmem>>, vector<8x128xf32>,
    } else {
    }
    %c0 = arith.constant 0 : index
    %c0_1 = arith.constant 0 : index
    %4 = vector.load %arg7[%c0, %c0_1] : memref<8x128xf32, #tpu.memory_space<vmem>>, vector<8x128xf32>
    %c0_2 = arith.constant 0 : index
    %c0_3 = arith.constant 0 : index
    %5 = vector.load %arg3[%c0_2, %c0_3] : memref<8x64xbf16, #tpu.memory_space<vmem>>, vector<8x64xbf16>
    %c0_4 = arith.constant 0 : index
    %c0_5 = arith.constant 0 : index
    %6 = vector.load %arg4[%c0_4, %c0_5] : memref<64x128xbf16, #tpu.memory_space<vmem>>, vector<64x128xbf16>
    %cst = arith.constant dense<0.000000e+00> : vector<8x128xf32>
    %7 = tpu.matmul %5, %6, %cst {dimension_numbers = #tpu.dot_dimension_numbers<[1], [0], [0], [1], [0, 0, 1, 1], [], []>} : vector<8x64xbf16>, vector<64x128xbf16>, vector<8x128xf32> -> vector<8x128xf32>
    %8 = arith.addf %4, %7 : vector<8x128xf32>
    %c0_6 = arith.constant 0 : index
    %c0_7 = arith.constant 0 : index
    %9 = vector.load %arg7[%c0_6, %c0_7] : memref<8x128xf32, #tpu.memory_space<vmem>>, vector<8x128xf32>
    tpu.vector_store %arg7[%c0_6, %c0_7], %8 {strides = array<i32>} : memref<8x128xf32, #tpu.memory_space<vmem>>, vector<8x128xf32>,
    %c0_i32_8 = arith.constant 0 : i32
    %10 = arith.cmpi eq, %arg2, %c0_i32_8 : i32
    %11 = arith.extui %10 : i1 to i32
    %c0_i32_9 = arith.constant 0 : i32
    %12 = arith.cmpi ne, %11, %c0_i32_9 : i32
    scf.if %12 {
      %c0_10 = arith.constant 0 : index
      %c0_11 = arith.constant 0 : index
      %13 = vector.load %arg7[%c0_10, %c0_11] : memref<8x128xf32, #tpu.memory_space<vmem>>, vector<8x128xf32>
      %14 = arith.truncf %13 : vector<8x128xf32> to vector<8x128xbf16>
      %c0_12 = arith.constant 0 : index
      %c0_13 = arith.constant 0 : index
      %15 = vector.load %arg5[%c0_12, %c0_13] : memref<8x128xbf16, #tpu.memory_space<vmem>>, vector<8x128xbf16>
      tpu.vector_store %arg5[%c0_12, %c0_13], %14 {strides = array<i32>} : memref<8x128xbf16, #tpu.memory_space<vmem>>, vector<8x128xbf16>,
      %16 = tpu.iota {dimensions = array<i32: 0>} : vector<8x128xi32>
      %17 = vector.broadcast %0 : i32 to vector<8x128xi32>
      %18 = arith.addi %16, %17 : vector<8x128xi32>
      %c8_i32_14 = arith.constant 8 : i32
      %19 = vector.broadcast %c8_i32_14 : i32 to vector<8x128xi32>
      %20 = arith.cmpi slt, %18, %19 : vector<8x128xi32>
      %cst_15 = arith.constant 0.000000e+00 : f32
      %21 = vector.broadcast %cst_15 : f32 to vector<8x128xf32>
      %22 = arith.select %20, %13, %21 : vector<8x128xi1>, vector<8x128xf32>
      %cst_16 = arith.constant dense<0.000000e+00> : vector<128xf32>
      %23 = vector.multi_reduction <add>, %22, %cst_16 [0] : vector<8x128xf32> to vector<128xf32>
      %24 = vector.shape_cast %23 : vector<128xf32> to vector<1x128xf32>
      %25 = arith.mulf %22, %22 : vector<8x128xf32>
      %cst_17 = arith.constant dense<0.000000e+00> : vector<128xf32>
      %26 = vector.multi_reduction <add>, %25, %cst_17 [0] : vector<8x128xf32> to vector<128xf32>
      %27 = vector.shape_cast %26 : vector<128xf32> to vector<1x128xf32>
      %28 = tpu.concatenate %24, %27 in 0 : vector<1x128xf32>, vector<1x128xf32> -> vector<2x128xf32>
      %c0_18 = arith.constant 0 : index
      %c0_19 = arith.constant 0 : index
      %c0_20 = arith.constant 0 : index
      %29 = vector.load %arg6[%c0_18, %c0_19, %c0_20] : memref<1x2x128xf32, #tpu.memory_space<vmem>>, vector<1x2x128xf32>
      %30 = vector.shape_cast %29 : vector<1x2x128xf32> to vector<2x128xf32>
      %31 = vector.shape_cast %28 : vector<2x128xf32> to vector<1x2x128xf32>
      tpu.vector_store %arg6[%c0_18, %c0_19, %c0_20], %31 {strides = array<i32>} : memref<1x2x128xf32, #tpu.memory_space<vmem>>, vector<1x2x128xf32>,
    } else {
    }
    return
  }
  func.func @transform_0(%arg0: i32, %arg1: i32, %arg2: i32) -> (i32, i32) {
    %c0_i32 = arith.constant 0 : i32
    return %arg0, %arg2 : i32, i32
  }
  func.func @transform_1(%arg0: i32, %arg1: i32, %arg2: i32) -> (i32, i32) {
    %c0_i32 = arith.constant 0 : i32
    return %arg2, %arg1 : i32, i32
  }
  func.func @transform_2(%arg0: i32, %arg1: i32, %arg2: i32) -> (i32, i32) {
    %c0_i32 = arith.constant 0 : i32
    return %arg0, %arg1 : i32, i32
  }
  func.func @transform_3(%arg0: i32, %arg1: i32, %arg2: i32) -> (i32, i32, i32) {
    %c0_i32 = arith.constant 0 : i32
    %c0_i32_0 = arith.constant 0 : i32
    return %arg0, %c0_i32, %arg1 : i32, i32, i32
  }
}

module attributes {stable_mosaic.version = 11 : i64} {
  func.func @kernel(%arg0: i32, %arg1: memref<8x128xbf16, #tpu.memory_space<vmem>>, %arg2: memref<1x128xf32, #tpu.memory_space<vmem>>, %arg3: memref<1x128xf32, #tpu.memory_space<vmem>>, %arg4: memref<8x128xbf16, #tpu.memory_space<vmem>>) attributes {dimension_semantics = [#tpu.dimension_semantics<parallel>], iteration_bounds = array<i64: 1>, scalar_prefetch = 0 : i64, scratch_operands = 0 : i64, tpu.core_type = #tpu.core_type<tc>, window_params = [{transform_indices = @transform_0, window_bounds = array<i64: 8, 128>}, {pipeline_mode = #tpu.pipeline_mode<synchronous>, transform_indices = @transform_1, window_bounds = array<i64: 1, 128>}, {pipeline_mode = #tpu.pipeline_mode<synchronous>, transform_indices = @transform_2, window_bounds = array<i64: 1, 128>}, {transform_indices = @transform_3, window_bounds = array<i64: 8, 128>}]} {
    %c0 = arith.constant 0 : index
    %c0_0 = arith.constant 0 : index
    %0 = vector.load %arg1[%c0, %c0_0] : memref<8x128xbf16, #tpu.memory_space<vmem>>, vector<8x128xbf16>
    %1 = arith.extf %0 : vector<8x128xbf16> to vector<8x128xf32>
    %c0_1 = arith.constant 0 : index
    %c0_2 = arith.constant 0 : index
    %2 = vector.load %arg2[%c0_1, %c0_2] : memref<1x128xf32, #tpu.memory_space<vmem>>, vector<1x128xf32>
    %3 = vector.broadcast %2 : vector<1x128xf32> to vector<8x128xf32>
    %4 = arith.mulf %1, %3 : vector<8x128xf32>
    %c0_3 = arith.constant 0 : index
    %c0_4 = arith.constant 0 : index
    %5 = vector.load %arg3[%c0_3, %c0_4] : memref<1x128xf32, #tpu.memory_space<vmem>>, vector<1x128xf32>
    %6 = vector.broadcast %5 : vector<1x128xf32> to vector<8x128xf32>
    %7 = arith.addf %4, %6 : vector<8x128xf32>
    %cst = arith.constant 0.000000e+00 : f32
    %8 = vector.broadcast %cst : f32 to vector<8x128xf32>
    %9 = arith.maximumf %7, %8 : vector<8x128xf32>
    %10 = arith.truncf %9 : vector<8x128xf32> to vector<8x128xbf16>
    %c0_5 = arith.constant 0 : index
    %c0_6 = arith.constant 0 : index
    %11 = vector.load %arg4[%c0_5, %c0_6] : memref<8x128xbf16, #tpu.memory_space<vmem>>, vector<8x128xbf16>
    tpu.vector_store %arg4[%c0_5, %c0_6], %10 {strides = array<i32>} : memref<8x128xbf16, #tpu.memory_space<vmem>>, vector<8x128xbf16>,
    return
  }
  func.func @transform_0(%arg0: i32) -> (i32, i32) {
    %c0_i32 = arith.constant 0 : i32
    %c0_i32_0 = arith.constant 0 : i32
    return %arg0, %c0_i32 : i32, i32
  }
  func.func @transform_1(%arg0: i32) -> (i32, i32) {
    %c0_i32 = arith.constant 0 : i32
    %c0_i32_0 = arith.constant 0 : i32
    %c0_i32_1 = arith.constant 0 : i32
    return %c0_i32, %c0_i32_0 : i32, i32
  }
  func.func @transform_2(%arg0: i32) -> (i32, i32) {
    %c0_i32 = arith.constant 0 : i32
    %c0_i32_0 = arith.constant 0 : i32
    %c0_i32_1 = arith.constant 0 : i32
    return %c0_i32, %c0_i32_0 : i32, i32
  }
  func.func @transform_3(%arg0: i32) -> (i32, i32) {
    %c0_i32 = arith.constant 0 : i32
    %c0_i32_0 = arith.constant 0 : i32
    return %arg0, %c0_i32 : i32, i32
  }
}

module attributes {stable_mosaic.version = 11 : i64} {
  func.func @kernel(%arg0: i32, %arg1: i32, %arg2: i32, %arg3: memref<8x576xbf16, #tpu.memory_space<vmem>>, %arg4: memref<576x128xbf16, #tpu.memory_space<vmem>>, %arg5: memref<8x128xbf16, #tpu.memory_space<vmem>>, %arg6: memref<1x2x128xf32, #tpu.memory_space<vmem>>, %arg7: memref<8x128xf32, #tpu.memory_space<vmem>>) attributes {dimension_semantics = [#tpu.dimension_semantics<parallel>, #tpu.dimension_semantics<parallel>, #tpu.dimension_semantics<arbitrary>], iteration_bounds = array<i64: 1, 1, 1>, scalar_prefetch = 0 : i64, scratch_operands = 1 : i64, tpu.core_type = #tpu.core_type<tc>, window_params = [{transform_indices = @transform_0, window_bounds = array<i64: 8, 576>}, {transform_indices = @transform_1, window_bounds = array<i64: 576, 128>}, {transform_indices = @transform_2, window_bounds = array<i64: 8, 128>}, {transform_indices = @transform_3, window_bounds = array<i64: 1, 2, 128>}]} {
    %c8_i32 = arith.constant 8 : i32
    %0 = arith.muli %arg0, %c8_i32 : i32
    %c0_i32 = arith.constant 0 : i32
    %1 = arith.cmpi eq, %arg2, %c0_i32 : i32
    %2 = arith.extui %1 : i1 to i32
    %c0_i32_0 = arith.constant 0 : i32
    %3 = arith.cmpi ne, %2, %c0_i32_0 : i32
    scf.if %3 {
      %cst_10 = arith.constant 0.000000e+00 : f32
      %13 = vector.broadcast %cst_10 : f32 to vector<8x128xf32>
      %c0_11 = arith.constant 0 : index
      %c0_12 = arith.constant 0 : index
      %14 = vector.load %arg7[%c0_11, %c0_12] : memref<8x128xf32, #tpu.memory_space<vmem>>, vector<8x128xf32>
      tpu.vector_store %arg7[%c0_11, %c0_12], %13 {strides = array<i32>} : memref<8x128xf32, #tpu.memory_space<vmem>>, vector<8x128xf32>,
    } else {
    }
    %c0 = arith.constant 0 : index
    %c0_1 = arith.constant 0 : index
    %4 = vector.load %arg7[%c0, %c0_1] : memref<8x128xf32, #tpu.memory_space<vmem>>, vector<8x128xf32>
    %c0_2 = arith.constant 0 : index
    %c0_3 = arith.constant 0 : index
    %5 = vector.load %arg3[%c0_2, %c0_3] : memref<8x576xbf16, #tpu.memory_space<vmem>>, vector<8x576xbf16>
    %c0_4 = arith.constant 0 : index
    %c0_5 = arith.constant 0 : index
    %6 = vector.load %arg4[%c0_4, %c0_5] : memref<576x128xbf16, #tpu.memory_space<vmem>>, vector<576x128xbf16>
    %cst = arith.constant dense<0.000000e+00> : vector<8x128xf32>
    %7 = tpu.matmul %5, %6, %cst {dimension_numbers = #tpu.dot_dimension_numbers<[1], [0], [0], [1], [0, 0, 1, 1], [], []>} : vector<8x576xbf16>, vector<576x128xbf16>, vector<8x128xf32> -> vector<8x128xf32>
    %8 = arith.addf %4, %7 : vector<8x128xf32>
    %c0_6 = arith.constant 0 : index
    %c0_7 = arith.constant 0 : index
    %9 = vector.load %arg7[%c0_6, %c0_7] : memref<8x128xf32, #tpu.memory_space<vmem>>, vector<8x128xf32>
    tpu.vector_store %arg7[%c0_6, %c0_7], %8 {strides = array<i32>} : memref<8x128xf32, #tpu.memory_space<vmem>>, vector<8x128xf32>,
    %c0_i32_8 = arith.constant 0 : i32
    %10 = arith.cmpi eq, %arg2, %c0_i32_8 : i32
    %11 = arith.extui %10 : i1 to i32
    %c0_i32_9 = arith.constant 0 : i32
    %12 = arith.cmpi ne, %11, %c0_i32_9 : i32
    scf.if %12 {
      %c0_10 = arith.constant 0 : index
      %c0_11 = arith.constant 0 : index
      %13 = vector.load %arg7[%c0_10, %c0_11] : memref<8x128xf32, #tpu.memory_space<vmem>>, vector<8x128xf32>
      %14 = arith.truncf %13 : vector<8x128xf32> to vector<8x128xbf16>
      %c0_12 = arith.constant 0 : index
      %c0_13 = arith.constant 0 : index
      %15 = vector.load %arg5[%c0_12, %c0_13] : memref<8x128xbf16, #tpu.memory_space<vmem>>, vector<8x128xbf16>
      tpu.vector_store %arg5[%c0_12, %c0_13], %14 {strides = array<i32>} : memref<8x128xbf16, #tpu.memory_space<vmem>>, vector<8x128xbf16>,
      %16 = tpu.iota {dimensions = array<i32: 0>} : vector<8x128xi32>
      %17 = vector.broadcast %0 : i32 to vector<8x128xi32>
      %18 = arith.addi %16, %17 : vector<8x128xi32>
      %c8_i32_14 = arith.constant 8 : i32
      %19 = vector.broadcast %c8_i32_14 : i32 to vector<8x128xi32>
      %20 = arith.cmpi slt, %18, %19 : vector<8x128xi32>
      %cst_15 = arith.constant 0.000000e+00 : f32
      %21 = vector.broadcast %cst_15 : f32 to vector<8x128xf32>
      %22 = arith.select %20, %13, %21 : vector<8x128xi1>, vector<8x128xf32>
      %cst_16 = arith.constant dense<0.000000e+00> : vector<128xf32>
      %23 = vector.multi_reduction <add>, %22, %cst_16 [0] : vector<8x128xf32> to vector<128xf32>
      %24 = vector.shape_cast %23 : vector<128xf32> to vector<1x128xf32>
      %25 = arith.mulf %22, %22 : vector<8x128xf32>
      %cst_17 = arith.constant dense<0.000000e+00> : vector<128xf32>
      %26 = vector.multi_reduction <add>, %25, %cst_17 [0] : vector<8x128xf32> to vector<128xf32>
      %27 = vector.shape_cast %26 : vector<128xf32> to vector<1x128xf32>
      %28 = tpu.concatenate %24, %27 in 0 : vector<1x128xf32>, vector<1x128xf32> -> vector<2x128xf32>
      %c0_18 = arith.constant 0 : index
      %c0_19 = arith.constant 0 : index
      %c0_20 = arith.constant 0 : index
      %29 = vector.load %arg6[%c0_18, %c0_19, %c0_20] : memref<1x2x128xf32, #tpu.memory_space<vmem>>, vector<1x2x128xf32>
      %30 = vector.shape_cast %29 : vector<1x2x128xf32> to vector<2x128xf32>
      %31 = vector.shape_cast %28 : vector<2x128xf32> to vector<1x2x128xf32>
      tpu.vector_store %arg6[%c0_18, %c0_19, %c0_20], %31 {strides = array<i32>} : memref<1x2x128xf32, #tpu.memory_space<vmem>>, vector<1x2x128xf32>,
    } else {
    }
    return
  }
  func.func @transform_0(%arg0: i32, %arg1: i32, %arg2: i32) -> (i32, i32) {
    %c0_i32 = arith.constant 0 : i32
    return %arg0, %arg2 : i32, i32
  }
  func.func @transform_1(%arg0: i32, %arg1: i32, %arg2: i32) -> (i32, i32) {
    %c0_i32 = arith.constant 0 : i32
    return %arg2, %arg1 : i32, i32
  }
  func.func @transform_2(%arg0: i32, %arg1: i32, %arg2: i32) -> (i32, i32) {
    %c0_i32 = arith.constant 0 : i32
    return %arg0, %arg1 : i32, i32
  }
  func.func @transform_3(%arg0: i32, %arg1: i32, %arg2: i32) -> (i32, i32, i32) {
    %c0_i32 = arith.constant 0 : i32
    %c0_i32_0 = arith.constant 0 : i32
    return %arg0, %c0_i32, %arg1 : i32, i32, i32
  }
}

module attributes {stable_mosaic.version = 11 : i64} {
  func.func @kernel(%arg0: i32, %arg1: memref<8x128xbf16, #tpu.memory_space<vmem>>, %arg2: memref<8x128xbf16, #tpu.memory_space<vmem>>, %arg3: memref<1x128xf32, #tpu.memory_space<vmem>>, %arg4: memref<1x128xf32, #tpu.memory_space<vmem>>, %arg5: memref<1x128xf32, #tpu.memory_space<vmem>>, %arg6: memref<1x128xf32, #tpu.memory_space<vmem>>, %arg7: memref<8x128xbf16, #tpu.memory_space<vmem>>) attributes {dimension_semantics = [#tpu.dimension_semantics<parallel>], iteration_bounds = array<i64: 1>, scalar_prefetch = 0 : i64, scratch_operands = 0 : i64, tpu.core_type = #tpu.core_type<tc>, window_params = [{transform_indices = @transform_0, window_bounds = array<i64: 8, 128>}, {transform_indices = @transform_1, window_bounds = array<i64: 8, 128>}, {pipeline_mode = #tpu.pipeline_mode<synchronous>, transform_indices = @transform_2, window_bounds = array<i64: 1, 128>}, {pipeline_mode = #tpu.pipeline_mode<synchronous>, transform_indices = @transform_3, window_bounds = array<i64: 1, 128>}, {pipeline_mode = #tpu.pipeline_mode<synchronous>, transform_indices = @transform_4, window_bounds = array<i64: 1, 128>}, {pipeline_mode = #tpu.pipeline_mode<synchronous>, transform_indices = @transform_5, window_bounds = array<i64: 1, 128>}, {transform_indices = @transform_6, window_bounds = array<i64: 8, 128>}]} {
    %c0 = arith.constant 0 : index
    %c0_0 = arith.constant 0 : index
    %0 = vector.load %arg1[%c0, %c0_0] : memref<8x128xbf16, #tpu.memory_space<vmem>>, vector<8x128xbf16>
    %1 = arith.extf %0 : vector<8x128xbf16> to vector<8x128xf32>
    %c0_1 = arith.constant 0 : index
    %c0_2 = arith.constant 0 : index
    %2 = vector.load %arg3[%c0_1, %c0_2] : memref<1x128xf32, #tpu.memory_space<vmem>>, vector<1x128xf32>
    %3 = vector.broadcast %2 : vector<1x128xf32> to vector<8x128xf32>
    %4 = arith.mulf %1, %3 : vector<8x128xf32>
    %c0_3 = arith.constant 0 : index
    %c0_4 = arith.constant 0 : index
    %5 = vector.load %arg4[%c0_3, %c0_4] : memref<1x128xf32, #tpu.memory_space<vmem>>, vector<1x128xf32>
    %6 = vector.broadcast %5 : vector<1x128xf32> to vector<8x128xf32>
    %7 = arith.addf %4, %6 : vector<8x128xf32>
    %c0_5 = arith.constant 0 : index
    %c0_6 = arith.constant 0 : index
    %8 = vector.load %arg2[%c0_5, %c0_6] : memref<8x128xbf16, #tpu.memory_space<vmem>>, vector<8x128xbf16>
    %9 = arith.extf %8 : vector<8x128xbf16> to vector<8x128xf32>
    %c0_7 = arith.constant 0 : index
    %c0_8 = arith.constant 0 : index
    %10 = vector.load %arg5[%c0_7, %c0_8] : memref<1x128xf32, #tpu.memory_space<vmem>>, vector<1x128xf32>
    %11 = vector.broadcast %10 : vector<1x128xf32> to vector<8x128xf32>
    %12 = arith.mulf %9, %11 : vector<8x128xf32>
    %c0_9 = arith.constant 0 : index
    %c0_10 = arith.constant 0 : index
    %13 = vector.load %arg6[%c0_9, %c0_10] : memref<1x128xf32, #tpu.memory_space<vmem>>, vector<1x128xf32>
    %14 = vector.broadcast %13 : vector<1x128xf32> to vector<8x128xf32>
    %15 = arith.addf %12, %14 : vector<8x128xf32>
    %16 = arith.addf %7, %15 : vector<8x128xf32>
    %cst = arith.constant 0.000000e+00 : f32
    %17 = vector.broadcast %cst : f32 to vector<8x128xf32>
    %18 = arith.maximumf %16, %17 : vector<8x128xf32>
    %19 = arith.truncf %18 : vector<8x128xf32> to vector<8x128xbf16>
    %c0_11 = arith.constant 0 : index
    %c0_12 = arith.constant 0 : index
    %20 = vector.load %arg7[%c0_11, %c0_12] : memref<8x128xbf16, #tpu.memory_space<vmem>>, vector<8x128xbf16>
    tpu.vector_store %arg7[%c0_11, %c0_12], %19 {strides = array<i32>} : memref<8x128xbf16, #tpu.memory_space<vmem>>, vector<8x128xbf16>,
    return
  }
  func.func @transform_0(%arg0: i32) -> (i32, i32) {
    %c0_i32 = arith.constant 0 : i32
    %c0_i32_0 = arith.constant 0 : i32
    return %arg0, %c0_i32 : i32, i32
  }
  func.func @transform_1(%arg0: i32) -> (i32, i32) {
    %c0_i32 = arith.constant 0 : i32
    %c0_i32_0 = arith.constant 0 : i32
    return %arg0, %c0_i32 : i32, i32
  }
  func.func @transform_2(%arg0: i32) -> (i32, i32) {
    %c0_i32 = arith.constant 0 : i32
    %c0_i32_0 = arith.constant 0 : i32
    %c0_i32_1 = arith.constant 0 : i32
    return %c0_i32, %c0_i32_0 : i32, i32
  }
  func.func @transform_3(%arg0: i32) -> (i32, i32) {
    %c0_i32 = arith.constant 0 : i32
    %c0_i32_0 = arith.constant 0 : i32
    %c0_i32_1 = arith.constant 0 : i32
    return %c0_i32, %c0_i32_0 : i32, i32
  }
  func.func @transform_4(%arg0: i32) -> (i32, i32) {
    %c0_i32 = arith.constant 0 : i32
    %c0_i32_0 = arith.constant 0 : i32
    %c0_i32_1 = arith.constant 0 : i32
    return %c0_i32, %c0_i32_0 : i32, i32
  }
  func.func @transform_5(%arg0: i32) -> (i32, i32) {
    %c0_i32 = arith.constant 0 : i32
    %c0_i32_0 = arith.constant 0 : i32
    %c0_i32_1 = arith.constant 0 : i32
    return %c0_i32, %c0_i32_0 : i32, i32
  }
  func.func @transform_6(%arg0: i32) -> (i32, i32) {
    %c0_i32 = arith.constant 0 : i32
    %c0_i32_0 = arith.constant 0 : i32
    return %arg0, %c0_i32 : i32, i32
  }
}

module attributes {stable_mosaic.version = 11 : i64} {
  func.func @kernel(%arg0: i32, %arg1: memref<8x128xbf16, #tpu.memory_space<vmem>>, %arg2: memref<8x128xbf16, #tpu.memory_space<vmem>>, %arg3: memref<1x128xf32, #tpu.memory_space<vmem>>, %arg4: memref<1x128xf32, #tpu.memory_space<vmem>>, %arg5: memref<8x128xbf16, #tpu.memory_space<vmem>>) attributes {dimension_semantics = [#tpu.dimension_semantics<parallel>], iteration_bounds = array<i64: 1>, scalar_prefetch = 0 : i64, scratch_operands = 0 : i64, tpu.core_type = #tpu.core_type<tc>, window_params = [{transform_indices = @transform_0, window_bounds = array<i64: 8, 128>}, {transform_indices = @transform_1, window_bounds = array<i64: 8, 128>}, {pipeline_mode = #tpu.pipeline_mode<synchronous>, transform_indices = @transform_2, window_bounds = array<i64: 1, 128>}, {pipeline_mode = #tpu.pipeline_mode<synchronous>, transform_indices = @transform_3, window_bounds = array<i64: 1, 128>}, {transform_indices = @transform_4, window_bounds = array<i64: 8, 128>}]} {
    %c0 = arith.constant 0 : index
    %c0_0 = arith.constant 0 : index
    %0 = vector.load %arg1[%c0, %c0_0] : memref<8x128xbf16, #tpu.memory_space<vmem>>, vector<8x128xbf16>
    %1 = arith.extf %0 : vector<8x128xbf16> to vector<8x128xf32>
    %c0_1 = arith.constant 0 : index
    %c0_2 = arith.constant 0 : index
    %2 = vector.load %arg3[%c0_1, %c0_2] : memref<1x128xf32, #tpu.memory_space<vmem>>, vector<1x128xf32>
    %3 = vector.broadcast %2 : vector<1x128xf32> to vector<8x128xf32>
    %4 = arith.mulf %1, %3 : vector<8x128xf32>
    %c0_3 = arith.constant 0 : index
    %c0_4 = arith.constant 0 : index
    %5 = vector.load %arg4[%c0_3, %c0_4] : memref<1x128xf32, #tpu.memory_space<vmem>>, vector<1x128xf32>
    %6 = vector.broadcast %5 : vector<1x128xf32> to vector<8x128xf32>
    %7 = arith.addf %4, %6 : vector<8x128xf32>
    %c0_5 = arith.constant 0 : index
    %c0_6 = arith.constant 0 : index
    %8 = vector.load %arg2[%c0_5, %c0_6] : memref<8x128xbf16, #tpu.memory_space<vmem>>, vector<8x128xbf16>
    %9 = arith.extf %8 : vector<8x128xbf16> to vector<8x128xf32>
    %10 = arith.addf %7, %9 : vector<8x128xf32>
    %cst = arith.constant 0.000000e+00 : f32
    %11 = vector.broadcast %cst : f32 to vector<8x128xf32>
    %12 = arith.maximumf %10, %11 : vector<8x128xf32>
    %13 = arith.truncf %12 : vector<8x128xf32> to vector<8x128xbf16>
    %c0_7 = arith.constant 0 : index
    %c0_8 = arith.constant 0 : index
    %14 = vector.load %arg5[%c0_7, %c0_8] : memref<8x128xbf16, #tpu.memory_space<vmem>>, vector<8x128xbf16>
    tpu.vector_store %arg5[%c0_7, %c0_8], %13 {strides = array<i32>} : memref<8x128xbf16, #tpu.memory_space<vmem>>, vector<8x128xbf16>,
    return
  }
  func.func @transform_0(%arg0: i32) -> (i32, i32) {
    %c0_i32 = arith.constant 0 : i32
    %c0_i32_0 = arith.constant 0 : i32
    return %arg0, %c0_i32 : i32, i32
  }
  func.func @transform_1(%arg0: i32) -> (i32, i32) {
    %c0_i32 = arith.constant 0 : i32
    %c0_i32_0 = arith.constant 0 : i32
    return %arg0, %c0_i32 : i32, i32
  }
  func.func @transform_2(%arg0: i32) -> (i32, i32) {
    %c0_i32 = arith.constant 0 : i32
    %c0_i32_0 = arith.constant 0 : i32
    %c0_i32_1 = arith.constant 0 : i32
    return %c0_i32, %c0_i32_0 : i32, i32
  }
  func.func @transform_3(%arg0: i32) -> (i32, i32) {
    %c0_i32 = arith.constant 0 : i32
    %c0_i32_0 = arith.constant 0 : i32
    %c0_i32_1 = arith.constant 0 : i32
    return %c0_i32, %c0_i32_0 : i32, i32
  }
  func.func @transform_4(%arg0: i32) -> (i32, i32) {
    %c0_i32 = arith.constant 0 : i32
    %c0_i32_0 = arith.constant 0 : i32
    return %arg0, %c0_i32 : i32, i32
  }
}

module attributes {stable_mosaic.version = 11 : i64} {
  func.func @kernel(%arg0: i32, %arg1: i32, %arg2: i32, %arg3: memref<8x1152xbf16, #tpu.memory_space<vmem>>, %arg4: memref<1152x128xbf16, #tpu.memory_space<vmem>>, %arg5: memref<8x128xbf16, #tpu.memory_space<vmem>>, %arg6: memref<1x2x128xf32, #tpu.memory_space<vmem>>, %arg7: memref<8x128xf32, #tpu.memory_space<vmem>>) attributes {dimension_semantics = [#tpu.dimension_semantics<parallel>, #tpu.dimension_semantics<parallel>, #tpu.dimension_semantics<arbitrary>], iteration_bounds = array<i64: 1, 1, 1>, scalar_prefetch = 0 : i64, scratch_operands = 1 : i64, tpu.core_type = #tpu.core_type<tc>, window_params = [{transform_indices = @transform_0, window_bounds = array<i64: 8, 1152>}, {transform_indices = @transform_1, window_bounds = array<i64: 1152, 128>}, {transform_indices = @transform_2, window_bounds = array<i64: 8, 128>}, {transform_indices = @transform_3, window_bounds = array<i64: 1, 2, 128>}]} {
    %c8_i32 = arith.constant 8 : i32
    %0 = arith.muli %arg0, %c8_i32 : i32
    %c0_i32 = arith.constant 0 : i32
    %1 = arith.cmpi eq, %arg2, %c0_i32 : i32
    %2 = arith.extui %1 : i1 to i32
    %c0_i32_0 = arith.constant 0 : i32
    %3 = arith.cmpi ne, %2, %c0_i32_0 : i32
    scf.if %3 {
      %cst_10 = arith.constant 0.000000e+00 : f32
      %13 = vector.broadcast %cst_10 : f32 to vector<8x128xf32>
      %c0_11 = arith.constant 0 : index
      %c0_12 = arith.constant 0 : index
      %14 = vector.load %arg7[%c0_11, %c0_12] : memref<8x128xf32, #tpu.memory_space<vmem>>, vector<8x128xf32>
      tpu.vector_store %arg7[%c0_11, %c0_12], %13 {strides = array<i32>} : memref<8x128xf32, #tpu.memory_space<vmem>>, vector<8x128xf32>,
    } else {
    }
    %c0 = arith.constant 0 : index
    %c0_1 = arith.constant 0 : index
    %4 = vector.load %arg7[%c0, %c0_1] : memref<8x128xf32, #tpu.memory_space<vmem>>, vector<8x128xf32>
    %c0_2 = arith.constant 0 : index
    %c0_3 = arith.constant 0 : index
    %5 = vector.load %arg3[%c0_2, %c0_3] : memref<8x1152xbf16, #tpu.memory_space<vmem>>, vector<8x1152xbf16>
    %c0_4 = arith.constant 0 : index
    %c0_5 = arith.constant 0 : index
    %6 = vector.load %arg4[%c0_4, %c0_5] : memref<1152x128xbf16, #tpu.memory_space<vmem>>, vector<1152x128xbf16>
    %cst = arith.constant dense<0.000000e+00> : vector<8x128xf32>
    %7 = tpu.matmul %5, %6, %cst {dimension_numbers = #tpu.dot_dimension_numbers<[1], [0], [0], [1], [0, 0, 1, 1], [], []>} : vector<8x1152xbf16>, vector<1152x128xbf16>, vector<8x128xf32> -> vector<8x128xf32>
    %8 = arith.addf %4, %7 : vector<8x128xf32>
    %c0_6 = arith.constant 0 : index
    %c0_7 = arith.constant 0 : index
    %9 = vector.load %arg7[%c0_6, %c0_7] : memref<8x128xf32, #tpu.memory_space<vmem>>, vector<8x128xf32>
    tpu.vector_store %arg7[%c0_6, %c0_7], %8 {strides = array<i32>} : memref<8x128xf32, #tpu.memory_space<vmem>>, vector<8x128xf32>,
    %c0_i32_8 = arith.constant 0 : i32
    %10 = arith.cmpi eq, %arg2, %c0_i32_8 : i32
    %11 = arith.extui %10 : i1 to i32
    %c0_i32_9 = arith.constant 0 : i32
    %12 = arith.cmpi ne, %11, %c0_i32_9 : i32
    scf.if %12 {
      %c0_10 = arith.constant 0 : index
      %c0_11 = arith.constant 0 : index
      %13 = vector.load %arg7[%c0_10, %c0_11] : memref<8x128xf32, #tpu.memory_space<vmem>>, vector<8x128xf32>
      %14 = arith.truncf %13 : vector<8x128xf32> to vector<8x128xbf16>
      %c0_12 = arith.constant 0 : index
      %c0_13 = arith.constant 0 : index
      %15 = vector.load %arg5[%c0_12, %c0_13] : memref<8x128xbf16, #tpu.memory_space<vmem>>, vector<8x128xbf16>
      tpu.vector_store %arg5[%c0_12, %c0_13], %14 {strides = array<i32>} : memref<8x128xbf16, #tpu.memory_space<vmem>>, vector<8x128xbf16>,
      %16 = tpu.iota {dimensions = array<i32: 0>} : vector<8x128xi32>
      %17 = vector.broadcast %0 : i32 to vector<8x128xi32>
      %18 = arith.addi %16, %17 : vector<8x128xi32>
      %c8_i32_14 = arith.constant 8 : i32
      %19 = vector.broadcast %c8_i32_14 : i32 to vector<8x128xi32>
      %20 = arith.cmpi slt, %18, %19 : vector<8x128xi32>
      %cst_15 = arith.constant 0.000000e+00 : f32
      %21 = vector.broadcast %cst_15 : f32 to vector<8x128xf32>
      %22 = arith.select %20, %13, %21 : vector<8x128xi1>, vector<8x128xf32>
      %cst_16 = arith.constant dense<0.000000e+00> : vector<128xf32>
      %23 = vector.multi_reduction <add>, %22, %cst_16 [0] : vector<8x128xf32> to vector<128xf32>
      %24 = vector.shape_cast %23 : vector<128xf32> to vector<1x128xf32>
      %25 = arith.mulf %22, %22 : vector<8x128xf32>
      %cst_17 = arith.constant dense<0.000000e+00> : vector<128xf32>
      %26 = vector.multi_reduction <add>, %25, %cst_17 [0] : vector<8x128xf32> to vector<128xf32>
      %27 = vector.shape_cast %26 : vector<128xf32> to vector<1x128xf32>
      %28 = tpu.concatenate %24, %27 in 0 : vector<1x128xf32>, vector<1x128xf32> -> vector<2x128xf32>
      %c0_18 = arith.constant 0 : index
      %c0_19 = arith.constant 0 : index
      %c0_20 = arith.constant 0 : index
      %29 = vector.load %arg6[%c0_18, %c0_19, %c0_20] : memref<1x2x128xf32, #tpu.memory_space<vmem>>, vector<1x2x128xf32>
      %30 = vector.shape_cast %29 : vector<1x2x128xf32> to vector<2x128xf32>
      %31 = vector.shape_cast %28 : vector<2x128xf32> to vector<1x2x128xf32>
      tpu.vector_store %arg6[%c0_18, %c0_19, %c0_20], %31 {strides = array<i32>} : memref<1x2x128xf32, #tpu.memory_space<vmem>>, vector<1x2x128xf32>,
    } else {
    }
    return
  }
  func.func @transform_0(%arg0: i32, %arg1: i32, %arg2: i32) -> (i32, i32) {
    %c0_i32 = arith.constant 0 : i32
    return %arg0, %arg2 : i32, i32
  }
  func.func @transform_1(%arg0: i32, %arg1: i32, %arg2: i32) -> (i32, i32) {
    %c0_i32 = arith.constant 0 : i32
    return %arg2, %arg1 : i32, i32
  }
  func.func @transform_2(%arg0: i32, %arg1: i32, %arg2: i32) -> (i32, i32) {
    %c0_i32 = arith.constant 0 : i32
    return %arg0, %arg1 : i32, i32
  }
  func.func @transform_3(%arg0: i32, %arg1: i32, %arg2: i32) -> (i32, i32, i32) {
    %c0_i32 = arith.constant 0 : i32
    %c0_i32_0 = arith.constant 0 : i32
    return %arg0, %c0_i32, %arg1 : i32, i32, i32
  }
}

module attributes {stable_mosaic.version = 11 : i64} {
  func.func @kernel(%arg0: i32, %arg1: i32, %arg2: i32, %arg3: memref<2x128xbf16, #tpu.memory_space<vmem>>, %arg4: memref<128x128xbf16, #tpu.memory_space<vmem>>, %arg5: memref<2x128xbf16, #tpu.memory_space<vmem>>, %arg6: memref<1x2x128xf32, #tpu.memory_space<vmem>>, %arg7: memref<2x128xf32, #tpu.memory_space<vmem>>) attributes {dimension_semantics = [#tpu.dimension_semantics<parallel>, #tpu.dimension_semantics<parallel>, #tpu.dimension_semantics<arbitrary>], iteration_bounds = array<i64: 1, 2, 1>, scalar_prefetch = 0 : i64, scratch_operands = 1 : i64, tpu.core_type = #tpu.core_type<tc>, window_params = [{transform_indices = @transform_0, window_bounds = array<i64: 2, 128>}, {transform_indices = @transform_1, window_bounds = array<i64: 128, 128>}, {transform_indices = @transform_2, window_bounds = array<i64: 2, 128>}, {transform_indices = @transform_3, window_bounds = array<i64: 1, 2, 128>}]} {
    %c2_i32 = arith.constant 2 : i32
    %0 = arith.muli %arg0, %c2_i32 : i32
    %c0_i32 = arith.constant 0 : i32
    %1 = arith.cmpi eq, %arg2, %c0_i32 : i32
    %2 = arith.extui %1 : i1 to i32
    %c0_i32_0 = arith.constant 0 : i32
    %3 = arith.cmpi ne, %2, %c0_i32_0 : i32
    scf.if %3 {
      %cst_10 = arith.constant 0.000000e+00 : f32
      %13 = vector.broadcast %cst_10 : f32 to vector<2x128xf32>
      %c0_11 = arith.constant 0 : index
      %c0_12 = arith.constant 0 : index
      %14 = vector.load %arg7[%c0_11, %c0_12] : memref<2x128xf32, #tpu.memory_space<vmem>>, vector<2x128xf32>
      tpu.vector_store %arg7[%c0_11, %c0_12], %13 {strides = array<i32>} : memref<2x128xf32, #tpu.memory_space<vmem>>, vector<2x128xf32>,
    } else {
    }
    %c0 = arith.constant 0 : index
    %c0_1 = arith.constant 0 : index
    %4 = vector.load %arg7[%c0, %c0_1] : memref<2x128xf32, #tpu.memory_space<vmem>>, vector<2x128xf32>
    %c0_2 = arith.constant 0 : index
    %c0_3 = arith.constant 0 : index
    %5 = vector.load %arg3[%c0_2, %c0_3] : memref<2x128xbf16, #tpu.memory_space<vmem>>, vector<2x128xbf16>
    %c0_4 = arith.constant 0 : index
    %c0_5 = arith.constant 0 : index
    %6 = vector.load %arg4[%c0_4, %c0_5] : memref<128x128xbf16, #tpu.memory_space<vmem>>, vector<128x128xbf16>
    %cst = arith.constant dense<0.000000e+00> : vector<2x128xf32>
    %7 = tpu.matmul %5, %6, %cst {dimension_numbers = #tpu.dot_dimension_numbers<[1], [0], [0], [1], [0, 0, 1, 1], [], []>} : vector<2x128xbf16>, vector<128x128xbf16>, vector<2x128xf32> -> vector<2x128xf32>
    %8 = arith.addf %4, %7 : vector<2x128xf32>
    %c0_6 = arith.constant 0 : index
    %c0_7 = arith.constant 0 : index
    %9 = vector.load %arg7[%c0_6, %c0_7] : memref<2x128xf32, #tpu.memory_space<vmem>>, vector<2x128xf32>
    tpu.vector_store %arg7[%c0_6, %c0_7], %8 {strides = array<i32>} : memref<2x128xf32, #tpu.memory_space<vmem>>, vector<2x128xf32>,
    %c0_i32_8 = arith.constant 0 : i32
    %10 = arith.cmpi eq, %arg2, %c0_i32_8 : i32
    %11 = arith.extui %10 : i1 to i32
    %c0_i32_9 = arith.constant 0 : i32
    %12 = arith.cmpi ne, %11, %c0_i32_9 : i32
    scf.if %12 {
      %c0_10 = arith.constant 0 : index
      %c0_11 = arith.constant 0 : index
      %13 = vector.load %arg7[%c0_10, %c0_11] : memref<2x128xf32, #tpu.memory_space<vmem>>, vector<2x128xf32>
      %14 = arith.truncf %13 : vector<2x128xf32> to vector<2x128xbf16>
      %c0_12 = arith.constant 0 : index
      %c0_13 = arith.constant 0 : index
      %15 = vector.load %arg5[%c0_12, %c0_13] : memref<2x128xbf16, #tpu.memory_space<vmem>>, vector<2x128xbf16>
      tpu.vector_store %arg5[%c0_12, %c0_13], %14 {strides = array<i32>} : memref<2x128xbf16, #tpu.memory_space<vmem>>, vector<2x128xbf16>,
      %16 = tpu.iota {dimensions = array<i32: 0>} : vector<2x128xi32>
      %17 = vector.broadcast %0 : i32 to vector<2x128xi32>
      %18 = arith.addi %16, %17 : vector<2x128xi32>
      %c2_i32_14 = arith.constant 2 : i32
      %19 = vector.broadcast %c2_i32_14 : i32 to vector<2x128xi32>
      %20 = arith.cmpi slt, %18, %19 : vector<2x128xi32>
      %cst_15 = arith.constant 0.000000e+00 : f32
      %21 = vector.broadcast %cst_15 : f32 to vector<2x128xf32>
      %22 = arith.select %20, %13, %21 : vector<2x128xi1>, vector<2x128xf32>
      %cst_16 = arith.constant dense<0.000000e+00> : vector<128xf32>
      %23 = vector.multi_reduction <add>, %22, %cst_16 [0] : vector<2x128xf32> to vector<128xf32>
      %24 = vector.shape_cast %23 : vector<128xf32> to vector<1x128xf32>
      %25 = arith.mulf %22, %22 : vector<2x128xf32>
      %cst_17 = arith.constant dense<0.000000e+00> : vector<128xf32>
      %26 = vector.multi_reduction <add>, %25, %cst_17 [0] : vector<2x128xf32> to vector<128xf32>
      %27 = vector.shape_cast %26 : vector<128xf32> to vector<1x128xf32>
      %28 = tpu.concatenate %24, %27 in 0 : vector<1x128xf32>, vector<1x128xf32> -> vector<2x128xf32>
      %c0_18 = arith.constant 0 : index
      %c0_19 = arith.constant 0 : index
      %c0_20 = arith.constant 0 : index
      %29 = vector.load %arg6[%c0_18, %c0_19, %c0_20] : memref<1x2x128xf32, #tpu.memory_space<vmem>>, vector<1x2x128xf32>
      %30 = vector.shape_cast %29 : vector<1x2x128xf32> to vector<2x128xf32>
      %31 = vector.shape_cast %28 : vector<2x128xf32> to vector<1x2x128xf32>
      tpu.vector_store %arg6[%c0_18, %c0_19, %c0_20], %31 {strides = array<i32>} : memref<1x2x128xf32, #tpu.memory_space<vmem>>, vector<1x2x128xf32>,
    } else {
    }
    return
  }
  func.func @transform_0(%arg0: i32, %arg1: i32, %arg2: i32) -> (i32, i32) {
    %c0_i32 = arith.constant 0 : i32
    return %arg0, %arg2 : i32, i32
  }
  func.func @transform_1(%arg0: i32, %arg1: i32, %arg2: i32) -> (i32, i32) {
    %c0_i32 = arith.constant 0 : i32
    return %arg2, %arg1 : i32, i32
  }
  func.func @transform_2(%arg0: i32, %arg1: i32, %arg2: i32) -> (i32, i32) {
    %c0_i32 = arith.constant 0 : i32
    return %arg0, %arg1 : i32, i32
  }
  func.func @transform_3(%arg0: i32, %arg1: i32, %arg2: i32) -> (i32, i32, i32) {
    %c0_i32 = arith.constant 0 : i32
    %c0_i32_0 = arith.constant 0 : i32
    return %arg0, %c0_i32, %arg1 : i32, i32, i32
  }
}

module attributes {stable_mosaic.version = 11 : i64} {
  func.func @kernel(%arg0: i32, %arg1: i32, %arg2: i32, %arg3: memref<2x1152xbf16, #tpu.memory_space<vmem>>, %arg4: memref<1152x128xbf16, #tpu.memory_space<vmem>>, %arg5: memref<2x128xbf16, #tpu.memory_space<vmem>>, %arg6: memref<1x2x128xf32, #tpu.memory_space<vmem>>, %arg7: memref<2x128xf32, #tpu.memory_space<vmem>>) attributes {dimension_semantics = [#tpu.dimension_semantics<parallel>, #tpu.dimension_semantics<parallel>, #tpu.dimension_semantics<arbitrary>], iteration_bounds = array<i64: 1, 2, 1>, scalar_prefetch = 0 : i64, scratch_operands = 1 : i64, tpu.core_type = #tpu.core_type<tc>, window_params = [{transform_indices = @transform_0, window_bounds = array<i64: 2, 1152>}, {transform_indices = @transform_1, window_bounds = array<i64: 1152, 128>}, {transform_indices = @transform_2, window_bounds = array<i64: 2, 128>}, {transform_indices = @transform_3, window_bounds = array<i64: 1, 2, 128>}]} {
    %c2_i32 = arith.constant 2 : i32
    %0 = arith.muli %arg0, %c2_i32 : i32
    %c0_i32 = arith.constant 0 : i32
    %1 = arith.cmpi eq, %arg2, %c0_i32 : i32
    %2 = arith.extui %1 : i1 to i32
    %c0_i32_0 = arith.constant 0 : i32
    %3 = arith.cmpi ne, %2, %c0_i32_0 : i32
    scf.if %3 {
      %cst_10 = arith.constant 0.000000e+00 : f32
      %13 = vector.broadcast %cst_10 : f32 to vector<2x128xf32>
      %c0_11 = arith.constant 0 : index
      %c0_12 = arith.constant 0 : index
      %14 = vector.load %arg7[%c0_11, %c0_12] : memref<2x128xf32, #tpu.memory_space<vmem>>, vector<2x128xf32>
      tpu.vector_store %arg7[%c0_11, %c0_12], %13 {strides = array<i32>} : memref<2x128xf32, #tpu.memory_space<vmem>>, vector<2x128xf32>,
    } else {
    }
    %c0 = arith.constant 0 : index
    %c0_1 = arith.constant 0 : index
    %4 = vector.load %arg7[%c0, %c0_1] : memref<2x128xf32, #tpu.memory_space<vmem>>, vector<2x128xf32>
    %c0_2 = arith.constant 0 : index
    %c0_3 = arith.constant 0 : index
    %5 = vector.load %arg3[%c0_2, %c0_3] : memref<2x1152xbf16, #tpu.memory_space<vmem>>, vector<2x1152xbf16>
    %c0_4 = arith.constant 0 : index
    %c0_5 = arith.constant 0 : index
    %6 = vector.load %arg4[%c0_4, %c0_5] : memref<1152x128xbf16, #tpu.memory_space<vmem>>, vector<1152x128xbf16>
    %cst = arith.constant dense<0.000000e+00> : vector<2x128xf32>
    %7 = tpu.matmul %5, %6, %cst {dimension_numbers = #tpu.dot_dimension_numbers<[1], [0], [0], [1], [0, 0, 1, 1], [], []>} : vector<2x1152xbf16>, vector<1152x128xbf16>, vector<2x128xf32> -> vector<2x128xf32>
    %8 = arith.addf %4, %7 : vector<2x128xf32>
    %c0_6 = arith.constant 0 : index
    %c0_7 = arith.constant 0 : index
    %9 = vector.load %arg7[%c0_6, %c0_7] : memref<2x128xf32, #tpu.memory_space<vmem>>, vector<2x128xf32>
    tpu.vector_store %arg7[%c0_6, %c0_7], %8 {strides = array<i32>} : memref<2x128xf32, #tpu.memory_space<vmem>>, vector<2x128xf32>,
    %c0_i32_8 = arith.constant 0 : i32
    %10 = arith.cmpi eq, %arg2, %c0_i32_8 : i32
    %11 = arith.extui %10 : i1 to i32
    %c0_i32_9 = arith.constant 0 : i32
    %12 = arith.cmpi ne, %11, %c0_i32_9 : i32
    scf.if %12 {
      %c0_10 = arith.constant 0 : index
      %c0_11 = arith.constant 0 : index
      %13 = vector.load %arg7[%c0_10, %c0_11] : memref<2x128xf32, #tpu.memory_space<vmem>>, vector<2x128xf32>
      %14 = arith.truncf %13 : vector<2x128xf32> to vector<2x128xbf16>
      %c0_12 = arith.constant 0 : index
      %c0_13 = arith.constant 0 : index
      %15 = vector.load %arg5[%c0_12, %c0_13] : memref<2x128xbf16, #tpu.memory_space<vmem>>, vector<2x128xbf16>
      tpu.vector_store %arg5[%c0_12, %c0_13], %14 {strides = array<i32>} : memref<2x128xbf16, #tpu.memory_space<vmem>>, vector<2x128xbf16>,
      %16 = tpu.iota {dimensions = array<i32: 0>} : vector<2x128xi32>
      %17 = vector.broadcast %0 : i32 to vector<2x128xi32>
      %18 = arith.addi %16, %17 : vector<2x128xi32>
      %c2_i32_14 = arith.constant 2 : i32
      %19 = vector.broadcast %c2_i32_14 : i32 to vector<2x128xi32>
      %20 = arith.cmpi slt, %18, %19 : vector<2x128xi32>
      %cst_15 = arith.constant 0.000000e+00 : f32
      %21 = vector.broadcast %cst_15 : f32 to vector<2x128xf32>
      %22 = arith.select %20, %13, %21 : vector<2x128xi1>, vector<2x128xf32>
      %cst_16 = arith.constant dense<0.000000e+00> : vector<128xf32>
      %23 = vector.multi_reduction <add>, %22, %cst_16 [0] : vector<2x128xf32> to vector<128xf32>
      %24 = vector.shape_cast %23 : vector<128xf32> to vector<1x128xf32>
      %25 = arith.mulf %22, %22 : vector<2x128xf32>
      %cst_17 = arith.constant dense<0.000000e+00> : vector<128xf32>
      %26 = vector.multi_reduction <add>, %25, %cst_17 [0] : vector<2x128xf32> to vector<128xf32>
      %27 = vector.shape_cast %26 : vector<128xf32> to vector<1x128xf32>
      %28 = tpu.concatenate %24, %27 in 0 : vector<1x128xf32>, vector<1x128xf32> -> vector<2x128xf32>
      %c0_18 = arith.constant 0 : index
      %c0_19 = arith.constant 0 : index
      %c0_20 = arith.constant 0 : index
      %29 = vector.load %arg6[%c0_18, %c0_19, %c0_20] : memref<1x2x128xf32, #tpu.memory_space<vmem>>, vector<1x2x128xf32>
      %30 = vector.shape_cast %29 : vector<1x2x128xf32> to vector<2x128xf32>
      %31 = vector.shape_cast %28 : vector<2x128xf32> to vector<1x2x128xf32>
      tpu.vector_store %arg6[%c0_18, %c0_19, %c0_20], %31 {strides = array<i32>} : memref<1x2x128xf32, #tpu.memory_space<vmem>>, vector<1x2x128xf32>,
    } else {
    }
    return
  }
  func.func @transform_0(%arg0: i32, %arg1: i32, %arg2: i32) -> (i32, i32) {
    %c0_i32 = arith.constant 0 : i32
    return %arg0, %arg2 : i32, i32
  }
  func.func @transform_1(%arg0: i32, %arg1: i32, %arg2: i32) -> (i32, i32) {
    %c0_i32 = arith.constant 0 : i32
    return %arg2, %arg1 : i32, i32
  }
  func.func @transform_2(%arg0: i32, %arg1: i32, %arg2: i32) -> (i32, i32) {
    %c0_i32 = arith.constant 0 : i32
    return %arg0, %arg1 : i32, i32
  }
  func.func @transform_3(%arg0: i32, %arg1: i32, %arg2: i32) -> (i32, i32, i32) {
    %c0_i32 = arith.constant 0 : i32
    %c0_i32_0 = arith.constant 0 : i32
    return %arg0, %c0_i32, %arg1 : i32, i32, i32
  }
}

module attributes {stable_mosaic.version = 11 : i64} {
  func.func @kernel(%arg0: i32, %arg1: memref<2x256xbf16, #tpu.memory_space<vmem>>, %arg2: memref<1x256xf32, #tpu.memory_space<vmem>>, %arg3: memref<1x256xf32, #tpu.memory_space<vmem>>, %arg4: memref<2x256xbf16, #tpu.memory_space<vmem>>) attributes {dimension_semantics = [#tpu.dimension_semantics<parallel>], iteration_bounds = array<i64: 1>, scalar_prefetch = 0 : i64, scratch_operands = 0 : i64, tpu.core_type = #tpu.core_type<tc>, window_params = [{transform_indices = @transform_0, window_bounds = array<i64: 2, 256>}, {pipeline_mode = #tpu.pipeline_mode<synchronous>, transform_indices = @transform_1, window_bounds = array<i64: 1, 256>}, {pipeline_mode = #tpu.pipeline_mode<synchronous>, transform_indices = @transform_2, window_bounds = array<i64: 1, 256>}, {transform_indices = @transform_3, window_bounds = array<i64: 2, 256>}]} {
    %c0 = arith.constant 0 : index
    %c0_0 = arith.constant 0 : index
    %0 = vector.load %arg1[%c0, %c0_0] : memref<2x256xbf16, #tpu.memory_space<vmem>>, vector<2x256xbf16>
    %1 = arith.extf %0 : vector<2x256xbf16> to vector<2x256xf32>
    %c0_1 = arith.constant 0 : index
    %c0_2 = arith.constant 0 : index
    %2 = vector.load %arg2[%c0_1, %c0_2] : memref<1x256xf32, #tpu.memory_space<vmem>>, vector<1x256xf32>
    %3 = vector.broadcast %2 : vector<1x256xf32> to vector<2x256xf32>
    %4 = arith.mulf %1, %3 : vector<2x256xf32>
    %c0_3 = arith.constant 0 : index
    %c0_4 = arith.constant 0 : index
    %5 = vector.load %arg3[%c0_3, %c0_4] : memref<1x256xf32, #tpu.memory_space<vmem>>, vector<1x256xf32>
    %6 = vector.broadcast %5 : vector<1x256xf32> to vector<2x256xf32>
    %7 = arith.addf %4, %6 : vector<2x256xf32>
    %cst = arith.constant 0.000000e+00 : f32
    %8 = vector.broadcast %cst : f32 to vector<2x256xf32>
    %9 = arith.maximumf %7, %8 : vector<2x256xf32>
    %10 = arith.truncf %9 : vector<2x256xf32> to vector<2x256xbf16>
    %c0_5 = arith.constant 0 : index
    %c0_6 = arith.constant 0 : index
    %11 = vector.load %arg4[%c0_5, %c0_6] : memref<2x256xbf16, #tpu.memory_space<vmem>>, vector<2x256xbf16>
    tpu.vector_store %arg4[%c0_5, %c0_6], %10 {strides = array<i32>} : memref<2x256xbf16, #tpu.memory_space<vmem>>, vector<2x256xbf16>,
    return
  }
  func.func @transform_0(%arg0: i32) -> (i32, i32) {
    %c0_i32 = arith.constant 0 : i32
    %c0_i32_0 = arith.constant 0 : i32
    return %arg0, %c0_i32 : i32, i32
  }
  func.func @transform_1(%arg0: i32) -> (i32, i32) {
    %c0_i32 = arith.constant 0 : i32
    %c0_i32_0 = arith.constant 0 : i32
    %c0_i32_1 = arith.constant 0 : i32
    return %c0_i32, %c0_i32_0 : i32, i32
  }
  func.func @transform_2(%arg0: i32) -> (i32, i32) {
    %c0_i32 = arith.constant 0 : i32
    %c0_i32_0 = arith.constant 0 : i32
    %c0_i32_1 = arith.constant 0 : i32
    return %c0_i32, %c0_i32_0 : i32, i32
  }
  func.func @transform_3(%arg0: i32) -> (i32, i32) {
    %c0_i32 = arith.constant 0 : i32
    %c0_i32_0 = arith.constant 0 : i32
    return %arg0, %c0_i32 : i32, i32
  }
}

module attributes {stable_mosaic.version = 11 : i64} {
  func.func @kernel(%arg0: i32, %arg1: i32, %arg2: i32, %arg3: memref<2x1152xbf16, #tpu.memory_space<vmem>>, %arg4: memref<1152x128xbf16, #tpu.memory_space<vmem>>, %arg5: memref<2x128xbf16, #tpu.memory_space<vmem>>, %arg6: memref<1x2x128xf32, #tpu.memory_space<vmem>>, %arg7: memref<2x128xf32, #tpu.memory_space<vmem>>) attributes {dimension_semantics = [#tpu.dimension_semantics<parallel>, #tpu.dimension_semantics<parallel>, #tpu.dimension_semantics<arbitrary>], iteration_bounds = array<i64: 1, 2, 2>, scalar_prefetch = 0 : i64, scratch_operands = 1 : i64, tpu.core_type = #tpu.core_type<tc>, window_params = [{transform_indices = @transform_0, window_bounds = array<i64: 2, 1152>}, {transform_indices = @transform_1, window_bounds = array<i64: 1152, 128>}, {transform_indices = @transform_2, window_bounds = array<i64: 2, 128>}, {transform_indices = @transform_3, window_bounds = array<i64: 1, 2, 128>}]} {
    %c2_i32 = arith.constant 2 : i32
    %0 = arith.muli %arg0, %c2_i32 : i32
    %c0_i32 = arith.constant 0 : i32
    %1 = arith.cmpi eq, %arg2, %c0_i32 : i32
    %2 = arith.extui %1 : i1 to i32
    %c0_i32_0 = arith.constant 0 : i32
    %3 = arith.cmpi ne, %2, %c0_i32_0 : i32
    scf.if %3 {
      %cst_9 = arith.constant 0.000000e+00 : f32
      %13 = vector.broadcast %cst_9 : f32 to vector<2x128xf32>
      %c0_10 = arith.constant 0 : index
      %c0_11 = arith.constant 0 : index
      %14 = vector.load %arg7[%c0_10, %c0_11] : memref<2x128xf32, #tpu.memory_space<vmem>>, vector<2x128xf32>
      tpu.vector_store %arg7[%c0_10, %c0_11], %13 {strides = array<i32>} : memref<2x128xf32, #tpu.memory_space<vmem>>, vector<2x128xf32>,
    } else {
    }
    %c0 = arith.constant 0 : index
    %c0_1 = arith.constant 0 : index
    %4 = vector.load %arg7[%c0, %c0_1] : memref<2x128xf32, #tpu.memory_space<vmem>>, vector<2x128xf32>
    %c0_2 = arith.constant 0 : index
    %c0_3 = arith.constant 0 : index
    %5 = vector.load %arg3[%c0_2, %c0_3] : memref<2x1152xbf16, #tpu.memory_space<vmem>>, vector<2x1152xbf16>
    %c0_4 = arith.constant 0 : index
    %c0_5 = arith.constant 0 : index
    %6 = vector.load %arg4[%c0_4, %c0_5] : memref<1152x128xbf16, #tpu.memory_space<vmem>>, vector<1152x128xbf16>
    %cst = arith.constant dense<0.000000e+00> : vector<2x128xf32>
    %7 = tpu.matmul %5, %6, %cst {dimension_numbers = #tpu.dot_dimension_numbers<[1], [0], [0], [1], [0, 0, 1, 1], [], []>} : vector<2x1152xbf16>, vector<1152x128xbf16>, vector<2x128xf32> -> vector<2x128xf32>
    %8 = arith.addf %4, %7 : vector<2x128xf32>
    %c0_6 = arith.constant 0 : index
    %c0_7 = arith.constant 0 : index
    %9 = vector.load %arg7[%c0_6, %c0_7] : memref<2x128xf32, #tpu.memory_space<vmem>>, vector<2x128xf32>
    tpu.vector_store %arg7[%c0_6, %c0_7], %8 {strides = array<i32>} : memref<2x128xf32, #tpu.memory_space<vmem>>, vector<2x128xf32>,
    %c1_i32 = arith.constant 1 : i32
    %10 = arith.cmpi eq, %arg2, %c1_i32 : i32
    %11 = arith.extui %10 : i1 to i32
    %c0_i32_8 = arith.constant 0 : i32
    %12 = arith.cmpi ne, %11, %c0_i32_8 : i32
    scf.if %12 {
      %c0_9 = arith.constant 0 : index
      %c0_10 = arith.constant 0 : index
      %13 = vector.load %arg7[%c0_9, %c0_10] : memref<2x128xf32, #tpu.memory_space<vmem>>, vector<2x128xf32>
      %14 = arith.truncf %13 : vector<2x128xf32> to vector<2x128xbf16>
      %c0_11 = arith.constant 0 : index
      %c0_12 = arith.constant 0 : index
      %15 = vector.load %arg5[%c0_11, %c0_12] : memref<2x128xbf16, #tpu.memory_space<vmem>>, vector<2x128xbf16>
      tpu.vector_store %arg5[%c0_11, %c0_12], %14 {strides = array<i32>} : memref<2x128xbf16, #tpu.memory_space<vmem>>, vector<2x128xbf16>,
      %16 = tpu.iota {dimensions = array<i32: 0>} : vector<2x128xi32>
      %17 = vector.broadcast %0 : i32 to vector<2x128xi32>
      %18 = arith.addi %16, %17 : vector<2x128xi32>
      %c2_i32_13 = arith.constant 2 : i32
      %19 = vector.broadcast %c2_i32_13 : i32 to vector<2x128xi32>
      %20 = arith.cmpi slt, %18, %19 : vector<2x128xi32>
      %cst_14 = arith.constant 0.000000e+00 : f32
      %21 = vector.broadcast %cst_14 : f32 to vector<2x128xf32>
      %22 = arith.select %20, %13, %21 : vector<2x128xi1>, vector<2x128xf32>
      %cst_15 = arith.constant dense<0.000000e+00> : vector<128xf32>
      %23 = vector.multi_reduction <add>, %22, %cst_15 [0] : vector<2x128xf32> to vector<128xf32>
      %24 = vector.shape_cast %23 : vector<128xf32> to vector<1x128xf32>
      %25 = arith.mulf %22, %22 : vector<2x128xf32>
      %cst_16 = arith.constant dense<0.000000e+00> : vector<128xf32>
      %26 = vector.multi_reduction <add>, %25, %cst_16 [0] : vector<2x128xf32> to vector<128xf32>
      %27 = vector.shape_cast %26 : vector<128xf32> to vector<1x128xf32>
      %28 = tpu.concatenate %24, %27 in 0 : vector<1x128xf32>, vector<1x128xf32> -> vector<2x128xf32>
      %c0_17 = arith.constant 0 : index
      %c0_18 = arith.constant 0 : index
      %c0_19 = arith.constant 0 : index
      %29 = vector.load %arg6[%c0_17, %c0_18, %c0_19] : memref<1x2x128xf32, #tpu.memory_space<vmem>>, vector<1x2x128xf32>
      %30 = vector.shape_cast %29 : vector<1x2x128xf32> to vector<2x128xf32>
      %31 = vector.shape_cast %28 : vector<2x128xf32> to vector<1x2x128xf32>
      tpu.vector_store %arg6[%c0_17, %c0_18, %c0_19], %31 {strides = array<i32>} : memref<1x2x128xf32, #tpu.memory_space<vmem>>, vector<1x2x128xf32>,
    } else {
    }
    return
  }
  func.func @transform_0(%arg0: i32, %arg1: i32, %arg2: i32) -> (i32, i32) {
    %c0_i32 = arith.constant 0 : i32
    return %arg0, %arg2 : i32, i32
  }
  func.func @transform_1(%arg0: i32, %arg1: i32, %arg2: i32) -> (i32, i32) {
    %c0_i32 = arith.constant 0 : i32
    return %arg2, %arg1 : i32, i32
  }
  func.func @transform_2(%arg0: i32, %arg1: i32, %arg2: i32) -> (i32, i32) {
    %c0_i32 = arith.constant 0 : i32
    return %arg0, %arg1 : i32, i32
  }
  func.func @transform_3(%arg0: i32, %arg1: i32, %arg2: i32) -> (i32, i32, i32) {
    %c0_i32 = arith.constant 0 : i32
    %c0_i32_0 = arith.constant 0 : i32
    return %arg0, %c0_i32, %arg1 : i32, i32, i32
  }
}

module attributes {stable_mosaic.version = 11 : i64} {
  func.func @kernel(%arg0: i32, %arg1: memref<2x256xbf16, #tpu.memory_space<vmem>>, %arg2: memref<2x256xbf16, #tpu.memory_space<vmem>>, %arg3: memref<1x256xf32, #tpu.memory_space<vmem>>, %arg4: memref<1x256xf32, #tpu.memory_space<vmem>>, %arg5: memref<2x256xbf16, #tpu.memory_space<vmem>>) attributes {dimension_semantics = [#tpu.dimension_semantics<parallel>], iteration_bounds = array<i64: 1>, scalar_prefetch = 0 : i64, scratch_operands = 0 : i64, tpu.core_type = #tpu.core_type<tc>, window_params = [{transform_indices = @transform_0, window_bounds = array<i64: 2, 256>}, {transform_indices = @transform_1, window_bounds = array<i64: 2, 256>}, {pipeline_mode = #tpu.pipeline_mode<synchronous>, transform_indices = @transform_2, window_bounds = array<i64: 1, 256>}, {pipeline_mode = #tpu.pipeline_mode<synchronous>, transform_indices = @transform_3, window_bounds = array<i64: 1, 256>}, {transform_indices = @transform_4, window_bounds = array<i64: 2, 256>}]} {
    %c0 = arith.constant 0 : index
    %c0_0 = arith.constant 0 : index
    %0 = vector.load %arg1[%c0, %c0_0] : memref<2x256xbf16, #tpu.memory_space<vmem>>, vector<2x256xbf16>
    %1 = arith.extf %0 : vector<2x256xbf16> to vector<2x256xf32>
    %c0_1 = arith.constant 0 : index
    %c0_2 = arith.constant 0 : index
    %2 = vector.load %arg3[%c0_1, %c0_2] : memref<1x256xf32, #tpu.memory_space<vmem>>, vector<1x256xf32>
    %3 = vector.broadcast %2 : vector<1x256xf32> to vector<2x256xf32>
    %4 = arith.mulf %1, %3 : vector<2x256xf32>
    %c0_3 = arith.constant 0 : index
    %c0_4 = arith.constant 0 : index
    %5 = vector.load %arg4[%c0_3, %c0_4] : memref<1x256xf32, #tpu.memory_space<vmem>>, vector<1x256xf32>
    %6 = vector.broadcast %5 : vector<1x256xf32> to vector<2x256xf32>
    %7 = arith.addf %4, %6 : vector<2x256xf32>
    %c0_5 = arith.constant 0 : index
    %c0_6 = arith.constant 0 : index
    %8 = vector.load %arg2[%c0_5, %c0_6] : memref<2x256xbf16, #tpu.memory_space<vmem>>, vector<2x256xbf16>
    %9 = arith.extf %8 : vector<2x256xbf16> to vector<2x256xf32>
    %10 = arith.addf %7, %9 : vector<2x256xf32>
    %cst = arith.constant 0.000000e+00 : f32
    %11 = vector.broadcast %cst : f32 to vector<2x256xf32>
    %12 = arith.maximumf %10, %11 : vector<2x256xf32>
    %13 = arith.truncf %12 : vector<2x256xf32> to vector<2x256xbf16>
    %c0_7 = arith.constant 0 : index
    %c0_8 = arith.constant 0 : index
    %14 = vector.load %arg5[%c0_7, %c0_8] : memref<2x256xbf16, #tpu.memory_space<vmem>>, vector<2x256xbf16>
    tpu.vector_store %arg5[%c0_7, %c0_8], %13 {strides = array<i32>} : memref<2x256xbf16, #tpu.memory_space<vmem>>, vector<2x256xbf16>,
    return
  }
  func.func @transform_0(%arg0: i32) -> (i32, i32) {
    %c0_i32 = arith.constant 0 : i32
    %c0_i32_0 = arith.constant 0 : i32
    return %arg0, %c0_i32 : i32, i32
  }
  func.func @transform_1(%arg0: i32) -> (i32, i32) {
    %c0_i32 = arith.constant 0 : i32
    %c0_i32_0 = arith.constant 0 : i32
    return %arg0, %c0_i32 : i32, i32
  }
  func.func @transform_2(%arg0: i32) -> (i32, i32) {
    %c0_i32 = arith.constant 0 : i32
    %c0_i32_0 = arith.constant 0 : i32
    %c0_i32_1 = arith.constant 0 : i32
    return %c0_i32, %c0_i32_0 : i32, i32
  }
  func.func @transform_3(%arg0: i32) -> (i32, i32) {
    %c0_i32 = arith.constant 0 : i32
    %c0_i32_0 = arith.constant 0 : i32
    %c0_i32_1 = arith.constant 0 : i32
    return %c0_i32, %c0_i32_0 : i32, i32
  }
  func.func @transform_4(%arg0: i32) -> (i32, i32) {
    %c0_i32 = arith.constant 0 : i32
    %c0_i32_0 = arith.constant 0 : i32
    return %arg0, %c0_i32 : i32, i32
  }
}

module attributes {stable_mosaic.version = 11 : i64} {
  func.func @kernel(%arg0: i32, %arg1: memref<2x256xbf16, #tpu.memory_space<vmem>>, %arg2: memref<2x256xbf16, #tpu.memory_space<vmem>>, %arg3: memref<1x256xf32, #tpu.memory_space<vmem>>, %arg4: memref<1x256xf32, #tpu.memory_space<vmem>>, %arg5: memref<1x256xf32, #tpu.memory_space<vmem>>, %arg6: memref<1x256xf32, #tpu.memory_space<vmem>>, %arg7: memref<2x256xbf16, #tpu.memory_space<vmem>>) attributes {dimension_semantics = [#tpu.dimension_semantics<parallel>], iteration_bounds = array<i64: 1>, scalar_prefetch = 0 : i64, scratch_operands = 0 : i64, tpu.core_type = #tpu.core_type<tc>, window_params = [{transform_indices = @transform_0, window_bounds = array<i64: 2, 256>}, {transform_indices = @transform_1, window_bounds = array<i64: 2, 256>}, {pipeline_mode = #tpu.pipeline_mode<synchronous>, transform_indices = @transform_2, window_bounds = array<i64: 1, 256>}, {pipeline_mode = #tpu.pipeline_mode<synchronous>, transform_indices = @transform_3, window_bounds = array<i64: 1, 256>}, {pipeline_mode = #tpu.pipeline_mode<synchronous>, transform_indices = @transform_4, window_bounds = array<i64: 1, 256>}, {pipeline_mode = #tpu.pipeline_mode<synchronous>, transform_indices = @transform_5, window_bounds = array<i64: 1, 256>}, {transform_indices = @transform_6, window_bounds = array<i64: 2, 256>}]} {
    %c0 = arith.constant 0 : index
    %c0_0 = arith.constant 0 : index
    %0 = vector.load %arg1[%c0, %c0_0] : memref<2x256xbf16, #tpu.memory_space<vmem>>, vector<2x256xbf16>
    %1 = arith.extf %0 : vector<2x256xbf16> to vector<2x256xf32>
    %c0_1 = arith.constant 0 : index
    %c0_2 = arith.constant 0 : index
    %2 = vector.load %arg3[%c0_1, %c0_2] : memref<1x256xf32, #tpu.memory_space<vmem>>, vector<1x256xf32>
    %3 = vector.broadcast %2 : vector<1x256xf32> to vector<2x256xf32>
    %4 = arith.mulf %1, %3 : vector<2x256xf32>
    %c0_3 = arith.constant 0 : index
    %c0_4 = arith.constant 0 : index
    %5 = vector.load %arg4[%c0_3, %c0_4] : memref<1x256xf32, #tpu.memory_space<vmem>>, vector<1x256xf32>
    %6 = vector.broadcast %5 : vector<1x256xf32> to vector<2x256xf32>
    %7 = arith.addf %4, %6 : vector<2x256xf32>
    %c0_5 = arith.constant 0 : index
    %c0_6 = arith.constant 0 : index
    %8 = vector.load %arg2[%c0_5, %c0_6] : memref<2x256xbf16, #tpu.memory_space<vmem>>, vector<2x256xbf16>
    %9 = arith.extf %8 : vector<2x256xbf16> to vector<2x256xf32>
    %c0_7 = arith.constant 0 : index
    %c0_8 = arith.constant 0 : index
    %10 = vector.load %arg5[%c0_7, %c0_8] : memref<1x256xf32, #tpu.memory_space<vmem>>, vector<1x256xf32>
    %11 = vector.broadcast %10 : vector<1x256xf32> to vector<2x256xf32>
    %12 = arith.mulf %9, %11 : vector<2x256xf32>
    %c0_9 = arith.constant 0 : index
    %c0_10 = arith.constant 0 : index
    %13 = vector.load %arg6[%c0_9, %c0_10] : memref<1x256xf32, #tpu.memory_space<vmem>>, vector<1x256xf32>
    %14 = vector.broadcast %13 : vector<1x256xf32> to vector<2x256xf32>
    %15 = arith.addf %12, %14 : vector<2x256xf32>
    %16 = arith.addf %7, %15 : vector<2x256xf32>
    %cst = arith.constant 0.000000e+00 : f32
    %17 = vector.broadcast %cst : f32 to vector<2x256xf32>
    %18 = arith.maximumf %16, %17 : vector<2x256xf32>
    %19 = arith.truncf %18 : vector<2x256xf32> to vector<2x256xbf16>
    %c0_11 = arith.constant 0 : index
    %c0_12 = arith.constant 0 : index
    %20 = vector.load %arg7[%c0_11, %c0_12] : memref<2x256xbf16, #tpu.memory_space<vmem>>, vector<2x256xbf16>
    tpu.vector_store %arg7[%c0_11, %c0_12], %19 {strides = array<i32>} : memref<2x256xbf16, #tpu.memory_space<vmem>>, vector<2x256xbf16>,
    return
  }
  func.func @transform_0(%arg0: i32) -> (i32, i32) {
    %c0_i32 = arith.constant 0 : i32
    %c0_i32_0 = arith.constant 0 : i32
    return %arg0, %c0_i32 : i32, i32
  }
  func.func @transform_1(%arg0: i32) -> (i32, i32) {
    %c0_i32 = arith.constant 0 : i32
    %c0_i32_0 = arith.constant 0 : i32
    return %arg0, %c0_i32 : i32, i32
  }
  func.func @transform_2(%arg0: i32) -> (i32, i32) {
    %c0_i32 = arith.constant 0 : i32
    %c0_i32_0 = arith.constant 0 : i32
    %c0_i32_1 = arith.constant 0 : i32
    return %c0_i32, %c0_i32_0 : i32, i32
  }
  func.func @transform_3(%arg0: i32) -> (i32, i32) {
    %c0_i32 = arith.constant 0 : i32
    %c0_i32_0 = arith.constant 0 : i32
    %c0_i32_1 = arith.constant 0 : i32
    return %c0_i32, %c0_i32_0 : i32, i32
  }
  func.func @transform_4(%arg0: i32) -> (i32, i32) {
    %c0_i32 = arith.constant 0 : i32
    %c0_i32_0 = arith.constant 0 : i32
    %c0_i32_1 = arith.constant 0 : i32
    return %c0_i32, %c0_i32_0 : i32, i32
  }
  func.func @transform_5(%arg0: i32) -> (i32, i32) {
    %c0_i32 = arith.constant 0 : i32
    %c0_i32_0 = arith.constant 0 : i32
    %c0_i32_1 = arith.constant 0 : i32
    return %c0_i32, %c0_i32_0 : i32, i32
  }
  func.func @transform_6(%arg0: i32) -> (i32, i32) {
    %c0_i32 = arith.constant 0 : i32
    %c0_i32_0 = arith.constant 0 : i32
    return %arg0, %c0_i32 : i32, i32
  }
}

module attributes {stable_mosaic.version = 11 : i64} {
  func.func @kernel(%arg0: i32, %arg1: i32, %arg2: i32, %arg3: memref<2x1152xbf16, #tpu.memory_space<vmem>>, %arg4: memref<1152x256xbf16, #tpu.memory_space<vmem>>, %arg5: memref<2x256xbf16, #tpu.memory_space<vmem>>, %arg6: memref<1x2x256xf32, #tpu.memory_space<vmem>>, %arg7: memref<2x256xf32, #tpu.memory_space<vmem>>) attributes {dimension_semantics = [#tpu.dimension_semantics<parallel>, #tpu.dimension_semantics<parallel>, #tpu.dimension_semantics<arbitrary>], iteration_bounds = array<i64: 1, 2, 2>, scalar_prefetch = 0 : i64, scratch_operands = 1 : i64, tpu.core_type = #tpu.core_type<tc>, window_params = [{transform_indices = @transform_0, window_bounds = array<i64: 2, 1152>}, {transform_indices = @transform_1, window_bounds = array<i64: 1152, 256>}, {transform_indices = @transform_2, window_bounds = array<i64: 2, 256>}, {transform_indices = @transform_3, window_bounds = array<i64: 1, 2, 256>}]} {
    %c2_i32 = arith.constant 2 : i32
    %0 = arith.muli %arg0, %c2_i32 : i32
    %c0_i32 = arith.constant 0 : i32
    %1 = arith.cmpi eq, %arg2, %c0_i32 : i32
    %2 = arith.extui %1 : i1 to i32
    %c0_i32_0 = arith.constant 0 : i32
    %3 = arith.cmpi ne, %2, %c0_i32_0 : i32
    scf.if %3 {
      %cst_9 = arith.constant 0.000000e+00 : f32
      %13 = vector.broadcast %cst_9 : f32 to vector<2x256xf32>
      %c0_10 = arith.constant 0 : index
      %c0_11 = arith.constant 0 : index
      %14 = vector.load %arg7[%c0_10, %c0_11] : memref<2x256xf32, #tpu.memory_space<vmem>>, vector<2x256xf32>
      tpu.vector_store %arg7[%c0_10, %c0_11], %13 {strides = array<i32>} : memref<2x256xf32, #tpu.memory_space<vmem>>, vector<2x256xf32>,
    } else {
    }
    %c0 = arith.constant 0 : index
    %c0_1 = arith.constant 0 : index
    %4 = vector.load %arg7[%c0, %c0_1] : memref<2x256xf32, #tpu.memory_space<vmem>>, vector<2x256xf32>
    %c0_2 = arith.constant 0 : index
    %c0_3 = arith.constant 0 : index
    %5 = vector.load %arg3[%c0_2, %c0_3] : memref<2x1152xbf16, #tpu.memory_space<vmem>>, vector<2x1152xbf16>
    %c0_4 = arith.constant 0 : index
    %c0_5 = arith.constant 0 : index
    %6 = vector.load %arg4[%c0_4, %c0_5] : memref<1152x256xbf16, #tpu.memory_space<vmem>>, vector<1152x256xbf16>
    %cst = arith.constant dense<0.000000e+00> : vector<2x256xf32>
    %7 = tpu.matmul %5, %6, %cst {dimension_numbers = #tpu.dot_dimension_numbers<[1], [0], [0], [1], [0, 0, 1, 1], [], []>} : vector<2x1152xbf16>, vector<1152x256xbf16>, vector<2x256xf32> -> vector<2x256xf32>
    %8 = arith.addf %4, %7 : vector<2x256xf32>
    %c0_6 = arith.constant 0 : index
    %c0_7 = arith.constant 0 : index
    %9 = vector.load %arg7[%c0_6, %c0_7] : memref<2x256xf32, #tpu.memory_space<vmem>>, vector<2x256xf32>
    tpu.vector_store %arg7[%c0_6, %c0_7], %8 {strides = array<i32>} : memref<2x256xf32, #tpu.memory_space<vmem>>, vector<2x256xf32>,
    %c1_i32 = arith.constant 1 : i32
    %10 = arith.cmpi eq, %arg2, %c1_i32 : i32
    %11 = arith.extui %10 : i1 to i32
    %c0_i32_8 = arith.constant 0 : i32
    %12 = arith.cmpi ne, %11, %c0_i32_8 : i32
    scf.if %12 {
      %c0_9 = arith.constant 0 : index
      %c0_10 = arith.constant 0 : index
      %13 = vector.load %arg7[%c0_9, %c0_10] : memref<2x256xf32, #tpu.memory_space<vmem>>, vector<2x256xf32>
      %14 = arith.truncf %13 : vector<2x256xf32> to vector<2x256xbf16>
      %c0_11 = arith.constant 0 : index
      %c0_12 = arith.constant 0 : index
      %15 = vector.load %arg5[%c0_11, %c0_12] : memref<2x256xbf16, #tpu.memory_space<vmem>>, vector<2x256xbf16>
      tpu.vector_store %arg5[%c0_11, %c0_12], %14 {strides = array<i32>} : memref<2x256xbf16, #tpu.memory_space<vmem>>, vector<2x256xbf16>,
      %16 = tpu.iota {dimensions = array<i32: 0>} : vector<2x256xi32>
      %17 = vector.broadcast %0 : i32 to vector<2x256xi32>
      %18 = arith.addi %16, %17 : vector<2x256xi32>
      %c2_i32_13 = arith.constant 2 : i32
      %19 = vector.broadcast %c2_i32_13 : i32 to vector<2x256xi32>
      %20 = arith.cmpi slt, %18, %19 : vector<2x256xi32>
      %cst_14 = arith.constant 0.000000e+00 : f32
      %21 = vector.broadcast %cst_14 : f32 to vector<2x256xf32>
      %22 = arith.select %20, %13, %21 : vector<2x256xi1>, vector<2x256xf32>
      %cst_15 = arith.constant dense<0.000000e+00> : vector<256xf32>
      %23 = vector.multi_reduction <add>, %22, %cst_15 [0] : vector<2x256xf32> to vector<256xf32>
      %24 = vector.shape_cast %23 : vector<256xf32> to vector<1x256xf32>
      %25 = arith.mulf %22, %22 : vector<2x256xf32>
      %cst_16 = arith.constant dense<0.000000e+00> : vector<256xf32>
      %26 = vector.multi_reduction <add>, %25, %cst_16 [0] : vector<2x256xf32> to vector<256xf32>
      %27 = vector.shape_cast %26 : vector<256xf32> to vector<1x256xf32>
      %28 = tpu.concatenate %24, %27 in 0 : vector<1x256xf32>, vector<1x256xf32> -> vector<2x256xf32>
      %c0_17 = arith.constant 0 : index
      %c0_18 = arith.constant 0 : index
      %c0_19 = arith.constant 0 : index
      %29 = vector.load %arg6[%c0_17, %c0_18, %c0_19] : memref<1x2x256xf32, #tpu.memory_space<vmem>>, vector<1x2x256xf32>
      %30 = vector.shape_cast %29 : vector<1x2x256xf32> to vector<2x256xf32>
      %31 = vector.shape_cast %28 : vector<2x256xf32> to vector<1x2x256xf32>
      tpu.vector_store %arg6[%c0_17, %c0_18, %c0_19], %31 {strides = array<i32>} : memref<1x2x256xf32, #tpu.memory_space<vmem>>, vector<1x2x256xf32>,
    } else {
    }
    return
  }
  func.func @transform_0(%arg0: i32, %arg1: i32, %arg2: i32) -> (i32, i32) {
    %c0_i32 = arith.constant 0 : i32
    return %arg0, %arg2 : i32, i32
  }
  func.func @transform_1(%arg0: i32, %arg1: i32, %arg2: i32) -> (i32, i32) {
    %c0_i32 = arith.constant 0 : i32
    return %arg2, %arg1 : i32, i32
  }
  func.func @transform_2(%arg0: i32, %arg1: i32, %arg2: i32) -> (i32, i32) {
    %c0_i32 = arith.constant 0 : i32
    return %arg0, %arg1 : i32, i32
  }
  func.func @transform_3(%arg0: i32, %arg1: i32, %arg2: i32) -> (i32, i32, i32) {
    %c0_i32 = arith.constant 0 : i32
    %c0_i32_0 = arith.constant 0 : i32
    return %arg0, %c0_i32, %arg1 : i32, i32, i32
  }
}

module attributes {stable_mosaic.version = 11 : i64} {
  func.func @kernel(%arg0: i32, %arg1: i32, %arg2: i32, %arg3: memref<2x256xbf16, #tpu.memory_space<vmem>>, %arg4: memref<256x256xbf16, #tpu.memory_space<vmem>>, %arg5: memref<2x256xbf16, #tpu.memory_space<vmem>>, %arg6: memref<1x2x256xf32, #tpu.memory_space<vmem>>, %arg7: memref<2x256xf32, #tpu.memory_space<vmem>>) attributes {dimension_semantics = [#tpu.dimension_semantics<parallel>, #tpu.dimension_semantics<parallel>, #tpu.dimension_semantics<arbitrary>], iteration_bounds = array<i64: 1, 2, 1>, scalar_prefetch = 0 : i64, scratch_operands = 1 : i64, tpu.core_type = #tpu.core_type<tc>, window_params = [{transform_indices = @transform_0, window_bounds = array<i64: 2, 256>}, {transform_indices = @transform_1, window_bounds = array<i64: 256, 256>}, {transform_indices = @transform_2, window_bounds = array<i64: 2, 256>}, {transform_indices = @transform_3, window_bounds = array<i64: 1, 2, 256>}]} {
    %c2_i32 = arith.constant 2 : i32
    %0 = arith.muli %arg0, %c2_i32 : i32
    %c0_i32 = arith.constant 0 : i32
    %1 = arith.cmpi eq, %arg2, %c0_i32 : i32
    %2 = arith.extui %1 : i1 to i32
    %c0_i32_0 = arith.constant 0 : i32
    %3 = arith.cmpi ne, %2, %c0_i32_0 : i32
    scf.if %3 {
      %cst_10 = arith.constant 0.000000e+00 : f32
      %13 = vector.broadcast %cst_10 : f32 to vector<2x256xf32>
      %c0_11 = arith.constant 0 : index
      %c0_12 = arith.constant 0 : index
      %14 = vector.load %arg7[%c0_11, %c0_12] : memref<2x256xf32, #tpu.memory_space<vmem>>, vector<2x256xf32>
      tpu.vector_store %arg7[%c0_11, %c0_12], %13 {strides = array<i32>} : memref<2x256xf32, #tpu.memory_space<vmem>>, vector<2x256xf32>,
    } else {
    }
    %c0 = arith.constant 0 : index
    %c0_1 = arith.constant 0 : index
    %4 = vector.load %arg7[%c0, %c0_1] : memref<2x256xf32, #tpu.memory_space<vmem>>, vector<2x256xf32>
    %c0_2 = arith.constant 0 : index
    %c0_3 = arith.constant 0 : index
    %5 = vector.load %arg3[%c0_2, %c0_3] : memref<2x256xbf16, #tpu.memory_space<vmem>>, vector<2x256xbf16>
    %c0_4 = arith.constant 0 : index
    %c0_5 = arith.constant 0 : index
    %6 = vector.load %arg4[%c0_4, %c0_5] : memref<256x256xbf16, #tpu.memory_space<vmem>>, vector<256x256xbf16>
    %cst = arith.constant dense<0.000000e+00> : vector<2x256xf32>
    %7 = tpu.matmul %5, %6, %cst {dimension_numbers = #tpu.dot_dimension_numbers<[1], [0], [0], [1], [0, 0, 1, 1], [], []>} : vector<2x256xbf16>, vector<256x256xbf16>, vector<2x256xf32> -> vector<2x256xf32>
    %8 = arith.addf %4, %7 : vector<2x256xf32>
    %c0_6 = arith.constant 0 : index
    %c0_7 = arith.constant 0 : index
    %9 = vector.load %arg7[%c0_6, %c0_7] : memref<2x256xf32, #tpu.memory_space<vmem>>, vector<2x256xf32>
    tpu.vector_store %arg7[%c0_6, %c0_7], %8 {strides = array<i32>} : memref<2x256xf32, #tpu.memory_space<vmem>>, vector<2x256xf32>,
    %c0_i32_8 = arith.constant 0 : i32
    %10 = arith.cmpi eq, %arg2, %c0_i32_8 : i32
    %11 = arith.extui %10 : i1 to i32
    %c0_i32_9 = arith.constant 0 : i32
    %12 = arith.cmpi ne, %11, %c0_i32_9 : i32
    scf.if %12 {
      %c0_10 = arith.constant 0 : index
      %c0_11 = arith.constant 0 : index
      %13 = vector.load %arg7[%c0_10, %c0_11] : memref<2x256xf32, #tpu.memory_space<vmem>>, vector<2x256xf32>
      %14 = arith.truncf %13 : vector<2x256xf32> to vector<2x256xbf16>
      %c0_12 = arith.constant 0 : index
      %c0_13 = arith.constant 0 : index
      %15 = vector.load %arg5[%c0_12, %c0_13] : memref<2x256xbf16, #tpu.memory_space<vmem>>, vector<2x256xbf16>
      tpu.vector_store %arg5[%c0_12, %c0_13], %14 {strides = array<i32>} : memref<2x256xbf16, #tpu.memory_space<vmem>>, vector<2x256xbf16>,
      %16 = tpu.iota {dimensions = array<i32: 0>} : vector<2x256xi32>
      %17 = vector.broadcast %0 : i32 to vector<2x256xi32>
      %18 = arith.addi %16, %17 : vector<2x256xi32>
      %c2_i32_14 = arith.constant 2 : i32
      %19 = vector.broadcast %c2_i32_14 : i32 to vector<2x256xi32>
      %20 = arith.cmpi slt, %18, %19 : vector<2x256xi32>
      %cst_15 = arith.constant 0.000000e+00 : f32
      %21 = vector.broadcast %cst_15 : f32 to vector<2x256xf32>
      %22 = arith.select %20, %13, %21 : vector<2x256xi1>, vector<2x256xf32>
      %cst_16 = arith.constant dense<0.000000e+00> : vector<256xf32>
      %23 = vector.multi_reduction <add>, %22, %cst_16 [0] : vector<2x256xf32> to vector<256xf32>
      %24 = vector.shape_cast %23 : vector<256xf32> to vector<1x256xf32>
      %25 = arith.mulf %22, %22 : vector<2x256xf32>
      %cst_17 = arith.constant dense<0.000000e+00> : vector<256xf32>
      %26 = vector.multi_reduction <add>, %25, %cst_17 [0] : vector<2x256xf32> to vector<256xf32>
      %27 = vector.shape_cast %26 : vector<256xf32> to vector<1x256xf32>
      %28 = tpu.concatenate %24, %27 in 0 : vector<1x256xf32>, vector<1x256xf32> -> vector<2x256xf32>
      %c0_18 = arith.constant 0 : index
      %c0_19 = arith.constant 0 : index
      %c0_20 = arith.constant 0 : index
      %29 = vector.load %arg6[%c0_18, %c0_19, %c0_20] : memref<1x2x256xf32, #tpu.memory_space<vmem>>, vector<1x2x256xf32>
      %30 = vector.shape_cast %29 : vector<1x2x256xf32> to vector<2x256xf32>
      %31 = vector.shape_cast %28 : vector<2x256xf32> to vector<1x2x256xf32>
      tpu.vector_store %arg6[%c0_18, %c0_19, %c0_20], %31 {strides = array<i32>} : memref<1x2x256xf32, #tpu.memory_space<vmem>>, vector<1x2x256xf32>,
    } else {
    }
    return
  }
  func.func @transform_0(%arg0: i32, %arg1: i32, %arg2: i32) -> (i32, i32) {
    %c0_i32 = arith.constant 0 : i32
    return %arg0, %arg2 : i32, i32
  }
  func.func @transform_1(%arg0: i32, %arg1: i32, %arg2: i32) -> (i32, i32) {
    %c0_i32 = arith.constant 0 : i32
    return %arg2, %arg1 : i32, i32
  }
  func.func @transform_2(%arg0: i32, %arg1: i32, %arg2: i32) -> (i32, i32) {
    %c0_i32 = arith.constant 0 : i32
    return %arg0, %arg1 : i32, i32
  }
  func.func @transform_3(%arg0: i32, %arg1: i32, %arg2: i32) -> (i32, i32, i32) {
    %c0_i32 = arith.constant 0 : i32
    %c0_i32_0 = arith.constant 0 : i32
    return %arg0, %c0_i32, %arg1 : i32, i32, i32
  }
}

module attributes {stable_mosaic.version = 11 : i64} {
  func.func @kernel(%arg0: i32, %arg1: memref<2x512xbf16, #tpu.memory_space<vmem>>, %arg2: memref<1x512xf32, #tpu.memory_space<vmem>>, %arg3: memref<1x512xf32, #tpu.memory_space<vmem>>, %arg4: memref<2x512xbf16, #tpu.memory_space<vmem>>) attributes {dimension_semantics = [#tpu.dimension_semantics<parallel>], iteration_bounds = array<i64: 1>, scalar_prefetch = 0 : i64, scratch_operands = 0 : i64, tpu.core_type = #tpu.core_type<tc>, window_params = [{transform_indices = @transform_0, window_bounds = array<i64: 2, 512>}, {pipeline_mode = #tpu.pipeline_mode<synchronous>, transform_indices = @transform_1, window_bounds = array<i64: 1, 512>}, {pipeline_mode = #tpu.pipeline_mode<synchronous>, transform_indices = @transform_2, window_bounds = array<i64: 1, 512>}, {transform_indices = @transform_3, window_bounds = array<i64: 2, 512>}]} {
    %c0 = arith.constant 0 : index
    %c0_0 = arith.constant 0 : index
    %0 = vector.load %arg1[%c0, %c0_0] : memref<2x512xbf16, #tpu.memory_space<vmem>>, vector<2x512xbf16>
    %1 = arith.extf %0 : vector<2x512xbf16> to vector<2x512xf32>
    %c0_1 = arith.constant 0 : index
    %c0_2 = arith.constant 0 : index
    %2 = vector.load %arg2[%c0_1, %c0_2] : memref<1x512xf32, #tpu.memory_space<vmem>>, vector<1x512xf32>
    %3 = vector.broadcast %2 : vector<1x512xf32> to vector<2x512xf32>
    %4 = arith.mulf %1, %3 : vector<2x512xf32>
    %c0_3 = arith.constant 0 : index
    %c0_4 = arith.constant 0 : index
    %5 = vector.load %arg3[%c0_3, %c0_4] : memref<1x512xf32, #tpu.memory_space<vmem>>, vector<1x512xf32>
    %6 = vector.broadcast %5 : vector<1x512xf32> to vector<2x512xf32>
    %7 = arith.addf %4, %6 : vector<2x512xf32>
    %cst = arith.constant 0.000000e+00 : f32
    %8 = vector.broadcast %cst : f32 to vector<2x512xf32>
    %9 = arith.maximumf %7, %8 : vector<2x512xf32>
    %10 = arith.truncf %9 : vector<2x512xf32> to vector<2x512xbf16>
    %c0_5 = arith.constant 0 : index
    %c0_6 = arith.constant 0 : index
    %11 = vector.load %arg4[%c0_5, %c0_6] : memref<2x512xbf16, #tpu.memory_space<vmem>>, vector<2x512xbf16>
    tpu.vector_store %arg4[%c0_5, %c0_6], %10 {strides = array<i32>} : memref<2x512xbf16, #tpu.memory_space<vmem>>, vector<2x512xbf16>,
    return
  }
  func.func @transform_0(%arg0: i32) -> (i32, i32) {
    %c0_i32 = arith.constant 0 : i32
    %c0_i32_0 = arith.constant 0 : i32
    return %arg0, %c0_i32 : i32, i32
  }
  func.func @transform_1(%arg0: i32) -> (i32, i32) {
    %c0_i32 = arith.constant 0 : i32
    %c0_i32_0 = arith.constant 0 : i32
    %c0_i32_1 = arith.constant 0 : i32
    return %c0_i32, %c0_i32_0 : i32, i32
  }
  func.func @transform_2(%arg0: i32) -> (i32, i32) {
    %c0_i32 = arith.constant 0 : i32
    %c0_i32_0 = arith.constant 0 : i32
    %c0_i32_1 = arith.constant 0 : i32
    return %c0_i32, %c0_i32_0 : i32, i32
  }
  func.func @transform_3(%arg0: i32) -> (i32, i32) {
    %c0_i32 = arith.constant 0 : i32
    %c0_i32_0 = arith.constant 0 : i32
    return %arg0, %c0_i32 : i32, i32
  }
}

module attributes {stable_mosaic.version = 11 : i64} {
  func.func @kernel(%arg0: i32, %arg1: i32, %arg2: i32, %arg3: memref<2x1536xbf16, #tpu.memory_space<vmem>>, %arg4: memref<1536x256xbf16, #tpu.memory_space<vmem>>, %arg5: memref<2x256xbf16, #tpu.memory_space<vmem>>, %arg6: memref<1x2x256xf32, #tpu.memory_space<vmem>>, %arg7: memref<2x256xf32, #tpu.memory_space<vmem>>) attributes {dimension_semantics = [#tpu.dimension_semantics<parallel>, #tpu.dimension_semantics<parallel>, #tpu.dimension_semantics<arbitrary>], iteration_bounds = array<i64: 1, 2, 3>, scalar_prefetch = 0 : i64, scratch_operands = 1 : i64, tpu.core_type = #tpu.core_type<tc>, window_params = [{transform_indices = @transform_0, window_bounds = array<i64: 2, 1536>}, {transform_indices = @transform_1, window_bounds = array<i64: 1536, 256>}, {transform_indices = @transform_2, window_bounds = array<i64: 2, 256>}, {transform_indices = @transform_3, window_bounds = array<i64: 1, 2, 256>}]} {
    %c2_i32 = arith.constant 2 : i32
    %0 = arith.muli %arg0, %c2_i32 : i32
    %c0_i32 = arith.constant 0 : i32
    %1 = arith.cmpi eq, %arg2, %c0_i32 : i32
    %2 = arith.extui %1 : i1 to i32
    %c0_i32_0 = arith.constant 0 : i32
    %3 = arith.cmpi ne, %2, %c0_i32_0 : i32
    scf.if %3 {
      %cst_10 = arith.constant 0.000000e+00 : f32
      %13 = vector.broadcast %cst_10 : f32 to vector<2x256xf32>
      %c0_11 = arith.constant 0 : index
      %c0_12 = arith.constant 0 : index
      %14 = vector.load %arg7[%c0_11, %c0_12] : memref<2x256xf32, #tpu.memory_space<vmem>>, vector<2x256xf32>
      tpu.vector_store %arg7[%c0_11, %c0_12], %13 {strides = array<i32>} : memref<2x256xf32, #tpu.memory_space<vmem>>, vector<2x256xf32>,
    } else {
    }
    %c0 = arith.constant 0 : index
    %c0_1 = arith.constant 0 : index
    %4 = vector.load %arg7[%c0, %c0_1] : memref<2x256xf32, #tpu.memory_space<vmem>>, vector<2x256xf32>
    %c0_2 = arith.constant 0 : index
    %c0_3 = arith.constant 0 : index
    %5 = vector.load %arg3[%c0_2, %c0_3] : memref<2x1536xbf16, #tpu.memory_space<vmem>>, vector<2x1536xbf16>
    %c0_4 = arith.constant 0 : index
    %c0_5 = arith.constant 0 : index
    %6 = vector.load %arg4[%c0_4, %c0_5] : memref<1536x256xbf16, #tpu.memory_space<vmem>>, vector<1536x256xbf16>
    %cst = arith.constant dense<0.000000e+00> : vector<2x256xf32>
    %7 = tpu.matmul %5, %6, %cst {dimension_numbers = #tpu.dot_dimension_numbers<[1], [0], [0], [1], [0, 0, 1, 1], [], []>} : vector<2x1536xbf16>, vector<1536x256xbf16>, vector<2x256xf32> -> vector<2x256xf32>
    %8 = arith.addf %4, %7 : vector<2x256xf32>
    %c0_6 = arith.constant 0 : index
    %c0_7 = arith.constant 0 : index
    %9 = vector.load %arg7[%c0_6, %c0_7] : memref<2x256xf32, #tpu.memory_space<vmem>>, vector<2x256xf32>
    tpu.vector_store %arg7[%c0_6, %c0_7], %8 {strides = array<i32>} : memref<2x256xf32, #tpu.memory_space<vmem>>, vector<2x256xf32>,
    %c2_i32_8 = arith.constant 2 : i32
    %10 = arith.cmpi eq, %arg2, %c2_i32_8 : i32
    %11 = arith.extui %10 : i1 to i32
    %c0_i32_9 = arith.constant 0 : i32
    %12 = arith.cmpi ne, %11, %c0_i32_9 : i32
    scf.if %12 {
      %c0_10 = arith.constant 0 : index
      %c0_11 = arith.constant 0 : index
      %13 = vector.load %arg7[%c0_10, %c0_11] : memref<2x256xf32, #tpu.memory_space<vmem>>, vector<2x256xf32>
      %14 = arith.truncf %13 : vector<2x256xf32> to vector<2x256xbf16>
      %c0_12 = arith.constant 0 : index
      %c0_13 = arith.constant 0 : index
      %15 = vector.load %arg5[%c0_12, %c0_13] : memref<2x256xbf16, #tpu.memory_space<vmem>>, vector<2x256xbf16>
      tpu.vector_store %arg5[%c0_12, %c0_13], %14 {strides = array<i32>} : memref<2x256xbf16, #tpu.memory_space<vmem>>, vector<2x256xbf16>,
      %16 = tpu.iota {dimensions = array<i32: 0>} : vector<2x256xi32>
      %17 = vector.broadcast %0 : i32 to vector<2x256xi32>
      %18 = arith.addi %16, %17 : vector<2x256xi32>
      %c2_i32_14 = arith.constant 2 : i32
      %19 = vector.broadcast %c2_i32_14 : i32 to vector<2x256xi32>
      %20 = arith.cmpi slt, %18, %19 : vector<2x256xi32>
      %cst_15 = arith.constant 0.000000e+00 : f32
      %21 = vector.broadcast %cst_15 : f32 to vector<2x256xf32>
      %22 = arith.select %20, %13, %21 : vector<2x256xi1>, vector<2x256xf32>
      %cst_16 = arith.constant dense<0.000000e+00> : vector<256xf32>
      %23 = vector.multi_reduction <add>, %22, %cst_16 [0] : vector<2x256xf32> to vector<256xf32>
      %24 = vector.shape_cast %23 : vector<256xf32> to vector<1x256xf32>
      %25 = arith.mulf %22, %22 : vector<2x256xf32>
      %cst_17 = arith.constant dense<0.000000e+00> : vector<256xf32>
      %26 = vector.multi_reduction <add>, %25, %cst_17 [0] : vector<2x256xf32> to vector<256xf32>
      %27 = vector.shape_cast %26 : vector<256xf32> to vector<1x256xf32>
      %28 = tpu.concatenate %24, %27 in 0 : vector<1x256xf32>, vector<1x256xf32> -> vector<2x256xf32>
      %c0_18 = arith.constant 0 : index
      %c0_19 = arith.constant 0 : index
      %c0_20 = arith.constant 0 : index
      %29 = vector.load %arg6[%c0_18, %c0_19, %c0_20] : memref<1x2x256xf32, #tpu.memory_space<vmem>>, vector<1x2x256xf32>
      %30 = vector.shape_cast %29 : vector<1x2x256xf32> to vector<2x256xf32>
      %31 = vector.shape_cast %28 : vector<2x256xf32> to vector<1x2x256xf32>
      tpu.vector_store %arg6[%c0_18, %c0_19, %c0_20], %31 {strides = array<i32>} : memref<1x2x256xf32, #tpu.memory_space<vmem>>, vector<1x2x256xf32>,
    } else {
    }
    return
  }
  func.func @transform_0(%arg0: i32, %arg1: i32, %arg2: i32) -> (i32, i32) {
    %c0_i32 = arith.constant 0 : i32
    return %arg0, %arg2 : i32, i32
  }
  func.func @transform_1(%arg0: i32, %arg1: i32, %arg2: i32) -> (i32, i32) {
    %c0_i32 = arith.constant 0 : i32
    return %arg2, %arg1 : i32, i32
  }
  func.func @transform_2(%arg0: i32, %arg1: i32, %arg2: i32) -> (i32, i32) {
    %c0_i32 = arith.constant 0 : i32
    return %arg0, %arg1 : i32, i32
  }
  func.func @transform_3(%arg0: i32, %arg1: i32, %arg2: i32) -> (i32, i32, i32) {
    %c0_i32 = arith.constant 0 : i32
    %c0_i32_0 = arith.constant 0 : i32
    return %arg0, %c0_i32, %arg1 : i32, i32, i32
  }
}

module attributes {stable_mosaic.version = 11 : i64} {
  func.func @kernel(%arg0: i32, %arg1: memref<2x512xbf16, #tpu.memory_space<vmem>>, %arg2: memref<2x512xbf16, #tpu.memory_space<vmem>>, %arg3: memref<1x512xf32, #tpu.memory_space<vmem>>, %arg4: memref<1x512xf32, #tpu.memory_space<vmem>>, %arg5: memref<1x512xf32, #tpu.memory_space<vmem>>, %arg6: memref<1x512xf32, #tpu.memory_space<vmem>>, %arg7: memref<2x512xbf16, #tpu.memory_space<vmem>>) attributes {dimension_semantics = [#tpu.dimension_semantics<parallel>], iteration_bounds = array<i64: 1>, scalar_prefetch = 0 : i64, scratch_operands = 0 : i64, tpu.core_type = #tpu.core_type<tc>, window_params = [{transform_indices = @transform_0, window_bounds = array<i64: 2, 512>}, {transform_indices = @transform_1, window_bounds = array<i64: 2, 512>}, {pipeline_mode = #tpu.pipeline_mode<synchronous>, transform_indices = @transform_2, window_bounds = array<i64: 1, 512>}, {pipeline_mode = #tpu.pipeline_mode<synchronous>, transform_indices = @transform_3, window_bounds = array<i64: 1, 512>}, {pipeline_mode = #tpu.pipeline_mode<synchronous>, transform_indices = @transform_4, window_bounds = array<i64: 1, 512>}, {pipeline_mode = #tpu.pipeline_mode<synchronous>, transform_indices = @transform_5, window_bounds = array<i64: 1, 512>}, {transform_indices = @transform_6, window_bounds = array<i64: 2, 512>}]} {
    %c0 = arith.constant 0 : index
    %c0_0 = arith.constant 0 : index
    %0 = vector.load %arg1[%c0, %c0_0] : memref<2x512xbf16, #tpu.memory_space<vmem>>, vector<2x512xbf16>
    %1 = arith.extf %0 : vector<2x512xbf16> to vector<2x512xf32>
    %c0_1 = arith.constant 0 : index
    %c0_2 = arith.constant 0 : index
    %2 = vector.load %arg3[%c0_1, %c0_2] : memref<1x512xf32, #tpu.memory_space<vmem>>, vector<1x512xf32>
    %3 = vector.broadcast %2 : vector<1x512xf32> to vector<2x512xf32>
    %4 = arith.mulf %1, %3 : vector<2x512xf32>
    %c0_3 = arith.constant 0 : index
    %c0_4 = arith.constant 0 : index
    %5 = vector.load %arg4[%c0_3, %c0_4] : memref<1x512xf32, #tpu.memory_space<vmem>>, vector<1x512xf32>
    %6 = vector.broadcast %5 : vector<1x512xf32> to vector<2x512xf32>
    %7 = arith.addf %4, %6 : vector<2x512xf32>
    %c0_5 = arith.constant 0 : index
    %c0_6 = arith.constant 0 : index
    %8 = vector.load %arg2[%c0_5, %c0_6] : memref<2x512xbf16, #tpu.memory_space<vmem>>, vector<2x512xbf16>
    %9 = arith.extf %8 : vector<2x512xbf16> to vector<2x512xf32>
    %c0_7 = arith.constant 0 : index
    %c0_8 = arith.constant 0 : index
    %10 = vector.load %arg5[%c0_7, %c0_8] : memref<1x512xf32, #tpu.memory_space<vmem>>, vector<1x512xf32>
    %11 = vector.broadcast %10 : vector<1x512xf32> to vector<2x512xf32>
    %12 = arith.mulf %9, %11 : vector<2x512xf32>
    %c0_9 = arith.constant 0 : index
    %c0_10 = arith.constant 0 : index
    %13 = vector.load %arg6[%c0_9, %c0_10] : memref<1x512xf32, #tpu.memory_space<vmem>>, vector<1x512xf32>
    %14 = vector.broadcast %13 : vector<1x512xf32> to vector<2x512xf32>
    %15 = arith.addf %12, %14 : vector<2x512xf32>
    %16 = arith.addf %7, %15 : vector<2x512xf32>
    %cst = arith.constant 0.000000e+00 : f32
    %17 = vector.broadcast %cst : f32 to vector<2x512xf32>
    %18 = arith.maximumf %16, %17 : vector<2x512xf32>
    %19 = arith.truncf %18 : vector<2x512xf32> to vector<2x512xbf16>
    %c0_11 = arith.constant 0 : index
    %c0_12 = arith.constant 0 : index
    %20 = vector.load %arg7[%c0_11, %c0_12] : memref<2x512xbf16, #tpu.memory_space<vmem>>, vector<2x512xbf16>
    tpu.vector_store %arg7[%c0_11, %c0_12], %19 {strides = array<i32>} : memref<2x512xbf16, #tpu.memory_space<vmem>>, vector<2x512xbf16>,
    return
  }
  func.func @transform_0(%arg0: i32) -> (i32, i32) {
    %c0_i32 = arith.constant 0 : i32
    %c0_i32_0 = arith.constant 0 : i32
    return %arg0, %c0_i32 : i32, i32
  }
  func.func @transform_1(%arg0: i32) -> (i32, i32) {
    %c0_i32 = arith.constant 0 : i32
    %c0_i32_0 = arith.constant 0 : i32
    return %arg0, %c0_i32 : i32, i32
  }
  func.func @transform_2(%arg0: i32) -> (i32, i32) {
    %c0_i32 = arith.constant 0 : i32
    %c0_i32_0 = arith.constant 0 : i32
    %c0_i32_1 = arith.constant 0 : i32
    return %c0_i32, %c0_i32_0 : i32, i32
  }
  func.func @transform_3(%arg0: i32) -> (i32, i32) {
    %c0_i32 = arith.constant 0 : i32
    %c0_i32_0 = arith.constant 0 : i32
    %c0_i32_1 = arith.constant 0 : i32
    return %c0_i32, %c0_i32_0 : i32, i32
  }
  func.func @transform_4(%arg0: i32) -> (i32, i32) {
    %c0_i32 = arith.constant 0 : i32
    %c0_i32_0 = arith.constant 0 : i32
    %c0_i32_1 = arith.constant 0 : i32
    return %c0_i32, %c0_i32_0 : i32, i32
  }
  func.func @transform_5(%arg0: i32) -> (i32, i32) {
    %c0_i32 = arith.constant 0 : i32
    %c0_i32_0 = arith.constant 0 : i32
    %c0_i32_1 = arith.constant 0 : i32
    return %c0_i32, %c0_i32_0 : i32, i32
  }
  func.func @transform_6(%arg0: i32) -> (i32, i32) {
    %c0_i32 = arith.constant 0 : i32
    %c0_i32_0 = arith.constant 0 : i32
    return %arg0, %c0_i32 : i32, i32
  }
}

module attributes {stable_mosaic.version = 11 : i64} {
  func.func @kernel(%arg0: i32, %arg1: memref<2x512xbf16, #tpu.memory_space<vmem>>, %arg2: memref<2x512xbf16, #tpu.memory_space<vmem>>, %arg3: memref<1x512xf32, #tpu.memory_space<vmem>>, %arg4: memref<1x512xf32, #tpu.memory_space<vmem>>, %arg5: memref<2x512xbf16, #tpu.memory_space<vmem>>) attributes {dimension_semantics = [#tpu.dimension_semantics<parallel>], iteration_bounds = array<i64: 1>, scalar_prefetch = 0 : i64, scratch_operands = 0 : i64, tpu.core_type = #tpu.core_type<tc>, window_params = [{transform_indices = @transform_0, window_bounds = array<i64: 2, 512>}, {transform_indices = @transform_1, window_bounds = array<i64: 2, 512>}, {pipeline_mode = #tpu.pipeline_mode<synchronous>, transform_indices = @transform_2, window_bounds = array<i64: 1, 512>}, {pipeline_mode = #tpu.pipeline_mode<synchronous>, transform_indices = @transform_3, window_bounds = array<i64: 1, 512>}, {transform_indices = @transform_4, window_bounds = array<i64: 2, 512>}]} {
    %c0 = arith.constant 0 : index
    %c0_0 = arith.constant 0 : index
    %0 = vector.load %arg1[%c0, %c0_0] : memref<2x512xbf16, #tpu.memory_space<vmem>>, vector<2x512xbf16>
    %1 = arith.extf %0 : vector<2x512xbf16> to vector<2x512xf32>
    %c0_1 = arith.constant 0 : index
    %c0_2 = arith.constant 0 : index
    %2 = vector.load %arg3[%c0_1, %c0_2] : memref<1x512xf32, #tpu.memory_space<vmem>>, vector<1x512xf32>
    %3 = vector.broadcast %2 : vector<1x512xf32> to vector<2x512xf32>
    %4 = arith.mulf %1, %3 : vector<2x512xf32>
    %c0_3 = arith.constant 0 : index
    %c0_4 = arith.constant 0 : index
    %5 = vector.load %arg4[%c0_3, %c0_4] : memref<1x512xf32, #tpu.memory_space<vmem>>, vector<1x512xf32>
    %6 = vector.broadcast %5 : vector<1x512xf32> to vector<2x512xf32>
    %7 = arith.addf %4, %6 : vector<2x512xf32>
    %c0_5 = arith.constant 0 : index
    %c0_6 = arith.constant 0 : index
    %8 = vector.load %arg2[%c0_5, %c0_6] : memref<2x512xbf16, #tpu.memory_space<vmem>>, vector<2x512xbf16>
    %9 = arith.extf %8 : vector<2x512xbf16> to vector<2x512xf32>
    %10 = arith.addf %7, %9 : vector<2x512xf32>
    %cst = arith.constant 0.000000e+00 : f32
    %11 = vector.broadcast %cst : f32 to vector<2x512xf32>
    %12 = arith.maximumf %10, %11 : vector<2x512xf32>
    %13 = arith.truncf %12 : vector<2x512xf32> to vector<2x512xbf16>
    %c0_7 = arith.constant 0 : index
    %c0_8 = arith.constant 0 : index
    %14 = vector.load %arg5[%c0_7, %c0_8] : memref<2x512xbf16, #tpu.memory_space<vmem>>, vector<2x512xbf16>
    tpu.vector_store %arg5[%c0_7, %c0_8], %13 {strides = array<i32>} : memref<2x512xbf16, #tpu.memory_space<vmem>>, vector<2x512xbf16>,
    return
  }
  func.func @transform_0(%arg0: i32) -> (i32, i32) {
    %c0_i32 = arith.constant 0 : i32
    %c0_i32_0 = arith.constant 0 : i32
    return %arg0, %c0_i32 : i32, i32
  }
  func.func @transform_1(%arg0: i32) -> (i32, i32) {
    %c0_i32 = arith.constant 0 : i32
    %c0_i32_0 = arith.constant 0 : i32
    return %arg0, %c0_i32 : i32, i32
  }
  func.func @transform_2(%arg0: i32) -> (i32, i32) {
    %c0_i32 = arith.constant 0 : i32
    %c0_i32_0 = arith.constant 0 : i32
    %c0_i32_1 = arith.constant 0 : i32
    return %c0_i32, %c0_i32_0 : i32, i32
  }
  func.func @transform_3(%arg0: i32) -> (i32, i32) {
    %c0_i32 = arith.constant 0 : i32
    %c0_i32_0 = arith.constant 0 : i32
    %c0_i32_1 = arith.constant 0 : i32
    return %c0_i32, %c0_i32_0 : i32, i32
  }
  func.func @transform_4(%arg0: i32) -> (i32, i32) {
    %c0_i32 = arith.constant 0 : i32
    %c0_i32_0 = arith.constant 0 : i32
    return %arg0, %c0_i32 : i32, i32
  }
}

</mosaic_0001>

<bundles_post_ra>
// kernel: resnet_backbone_forward.39
= control target key start
LH: loop header
LB: loop body
LE: loop exit
PB: predicated region body
PF: predicated region fallthrough
CT: control target
= control target key end

     0   :  { %s176_s0 = inlined_call_operand.vmem [shape: bf16[64,128], index: 0, kind: input, shape index: {}]   ;;  %s177_s1 = inlined_call_operand.vmem [shape: f32[1,128], index: 1, kind: input, shape index: {}]   ;;  %s178_s2 = inlined_call_operand.vmem [shape: f32[1,128], index: 2, kind: input, shape index: {}]   ;;  %s179_s3 = inlined_call_operand.vmem [shape: bf16[64,128], index: 3, kind: output, shape index: {}]  }
   0x1   :  { %v83_v0 = vld [vmem:[%s176_s0] sm:$0xff]   ;;  %v118_v5 = vld [vmem:[%s176_s0 + $0x8] sm:$0xff]   ;;  %v119_v8 = vld [vmem:[%s176_s0 + $0x10] sm:$0xff]  }
   0x2   :  { %v124_v1 = vld [vmem:[%s177_s1] ss:$0 sm:$0xff]  ;;  %v84_v2 = vunpack.c.l.bf16 %v83_v0  ;;  %v85_v3 = vunpack.c.h.bf16 %v83_v0  ;;  %v88_v6 = vunpack.c.l.bf16 %v118_v5  ;;  %v89_v7 = vunpack.c.h.bf16 %v118_v5  ;;  %v120_v9 = vld [vmem:[%s176_s0 + $0x18] sm:$0xff]  }
   0x3   :  { %v125_v4 = vld [vmem:[%s178_s2] ss:$0 sm:$0xff]  ;;  %v92_v12 = vunpack.c.l.bf16 %v119_v8  ;;  %v93_v13 = vunpack.c.h.bf16 %v119_v8  ;;  %v96_v16 = vunpack.c.l.bf16 %v120_v9  ;;  %v97_v17 = vunpack.c.h.bf16 %v120_v9 }
   0x4   :  { %v34_v10 = vmul.f32 %v124_v1, %v84_v2  ;;  %v35_v11 = vmul.f32 %v124_v1, %v85_v3  ;;  %v36_v14 = vmul.f32 %v124_v1, %v88_v6  ;;  %v37_v15 = vmul.f32 %v124_v1, %v89_v7 }
   0x5   :  { %v38_v20 = vmul.f32 %v124_v1, %v92_v12  ;;  %v39_v21 = vmul.f32 %v124_v1, %v93_v13  ;;  %v40_v24 = vmul.f32 %v124_v1, %v96_v16  ;;  %v41_v25 = vmul.f32 %v124_v1, %v97_v17 }
   0x6   :  { %v46_v18 = vadd.f32 %v125_v4, %v34_v10  ;;  %v47_v19 = vadd.f32 %v125_v4, %v35_v11  ;;  %v48_v22 = vadd.f32 %v125_v4, %v36_v14  ;;  %v49_v23 = vadd.f32 %v125_v4, %v37_v15 }
   0x7   :  { %v50_v28 = vadd.f32 %v125_v4, %v38_v20  ;;  %v51_v29 = vadd.f32 %v125_v4, %v39_v21  ;;  %v52_v32 = vadd.f32 %v125_v4, %v40_v24  ;;  %v53_v33 = vadd.f32 %v125_v4, %v41_v25 }
   0x8   :  { %v54_v26 = vmax.f32 %v46_v18, 0.0  ;;  %v55_v27 = vmax.f32 %v47_v19, 0.0  ;;  %v56_v30 = vmax.f32 %v48_v22, 0.0  ;;  %v57_v31 = vmax.f32 %v49_v23, 0.0 }
   0x9   :  { %v58_v35 = vmax.f32 %v50_v28, 0.0  ;;  %v59_v36 = vmax.f32 %v51_v29, 0.0  ;;  %v60_v38 = vmax.f32 %v52_v32, 0.0  ;;  %v61_v39 = vmax.f32 %v53_v33, 0.0 }
   0xa   :  { %v101_v34 = vpack.c.bf16 %v55_v27, %v54_v26  ;;  %v106_v37 = vpack.c.bf16 %v57_v31, %v56_v30 }
   0xb   :  { %v111_v40 = vpack.c.bf16 %v59_v36, %v58_v35  ;;  %v116_v41 = vpack.c.bf16 %v61_v39, %v60_v38 }
   0xc   :  { %102 = vst [vmem:[%s179_s3] sm:$0xff] %v101_v34  }
   0xd   :  { %121 = vst [vmem:[%s179_s3 + $0x8] sm:$0xff] %v106_v37  }
   0xe   :  { %122 = vst [vmem:[%s179_s3 + $0x10] sm:$0xff] %v111_v40  }
   0xf   :  { %123 = vst [vmem:[%s179_s3 + $0x18] sm:$0xff] %v116_v41  }

// kernel: resnet_backbone_forward.40
= control target key start
LH: loop header
LB: loop body
LE: loop exit
PB: predicated region body
PF: predicated region fallthrough
CT: control target
= control target key end

     0   :  { %s629_s15 = smov 0   ;;  %s707_s0 = inlined_call_operand.vmem [shape: bf16[2,5,5,64], index: 0, kind: input, shape index: {}]   ;;  %s708_s1 = inlined_call_operand.vmem [shape: bf16[2,5,4,64], index: 1, kind: input, shape index: {}]   ;;  %s709_s2 = inlined_call_operand.vmem [shape: bf16[2,4,5,64], index: 2, kind: input, shape index: {}]   ;;  %s710_s3 = inlined_call_operand.vmem [shape: bf16[2,4,4,64], index: 3, kind: input, shape index: {}]   ;;  %s711_s4 = inlined_call_operand.vmem [shape: bf16[2,4,4,64], index: 4, kind: output, shape index: {}]  }
   0x1 LB: > { %s556_s16 = sadd.s32 4294967295, %s602_s15   ;;  %p560_p0 = scmp.ge.s32.totalorder %s602_s15, 1  ;;  %s602_s15 = sphi %s629_s15, %s14_s15  }
   0x2   : > { %p192_p1 = scmp.lt.s32.totalorder %s602_s15, 3 }
   0x4   : > { %p193_p2 = pnand %p560_p0, %p192_p1 }
   0x5   : > { %p233_p3 = scmp.lt.s32.totalorder (!%p193_p2), %s556_s16, 1 }
   0x6   : > { %196 = sbr.rel (%p193_p2) target bundleno = 45 (0x2d), region = 36 }
   0xb   : > { %s713_s16 = smov (!%p233_p3, %s556_s16), 1  ;;  %vm460_vm0 = vcmask 517120  }
   0xc   : > { %s586_s17 = smul.u32 20, %s713_s16  ;;  %s583_s18 = sshll.u32 %s713_s16, 4 }
   0xd   : > { %s587_s19 = smul.u32 10, %s713_s16  ;;  %s645_s22 = scalar_lea.vmem %s709_s2, %s583_s18 }
   0xe   : > { %s650_s25 = scalar_lea.vmem %s707_s0, %s586_s17  ;;  %s584_s26 = sshll.u32 %s713_s16, 3  ;;  %v428_v9 = vld [vmem:[%s645_s22] sm:$0x7]  ;;  %v409_v54 = vld [vmem:[%s645_s22 + $0x4] sm:$0x3] }
   0xf   : > { %s252_s29 = scalar_lea.vmem %s710_s3, %s584_s26  ;;  %v262_v0 = vld [vmem:[%s650_s25] sm:$0x3]  ;;  %v263_v1 = vld [vmem:[%s650_s25 + $0x4] sm:$0x3]  ;;  %v264_v2 = vld [vmem:[%s650_s25 + $0x8] sm:$0x3]  ;;  %s667_s6 = scalar_lea.vmem %s708_s1, %s587_s19  ;;  %v436_v36 = vunpack.c.l.bf16 %v428_v9 }
  0x10   : > { %v258_v3 = vld [vmem:[%s252_s29] sm:$0x3]  ;;  %v259_v4 = vld [vmem:[%s252_s29 + $0x2] sm:$0x3]  ;;  %v260_v5 = vld [vmem:[%s252_s29 + $0x4] sm:$0x3]  ;;  %v270_v6 = vunpack.c.l.bf16 %v262_v0  ;;  %v271_v7 = vunpack.c.l.bf16 %v263_v1  ;;  %v272_v8 = vunpack.c.l.bf16 %v264_v2  ;;  %s257_s9 = scalar_lea.vmem %s711_s4, %s584_s26 }
  0x11   : > { %v261_v10 = vld [vmem:[%s252_s29 + $0x6] sm:$0x3]  ;;  %v265_v11 = vld [vmem:[%s650_s25 + $0xc] sm:$0x3]  ;;  %v266_v12 = vunpack.c.l.bf16 %v258_v3  ;;  %v267_v13 = vunpack.c.l.bf16 %v259_v4  ;;  %v268_v14 = vunpack.c.l.bf16 %v260_v5  ;;  %v282_v15 = vld [vmem:[%s650_s25] sm:$0x7] }
  0x12   : > { %v269_v16 = vunpack.c.l.bf16 %v261_v10  ;;  %v273_v17 = vunpack.c.l.bf16 %v265_v11  ;;  %v283_v18 = vld [vmem:[%s650_s25 + $0x4] sm:$0x7]  ;;  %v284_v19 = vld [vmem:[%s650_s25 + $0x8] sm:$0x7]  ;;  %v285_v20 = vld [vmem:[%s650_s25 + $0xc] sm:$0x7]  ;;  %v290_v21 = vunpack.c.l.bf16 %v282_v15 }
  0x13   : > { %v274_v22 = vmax.f32 %v266_v12, %v270_v6  ;;  %v275_v23 = vmax.f32 %v267_v13, %v271_v7  ;;  %v291_v24 = vunpack.c.l.bf16 %v283_v18  ;;  %v569_v25 = vld [vmem:[%s650_s25 + $0x4] sm:$0x3]  ;;  %v276_v27 = vmax.f32 %v268_v14, %v272_v8  ;;  %v570_v31 = vld [vmem:[%s650_s25 + $0x8] sm:$0x3]  ;;  %v367_v35 = vld [vmem:[%s667_s6] sm:$0x3] }
  0x14   : > { %v573_v26 = vld [vmem:[%s650_s25 + $0x4] sm:$0x7]  ;;  %v292_v28 = vunpack.c.l.bf16 %v284_v19  ;;  %v293_v29 = vunpack.c.l.bf16 %v285_v20  ;;  %v298_v30 = vrot.slane %v290_v21, 1  ;;  %v323_v33 = vunpack.c.l.bf16 %v569_v25  ;;  %v574_v37 = vld [vmem:[%s650_s25 + $0x8] sm:$0x7] }
  0x15   : > { %v299_v32 = vrot.slane %v291_v24, 1  ;;  %v343_v34 = vunpack.c.l.bf16 %v573_v26  ;;  %v277_v38 = vmax.f32 %v269_v16, %v273_v17  ;;  %v577_v41 = vld [vmem:[%s667_s6 + $0x2] sm:$0x3]  ;;  %v408_v42 = vld [vmem:[%s645_s22] sm:$0x3]  ;;  %v324_v46 = vunpack.c.l.bf16 %v570_v31 }
  0x16   : > { %v300_v39 = vrot.slane %v292_v28, 1  ;;  %v306_v40 = vmax.f32 %v274_v22, %v298_v30  ;;  %v301_v43 = vrot.slane %v293_v29, 1  ;;  %v368_v47 = vld [vmem:[%s667_s6 + $0x2] sm:$0x3]  ;;  %v571_v48 = vld [vmem:[%s650_s25 + $0xc] sm:$0x3]  ;;  %v375_v51 = vunpack.c.l.bf16 %v367_v35 }
  0x17   : > { %v307_v44 = vmax.f32 %v275_v23, %v299_v32  ;;  %v351_v45 = vrot.slane %v343_v34, 1  ;;  %v344_v52 = vunpack.c.l.bf16 %v574_v37  ;;  %v578_v53 = vld [vmem:[%s667_s6 + $0x4] sm:$0x3]  ;;  %v575_v55 = vld [vmem:[%s650_s25 + $0xc] sm:$0x7]  ;;  %v396_v56 = vunpack.c.l.bf16 %v577_v41 }
  0x18   : > { %v308_v49 = vmax.f32 %v276_v27, %v300_v39  ;;  %v327_v50 = vmax.f32 %v306_v40, %v323_v33  ;;  %v416_v57 = vunpack.c.l.bf16 %v408_v42  ;;  %v444_v58 = vrot.slane %v436_v36, 1  ;;  %v429_v60 = vld [vmem:[%s645_s22 + $0x4] sm:$0x7]  ;;  %v572_v2 = vld [vmem:[%s650_s25 + $0x10] sm:$0x3] }
  0x19   : > { %v328_v59 = vmax.f32 %v307_v44, %v324_v46  ;;  %v369_v61 = vld [vmem:[%s667_s6 + $0x4] sm:$0x3]  ;;  %v352_v63 = vrot.slane %v344_v52, 1  ;;  %v376_v0 = vunpack.c.l.bf16 %v368_v47  ;;  %v325_v1 = vunpack.c.l.bf16 %v571_v48  ;;  %v576_v3 = vld [vmem:[%s650_s25 + $0x10] sm:$0x7] }
  0x1a   : > { %v359_v62 = vmax.f32 %v327_v50, %v351_v45  ;;  %v309_v4 = vmax.f32 %v277_v38, %v301_v43  ;;  %v397_v5 = vunpack.c.l.bf16 %v578_v53  ;;  %v417_v6 = vunpack.c.l.bf16 %v409_v54  ;;  %v579_v8 = vld [vmem:[%s667_s6 + $0x6] sm:$0x3]  ;;  %v430_v9 = vld [vmem:[%s645_s22 + $0x8] sm:$0x7]  ;;  %v431_v25 = vld [vmem:[%s645_s22 + $0xc] sm:$0x7] }
  0x1b   : > { %v345_v7 = vunpack.c.l.bf16 %v575_v55  ;;  %v360_v11 = vmax.f32 %v328_v59, %v352_v63  ;;  %v437_v12 = vunpack.c.l.bf16 %v429_v60  ;;  %v329_v13 = vmax.f32 %v308_v49, %v325_v1  ;;  %v370_v14 = vld [vmem:[%s667_s6 + $0x6] sm:$0x3]  ;;  %v410_v17 = vld [vmem:[%s645_s22 + $0x8] sm:$0x3]  ;;  %v411_v34 = vld [vmem:[%s645_s22 + $0xc] sm:$0x3] }
  0x1c   : > { %v379_v10 = vmax.f32 %v359_v62, %v375_v51  ;;  %v377_v16 = vunpack.c.l.bf16 %v369_v61  ;;  %v326_v18 = vunpack.c.l.bf16 %v572_v2  ;;  %v346_v19 = vunpack.c.l.bf16 %v576_v3  ;;  %v580_v24 = vld [vmem:[%s667_s6 + $0x8] sm:$0x3] }
  0x1d   : > { %v353_v15 = vrot.slane %v345_v7, 1  ;;  %v380_v21 = vmax.f32 %v360_v11, %v376_v0  ;;  %v398_v22 = vunpack.c.l.bf16 %v579_v8  ;;  %v438_v23 = vunpack.c.l.bf16 %v430_v9 }
  0x1e   : > { %v400_v20 = vmax.f32 %v379_v10, %v396_v56  ;;  %v330_v27 = vmax.f32 %v309_v4, %v326_v18  ;;  %v354_v28 = vrot.slane %v346_v19, 1  ;;  %v378_v29 = vunpack.c.l.bf16 %v370_v14 }
  0x1f   : > { %v361_v26 = vmax.f32 %v329_v13, %v353_v15  ;;  %v401_v31 = vmax.f32 %v380_v21, %v397_v5  ;;  %v445_v32 = vrot.slane %v437_v12, 1  ;;  %v418_v33 = vunpack.c.l.bf16 %v410_v17 }
  0x20   : > { %v420_v30 = vmax.f32 %v400_v20, %v416_v57  ;;  %v362_v36 = vmax.f32 %v330_v27, %v354_v28  ;;  %v399_v37 = vunpack.c.l.bf16 %v580_v24  ;;  %v439_v38 = vunpack.c.l.bf16 %v431_v25 }
  0x21   : > { %v381_v35 = vmax.f32 %v361_v26, %v377_v16  ;;  %v421_v40 = vmax.f32 %v401_v31, %v417_v6  ;;  %v446_v42 = vrot.slane %v438_v23, 1  ;;  %v419_v44 = vunpack.c.l.bf16 %v411_v34 }
  0x22   : > { %v452_v39 = vmax.f32 %v420_v30, %v444_v58  ;;  %v382_v43 = vmax.f32 %v362_v36, %v378_v29  ;;  %v447_v49 = vrot.slane %v439_v38, 1 }
  0x23   : > { %v402_v41 = vmax.f32 %v381_v35, %v398_v22  ;;  %v453_v46 = vmax.f32 %v421_v40, %v445_v32 }
  0x24   : > { %v456_v45 = vpack.c.bf16 %v452_v39, %v452_v39  ;;  %v403_v48 = vmax.f32 %v382_v43, %v399_v37 }
  0x25   : > { %v422_v47 = vmax.f32 %v402_v41, %v418_v33  ;;  %v457_v50 = vpack.c.bf16 %v453_v46, %v453_v46 }
  0x26   : > { %461 = vst.msk [vmem:[%s257_s9] sm:$0x3] %vm460_vm0, %v456_v45  ;;  %v423_v52 = vmax.f32 %v403_v48, %v419_v44 }
  0x27   : > { %v454_v51 = vmax.f32 %v422_v47, %v446_v42  ;;  %462 = vst.msk [vmem:[%s257_s9 + $0x2] sm:$0x3] %vm460_vm0, %v457_v50 }
  0x28   : > { %v455_v54 = vmax.f32 %v423_v52, %v447_v49 }
  0x29   : > { %v458_v53 = vpack.c.bf16 %v454_v51, %v454_v51 }
  0x2a   : > { %v459_v55 = vpack.c.bf16 %v455_v54, %v455_v54 }
  0x2b   : > { %463 = vst.msk [vmem:[%s257_s9 + $0x4] sm:$0x3] %vm460_vm0, %v458_v53 }
  0x2c   : > { %464 = vst.msk [vmem:[%s257_s9 + $0x6] sm:$0x3] %vm460_vm0, %v459_v55 }
  0x2d PF: > { %s14_s15 = sadd.s32 1, %s602_s15  }
  0x2e   : > { %p11_p4 = scmp.ge.s32.totalorder %s14_s15, 4  }
  0x30   :  { %13 = sbr.rel (!%p11_p4) target bundleno = 1 (0x1), region = 77 }

// kernel: resnet_backbone_forward.38
= control target key start
LH: loop header
LB: loop body
LE: loop exit
PB: predicated region body
PF: predicated region fallthrough
CT: control target
= control target key end

     0   :  { %9 = vsyncpa [#allocation4], 0  ;;  %s847_s15 = smov [#allocation3]   ;;  %s848_s17 = smov 64   ;;  %s1110_s0 = inlined_call_operand.vmem [shape: bf16[128,256], index: 0, kind: input, shape index: {}]   ;;  %s1111_s1 = inlined_call_operand.hbm [shape: bf16[256,128], index: 1, kind: input, shape index: {}]   ;;  %s1112_s2 = inlined_call_operand.vmem [shape: bf16[128,64], index: 2, kind: output, shape index: {0}]   ;;  %s1113_s3 = inlined_call_operand.vmem [shape: f32[1,2,64], index: 3, kind: output, shape index: {1}]  }
   0x1   :  { %s16_s14 = sshll.u32 %s1111_s1, 4  ;;  %s18_s16 = sshll.u32 %s847_s15, 4  ;;  %s17_s14 = int_to_ptr.hbm [resolvable:$true] %s16_s14  ;;  %s19_s16 = int_to_ptr.vmem [resolvable:$true] %s18_s16 }
   0x2   :  { %s849_s18 = smov 4  }
   0x3   :  { %24 = dma.hbm_to_vmem [thread:$0]  %s17_s14, 2048, %s19_s16, [#allocation4], %s848_s17, %s848_s17, %s849_s18  }
   0x4   :  { %845 = dma.done.wait [#allocation4], 2048  }
   0x5   :  { %846 = vsyncadd [#allocation4], 4294965248  ;;  %v793_v0 = vld [vmem:[#allocation3 + $0x38] sm:$0xff]  ;;  %v792_v2 = vld [vmem:[#allocation3 + $0x30] sm:$0xff]  ;;  %vm455_vm0 = vcmask 519168   ;;  %vm538_vm1 = vcmask 523264  }
   0x6   :  { %v801_v1 = vld [vmem:[#allocation3 + $0x78] sm:$0xff]  ;;  %290 = vmatpush.bf16.msra.mxu0 %v793_v0  ;;  %v800_v3 = vld [vmem:[#allocation3 + $0x70] sm:$0xff]  ;;  %802 = vmatpush.bf16.msra.mxu2 %v793_v0  ;;  %v791_v4 = vld [vmem:[#allocation3 + $0x28] sm:$0xff]  ;;  %vm629_vm2 = vcmask 1040384   ;;  %vm631_vm3 = vcmask 517120  }
   0x7   :  { %339 = vmatpush.bf16.msra.mxu1 %v801_v1  ;;  %810 = vmatpush.bf16.msra.mxu3 %v801_v1  ;;  %v799_v5 = vld [vmem:[#allocation3 + $0x68] sm:$0xff]  ;;  %v790_v6 = vld [vmem:[#allocation3 + $0x20] sm:$0xff]  ;;  %v789_v8 = vld [vmem:[#allocation3 + $0x18] sm:$0xff] }
   0x8   :  { %v798_v7 = vld [vmem:[#allocation3 + $0x60] sm:$0xff]  ;;  %v797_v9 = vld [vmem:[#allocation3 + $0x58] sm:$0xff]  ;;  %v788_v10 = vld [vmem:[#allocation3 + $0x10] sm:$0xff] }
   0x9   :  { %v796_v11 = vld [vmem:[#allocation3 + $0x50] sm:$0xff]  ;;  %v787_v12 = vld [vmem:[#allocation3 + $0x8] sm:$0xff]  ;;  %v786_v14 = vld [vmem:[#allocation3] sm:$0xff] }
   0xa   :  { %291 = vmatpush.bf16.msra.mxu0 %v792_v2  ;;  %803 = vmatpush.bf16.msra.mxu2 %v792_v2  ;;  %v795_v13 = vld [vmem:[#allocation3 + $0x48] sm:$0xff]  ;;  %v794_v15 = vld [vmem:[#allocation3 + $0x40] sm:$0xff]  ;;  %v652_v28 = vld [vmem:[%s1110_s0 + $0x10] sm:$0xf] }
   0xb   :  { %340 = vmatpush.bf16.msra.mxu1 %v800_v3  ;;  %811 = vmatpush.bf16.msra.mxu3 %v800_v3  ;;  %v644_v16 = vld [vmem:[%s1110_s0] sm:$0xf]  ;;  %v771_v17 = vld [vmem:[%s1110_s0 + $0x4] sm:$0xf0]  ;;  %v770_v18 = vld [vmem:[%s1110_s0 + $0x4] sm:$0xf] }
   0xc   :  { %v646_v19 = vld [vmem:[%s1110_s0 + $0x8] sm:$0xf0]  ;;  %v676_v20 = vld [vmem:[%s1110_s0 + $0x40] sm:$0xf]  ;;  %v779_v21 = vld [vmem:[%s1110_s0 + $0x44] sm:$0xf0]  ;;  %v645_v24 = vor.u32 %v771_v17, %v644_v16 }
   0xd   :  { %v778_v22 = vld [vmem:[%s1110_s0 + $0x44] sm:$0xf]  ;;  %v678_v23 = vld [vmem:[%s1110_s0 + $0x48] sm:$0xf0]  ;;  %v649_v25 = vor.u32 %v770_v18, %v646_v19  ;;  %v677_v26 = vor.u32 %v779_v21, %v676_v20  ;;  %v773_v29 = vld [vmem:[%s1110_s0 + $0x14] sm:$0xf0] }
   0xe   :  { %292 = vmatpush.bf16.msra.mxu0 %v791_v4  ;;  %804 = vmatpush.bf16.msra.mxu2 %v791_v4  ;;  %v681_v27 = vor.u32 %v778_v22, %v678_v23  ;;  %v772_v30 = vld [vmem:[%s1110_s0 + $0x14] sm:$0xf]  ;;  %v654_v31 = vld [vmem:[%s1110_s0 + $0x18] sm:$0xf0]  ;;  %v684_v32 = vld [vmem:[%s1110_s0 + $0x50] sm:$0xf]  ;;  %v653_v36 = vor.u32 %v773_v29, %v652_v28 }
   0xf   :  { %341 = vmatpush.bf16.msra.mxu1 %v799_v5  ;;  %812 = vmatpush.bf16.msra.mxu3 %v799_v5  ;;  %v781_v33 = vld [vmem:[%s1110_s0 + $0x54] sm:$0xf0]  ;;  %v780_v34 = vld [vmem:[%s1110_s0 + $0x54] sm:$0xf]  ;;  %v686_v35 = vld [vmem:[%s1110_s0 + $0x58] sm:$0xf0]  ;;  %v657_v37 = vor.u32 %v772_v30, %v654_v31 }
  0x10   :  { %v685_v38 = vor.u32 %v781_v33, %v684_v32  ;;  %v689_v39 = vor.u32 %v780_v34, %v686_v35  ;;  %v660_v40 = vld [vmem:[%s1110_s0 + $0x20] sm:$0xf]  ;;  %v775_v41 = vld [vmem:[%s1110_s0 + $0x24] sm:$0xf0]  ;;  %v774_v42 = vld [vmem:[%s1110_s0 + $0x24] sm:$0xf] }
  0x11   :  { %v662_v43 = vld [vmem:[%s1110_s0 + $0x28] sm:$0xf0]  ;;  %v692_v44 = vld [vmem:[%s1110_s0 + $0x60] sm:$0xf]  ;;  %v783_v45 = vld [vmem:[%s1110_s0 + $0x64] sm:$0xf0]  ;;  %v661_v48 = vor.u32 %v775_v41, %v660_v40 }
  0x12   :  { %293 = vmatpush.bf16.msra.mxu0 %v790_v6  ;;  %805 = vmatpush.bf16.msra.mxu2 %v790_v6  ;;  %v782_v46 = vld [vmem:[%s1110_s0 + $0x64] sm:$0xf]  ;;  %v694_v47 = vld [vmem:[%s1110_s0 + $0x68] sm:$0xf0]  ;;  %v665_v49 = vor.u32 %v774_v42, %v662_v43  ;;  %v693_v50 = vor.u32 %v783_v45, %v692_v44  ;;  %v668_v52 = vld [vmem:[%s1110_s0 + $0x30] sm:$0xf] }
  0x13   :  { %342 = vmatpush.bf16.msra.mxu1 %v798_v7  ;;  %813 = vmatpush.bf16.msra.mxu3 %v798_v7  ;;  %v697_v51 = vor.u32 %v782_v46, %v694_v47  ;;  %v777_v53 = vld [vmem:[%s1110_s0 + $0x34] sm:$0xf0]  ;;  %v776_v54 = vld [vmem:[%s1110_s0 + $0x34] sm:$0xf]  ;;  %v670_v55 = vld [vmem:[%s1110_s0 + $0x38] sm:$0xf0] }
  0x14   :  { %v700_v56 = vld [vmem:[%s1110_s0 + $0x70] sm:$0xf]  ;;  %v785_v57 = vld [vmem:[%s1110_s0 + $0x74] sm:$0xf0]  ;;  %v784_v58 = vld [vmem:[%s1110_s0 + $0x74] sm:$0xf]  ;;  %v669_v60 = vor.u32 %v777_v53, %v668_v52  ;;  %v673_v61 = vor.u32 %v776_v54, %v670_v55 }
  0x15   :  { %v702_v59 = vld [vmem:[%s1110_s0 + $0x78] sm:$0xf0]  ;;  %v701_v62 = vor.u32 %v785_v57, %v700_v56 }
  0x16   :  { %294 = vmatpush.bf16.msra.mxu0 %v789_v8  ;;  %806 = vmatpush.bf16.msra.mxu2 %v789_v8  ;;  %v705_v63 = vor.u32 %v784_v58, %v702_v59 }
  0x17   :  { %343 = vmatpush.bf16.msra.mxu1 %v797_v9  ;;  %814 = vmatpush.bf16.msra.mxu3 %v797_v9 }
  0x1a   :  { %295 = vmatpush.bf16.msra.mxu0 %v788_v10  ;;  %807 = vmatpush.bf16.msra.mxu2 %v788_v10 }
  0x1b   :  { %344 = vmatpush.bf16.msra.mxu1 %v796_v11  ;;  %815 = vmatpush.bf16.msra.mxu3 %v796_v11 }
  0x1e   :  { %296 = vmatpush.bf16.msra.mxu0 %v787_v12  ;;  %808 = vmatpush.bf16.msra.mxu2 %v787_v12 }
  0x1f   :  { %345 = vmatpush.bf16.msra.mxu1 %v795_v13  ;;  %816 = vmatpush.bf16.msra.mxu3 %v795_v13 }
  0x22   :  { %297 = vmatpush.bf16.msra.mxu0 %v786_v14  ;;  %809 = vmatpush.bf16.msra.mxu2 %v786_v14 }
  0x23   :  { %346 = vmatpush.bf16.msra.mxu1 %v794_v15  ;;  %817 = vmatpush.bf16.msra.mxu3 %v794_v15 }
  0x25   :  { %298 = vmatmul.bf16.vlgmr.msra.gmra.mxu0 %v645_v24  ;;  %318 = vmatmul.bf16.vlgmr.msra.gmra.mxu2 %v677_v26 }
  0x26   :  { %347 = vmatmul.bf16.vlgmr.msra.gmra.mxu1 %v649_v25  ;;  %367 = vmatmul.bf16.vlgmr.msra.gmra.mxu3 %v681_v27 }
  0x35   :  { %303 = vmatmul.bf16.gmra.mxu0 %v653_v36  ;;  %323 = vmatmul.bf16.gmra.mxu2 %v685_v38 }
  0x36   :  { %352 = vmatmul.bf16.gmra.mxu1 %v657_v37  ;;  %372 = vmatmul.bf16.gmra.mxu3 %v689_v39 }
  0x45   :  { %308 = vmatmul.bf16.gmra.mxu0 %v661_v48  ;;  %328 = vmatmul.bf16.gmra.mxu2 %v693_v50 }
  0x46   :  { %357 = vmatmul.bf16.gmra.mxu1 %v665_v49  ;;  %377 = vmatmul.bf16.gmra.mxu3 %v697_v51 }
  0x55   :  { %313 = vmatmul.bf16.gmra.mxu0 %v669_v60  ;;  %333 = vmatmul.bf16.gmra.mxu2 %v701_v62 }
  0x56   :  { %362 = vmatmul.bf16.gmra.mxu1 %v673_v61  ;;  %382 = vmatmul.bf16.gmra.mxu3 %v705_v63 }
  0xa2   :  { %v299_v0 = vpop.f32.mrf.mxu0 }
  0xa3   :  { %v348_v1 = vpop.f32.mrf.mxu1 }
  0xa4   :  { %v349_v2 = vadd.f32 %v348_v1, %v299_v0 }
  0xa6   :  { %v439_v3 = vpack.c.bf16 %v349_v2, %v349_v2  ;;  %v576_v45 = vmul.f32 %v349_v2, %v349_v2  ;;  %v539_v48 = vsel %vm538_vm1, %v349_v2, 0.0 }
  0xa8   :  { %456 = vst.msk [vmem:[%s1112_s2] sm:$0xf] %vm455_vm0, %v439_v3  ;;  %v319_v4 = vpop.f32.mrf.mxu2  ;;  %v592_v54 = vsel %vm538_vm1, %v576_v45, 0.0 }
  0xa9   :  { %v368_v5 = vpop.f32.mrf.mxu3 }
  0xaa   :  { %v301_v6 = vpop.f32.mrf.mxu0  ;;  %v973_v8 = vadd.f32 %v368_v5, %v319_v4 }
  0xab   :  { %v350_v7 = vpop.f32.mrf.mxu1 }
  0xac   :  { %v351_v9 = vadd.f32 %v350_v7, %v301_v6  ;;  %v447_v10 = vpack.c.bf16 %v973_v8, %v973_v8 }
  0xae   :  { %v440_v11 = vpack.c.bf16 %v351_v9, %v351_v9  ;;  %464 = vst.msk [vmem:[%s1112_s2 + $0x20] sm:$0xf] %vm455_vm0, %v447_v10  ;;  %v577_v43 = vmul.f32 %v351_v9, %v351_v9  ;;  %v540_v46 = vsel %vm538_vm1, %v351_v9, 0.0 }
  0xaf   :  { %v541_v55 = vadd.f32 %v540_v46, %v539_v48 }
  0xb0   :  { %457 = vst.msk [vmem:[%s1112_s2 + $0x4] sm:$0xf] %vm455_vm0, %v440_v11  ;;  %v321_v12 = vpop.f32.mrf.mxu2  ;;  %v593_v49 = vsel %vm538_vm1, %v577_v43, 0.0 }
  0xb1   :  { %v370_v13 = vpop.f32.mrf.mxu3  ;;  %v594_v63 = vadd.f32 %v593_v49, %v592_v54 }
  0xb2   :  { %v304_v14 = vpop.f32.mrf.mxu0  ;;  %v985_v16 = vadd.f32 %v370_v13, %v321_v12 }
  0xb3   :  { %v353_v15 = vpop.f32.mrf.mxu1 }
  0xb4   :  { %v354_v17 = vadd.f32 %v353_v15, %v304_v14  ;;  %v448_v18 = vpack.c.bf16 %v985_v16, %v985_v16 }
  0xb6   :  { %v441_v19 = vpack.c.bf16 %v354_v17, %v354_v17  ;;  %465 = vst.msk [vmem:[%s1112_s2 + $0x24] sm:$0xf] %vm455_vm0, %v448_v18  ;;  %v578_v47 = vmul.f32 %v354_v17, %v354_v17  ;;  %v542_v50 = vsel %vm538_vm1, %v354_v17, 0.0 }
  0xb7   :  { %v543_v0 = vadd.f32 %v542_v50, %v541_v55 }
  0xb8   :  { %458 = vst.msk [vmem:[%s1112_s2 + $0x8] sm:$0xf] %vm455_vm0, %v441_v19  ;;  %v324_v20 = vpop.f32.mrf.mxu2  ;;  %v595_v59 = vsel %vm538_vm1, %v578_v47, 0.0 }
  0xb9   :  { %v373_v21 = vpop.f32.mrf.mxu3  ;;  %v596_v6 = vadd.f32 %v595_v59, %v594_v63 }
  0xba   :  { %v306_v22 = vpop.f32.mrf.mxu0  ;;  %v997_v24 = vadd.f32 %v373_v21, %v324_v20 }
  0xbb   :  { %v355_v23 = vpop.f32.mrf.mxu1 }
  0xbc   :  { %v356_v25 = vadd.f32 %v355_v23, %v306_v22  ;;  %v449_v26 = vpack.c.bf16 %v997_v24, %v997_v24 }
  0xbe   :  { %v442_v27 = vpack.c.bf16 %v356_v25, %v356_v25  ;;  %466 = vst.msk [vmem:[%s1112_s2 + $0x28] sm:$0xf] %vm455_vm0, %v449_v26  ;;  %v579_v51 = vmul.f32 %v356_v25, %v356_v25  ;;  %v544_v60 = vsel %vm538_vm1, %v356_v25, 0.0 }
  0xbf   :  { %v545_v7 = vadd.f32 %v544_v60, %v543_v0 }
  0xc0   :  { %459 = vst.msk [vmem:[%s1112_s2 + $0xc] sm:$0xf] %vm455_vm0, %v442_v27  ;;  %v326_v28 = vpop.f32.mrf.mxu2  ;;  %v597_v2 = vsel %vm538_vm1, %v579_v51, 0.0  ;;  %v558_v51 = vsel %vm538_vm1, %v997_v24, 0.0 }
  0xc1   :  { %v375_v29 = vpop.f32.mrf.mxu3  ;;  %v598_v12 = vadd.f32 %v597_v2, %v596_v6 }
  0xc2   :  { %v309_v30 = vpop.f32.mrf.mxu0  ;;  %v1009_v32 = vadd.f32 %v375_v29, %v326_v28 }
  0xc3   :  { %v358_v31 = vpop.f32.mrf.mxu1 }
  0xc4   :  { %v359_v33 = vadd.f32 %v358_v31, %v309_v30  ;;  %v450_v34 = vpack.c.bf16 %v1009_v32, %v1009_v32  ;;  %v584_v30 = vmul.f32 %v973_v8, %v973_v8 }
  0xc6   :  { %v443_v35 = vpack.c.bf16 %v359_v33, %v359_v33  ;;  %467 = vst.msk [vmem:[%s1112_s2 + $0x2c] sm:$0xf] %vm455_vm0, %v450_v34  ;;  %v580_v61 = vmul.f32 %v359_v33, %v359_v33  ;;  %v546_v3 = vsel %vm538_vm1, %v359_v33, 0.0  ;;  %v607_v43 = vsel %vm538_vm1, %v584_v30, 0.0 }
  0xc7   :  { %v547_v13 = vadd.f32 %v546_v3, %v545_v7 }
  0xc8   :  { %460 = vst.msk [vmem:[%s1112_s2 + $0x10] sm:$0xf] %vm455_vm0, %v443_v35  ;;  %v329_v36 = vpop.f32.mrf.mxu2  ;;  %v599_v9 = vsel %vm538_vm1, %v580_v61, 0.0 }
  0xc9   :  { %v378_v37 = vpop.f32.mrf.mxu3  ;;  %v600_v19 = vadd.f32 %v599_v9, %v598_v12 }
  0xca   :  { %v311_v38 = vpop.f32.mrf.mxu0  ;;  %v1021_v40 = vadd.f32 %v378_v37, %v329_v36  ;;  %v554_v37 = vsel %vm538_vm1, %v973_v8, 0.0  ;;  %v586_v8 = vmul.f32 %v997_v24, %v997_v24 }
  0xcb   :  { %v360_v39 = vpop.f32.mrf.mxu1 }
  0xcc   :  { %v361_v41 = vadd.f32 %v360_v39, %v311_v38  ;;  %v451_v42 = vpack.c.bf16 %v1021_v40, %v1021_v40  ;;  %v585_v38 = vmul.f32 %v985_v16, %v985_v16  ;;  %v562_v61 = vsel %vm538_vm1, %v1021_v40, 0.0 }
  0xce   :  { %v444_v44 = vpack.c.bf16 %v361_v41, %v361_v41  ;;  %468 = vst.msk [vmem:[%s1112_s2 + $0x30] sm:$0xf] %vm455_vm0, %v451_v42  ;;  %v581_v4 = vmul.f32 %v361_v41, %v361_v41  ;;  %v548_v10 = vsel %vm538_vm1, %v361_v41, 0.0  ;;  %v609_v50 = vsel %vm538_vm1, %v585_v38, 0.0 }
  0xcf   :  { %v549_v20 = vadd.f32 %v548_v10, %v547_v13 }
  0xd0   :  { %461 = vst.msk [vmem:[%s1112_s2 + $0x14] sm:$0xf] %vm455_vm0, %v444_v44  ;;  %v331_v52 = vpop.f32.mrf.mxu2  ;;  %v601_v14 = vsel %vm538_vm1, %v581_v4, 0.0  ;;  %v556_v44 = vsel %vm538_vm1, %v985_v16, 0.0  ;;  %v611_v16 = vsel %vm538_vm1, %v586_v8, 0.0 }
  0xd1   :  { %v380_v53 = vpop.f32.mrf.mxu3  ;;  %v602_v27 = vadd.f32 %v601_v14, %v600_v19 }
  0xd2   :  { %v314_v56 = vpop.f32.mrf.mxu0  ;;  %v1038_v58 = vadd.f32 %v380_v53, %v331_v52  ;;  %v587_v52 = vmul.f32 %v1009_v32, %v1009_v32 }
  0xd3   :  { %v363_v57 = vpop.f32.mrf.mxu1 }
  0xd4   :  { %v364_v62 = vadd.f32 %v363_v57, %v314_v56  ;;  %v452_v1 = vpack.c.bf16 %v1038_v58, %v1038_v58  ;;  %v560_v56 = vsel %vm538_vm1, %v1009_v32, 0.0  ;;  %v588_v57 = vmul.f32 %v1021_v40, %v1021_v40 }
  0xd5   :  { %v613_v24 = vsel %vm538_vm1, %v587_v52, 0.0 }
  0xd6   :  { %v445_v5 = vpack.c.bf16 %v364_v62, %v364_v62  ;;  %469 = vst.msk [vmem:[%s1112_s2 + $0x34] sm:$0xf] %vm455_vm0, %v452_v1  ;;  %v582_v11 = vmul.f32 %v364_v62, %v364_v62  ;;  %v550_v15 = vsel %vm538_vm1, %v364_v62, 0.0  ;;  %v589_v62 = vmul.f32 %v1038_v58, %v1038_v58 }
  0xd7   :  { %v551_v28 = vadd.f32 %v550_v15, %v549_v20  ;;  %v615_v0 = vsel %vm538_vm1, %v588_v57, 0.0  ;;  %v564_v1 = vsel %vm538_vm1, %v1038_v58, 0.0 }
  0xd8   :  { %462 = vst.msk [vmem:[%s1112_s2 + $0x18] sm:$0xf] %vm455_vm0, %v445_v5  ;;  %v334_v17 = vpop.f32.mrf.mxu2  ;;  %v603_v25 = vsel %vm538_vm1, %v582_v11, 0.0  ;;  %v617_v5 = vsel %vm538_vm1, %v589_v62, 0.0 }
  0xd9   :  { %v383_v18 = vpop.f32.mrf.mxu3  ;;  %v604_v35 = vadd.f32 %v603_v25, %v602_v27 }
  0xda   :  { %v316_v21 = vpop.f32.mrf.mxu0  ;;  %v384_v23 = vadd.f32 %v383_v18, %v334_v17 }
  0xdb   :  { %v365_v22 = vpop.f32.mrf.mxu1 }
  0xdc   :  { %v366_v26 = vadd.f32 %v365_v22, %v316_v21  ;;  %v453_v29 = vpack.c.bf16 %v384_v23, %v384_v23  ;;  %v590_v2 = vmul.f32 %v384_v23, %v384_v23  ;;  %v566_v6 = vsel %vm538_vm1, %v384_v23, 0.0 }
  0xde   :  { %v446_v31 = vpack.c.bf16 %v366_v26, %v366_v26  ;;  %v552_v33 = vsel %vm538_vm1, %v366_v26, 0.0  ;;  %v583_v34 = vmul.f32 %v366_v26, %v366_v26  ;;  %470 = vst.msk [vmem:[%s1112_s2 + $0x38] sm:$0xf] %vm455_vm0, %v453_v29  ;;  %v619_v10 = vsel %vm538_vm1, %v590_v2, 0.0 }
  0xdf   :  { %v553_v36 = vadd.f32 %v552_v33, %v551_v28 }
  0xe0   :  { %463 = vst.msk [vmem:[%s1112_s2 + $0x1c] sm:$0xf] %vm455_vm0, %v446_v31  ;;  %v605_v39 = vsel %vm538_vm1, %v583_v34, 0.0  ;;  %v336_v45 = vpop.f32.mrf.mxu2 }
  0xe1   :  { %v555_v41 = vadd.f32 %v554_v37, %v553_v36  ;;  %v606_v42 = vadd.f32 %v605_v39, %v604_v35  ;;  %v385_v46 = vpop.f32.mrf.mxu3 }
  0xe2   :  { %v386_v49 = vadd.f32 %v385_v46, %v336_v45 }
  0xe3   :  { %v557_v47 = vadd.f32 %v556_v44, %v555_v41  ;;  %v608_v48 = vadd.f32 %v607_v43, %v606_v42 }
  0xe4   :  { %v454_v55 = vpack.c.bf16 %v386_v49, %v386_v49  ;;  %v591_v7 = vmul.f32 %v386_v49, %v386_v49  ;;  %v568_v11 = vsel %vm538_vm1, %v386_v49, 0.0 }
  0xe5   :  { %v559_v53 = vadd.f32 %v558_v51, %v557_v47  ;;  %v610_v54 = vadd.f32 %v609_v50, %v608_v48 }
  0xe6   :  { %471 = vst.msk [vmem:[%s1112_s2 + $0x3c] sm:$0xf] %vm455_vm0, %v454_v55  ;;  %v621_v14 = vsel %vm538_vm1, %v591_v7, 0.0 }
  0xe7   :  { %v612_v59 = vadd.f32 %v611_v16, %v610_v54  ;;  %v561_v60 = vadd.f32 %v560_v56, %v559_v53 }
  0xe9   :  { %v563_v63 = vadd.f32 %v562_v61, %v561_v60  ;;  %v614_v32 = vadd.f32 %v613_v24, %v612_v59 }
  0xeb   :  { %v565_v3 = vadd.f32 %v564_v1, %v563_v63  ;;  %v616_v4 = vadd.f32 %v615_v0, %v614_v32 }
  0xed   :  { %v567_v9 = vadd.f32 %v566_v6, %v565_v3  ;;  %v618_v40 = vadd.f32 %v617_v5, %v616_v4 }
  0xef   :  { %v620_v12 = vadd.f32 %v619_v10, %v618_v40  ;;  %v569_v13 = vadd.f32 %v568_v11, %v567_v9 }
  0xf1   :  { %v570_v15 = vrot.slane %v569_v13, 4  ;;  %v622_v58 = vadd.f32 %v621_v14, %v620_v12 }
  0xf3   :  { %v571_v17 = vadd.f32 %v570_v15, %v569_v13  ;;  %v623_v18 = vrot.slane %v622_v58, 4 }
  0xf5   :  { %v572_v19 = vrot.slane %v571_v17, 2  ;;  %v624_v20 = vadd.f32 %v623_v18, %v622_v58 }
  0xf7   :  { %v573_v21 = vadd.f32 %v572_v19, %v571_v17  ;;  %v625_v22 = vrot.slane %v624_v20, 2 }
  0xf9   :  { %v574_v23 = vrot.slane %v573_v21, 1  ;;  %v626_v25 = vadd.f32 %v625_v22, %v624_v20 }
  0xfb   :  { %v627_v26 = vrot.slane %v626_v25, 1  ;;  %v575_v27 = vadd.f32 %v574_v23, %v573_v21 }
  0xfd   :  { %v628_v28 = vadd.f32 %v627_v26, %v626_v25 }
  0xff   :  { %v630_v29 = vsel %vm629_vm2, %v575_v27, %v628_v28 }
 0x100   :  { %632 = vst.msk [vmem:[%s1113_s3] sm:$0x3] %vm631_vm3, %v630_v29 }
 0x101   :  { %641 = vsyncpa [#allocation4], 1 }

// kernel: resnet_backbone_forward.42
= control target key start
LH: loop header
LB: loop body
LE: loop exit
PB: predicated region body
PF: predicated region fallthrough
CT: control target
= control target key end

     0   :  { %s83_s0 = inlined_call_operand.vmem [shape: bf16[16,128], index: 0, kind: input, shape index: {}]   ;;  %s84_s1 = inlined_call_operand.vmem [shape: f32[1,128], index: 1, kind: input, shape index: {}]   ;;  %s85_s2 = inlined_call_operand.vmem [shape: f32[1,128], index: 2, kind: input, shape index: {}]   ;;  %s86_s3 = inlined_call_operand.vmem [shape: bf16[16,128], index: 3, kind: output, shape index: {}]  }
   0x1   :  { %v41_v0 = vld [vmem:[%s83_s0] sm:$0xff]  }
   0x2   :  { %v49_v1 = vld [vmem:[%s84_s1] ss:$0 sm:$0xff]  ;;  %v42_v2 = vunpack.c.l.bf16 %v41_v0  ;;  %v43_v3 = vunpack.c.h.bf16 %v41_v0 }
   0x3   :  { %v50_v4 = vld [vmem:[%s85_s2] ss:$0 sm:$0xff] }
   0x4   :  { %v22_v5 = vmul.f32 %v49_v1, %v42_v2  ;;  %v23_v6 = vmul.f32 %v49_v1, %v43_v3 }
   0x6   :  { %v28_v7 = vadd.f32 %v50_v4, %v22_v5  ;;  %v29_v8 = vadd.f32 %v50_v4, %v23_v6 }
   0x8   :  { %v30_v9 = vmax.f32 %v28_v7, 0.0  ;;  %v31_v10 = vmax.f32 %v29_v8, 0.0 }
   0xa   :  { %v47_v11 = vpack.c.bf16 %v31_v10, %v30_v9 }
   0xc   :  { %48 = vst [vmem:[%s86_s3] sm:$0xff] %v47_v11  }

// kernel: resnet_backbone_forward.41
= control target key start
LH: loop header
LB: loop body
LE: loop exit
PB: predicated region body
PF: predicated region fallthrough
CT: control target
= control target key end

     0   :  { %9 = vsyncpa [#allocation4], 0  ;;  %s845_s15 = smov [#allocation3]   ;;  %s846_s17 = smov 64   ;;  %s960_s0 = inlined_call_operand.vmem [shape: bf16[32,576], index: 0, kind: input, shape index: {}]   ;;  %s961_s1 = inlined_call_operand.hbm [shape: bf16[576,128], index: 1, kind: input, shape index: {}]   ;;  %s962_s2 = inlined_call_operand.vmem [shape: bf16[32,64], index: 2, kind: output, shape index: {0}]   ;;  %s963_s3 = inlined_call_operand.vmem [shape: f32[1,2,64], index: 3, kind: output, shape index: {1}]  }
   0x1   :  { %s16_s14 = sshll.u32 %s961_s1, 4  ;;  %s18_s16 = sshll.u32 %s845_s15, 4  ;;  %s17_s14 = int_to_ptr.hbm [resolvable:$true] %s16_s14  ;;  %s19_s16 = int_to_ptr.vmem [resolvable:$true] %s18_s16 }
   0x2   :  { %s847_s18 = smov 4  }
   0x3   :  { %24 = dma.hbm_to_vmem [thread:$0]  %s17_s14, 4608, %s19_s16, [#allocation4], %s846_s17, %s846_s17, %s847_s18  }
   0x4   :  { %843 = dma.done.wait [#allocation4], 4608  }
   0x5   :  { %844 = vsyncadd [#allocation4], 4294962688  ;;  %v783_v0 = vld [vmem:[#allocation3 + $0x38] sm:$0xff]  ;;  %v782_v4 = vld [vmem:[#allocation3 + $0x30] sm:$0xff]  ;;  %vm393_vm0 = vcmask 523264   ;;  %vm514_vm1 = vcmask 519168  }
   0x6   :  { %v791_v1 = vld [vmem:[#allocation3 + $0x78] sm:$0xff]  ;;  %400 = vmatpush.bf16.msra.mxu0 %v783_v0  ;;  %v790_v5 = vld [vmem:[#allocation3 + $0x70] sm:$0xff]  ;;  %v781_v8 = vld [vmem:[#allocation3 + $0x28] sm:$0xff]  ;;  %vm567_vm2 = vcmask 1040384   ;;  %vm569_vm3 = vcmask 517120  }
   0x7   :  { %v799_v2 = vld [vmem:[#allocation3 + $0xb8] sm:$0xff]  ;;  %419 = vmatpush.bf16.msra.mxu1 %v791_v1  ;;  %v798_v6 = vld [vmem:[#allocation3 + $0xb0] sm:$0xff]  ;;  %v789_v9 = vld [vmem:[#allocation3 + $0x68] sm:$0xff] }
   0x8   :  { %v807_v3 = vld [vmem:[#allocation3 + $0xf8] sm:$0xff]  ;;  %438 = vmatpush.bf16.msra.mxu2 %v799_v2  ;;  %v806_v7 = vld [vmem:[#allocation3 + $0xf0] sm:$0xff]  ;;  %v797_v10 = vld [vmem:[#allocation3 + $0xa8] sm:$0xff] }
   0x9   :  { %457 = vmatpush.bf16.msra.mxu3 %v807_v3  ;;  %v805_v11 = vld [vmem:[#allocation3 + $0xe8] sm:$0xff]  ;;  %v780_v12 = vld [vmem:[#allocation3 + $0x20] sm:$0xff]  ;;  %v779_v16 = vld [vmem:[#allocation3 + $0x18] sm:$0xff] }
   0xa   :  { %401 = vmatpush.bf16.msra.mxu0 %v782_v4  ;;  %v788_v13 = vld [vmem:[#allocation3 + $0x60] sm:$0xff]  ;;  %v787_v17 = vld [vmem:[#allocation3 + $0x58] sm:$0xff]  ;;  %v778_v20 = vld [vmem:[#allocation3 + $0x10] sm:$0xff] }
   0xb   :  { %420 = vmatpush.bf16.msra.mxu1 %v790_v5  ;;  %v796_v14 = vld [vmem:[#allocation3 + $0xa0] sm:$0xff]  ;;  %v795_v18 = vld [vmem:[#allocation3 + $0x98] sm:$0xff]  ;;  %v786_v21 = vld [vmem:[#allocation3 + $0x50] sm:$0xff] }
   0xc   :  { %439 = vmatpush.bf16.msra.mxu2 %v798_v6  ;;  %v804_v15 = vld [vmem:[#allocation3 + $0xe0] sm:$0xff]  ;;  %v803_v19 = vld [vmem:[#allocation3 + $0xd8] sm:$0xff]  ;;  %v794_v22 = vld [vmem:[#allocation3 + $0x90] sm:$0xff] }
   0xd   :  { %458 = vmatpush.bf16.msra.mxu3 %v806_v7  ;;  %v802_v23 = vld [vmem:[#allocation3 + $0xd0] sm:$0xff]  ;;  %v777_v24 = vld [vmem:[#allocation3 + $0x8] sm:$0xff]  ;;  %v776_v28 = vld [vmem:[#allocation3] sm:$0xff] }
   0xe   :  { %402 = vmatpush.bf16.msra.mxu0 %v781_v8  ;;  %v785_v25 = vld [vmem:[#allocation3 + $0x48] sm:$0xff]  ;;  %v784_v29 = vld [vmem:[#allocation3 + $0x40] sm:$0xff]  ;;  %v768_v33 = vld [vmem:[%s960_s0 + $0x10] sm:$0xf0] }
   0xf   :  { %421 = vmatpush.bf16.msra.mxu1 %v789_v9  ;;  %v793_v26 = vld [vmem:[#allocation3 + $0x88] sm:$0xff]  ;;  %v792_v30 = vld [vmem:[#allocation3 + $0x80] sm:$0xff]  ;;  %v584_v35 = vld [vmem:[%s960_s0 + $0x14] sm:$0xf0] }
  0x10   :  { %440 = vmatpush.bf16.msra.mxu2 %v797_v10  ;;  %v801_v27 = vld [vmem:[#allocation3 + $0xc8] sm:$0xff]  ;;  %v800_v31 = vld [vmem:[#allocation3 + $0xc0] sm:$0xff]  ;;  %v769_v37 = vld [vmem:[%s960_s0 + $0x18] sm:$0xf0] }
  0x11   :  { %459 = vmatpush.bf16.msra.mxu3 %v805_v11  ;;  %v582_v32 = vld [vmem:[%s960_s0] sm:$0xf]  ;;  %v766_v34 = vld [vmem:[%s960_s0 + $0x4] sm:$0xf]  ;;  %v590_v36 = vld [vmem:[%s960_s0 + $0x8] sm:$0xf] }
  0x12   :  { %403 = vmatpush.bf16.msra.mxu0 %v780_v12  ;;  %v767_v38 = vld [vmem:[%s960_s0 + $0xc] sm:$0xf]  ;;  %v592_v39 = vld [vmem:[%s960_s0 + $0x1c] sm:$0xf0]  ;;  %v811_v40 = vld [vmem:[#allocation3 + $0x118] sm:$0xff]  ;;  %v583_v41 = vor.u32 %v768_v33, %v582_v32  ;;  %v587_v42 = vor.u32 %v766_v34, %v584_v35  ;;  %v591_v43 = vor.u32 %v769_v37, %v590_v36 }
  0x13   :  { %422 = vmatpush.bf16.msra.mxu1 %v788_v13  ;;  %v595_v44 = vor.u32 %v767_v38, %v592_v39  ;;  %v810_v45 = vld [vmem:[#allocation3 + $0x110] sm:$0xff]  ;;  %v809_v46 = vld [vmem:[#allocation3 + $0x108] sm:$0xff]  ;;  %v808_v47 = vld [vmem:[#allocation3 + $0x100] sm:$0xff] }
  0x14   :  { %441 = vmatpush.bf16.msra.mxu2 %v796_v14  ;;  %v602_v48 = vld [vmem:[%s960_s0 + $0x28] sm:$0xf]  ;;  %v773_v49 = vld [vmem:[%s960_s0 + $0x38] sm:$0xf0]  ;;  %v771_v50 = vld [vmem:[%s960_s0 + $0x2c] sm:$0xf] }
  0x15   :  { %460 = vmatpush.bf16.msra.mxu3 %v804_v15  ;;  %v604_v51 = vld [vmem:[%s960_s0 + $0x3c] sm:$0xf0]  ;;  %v610_v52 = vld [vmem:[%s960_s0 + $0x30] sm:$0xf]  ;;  %v774_v53 = vld [vmem:[%s960_s0 + $0x40] sm:$0xf0]  ;;  %v603_v56 = vor.u32 %v773_v49, %v602_v48 }
  0x16   :  { %404 = vmatpush.bf16.msra.mxu0 %v779_v16  ;;  %v772_v54 = vld [vmem:[%s960_s0 + $0x34] sm:$0xf]  ;;  %v612_v55 = vld [vmem:[%s960_s0 + $0x44] sm:$0xf0]  ;;  %v607_v57 = vor.u32 %v771_v50, %v604_v51  ;;  %v611_v58 = vor.u32 %v774_v53, %v610_v52  ;;  %v598_v60 = vld [vmem:[%s960_s0 + $0x10] sm:$0xf] }
  0x17   :  { %423 = vmatpush.bf16.msra.mxu1 %v787_v17  ;;  %v615_v59 = vor.u32 %v772_v54, %v612_v55  ;;  %v770_v61 = vld [vmem:[%s960_s0 + $0x20] sm:$0xf0]  ;;  %v618_v62 = vld [vmem:[%s960_s0 + $0x38] sm:$0xf]  ;;  %v775_v63 = vld [vmem:[%s960_s0 + $0x48] sm:$0xf0] }
  0x18   :  { %442 = vmatpush.bf16.msra.mxu2 %v795_v18  ;;  %v599_v0 = vor.u32 %v770_v61, %v598_v60  ;;  %v619_v1 = vor.u32 %v775_v63, %v618_v62 }
  0x19   :  { %461 = vmatpush.bf16.msra.mxu3 %v803_v19 }
  0x1a   :  { %405 = vmatpush.bf16.msra.mxu0 %v778_v20 }
  0x1b   :  { %424 = vmatpush.bf16.msra.mxu1 %v786_v21 }
  0x1c   :  { %443 = vmatpush.bf16.msra.mxu2 %v794_v22 }
  0x1d   :  { %462 = vmatpush.bf16.msra.mxu3 %v802_v23 }
  0x1e   :  { %406 = vmatpush.bf16.msra.mxu0 %v777_v24 }
  0x1f   :  { %425 = vmatpush.bf16.msra.mxu1 %v785_v25 }
  0x20   :  { %444 = vmatpush.bf16.msra.mxu2 %v793_v26 }
  0x21   :  { %463 = vmatpush.bf16.msra.mxu3 %v801_v27 }
  0x22   :  { %407 = vmatpush.bf16.msra.mxu0 %v776_v28 }
  0x23   :  { %426 = vmatpush.bf16.msra.mxu1 %v784_v29 }
  0x24   :  { %445 = vmatpush.bf16.msra.mxu2 %v792_v30 }
  0x25   :  { %464 = vmatpush.bf16.msra.mxu3 %v800_v31  ;;  %408 = vmatmul.bf16.vlgmr.msra.gmra.mxu0 %v583_v41 }
  0x26   :  { %480 = vmatpush.bf16.msrb.mxu0 %v811_v40  ;;  %427 = vmatmul.bf16.vlgmr.msra.gmra.mxu1 %v587_v42 }
  0x27   :  { %812 = vmatpush.bf16.msrb.mxu1 %v811_v40  ;;  %446 = vmatmul.bf16.vlgmr.msra.gmra.mxu2 %v591_v43 }
  0x28   :  { %465 = vmatmul.bf16.vlgmr.msra.gmra.mxu3 %v595_v44 }
  0x2a   :  { %481 = vmatpush.bf16.msrb.mxu0 %v810_v45 }
  0x2b   :  { %813 = vmatpush.bf16.msrb.mxu1 %v810_v45 }
  0x2e   :  { %482 = vmatpush.bf16.msrb.mxu0 %v809_v46 }
  0x2f   :  { %814 = vmatpush.bf16.msrb.mxu1 %v809_v46 }
  0x32   :  { %483 = vmatpush.bf16.msrb.mxu0 %v808_v47 }
  0x33   :  { %815 = vmatpush.bf16.msrb.mxu1 %v808_v47 }
  0x35   :  { %413 = vmatmul.bf16.gmra.mxu0 %v603_v56 }
  0x36   :  { %432 = vmatmul.bf16.gmra.mxu1 %v607_v57 }
  0x37   :  { %451 = vmatmul.bf16.gmra.mxu2 %v611_v58 }
  0x38   :  { %470 = vmatmul.bf16.gmra.mxu3 %v615_v59 }
  0x45   :  { %764 = vmatmul.msk.bf16.vlgmr.msrb.gmra.mxu0 %vm393_vm0, %v599_v0 }
  0x46   :  { %765 = vmatmul.msk.bf16.vlgmr.msrb.gmra.mxu1 %vm393_vm0, %v619_v1 }
  0xa2   :  { %v409_v2 = vpop.f32.mrf.mxu0 }
  0xa3   :  { %v428_v3 = vpop.f32.mrf.mxu1 }
  0xa4   :  { %v429_v15 = vadd.f32 %v428_v3, %v409_v2 }
  0xaa   :  { %v447_v4 = vpop.f32.mrf.mxu2  ;;  %v411_v6 = vpop.f32.mrf.mxu0 }
  0xab   :  { %v466_v5 = vpop.f32.mrf.mxu3  ;;  %v430_v7 = vpop.f32.mrf.mxu1  ;;  %v448_v18 = vadd.f32 %v447_v4, %v429_v15 }
  0xac   :  { %v431_v25 = vadd.f32 %v430_v7, %v411_v6 }
  0xad   :  { %v467_v20 = vadd.f32 %v466_v5, %v448_v18 }
  0xb2   :  { %v449_v8 = vpop.f32.mrf.mxu2  ;;  %v414_v10 = vpop.f32.mrf.mxu0 }
  0xb3   :  { %v468_v9 = vpop.f32.mrf.mxu3  ;;  %v433_v11 = vpop.f32.mrf.mxu1  ;;  %v450_v29 = vadd.f32 %v449_v8, %v431_v25 }
  0xb4   :  { %v434_v16 = vadd.f32 %v433_v11, %v414_v10 }
  0xb5   :  { %v469_v34 = vadd.f32 %v468_v9, %v450_v29 }
  0xba   :  { %v452_v12 = vpop.f32.mrf.mxu2  ;;  %v416_v13 = vpop.f32.mrf.mxu0 }
  0xbb   :  { %v435_v14 = vpop.f32.mrf.mxu1  ;;  %v471_v17 = vpop.f32.mrf.mxu3  ;;  %v453_v19 = vadd.f32 %v452_v12, %v434_v16 }
  0xbc   :  { %v436_v26 = vadd.f32 %v435_v14, %v416_v13 }
  0xbd   :  { %v472_v21 = vadd.f32 %v471_v17, %v453_v19 }
  0xc2   :  { %v454_v22 = vpop.f32.mrf.mxu2  ;;  %v485_v23 = vpop.f32.mrf.mxu0 }
  0xc3   :  { %v490_v24 = vpop.f32.mrf.mxu1  ;;  %v486_v27 = vadd.f32 %v485_v23, %v467_v20  ;;  %v455_v30 = vadd.f32 %v454_v22, %v436_v26  ;;  %v473_v33 = vpop.f32.mrf.mxu3 }
  0xc4   :  { %v491_v28 = vadd.f32 %v490_v24, %v472_v21 }
  0xc5   :  { %v510_v31 = vpack.c.bf16 %v486_v27, %v486_v27  ;;  %v474_v35 = vadd.f32 %v473_v33, %v455_v30  ;;  %v550_v38 = vmul.f32 %v486_v27, %v486_v27  ;;  %v537_v41 = vsel %vm393_vm0, %v486_v27, 0.0 }
  0xc6   :  { %v512_v32 = vpack.c.bf16 %v491_v28, %v491_v28  ;;  %v552_v42 = vmul.f32 %v491_v28, %v491_v28  ;;  %v540_v49 = vsel %vm393_vm0, %v491_v28, 0.0 }
  0xc7   :  { %515 = vst.msk [vmem:[%s962_s2] sm:$0xf] %vm514_vm1, %v510_v31  ;;  %v554_v48 = vsel %vm393_vm0, %v550_v38, 0.0 }
  0xc8   :  { %517 = vst.msk [vmem:[%s962_s2 + $0x8] sm:$0xf] %vm514_vm1, %v512_v32  ;;  %v557_v54 = vsel %vm393_vm0, %v552_v42, 0.0 }
  0xca   :  { %v487_v36 = vpop.f32.mrf.mxu0 }
  0xcb   :  { %v492_v37 = vpop.f32.mrf.mxu1  ;;  %v488_v39 = vadd.f32 %v487_v36, %v469_v34 }
  0xcc   :  { %v493_v40 = vadd.f32 %v492_v37, %v474_v35 }
  0xcd   :  { %v511_v43 = vpack.c.bf16 %v488_v39, %v488_v39  ;;  %v538_v44 = vsel %vm393_vm0, %v488_v39, 0.0  ;;  %v551_v45 = vmul.f32 %v488_v39, %v488_v39 }
  0xce   :  { %v513_v46 = vpack.c.bf16 %v493_v40, %v493_v40  ;;  %v539_v47 = vadd.f32 %v538_v44, %v537_v41  ;;  %v553_v51 = vmul.f32 %v493_v40, %v493_v40  ;;  %v542_v55 = vsel %vm393_vm0, %v493_v40, 0.0 }
  0xcf   :  { %516 = vst.msk [vmem:[%s962_s2 + $0x4] sm:$0xf] %vm514_vm1, %v511_v43  ;;  %v555_v50 = vsel %vm393_vm0, %v551_v45, 0.0 }
  0xd0   :  { %v556_v52 = vadd.f32 %v555_v50, %v554_v48  ;;  %518 = vst.msk [vmem:[%s962_s2 + $0xc] sm:$0xf] %vm514_vm1, %v513_v46  ;;  %v541_v53 = vadd.f32 %v540_v49, %v539_v47  ;;  %v559_v58 = vsel %vm393_vm0, %v553_v51, 0.0 }
  0xd2   :  { %v543_v56 = vadd.f32 %v542_v55, %v541_v53  ;;  %v558_v57 = vadd.f32 %v557_v54, %v556_v52 }
  0xd4   :  { %v544_v59 = vrot.slane %v543_v56, 4  ;;  %v560_v60 = vadd.f32 %v559_v58, %v558_v57 }
  0xd6   :  { %v545_v61 = vadd.f32 %v544_v59, %v543_v56  ;;  %v561_v62 = vrot.slane %v560_v60, 4 }
  0xd8   :  { %v546_v63 = vrot.slane %v545_v61, 2  ;;  %v562_v0 = vadd.f32 %v561_v62, %v560_v60 }
  0xda   :  { %v547_v1 = vadd.f32 %v546_v63, %v545_v61  ;;  %v563_v2 = vrot.slane %v562_v0, 2 }
  0xdc   :  { %v548_v3 = vrot.slane %v547_v1, 1  ;;  %v564_v4 = vadd.f32 %v563_v2, %v562_v0 }
  0xde   :  { %v565_v5 = vrot.slane %v564_v4, 1  ;;  %v549_v6 = vadd.f32 %v548_v3, %v547_v1 }
  0xe0   :  { %v566_v7 = vadd.f32 %v565_v5, %v564_v4 }
  0xe2   :  { %v568_v8 = vsel %vm567_vm2, %v549_v6, %v566_v7 }
  0xe3   :  { %570 = vst.msk [vmem:[%s963_s3] sm:$0x3] %vm569_vm3, %v568_v8 }
  0xe4   :  { %579 = vsyncpa [#allocation4], 1 }

// kernel: resnet_backbone_forward.44
= control target key start
LH: loop header
LB: loop body
LE: loop exit
PB: predicated region body
PF: predicated region fallthrough
CT: control target
= control target key end

     0   :  { %s104_s0 = inlined_call_operand.vmem [shape: bf16[16,128], index: 0, kind: input, shape index: {}]   ;;  %s105_s1 = inlined_call_operand.vmem [shape: bf16[16,128], index: 1, kind: input, shape index: {}]   ;;  %s106_s2 = inlined_call_operand.vmem [shape: f32[1,128], index: 2, kind: input, shape index: {}]   ;;  %s107_s3 = inlined_call_operand.vmem [shape: f32[1,128], index: 3, kind: input, shape index: {}]   ;;  %s108_s4 = inlined_call_operand.vmem [shape: bf16[16,128], index: 4, kind: output, shape index: {}]  }
   0x1   :  { %v50_v0 = vld [vmem:[%s104_s0] sm:$0xff]  }
   0x2   :  { %v62_v1 = vld [vmem:[%s106_s2] ss:$0 sm:$0xff]  ;;  %v51_v2 = vunpack.c.l.bf16 %v50_v0  ;;  %v52_v3 = vunpack.c.h.bf16 %v50_v0 }
   0x3   :  { %v63_v4 = vld [vmem:[%s107_s3] ss:$0 sm:$0xff] }
   0x4   :  { %v54_v5 = vld [vmem:[%s105_s1] sm:$0xff]   ;;  %v25_v6 = vmul.f32 %v62_v1, %v51_v2  ;;  %v26_v7 = vmul.f32 %v62_v1, %v52_v3 }
   0x5   :  { %v55_v8 = vunpack.c.l.bf16 %v54_v5  ;;  %v56_v9 = vunpack.c.h.bf16 %v54_v5 }
   0x6   :  { %v31_v10 = vadd.f32 %v63_v4, %v25_v6  ;;  %v32_v11 = vadd.f32 %v63_v4, %v26_v7 }
   0x8   :  { %v37_v12 = vadd.f32 %v55_v8, %v31_v10  ;;  %v38_v13 = vadd.f32 %v56_v9, %v32_v11 }
   0xa   :  { %v39_v14 = vmax.f32 %v37_v12, 0.0  ;;  %v40_v15 = vmax.f32 %v38_v13, 0.0 }
   0xc   :  { %v60_v16 = vpack.c.bf16 %v40_v15, %v39_v14 }
   0xe   :  { %61 = vst [vmem:[%s108_s4] sm:$0xff] %v60_v16  }

// kernel: resnet_backbone_forward.52
= control target key start
LH: loop header
LB: loop body
LE: loop exit
PB: predicated region body
PF: predicated region fallthrough
CT: control target
= control target key end

     0   :  { %9 = vsyncpa [#allocation4], 0  ;;  %s176_s15 = smov [#allocation3]   ;;  %s177_s17 = smov 64   ;;  %s211_s0 = inlined_call_operand.vmem [shape: bf16[8,64], index: 0, kind: input, shape index: {}]   ;;  %s212_s1 = inlined_call_operand.hbm [shape: bf16[64,128], index: 1, kind: input, shape index: {}]   ;;  %s213_s2 = inlined_call_operand.vmem [shape: bf16[8,128], index: 2, kind: output, shape index: {0}]   ;;  %s214_s3 = inlined_call_operand.vmem [shape: f32[1,2,128], index: 3, kind: output, shape index: {1}]  }
   0x1   :  { %s16_s14 = sshll.u32 %s212_s1, 4  ;;  %s18_s16 = sshll.u32 %s176_s15, 4  ;;  %s17_s14 = int_to_ptr.hbm [resolvable:$true] %s16_s14  ;;  %s19_s16 = int_to_ptr.vmem [resolvable:$true] %s18_s16 }
   0x2   :  { %s178_s18 = smov 4  }
   0x3   :  { %24 = dma.hbm_to_vmem [thread:$0]  %s17_s14, 512, %s19_s16, [#allocation4], %s177_s17, %s177_s17, %s178_s18  }
   0x4   :  { %174 = dma.done.wait [#allocation4], 512  }
   0x5   :  { %175 = vsyncadd [#allocation4], 4294966784  ;;  %v146_v0 = vld [vmem:[#allocation3 + $0x18] sm:$0xff]  ;;  %v145_v1 = vld [vmem:[#allocation3 + $0x10] sm:$0xff]  ;;  %vm70_vm0 = vcmask 523264   ;;  %vm114_vm1 = vcmask 1040384  }
   0x6   :  { %78 = vmatpush.bf16.msra.mxu0 %v146_v0  ;;  %v144_v2 = vld [vmem:[#allocation3 + $0x8] sm:$0xff]  ;;  %v143_v3 = vld [vmem:[#allocation3] sm:$0xff] }
   0x7   :  { %v37_v4 = vld [vmem:[%s211_s0] sm:$0xf] }
   0xa   :  { %79 = vmatpush.bf16.msra.mxu0 %v145_v1 }
   0xe   :  { %80 = vmatpush.bf16.msra.mxu0 %v144_v2 }
  0x12   :  { %81 = vmatpush.bf16.msra.mxu0 %v143_v3 }
  0x15   :  { %142 = vmatmul.msk.bf16.vlgmr.msra.gmra.mxu0 %vm70_vm0, %v37_v4 }
  0x92   :  { %v83_v5 = vpop.f32.mrf.mxu0 }
  0x93   :  { %v93_v6 = vpack.c.bf16 %v83_v5, %v83_v5  ;;  %v101_v7 = vrot.slane %v83_v5, 4  ;;  %v107_v8 = vmul.f32 %v83_v5, %v83_v5 }
  0x95   :  { %94 = vst [vmem:[%s213_s2] sm:$0xf] %v93_v6  ;;  %v102_v9 = vadd.f32 %v101_v7, %v83_v5  ;;  %v108_v10 = vrot.slane %v107_v8, 4 }
  0x97   :  { %v103_v11 = vrot.slane %v102_v9, 2  ;;  %v109_v12 = vadd.f32 %v108_v10, %v107_v8 }
  0x99   :  { %v104_v13 = vadd.f32 %v103_v11, %v102_v9  ;;  %v110_v14 = vrot.slane %v109_v12, 2 }
  0x9a   :  { %v85_v15 = vpop.f32.mrf.mxu0 }
  0x9b   :  { %v105_v16 = vrot.slane %v104_v13, 1  ;;  %v111_v17 = vadd.f32 %v110_v14, %v109_v12 }
  0x9d   :  { %v112_v18 = vrot.slane %v111_v17, 1  ;;  %v106_v19 = vadd.f32 %v105_v16, %v104_v13 }
  0x9f   :  { %v113_v20 = vadd.f32 %v112_v18, %v111_v17 }
  0xa1   :  { %v115_v21 = vsel %vm114_vm1, %v106_v19, %v113_v20 }
  0xa2   :  { %116 = vst [vmem:[%s214_s3] sm:$0x3] %v115_v21 }
  0xa3   :  { %125 = vsyncpa [#allocation4], 1 }

// kernel: resnet_backbone_forward.50
= control target key start
LH: loop header
LB: loop body
LE: loop exit
PB: predicated region body
PF: predicated region fallthrough
CT: control target
= control target key end

     0   :  { %s67_s0 = inlined_call_operand.vmem [shape: bf16[8,128], index: 0, kind: input, shape index: {}]   ;;  %s68_s1 = inlined_call_operand.vmem [shape: f32[1,128], index: 1, kind: input, shape index: {}]   ;;  %s69_s2 = inlined_call_operand.vmem [shape: f32[1,128], index: 2, kind: input, shape index: {}]   ;;  %s70_s3 = inlined_call_operand.vmem [shape: bf16[8,128], index: 3, kind: output, shape index: {}]  }
   0x1   :  { %v14_v0 = vld [vmem:[%s67_s0] sm:$0xf] }
   0x2   :  { %v33_v1 = vld [vmem:[%s68_s1] ss:$0 sm:$0xff]  ;;  %v15_v2 = vunpack.c.l.bf16 %v14_v0 }
   0x3   :  { %v34_v3 = vld [vmem:[%s69_s2] ss:$0 sm:$0xff] }
   0x4   :  { %v20_v4 = vmul.f32 %v33_v1, %v15_v2 }
   0x6   :  { %v25_v5 = vadd.f32 %v34_v3, %v20_v4 }
   0x8   :  { %v26_v6 = vmax.f32 %v25_v5, 0.0 }
   0xa   :  { %v27_v7 = vpack.c.bf16 %v26_v6, %v26_v6 }
   0xc   :  { %28 = vst [vmem:[%s70_s3] sm:$0xf] %v27_v7 }

// kernel: resnet_backbone_forward.57
= control target key start
LH: loop header
LB: loop body
LE: loop exit
PB: predicated region body
PF: predicated region fallthrough
CT: control target
= control target key end

     0   :  { %s81_s0 = inlined_call_operand.vmem [shape: bf16[8,128], index: 0, kind: input, shape index: {}]   ;;  %s82_s1 = inlined_call_operand.vmem [shape: bf16[8,128], index: 1, kind: input, shape index: {}]   ;;  %s83_s2 = inlined_call_operand.vmem [shape: f32[1,128], index: 2, kind: input, shape index: {}]   ;;  %s84_s3 = inlined_call_operand.vmem [shape: f32[1,128], index: 3, kind: input, shape index: {}]   ;;  %s85_s4 = inlined_call_operand.vmem [shape: bf16[8,128], index: 4, kind: output, shape index: {}]  }
   0x1   :  { %v17_v0 = vld [vmem:[%s81_s0] sm:$0xf] }
   0x2   :  { %v39_v1 = vld [vmem:[%s83_s2] ss:$0 sm:$0xff]  ;;  %v18_v2 = vunpack.c.l.bf16 %v17_v0 }
   0x3   :  { %v40_v3 = vld [vmem:[%s84_s3] ss:$0 sm:$0xff] }
   0x4   :  { %v29_v4 = vld [vmem:[%s82_s1] sm:$0xf]  ;;  %v23_v5 = vmul.f32 %v39_v1, %v18_v2 }
   0x5   :  { %v30_v6 = vunpack.c.l.bf16 %v29_v4 }
   0x6   :  { %v28_v7 = vadd.f32 %v40_v3, %v23_v5 }
   0x8   :  { %v31_v8 = vadd.f32 %v30_v6, %v28_v7 }
   0xa   :  { %v32_v9 = vmax.f32 %v31_v8, 0.0 }
   0xc   :  { %v33_v10 = vpack.c.bf16 %v32_v9, %v32_v9 }
   0xe   :  { %34 = vst [vmem:[%s85_s4] sm:$0xf] %v33_v10 }

// kernel: resnet_backbone_forward.53
= control target key start
LH: loop header
LB: loop body
LE: loop exit
PB: predicated region body
PF: predicated region fallthrough
CT: control target
= control target key end

     0   :  { %s115_s0 = inlined_call_operand.vmem [shape: bf16[8,128], index: 0, kind: input, shape index: {}]   ;;  %s116_s1 = inlined_call_operand.vmem [shape: bf16[8,128], index: 1, kind: input, shape index: {}]   ;;  %s117_s2 = inlined_call_operand.vmem [shape: f32[1,128], index: 2, kind: input, shape index: {}]   ;;  %s118_s3 = inlined_call_operand.vmem [shape: f32[1,128], index: 3, kind: input, shape index: {}]   ;;  %s119_s4 = inlined_call_operand.vmem [shape: f32[1,128], index: 4, kind: input, shape index: {}]   ;;  %s120_s5 = inlined_call_operand.vmem [shape: f32[1,128], index: 5, kind: input, shape index: {}]   ;;  %s121_s6 = inlined_call_operand.vmem [shape: bf16[8,128], index: 6, kind: output, shape index: {}]  }
   0x1   :  { %v23_v0 = vld [vmem:[%s115_s0] sm:$0xf] }
   0x2   :  { %v55_v1 = vld [vmem:[%s117_s2] ss:$0 sm:$0xff]  ;;  %v24_v2 = vunpack.c.l.bf16 %v23_v0 }
   0x3   :  { %v56_v3 = vld [vmem:[%s118_s3] ss:$0 sm:$0xff] }
   0x4   :  { %v35_v4 = vld [vmem:[%s116_s1] sm:$0xf]  ;;  %v29_v7 = vmul.f32 %v55_v1, %v24_v2 }
   0x5   :  { %v36_v5 = vunpack.c.l.bf16 %v35_v4  ;;  %v57_v6 = vld [vmem:[%s119_s4] ss:$0 sm:$0xff] }
   0x6   :  { %v58_v8 = vld [vmem:[%s120_s5] ss:$0 sm:$0xff]  ;;  %v34_v10 = vadd.f32 %v56_v3, %v29_v7 }
   0x7   :  { %v41_v9 = vmul.f32 %v57_v6, %v36_v5 }
   0x9   :  { %v46_v11 = vadd.f32 %v58_v8, %v41_v9 }
   0xb   :  { %v47_v12 = vadd.f32 %v46_v11, %v34_v10 }
   0xd   :  { %v48_v13 = vmax.f32 %v47_v12, 0.0 }
   0xf   :  { %v49_v14 = vpack.c.bf16 %v48_v13, %v48_v13 }
  0x11   :  { %50 = vst [vmem:[%s121_s6] sm:$0xf] %v49_v14 }

// kernel: resnet_backbone_forward.49
= control target key start
LH: loop header
LB: loop body
LE: loop exit
PB: predicated region body
PF: predicated region fallthrough
CT: control target
= control target key end

     0   :  { %9 = vsyncpa [#allocation4], 0  ;;  %s663_s15 = smov [#allocation3]   ;;  %s664_s17 = smov 64   ;;  %s704_s0 = inlined_call_operand.vmem [shape: bf16[8,576], index: 0, kind: input, shape index: {}]   ;;  %s705_s1 = inlined_call_operand.hbm [shape: bf16[576,128], index: 1, kind: input, shape index: {}]   ;;  %s706_s2 = inlined_call_operand.vmem [shape: bf16[8,128], index: 2, kind: output, shape index: {0}]   ;;  %s707_s3 = inlined_call_operand.vmem [shape: f32[1,2,128], index: 3, kind: output, shape index: {1}]  }
   0x1   :  { %s16_s14 = sshll.u32 %s705_s1, 4  ;;  %s18_s16 = sshll.u32 %s663_s15, 4  ;;  %s17_s14 = int_to_ptr.hbm [resolvable:$true] %s16_s14  ;;  %s19_s16 = int_to_ptr.vmem [resolvable:$true] %s18_s16 }
   0x2   :  { %s665_s18 = smov 4  }
   0x3   :  { %24 = dma.hbm_to_vmem [thread:$0]  %s17_s14, 4608, %s19_s16, [#allocation4], %s664_s17, %s664_s17, %s665_s18  }
   0x4   :  { %661 = dma.done.wait [#allocation4], 4608  }
   0x5   :  { %662 = vsyncadd [#allocation4], 4294962688  ;;  %v605_v0 = vld [vmem:[#allocation3 + $0x38] sm:$0xff]  ;;  %v604_v4 = vld [vmem:[#allocation3 + $0x30] sm:$0xff]  ;;  %vm345_vm0 = vcmask 523264   ;;  %vm441_vm1 = vcmask 1040384  }
   0x6   :  { %v613_v1 = vld [vmem:[#allocation3 + $0x78] sm:$0xff]  ;;  %349 = vmatpush.bf16.msra.mxu0 %v605_v0  ;;  %v612_v5 = vld [vmem:[#allocation3 + $0x70] sm:$0xff]  ;;  %v603_v8 = vld [vmem:[#allocation3 + $0x28] sm:$0xff] }
   0x7   :  { %v621_v2 = vld [vmem:[#allocation3 + $0xb8] sm:$0xff]  ;;  %362 = vmatpush.bf16.msra.mxu1 %v613_v1  ;;  %v620_v6 = vld [vmem:[#allocation3 + $0xb0] sm:$0xff]  ;;  %v611_v9 = vld [vmem:[#allocation3 + $0x68] sm:$0xff] }
   0x8   :  { %v629_v3 = vld [vmem:[#allocation3 + $0xf8] sm:$0xff]  ;;  %375 = vmatpush.bf16.msra.mxu2 %v621_v2  ;;  %v628_v7 = vld [vmem:[#allocation3 + $0xf0] sm:$0xff]  ;;  %v619_v10 = vld [vmem:[#allocation3 + $0xa8] sm:$0xff] }
   0x9   :  { %388 = vmatpush.bf16.msra.mxu3 %v629_v3  ;;  %v627_v11 = vld [vmem:[#allocation3 + $0xe8] sm:$0xff]  ;;  %v602_v12 = vld [vmem:[#allocation3 + $0x20] sm:$0xff]  ;;  %v601_v16 = vld [vmem:[#allocation3 + $0x18] sm:$0xff] }
   0xa   :  { %350 = vmatpush.bf16.msra.mxu0 %v604_v4  ;;  %v610_v13 = vld [vmem:[#allocation3 + $0x60] sm:$0xff]  ;;  %v609_v17 = vld [vmem:[#allocation3 + $0x58] sm:$0xff]  ;;  %v600_v20 = vld [vmem:[#allocation3 + $0x10] sm:$0xff] }
   0xb   :  { %363 = vmatpush.bf16.msra.mxu1 %v612_v5  ;;  %v618_v14 = vld [vmem:[#allocation3 + $0xa0] sm:$0xff]  ;;  %v617_v18 = vld [vmem:[#allocation3 + $0x98] sm:$0xff]  ;;  %v608_v21 = vld [vmem:[#allocation3 + $0x50] sm:$0xff] }
   0xc   :  { %376 = vmatpush.bf16.msra.mxu2 %v620_v6  ;;  %v626_v15 = vld [vmem:[#allocation3 + $0xe0] sm:$0xff]  ;;  %v625_v19 = vld [vmem:[#allocation3 + $0xd8] sm:$0xff]  ;;  %v616_v22 = vld [vmem:[#allocation3 + $0x90] sm:$0xff] }
   0xd   :  { %389 = vmatpush.bf16.msra.mxu3 %v628_v7  ;;  %v624_v23 = vld [vmem:[#allocation3 + $0xd0] sm:$0xff]  ;;  %v599_v24 = vld [vmem:[#allocation3 + $0x8] sm:$0xff]  ;;  %v37_v26 = vld [vmem:[%s704_s0] sm:$0xff] }
   0xe   :  { %351 = vmatpush.bf16.msra.mxu0 %v603_v8  ;;  %v607_v25 = vld [vmem:[#allocation3 + $0x48] sm:$0xff]  ;;  %v115_v30 = vunpack.c.l.b16 %v37_v26  ;;  %v116_v31 = vunpack.c.h.b16 %v37_v26  ;;  %v598_v32 = vld [vmem:[#allocation3] sm:$0xff]  ;;  %v633_v38 = vld [vmem:[#allocation3 + $0x118] sm:$0xff] }
   0xf   :  { %364 = vmatpush.bf16.msra.mxu1 %v611_v9  ;;  %v615_v27 = vld [vmem:[#allocation3 + $0x88] sm:$0xff]  ;;  %v606_v33 = vld [vmem:[#allocation3 + $0x40] sm:$0xff]  ;;  %v632_v43 = vld [vmem:[#allocation3 + $0x110] sm:$0xff] }
  0x10   :  { %377 = vmatpush.bf16.msra.mxu2 %v619_v10  ;;  %v623_v28 = vld [vmem:[#allocation3 + $0xc8] sm:$0xff]  ;;  %v614_v36 = vld [vmem:[#allocation3 + $0x80] sm:$0xff]  ;;  %v120_v39 = vpack.c.b16 %v115_v30, %v115_v30  ;;  %v121_v40 = vpack.c.b16 %v116_v31, %v116_v31  ;;  %v39_v45 = vld [vmem:[%s704_s0 + $0x10] sm:$0xf] }
  0x11   :  { %390 = vmatpush.bf16.msra.mxu3 %v627_v11  ;;  %v38_v29 = vld [vmem:[%s704_s0 + $0x8] sm:$0xff]  ;;  %v622_v37 = vld [vmem:[#allocation3 + $0xc0] sm:$0xff]  ;;  %v119_v47 = vunpack.c.l.b16 %v39_v45 }
  0x12   :  { %352 = vmatpush.bf16.msra.mxu0 %v602_v12  ;;  %v117_v34 = vunpack.c.l.b16 %v38_v29  ;;  %v118_v35 = vunpack.c.h.b16 %v38_v29  ;;  %v631_v44 = vld [vmem:[#allocation3 + $0x108] sm:$0xff]  ;;  %v630_v46 = vld [vmem:[#allocation3 + $0x100] sm:$0xff] }
  0x13   :  { %365 = vmatpush.bf16.msra.mxu1 %v610_v13  ;;  %v124_v48 = vpack.c.b16 %v119_v47, %v119_v47 }
  0x14   :  { %378 = vmatpush.bf16.msra.mxu2 %v618_v14  ;;  %v122_v41 = vpack.c.b16 %v117_v34, %v117_v34  ;;  %v123_v42 = vpack.c.b16 %v118_v35, %v118_v35 }
  0x15   :  { %391 = vmatpush.bf16.msra.mxu3 %v626_v15 }
  0x16   :  { %353 = vmatpush.bf16.msra.mxu0 %v601_v16 }
  0x17   :  { %366 = vmatpush.bf16.msra.mxu1 %v609_v17 }
  0x18   :  { %379 = vmatpush.bf16.msra.mxu2 %v617_v18 }
  0x19   :  { %392 = vmatpush.bf16.msra.mxu3 %v625_v19 }
  0x1a   :  { %354 = vmatpush.bf16.msra.mxu0 %v600_v20 }
  0x1b   :  { %367 = vmatpush.bf16.msra.mxu1 %v608_v21 }
  0x1c   :  { %380 = vmatpush.bf16.msra.mxu2 %v616_v22 }
  0x1d   :  { %393 = vmatpush.bf16.msra.mxu3 %v624_v23 }
  0x1e   :  { %355 = vmatpush.bf16.msra.mxu0 %v599_v24 }
  0x1f   :  { %368 = vmatpush.bf16.msra.mxu1 %v607_v25 }
  0x20   :  { %381 = vmatpush.bf16.msra.mxu2 %v615_v27 }
  0x21   :  { %394 = vmatpush.bf16.msra.mxu3 %v623_v28 }
  0x22   :  { %356 = vmatpush.bf16.msra.mxu0 %v598_v32 }
  0x23   :  { %369 = vmatpush.bf16.msra.mxu1 %v606_v33 }
  0x24   :  { %382 = vmatpush.bf16.msra.mxu2 %v614_v36 }
  0x25   :  { %395 = vmatpush.bf16.msra.mxu3 %v622_v37  ;;  %357 = vmatmul.bf16.vlgmr.msra.gmra.mxu0 %v120_v39 }
  0x26   :  { %405 = vmatpush.bf16.msrb.mxu0 %v633_v38  ;;  %370 = vmatmul.bf16.vlgmr.msra.gmra.mxu1 %v121_v40 }
  0x27   :  { %383 = vmatmul.bf16.vlgmr.msra.gmra.mxu2 %v122_v41 }
  0x28   :  { %396 = vmatmul.bf16.vlgmr.msra.gmra.mxu3 %v123_v42 }
  0x2a   :  { %406 = vmatpush.bf16.msrb.mxu0 %v632_v43 }
  0x2e   :  { %407 = vmatpush.bf16.msrb.mxu0 %v631_v44 }
  0x32   :  { %408 = vmatpush.bf16.msrb.mxu0 %v630_v46 }
  0x35   :  { %597 = vmatmul.msk.bf16.vlgmr.msrb.gmra.mxu0 %vm345_vm0, %v124_v48 }
  0xa2   :  { %v358_v49 = vpop.f32.mrf.mxu0 }
  0xa3   :  { %v371_v50 = vpop.f32.mrf.mxu1 }
  0xa4   :  { %v372_v55 = vadd.f32 %v371_v50, %v358_v49 }
  0xaa   :  { %v384_v51 = vpop.f32.mrf.mxu2  ;;  %v360_v53 = vpop.f32.mrf.mxu0 }
  0xab   :  { %v397_v52 = vpop.f32.mrf.mxu3  ;;  %v373_v54 = vpop.f32.mrf.mxu1  ;;  %v385_v56 = vadd.f32 %v384_v51, %v372_v55 }
  0xad   :  { %v398_v57 = vadd.f32 %v397_v52, %v385_v56 }
  0xb2   :  { %v386_v58 = vpop.f32.mrf.mxu2  ;;  %v410_v60 = vpop.f32.mrf.mxu0 }
  0xb3   :  { %v399_v59 = vpop.f32.mrf.mxu3  ;;  %v411_v61 = vadd.f32 %v410_v60, %v398_v57 }
  0xb5   :  { %v420_v62 = vpack.c.bf16 %v411_v61, %v411_v61  ;;  %v428_v63 = vrot.slane %v411_v61, 4  ;;  %v434_v0 = vmul.f32 %v411_v61, %v411_v61 }
  0xb7   :  { %421 = vst [vmem:[%s706_s2] sm:$0xf] %v420_v62  ;;  %v429_v1 = vadd.f32 %v428_v63, %v411_v61  ;;  %v435_v2 = vrot.slane %v434_v0, 4 }
  0xb9   :  { %v430_v3 = vrot.slane %v429_v1, 2  ;;  %v436_v4 = vadd.f32 %v435_v2, %v434_v0 }
  0xba   :  { %v412_v5 = vpop.f32.mrf.mxu0 }
  0xbb   :  { %v431_v6 = vadd.f32 %v430_v3, %v429_v1  ;;  %v437_v7 = vrot.slane %v436_v4, 2 }
  0xbd   :  { %v432_v8 = vrot.slane %v431_v6, 1  ;;  %v438_v9 = vadd.f32 %v437_v7, %v436_v4 }
  0xbf   :  { %v439_v10 = vrot.slane %v438_v9, 1  ;;  %v433_v11 = vadd.f32 %v432_v8, %v431_v6 }
  0xc1   :  { %v440_v12 = vadd.f32 %v439_v10, %v438_v9 }
  0xc3   :  { %v442_v13 = vsel %vm441_vm1, %v433_v11, %v440_v12 }
  0xc4   :  { %443 = vst [vmem:[%s707_s3] sm:$0x3] %v442_v13 }
  0xc5   :  { %452 = vsyncpa [#allocation4], 1 }

// kernel: resnet_backbone_forward.61
= control target key start
LH: loop header
LB: loop body
LE: loop exit
PB: predicated region body
PF: predicated region fallthrough
CT: control target
= control target key end

     0   :  { %9 = vsyncpa [#allocation4], 0  ;;  %s848_s0 = inlined_call_operand.vmem [shape: bf16[2,128], index: 0, kind: input, shape index: {}]   ;;  %s849_s1 = inlined_call_operand.hbm [shape: bf16[128,256], index: 1, kind: input, shape index: {}]   ;;  %s850_s2 = inlined_call_operand.vmem [shape: bf16[2,256], index: 2, kind: output, shape index: {0}]   ;;  %s851_s3 = inlined_call_operand.vmem [shape: f32[1,2,256], index: 3, kind: output, shape index: {1}]  }
   0x1   :  { %11 = vsyncpa [#allocation4 + $0x1], 0  ;;  %s754_s12 = smov 0   ;;  %s756_s13 = smov 0  }
   0x2   :  { %s758_s14 = smov 0   ;;  %s760_s15 = smov 0  }
   0x3   :  { %s762_s16 = smov 0   ;;  %s764_s17 = smov 0  }
   0x4 LB: > { %s537_s18 = sadd.s32 4294967295, %s728_s17   ;;  %s32_s19 = sadd.s32 1, %s724_s16  ;;  %s728_s17 = sphi %s764_s17, %s17_s17   ;;  %s724_s16 = sphi %s762_s16, %s858_s16   ;;  %s720_s15 = sphi %s760_s15, %s857_s15   ;;  %s716_s14 = sphi %s758_s14, %s856_s14   ;;  %s712_s13 = sphi %s756_s13, %s855_s13   ;;  %s708_s12 = sphi %s754_s12, %s854_s12  }
   0x5   : > { %p34_p0 = scmp.ge.s32.totalorder %s32_s19, 2  ;;  %s73_s20 = sadd.s32 1, %s716_s14 }
   0x6   : > { %p80_p1 = scmp.ne.s32.totalorder %s716_s14, %s712_s13  ;;  %p81_p2 = scmp.eq.s32.totalorder %s728_s17, 0 }
   0x7   : > { %s860_s19 = smov (%p34_p0, %s32_s19), 0  ;;  %p86_p4 = scmp.ne.s32.totalorder %s712_s13, %s708_s12 }
   0x8   : > { %p790_p3 = por %p81_p2, %p80_p1  ;;  %s69_s22 = ssub.s32 %s724_s16, %s860_s19 }
   0x9   : > { %p87_p5 = scmp.eq.s32.totalorder %s537_s18, 0  ;;  %p71_p6 = scmp.eq.s32.totalorder %s69_s22, 0 }
   0xa   : > { %p595_p8 = scmp.lt.s32.totalorder %s728_s17, 2  ;;  %s175_s25 = sand.u32 1, %s716_s14  }
   0xb   : > { %p797_p7 = por %p87_p5, %p86_p4  ;;  %s543_s26 = sshll.u32 %s724_s16, 2 }
   0xc   : > { %s803_s24 = scalar_select %p71_p6, %s716_s14, %s73_s20  }
   0xd   : > { %s542_s27 = sshll.u32 %s175_s25, 6  ;;  %s186_s30 = scalar_lea.hbm %s849_s1, %s543_s26 }
   0xe   : > { %s187_s4 = sshll.u32 %s186_s30, 4  ;;  %s179_s5 = scalar_lea.vmem [#allocation3], %s542_s27  ;;  %s188_s4 = int_to_ptr.hbm [resolvable:$true] %s187_s4 }
   0xf   : > { %s189_s6 = sshll.u32 %s179_s5, 4  ;;  %p592_p9 = pnand %p595_p8, %p790_p3  ;;  %s190_s6 = int_to_ptr.vmem [resolvable:$true] %s189_s6 }
  0x10   : > { %p544_p10 = scmp.ge.s32.totalorder %s728_s17, 1  ;;  %s176_s7 = scalar_lea.sflag [#allocation4], %s175_s25 }
  0x11   : > { %s730_s8 = smov 128   ;;  %s731_s9 = smov 64  }
  0x12   : > { %s732_s10 = smov 4   ;;  %p197_p11 = scmp.lt.s32.totalorder %s728_s17, 3 }
  0x13   : > { %594 = dma.hbm_to_vmem [thread:$0]  (!%p592_p9), %s188_s4, 1024, %s190_s6, %s176_s7, %s730_s8, %s731_s9, %s732_s10  }
  0x14   : > { %p198_p12 = pnand %p544_p10, %p197_p11 }
  0x15   : > { %s203_s11 = sand.u32 (!%p198_p12), 1, %s712_s13  }
  0x16   : > { %201 = sbr.rel (%p198_p12) target bundleno = 214 (0xd6), region = 28  ;;  %s545_s12 = sshll.u32 (!%p198_p12), %s203_s11, 6 }
  0x17   : > { %s204_s18 = scalar_lea.sflag (!%p198_p12), [#allocation4], %s203_s11  ;;  %s207_s20 = scalar_lea.vmem (!%p198_p12), [#allocation3], %s545_s12 }
  0x1b   : > { %703 = dma.done.wait (%p797_p7), %s204_s18, 1024  }
  0x1c   : > { %705 = vsyncadd (%p797_p7), %s204_s18, 4294966272  ;;  %v588_v0 = vld [vmem:[%s207_s20 + $0x38] sm:$0xff]  ;;  %v587_v1 = vld [vmem:[%s207_s20 + $0x30] sm:$0xff]  ;;  %v733_v2 = vmov 0.0   ;;  %v362_v12 = vlaneseq  ;;  %p256_p13 = scmp.lt.s32.totalorder %s720_s15, 1  ;;  %vm368_vm1 = vcmask 1041408  }
  0x1d   : > { %341 = vmatpush.bf16.msra.mxu0 %v588_v0  ;;  %274 = vst [vmem:[#allocation2] sm:$0x3] %v733_v2  ;;  %v586_v3 = vld [vmem:[%s207_s20 + $0x28] sm:$0xff]  ;;  %v585_v4 = vld [vmem:[%s207_s20 + $0x20] sm:$0xff]  ;;  %v584_v5 = vld [vmem:[%s207_s20 + $0x18] sm:$0xff]  ;;  %vm384_vm2 = vcmask 1040384  }
  0x1e   : > { %v583_v6 = vld [vmem:[%s207_s20 + $0x10] sm:$0xff]  ;;  %v582_v7 = vld [vmem:[%s207_s20 + $0x8] sm:$0xff]  ;;  %v581_v8 = vld [vmem:[%s207_s20] sm:$0xff]  ;;  %v363_v14 = vshrl.u32 %v362_v12, 7  ;;  %s862_s15 = smov (!%p256_p13, %s720_s15), 1 }
  0x1f   : > { %v276_v9 = vld [vmem:[%s848_s0] sm:$0x1]  ;;  %s260_s26 = scalar_lea.vmem %s850_s2, %s862_s15  ;;  %s546_s27 = sshll.u32 %s862_s15, 1 }
  0x20   : > { %vm366_vm0 = vcmp.lt.s32.totalorder %v363_v14, 2  ;;  %s268_s30 = scalar_lea.vmem %s851_s3, %s546_s27 }
  0x21   : > { %342 = vmatpush.bf16.msra.mxu0 %v587_v1 }
  0x24   : > { %v275_v10 = vld [vmem:[#allocation2] sm:$0x3] }
  0x25   : > { %343 = vmatpush.bf16.msra.mxu0 %v586_v3 }
  0x29   : > { %344 = vmatpush.bf16.msra.mxu0 %v585_v4 }
  0x2d   : > { %345 = vmatpush.bf16.msra.mxu0 %v584_v5 }
  0x31   : > { %346 = vmatpush.bf16.msra.mxu0 %v583_v6 }
  0x35   : > { %347 = vmatpush.bf16.msra.mxu0 %v582_v7 }
  0x39   : > { %348 = vmatpush.bf16.msra.mxu0 %v581_v8 }
  0x3c   : > { %349 = vmatmul.bf16.vlgmr.msra.gmra.mxu0 %v276_v9 }
  0xb9   : > { %v350_v11 = vpop.f32.mrf.mxu0 }
  0xba   : > { %v354_v13 = vadd.f32 %v350_v11, %v275_v10 }
  0xbc   : > { %355 = vst [vmem:[#allocation2] sm:$0x3] %v354_v13 }
  0xc1   : > { %v352_v15 = vpop.f32.mrf.mxu0 }
  0xc3   : > { %v359_v16 = vld [vmem:[#allocation2] sm:$0x3] }
  0xc4   : > { %v360_v17 = vpack.c.bf16 %v359_v16, %v359_v16  ;;  %v367_v18 = vsel %vm366_vm0, %v359_v16, 0.0 }
  0xc5   : > { %v369_v19 = vsel %vm368_vm1, %v367_v18, 0.0  ;;  %v376_v20 = vmul.f32 %v367_v18, %v367_v18 }
  0xc6   : > { %361 = vst [vmem:[%s260_s26] sm:$0x1] %v360_v17  ;;  %v370_v21 = vrot.slane %v369_v19, 4 }
  0xc7   : > { %v377_v22 = vsel %vm368_vm1, %v376_v20, 0.0 }
  0xc8   : > { %v371_v23 = vadd.f32 %v370_v21, %v369_v19  ;;  %v378_v24 = vrot.slane %v377_v22, 4 }
  0xca   : > { %v372_v25 = vrot.slane %v371_v23, 2  ;;  %v379_v26 = vadd.f32 %v378_v24, %v377_v22 }
  0xcc   : > { %v373_v27 = vadd.f32 %v372_v25, %v371_v23  ;;  %v380_v28 = vrot.slane %v379_v26, 2 }
  0xce   : > { %v374_v29 = vrot.slane %v373_v27, 1  ;;  %v381_v30 = vadd.f32 %v380_v28, %v379_v26 }
  0xd0   : > { %v382_v31 = vrot.slane %v381_v30, 1  ;;  %v375_v32 = vadd.f32 %v374_v29, %v373_v27 }
  0xd2   : > { %v383_v33 = vadd.f32 %v382_v31, %v381_v30 }
  0xd4   : > { %v385_v34 = vsel %vm384_vm2, %v375_v32, %v383_v33 }
  0xd5   : > { %386 = vst [vmem:[%s268_s30] sm:$0x3] %v385_v34 }
  0xd6 PF: > { %s17_s17 = sadd.s32 1, %s728_s17   ;;  %s854_s12 = smov %s712_s13 }
  0xd7   : > { %p14_p0 = scmp.ge.s32.totalorder %s17_s17, 4   ;;  %s855_s13 = smov %s716_s14 }
  0xd8   : > { %s856_s14 = smov %s803_s24  ;;  %s857_s15 = smov %s724_s16 }
  0xd9   : > { %s858_s16 = smov %s860_s19  ;;  %16 = sbr.rel (!%p14_p0) target bundleno = 4 (0x4), region = 91 }
  0xde   :  { %434 = vsyncpa [#allocation4], 1 }
  0xdf   :  { %436 = vsyncpa [#allocation4 + $0x1], 1 }

// kernel: resnet_backbone_forward.59
= control target key start
LH: loop header
LB: loop body
LE: loop exit
PB: predicated region body
PF: predicated region fallthrough
CT: control target
= control target key end

     0   :  { %vm21_vm0 = vcmask 1041408   ;;  %vm43_vm1 = vcmask 1040384   ;;  %s85_s0 = inlined_call_operand.vmem [shape: bf16[2,256], index: 0, kind: input, shape index: {}]   ;;  %s86_s1 = inlined_call_operand.vmem [shape: f32[1,256], index: 1, kind: input, shape index: {}]   ;;  %s87_s2 = inlined_call_operand.vmem [shape: f32[1,256], index: 2, kind: input, shape index: {}]   ;;  %s88_s3 = inlined_call_operand.vmem [shape: bf16[2,256], index: 3, kind: output, shape index: {}]  }
   0x1   :  { %v14_v0 = vld [vmem:[%s85_s0] sm:$0x3] }
   0x2   :  { %v16_v1 = vld [vmem:[%s86_s1] sm:$0x3]  ;;  %v15_v5 = vunpack.c.l.bf16 %v14_v0 }
   0x3   :  { %v25_v2 = vld [vmem:[%s87_s2] sm:$0x3]  ;;  %v18_v3 = vperm.slane %v16_v1, 0  ;;  %v19_v4 = vperm.slane %v16_v1, 1 }
   0x4   :  { %v27_v6 = vperm.slane %v25_v2, 0  ;;  %v28_v7 = vperm.slane %v25_v2, 1 }
   0x5   :  { %v20_v8 = vrot.slane %v19_v4, 6 }
   0x6   :  { %v29_v9 = vrot.slane %v28_v7, 6 }
   0x7   :  { %v22_v10 = vsel %vm21_vm0, %v18_v3, %v20_v8 }
   0x8   :  { %v24_v11 = vmul.f32 %v22_v10, %v15_v5  ;;  %v30_v12 = vsel %vm21_vm0, %v27_v6, %v29_v9 }
   0xa   :  { %v32_v13 = vadd.f32 %v30_v12, %v24_v11 }
   0xc   :  { %v33_v14 = vmax.f32 %v32_v13, 0.0 }
   0xe   :  { %35 = vst [vmem:[#allocation1] ss:$4 sm:$0xff] %v33_v14 }
  0x15   :  { %v36_v15 = vld.sshfl [vmem:[#allocation1] sm:$0xff pattern:$0x73625140]  ;;  %v37_v16 = vld.sshfl [vmem:[#allocation1 + $0x8] sm:$0xff pattern:$0x73625140] }
  0x16   :  { %v40_v17 = vpack.c.bf16 %v37_v16, %v36_v15 }
  0x18   :  { %v42_v18 = vrot.slane %v40_v17, 3 }
  0x1a   :  { %v46_v19 = vsel %vm43_vm1, %v40_v17, %v42_v18 }
  0x1b   :  { %48 = vst [vmem:[%s88_s3] sm:$0x3] %v46_v19 }

// kernel: resnet_backbone_forward.51
= control target key start
LH: loop header
LB: loop body
LE: loop exit
PB: predicated region body
PF: predicated region fallthrough
CT: control target
= control target key end

     0   :  { %9 = vsyncpa [#allocation4], 0  ;;  %s1194_s15 = smov [#allocation3]   ;;  %s1195_s17 = smov 64   ;;  %s1241_s0 = inlined_call_operand.vmem [shape: bf16[8,1152], index: 0, kind: input, shape index: {}]   ;;  %s1242_s1 = inlined_call_operand.hbm [shape: bf16[1152,128], index: 1, kind: input, shape index: {}]   ;;  %s1243_s2 = inlined_call_operand.vmem [shape: bf16[8,128], index: 2, kind: output, shape index: {0}]   ;;  %s1244_s3 = inlined_call_operand.vmem [shape: f32[1,2,128], index: 3, kind: output, shape index: {1}]  }
   0x1   :  { %s16_s14 = sshll.u32 %s1242_s1, 4  ;;  %s18_s16 = sshll.u32 %s1194_s15, 4  ;;  %s17_s14 = int_to_ptr.hbm [resolvable:$true] %s16_s14  ;;  %s19_s16 = int_to_ptr.vmem [resolvable:$true] %s18_s16 }
   0x2   :  { %s1196_s18 = smov 4  }
   0x3   :  { %24 = dma.hbm_to_vmem [thread:$0]  %s17_s14, 9216, %s19_s16, [#allocation4], %s1195_s17, %s1195_s17, %s1196_s18  }
   0x4   :  { %1192 = dma.done.wait [#allocation4], 9216  }
   0x5   :  { %1193 = vsyncadd [#allocation4], 4294958080  ;;  %v1100_v0 = vld [vmem:[#allocation3 + $0x38] sm:$0xff]  ;;  %v1099_v4 = vld [vmem:[#allocation3 + $0x30] sm:$0xff]  ;;  %vm793_vm0 = vcmask 1040384  }
   0x6   :  { %v1116_v1 = vld [vmem:[#allocation3 + $0xb8] sm:$0xff]  ;;  %649 = vmatpush.bf16.msra.mxu0 %v1100_v0  ;;  %v1115_v5 = vld [vmem:[#allocation3 + $0xb0] sm:$0xff]  ;;  %v1098_v8 = vld [vmem:[#allocation3 + $0x28] sm:$0xff] }
   0x7   :  { %v1124_v2 = vld [vmem:[#allocation3 + $0xf8] sm:$0xff]  ;;  %675 = vmatpush.bf16.msra.mxu2 %v1116_v1  ;;  %v1123_v6 = vld [vmem:[#allocation3 + $0xf0] sm:$0xff]  ;;  %v1114_v9 = vld [vmem:[#allocation3 + $0xa8] sm:$0xff] }
   0x8   :  { %v1108_v3 = vld [vmem:[#allocation3 + $0x78] sm:$0xff]  ;;  %688 = vmatpush.bf16.msra.mxu3 %v1124_v2  ;;  %v1107_v7 = vld [vmem:[#allocation3 + $0x70] sm:$0xff]  ;;  %v1122_v10 = vld [vmem:[#allocation3 + $0xe8] sm:$0xff] }
   0x9   :  { %662 = vmatpush.bf16.msra.mxu1 %v1108_v3  ;;  %v1106_v11 = vld [vmem:[#allocation3 + $0x68] sm:$0xff]  ;;  %v1097_v12 = vld [vmem:[#allocation3 + $0x20] sm:$0xff]  ;;  %v1096_v16 = vld [vmem:[#allocation3 + $0x18] sm:$0xff] }
   0xa   :  { %650 = vmatpush.bf16.msra.mxu0 %v1099_v4  ;;  %v1113_v13 = vld [vmem:[#allocation3 + $0xa0] sm:$0xff]  ;;  %v1112_v17 = vld [vmem:[#allocation3 + $0x98] sm:$0xff]  ;;  %v1095_v20 = vld [vmem:[#allocation3 + $0x10] sm:$0xff] }
   0xb   :  { %676 = vmatpush.bf16.msra.mxu2 %v1115_v5  ;;  %v1121_v14 = vld [vmem:[#allocation3 + $0xe0] sm:$0xff]  ;;  %v1120_v18 = vld [vmem:[#allocation3 + $0xd8] sm:$0xff]  ;;  %v1111_v21 = vld [vmem:[#allocation3 + $0x90] sm:$0xff] }
   0xc   :  { %689 = vmatpush.bf16.msra.mxu3 %v1123_v6  ;;  %v1105_v15 = vld [vmem:[#allocation3 + $0x60] sm:$0xff]  ;;  %v1104_v19 = vld [vmem:[#allocation3 + $0x58] sm:$0xff]  ;;  %v1119_v22 = vld [vmem:[#allocation3 + $0xd0] sm:$0xff] }
   0xd   :  { %663 = vmatpush.bf16.msra.mxu1 %v1107_v7  ;;  %v1103_v23 = vld [vmem:[#allocation3 + $0x50] sm:$0xff]  ;;  %v1094_v24 = vld [vmem:[#allocation3 + $0x8] sm:$0xff]  ;;  %v36_v29 = vld [vmem:[%s1241_s0] sm:$0xff] }
   0xe   :  { %651 = vmatpush.bf16.msra.mxu0 %v1098_v8  ;;  %v1110_v25 = vld [vmem:[#allocation3 + $0x88] sm:$0xff]  ;;  %v1093_v30 = vld [vmem:[#allocation3] sm:$0xff]  ;;  %v190_v33 = vunpack.c.l.b16 %v36_v29  ;;  %v1132_v34 = vld [vmem:[#allocation3 + $0x138] sm:$0xff]  ;;  %v191_v39 = vunpack.c.h.b16 %v36_v29 }
   0xf   :  { %677 = vmatpush.bf16.msra.mxu2 %v1114_v9  ;;  %v1118_v26 = vld [vmem:[#allocation3 + $0xc8] sm:$0xff]  ;;  %v1109_v31 = vld [vmem:[#allocation3 + $0x80] sm:$0xff]  ;;  %v1148_v35 = vld [vmem:[#allocation3 + $0x1b8] sm:$0xff] }
  0x10   :  { %690 = vmatpush.bf16.msra.mxu3 %v1122_v10  ;;  %v1102_v27 = vld [vmem:[#allocation3 + $0x48] sm:$0xff]  ;;  %v1117_v36 = vld [vmem:[#allocation3 + $0xc0] sm:$0xff]  ;;  %v1156_v40 = vld [vmem:[#allocation3 + $0x1f8] sm:$0xff]  ;;  %v199_v43 = vpack.c.b16 %v190_v33, %v190_v33  ;;  %v200_v47 = vpack.c.b16 %v191_v39, %v191_v39 }
  0x11   :  { %664 = vmatpush.bf16.msra.mxu1 %v1106_v11  ;;  %v37_v28 = vld [vmem:[%s1241_s0 + $0x8] sm:$0xff]  ;;  %v1101_v37 = vld [vmem:[#allocation3 + $0x40] sm:$0xff]  ;;  %v1140_v41 = vld [vmem:[#allocation3 + $0x178] sm:$0xff] }
  0x12   :  { %652 = vmatpush.bf16.msra.mxu0 %v1097_v12  ;;  %v192_v32 = vunpack.c.l.b16 %v37_v28  ;;  %v193_v38 = vunpack.c.h.b16 %v37_v28  ;;  %v1131_v44 = vld [vmem:[#allocation3 + $0x130] sm:$0xff]  ;;  %v1130_v50 = vld [vmem:[#allocation3 + $0x128] sm:$0xff]  ;;  %v1129_v54 = vld [vmem:[#allocation3 + $0x120] sm:$0xff] }
  0x13   :  { %678 = vmatpush.bf16.msra.mxu2 %v1113_v13  ;;  %v1147_v45 = vld [vmem:[#allocation3 + $0x1b0] sm:$0xff]  ;;  %v1146_v51 = vld [vmem:[#allocation3 + $0x1a8] sm:$0xff]  ;;  %v1145_v55 = vld [vmem:[#allocation3 + $0x1a0] sm:$0xff] }
  0x14   :  { %691 = vmatpush.bf16.msra.mxu3 %v1121_v14  ;;  %v201_v42 = vpack.c.b16 %v192_v32, %v192_v32  ;;  %v202_v46 = vpack.c.b16 %v193_v38, %v193_v38  ;;  %v1155_v48 = vld [vmem:[#allocation3 + $0x1f0] sm:$0xff]  ;;  %v1154_v52 = vld [vmem:[#allocation3 + $0x1e8] sm:$0xff]  ;;  %v1153_v56 = vld [vmem:[#allocation3 + $0x1e0] sm:$0xff] }
  0x15   :  { %665 = vmatpush.bf16.msra.mxu1 %v1105_v15  ;;  %v1139_v49 = vld [vmem:[#allocation3 + $0x170] sm:$0xff]  ;;  %v1138_v53 = vld [vmem:[#allocation3 + $0x168] sm:$0xff]  ;;  %v1137_v57 = vld [vmem:[#allocation3 + $0x160] sm:$0xff] }
  0x16   :  { %653 = vmatpush.bf16.msra.mxu0 %v1096_v16  ;;  %v1128_v58 = vld [vmem:[#allocation3 + $0x118] sm:$0xff]  ;;  %v1127_v62 = vld [vmem:[#allocation3 + $0x110] sm:$0xff]  ;;  %v1126_v2 = vld [vmem:[#allocation3 + $0x108] sm:$0xff] }
  0x17   :  { %679 = vmatpush.bf16.msra.mxu2 %v1112_v17  ;;  %v1144_v59 = vld [vmem:[#allocation3 + $0x198] sm:$0xff]  ;;  %v1143_v63 = vld [vmem:[#allocation3 + $0x190] sm:$0xff]  ;;  %v1142_v3 = vld [vmem:[#allocation3 + $0x188] sm:$0xff] }
  0x18   :  { %692 = vmatpush.bf16.msra.mxu3 %v1120_v18  ;;  %v1152_v60 = vld [vmem:[#allocation3 + $0x1d8] sm:$0xff]  ;;  %v1151_v0 = vld [vmem:[#allocation3 + $0x1d0] sm:$0xff]  ;;  %v1150_v6 = vld [vmem:[#allocation3 + $0x1c8] sm:$0xff] }
  0x19   :  { %666 = vmatpush.bf16.msra.mxu1 %v1104_v19  ;;  %v1136_v61 = vld [vmem:[#allocation3 + $0x158] sm:$0xff]  ;;  %v1135_v1 = vld [vmem:[#allocation3 + $0x150] sm:$0xff]  ;;  %v1134_v7 = vld [vmem:[#allocation3 + $0x148] sm:$0xff] }
  0x1a   :  { %654 = vmatpush.bf16.msra.mxu0 %v1095_v20  ;;  %v39_v4 = vld [vmem:[%s1241_s0 + $0x18] sm:$0xff]  ;;  %v38_v5 = vld [vmem:[%s1241_s0 + $0x10] sm:$0xff]  ;;  %v1125_v10 = vld [vmem:[#allocation3 + $0x100] sm:$0xff] }
  0x1b   :  { %680 = vmatpush.bf16.msra.mxu2 %v1111_v21  ;;  %v196_v8 = vunpack.c.l.b16 %v39_v4  ;;  %v194_v9 = vunpack.c.l.b16 %v38_v5  ;;  %v1141_v11 = vld [vmem:[#allocation3 + $0x180] sm:$0xff]  ;;  %v1164_v12 = vld [vmem:[#allocation3 + $0x238] sm:$0xff]  ;;  %v197_v13 = vunpack.c.h.b16 %v39_v4  ;;  %v195_v16 = vunpack.c.h.b16 %v38_v5  ;;  %v1163_v19 = vld [vmem:[#allocation3 + $0x230] sm:$0xff] }
  0x1c   :  { %693 = vmatpush.bf16.msra.mxu3 %v1119_v22  ;;  %v1149_v14 = vld [vmem:[#allocation3 + $0x1c0] sm:$0xff]  ;;  %v1162_v22 = vld [vmem:[#allocation3 + $0x228] sm:$0xff] }
  0x1d   :  { %667 = vmatpush.bf16.msra.mxu1 %v1103_v23  ;;  %v1133_v15 = vld [vmem:[#allocation3 + $0x140] sm:$0xff]  ;;  %v205_v17 = vpack.c.b16 %v196_v8, %v196_v8  ;;  %v203_v18 = vpack.c.b16 %v194_v9, %v194_v9  ;;  %v206_v20 = vpack.c.b16 %v197_v13, %v197_v13  ;;  %v204_v21 = vpack.c.b16 %v195_v16, %v195_v16 }
  0x1e   :  { %655 = vmatpush.bf16.msra.mxu0 %v1094_v24  ;;  %v1161_v23 = vld [vmem:[#allocation3 + $0x220] sm:$0xff]  ;;  %v1160_v24 = vld [vmem:[#allocation3 + $0x218] sm:$0xff] }
  0x1f   :  { %681 = vmatpush.bf16.msra.mxu2 %v1110_v25  ;;  %v1159_v25 = vld [vmem:[#allocation3 + $0x210] sm:$0xff]  ;;  %v1157_v29 = vld [vmem:[#allocation3 + $0x200] sm:$0xff] }
  0x20   :  { %694 = vmatpush.bf16.msra.mxu3 %v1118_v26  ;;  %v1158_v26 = vld [vmem:[#allocation3 + $0x208] sm:$0xff] }
  0x21   :  { %668 = vmatpush.bf16.msra.mxu1 %v1102_v27  ;;  %v40_v27 = vld [vmem:[%s1241_s0 + $0x20] sm:$0xf] }
  0x22   :  { %656 = vmatpush.bf16.msra.mxu0 %v1093_v30  ;;  %v198_v28 = vunpack.c.l.b16 %v40_v27 }
  0x23   :  { %682 = vmatpush.bf16.msra.mxu2 %v1109_v31 }
  0x24   :  { %695 = vmatpush.bf16.msra.mxu3 %v1117_v36  ;;  %v207_v30 = vpack.c.b16 %v198_v28, %v198_v28 }
  0x25   :  { %669 = vmatpush.bf16.msra.mxu1 %v1101_v37  ;;  %657 = vmatmul.bf16.vlgmr.msra.gmra.mxu0 %v199_v43 }
  0x26   :  { %701 = vmatpush.bf16.msrb.mxu0 %v1132_v34  ;;  %683 = vmatmul.bf16.vlgmr.msra.gmra.mxu2 %v201_v42 }
  0x27   :  { %727 = vmatpush.bf16.msrb.mxu2 %v1148_v35  ;;  %696 = vmatmul.bf16.vlgmr.msra.gmra.mxu3 %v202_v46 }
  0x28   :  { %740 = vmatpush.bf16.msrb.mxu3 %v1156_v40  ;;  %670 = vmatmul.bf16.vlgmr.msra.gmra.mxu1 %v200_v47 }
  0x29   :  { %714 = vmatpush.bf16.msrb.mxu1 %v1140_v41 }
  0x2a   :  { %702 = vmatpush.bf16.msrb.mxu0 %v1131_v44 }
  0x2b   :  { %728 = vmatpush.bf16.msrb.mxu2 %v1147_v45 }
  0x2c   :  { %741 = vmatpush.bf16.msrb.mxu3 %v1155_v48 }
  0x2d   :  { %715 = vmatpush.bf16.msrb.mxu1 %v1139_v49 }
  0x2e   :  { %703 = vmatpush.bf16.msrb.mxu0 %v1130_v50 }
  0x2f   :  { %729 = vmatpush.bf16.msrb.mxu2 %v1146_v51 }
  0x30   :  { %742 = vmatpush.bf16.msrb.mxu3 %v1154_v52 }
  0x31   :  { %716 = vmatpush.bf16.msrb.mxu1 %v1138_v53 }
  0x32   :  { %704 = vmatpush.bf16.msrb.mxu0 %v1129_v54 }
  0x33   :  { %730 = vmatpush.bf16.msrb.mxu2 %v1145_v55 }
  0x34   :  { %743 = vmatpush.bf16.msrb.mxu3 %v1153_v56 }
  0x35   :  { %717 = vmatpush.bf16.msrb.mxu1 %v1137_v57 }
  0x36   :  { %705 = vmatpush.bf16.msrb.mxu0 %v1128_v58 }
  0x37   :  { %731 = vmatpush.bf16.msrb.mxu2 %v1144_v59 }
  0x38   :  { %744 = vmatpush.bf16.msrb.mxu3 %v1152_v60 }
  0x39   :  { %718 = vmatpush.bf16.msrb.mxu1 %v1136_v61 }
  0x3a   :  { %706 = vmatpush.bf16.msrb.mxu0 %v1127_v62 }
  0x3b   :  { %732 = vmatpush.bf16.msrb.mxu2 %v1143_v63 }
  0x3c   :  { %745 = vmatpush.bf16.msrb.mxu3 %v1151_v0 }
  0x3d   :  { %719 = vmatpush.bf16.msrb.mxu1 %v1135_v1 }
  0x3e   :  { %707 = vmatpush.bf16.msrb.mxu0 %v1126_v2 }
  0x3f   :  { %733 = vmatpush.bf16.msrb.mxu2 %v1142_v3 }
  0x40   :  { %746 = vmatpush.bf16.msrb.mxu3 %v1150_v6 }
  0x41   :  { %720 = vmatpush.bf16.msrb.mxu1 %v1134_v7 }
  0x42   :  { %708 = vmatpush.bf16.msrb.mxu0 %v1125_v10 }
  0x43   :  { %734 = vmatpush.bf16.msrb.mxu2 %v1141_v11 }
  0x44   :  { %747 = vmatpush.bf16.msrb.mxu3 %v1149_v14 }
  0x45   :  { %721 = vmatpush.bf16.msrb.mxu1 %v1133_v15  ;;  %709 = vmatmul.bf16.vlgmr.msrb.gmra.mxu0 %v203_v18 }
  0x46   :  { %753 = vmatpush.bf16.msra.mxu0 %v1164_v12  ;;  %735 = vmatmul.bf16.vlgmr.msrb.gmra.mxu2 %v205_v17 }
  0x47   :  { %748 = vmatmul.bf16.vlgmr.msrb.gmra.mxu3 %v206_v20 }
  0x48   :  { %722 = vmatmul.bf16.vlgmr.msrb.gmra.mxu1 %v204_v21 }
  0x4a   :  { %754 = vmatpush.bf16.msra.mxu0 %v1163_v19 }
  0x4e   :  { %755 = vmatpush.bf16.msra.mxu0 %v1162_v22 }
  0x52   :  { %756 = vmatpush.bf16.msra.mxu0 %v1161_v23 }
  0x56   :  { %757 = vmatpush.bf16.msra.mxu0 %v1160_v24 }
  0x5a   :  { %758 = vmatpush.bf16.msra.mxu0 %v1159_v25 }
  0x5e   :  { %759 = vmatpush.bf16.msra.mxu0 %v1158_v26 }
  0x62   :  { %760 = vmatpush.bf16.msra.mxu0 %v1157_v29 }
  0x65   :  { %761 = vmatmul.bf16.vlgmr.msra.gmra.mxu0 %v207_v30 }
  0xa2   :  { %v658_v31 = vpop.f32.mrf.mxu0 }
  0xa5   :  { %v671_v32 = vpop.f32.mrf.mxu1 }
  0xa6   :  { %v672_v41 = vadd.f32 %v671_v32, %v658_v31 }
  0xa9   :  { %v684_v33 = vpop.f32.mrf.mxu2 }
  0xaa   :  { %v697_v34 = vpop.f32.mrf.mxu3  ;;  %v660_v35 = vpop.f32.mrf.mxu0  ;;  %v685_v43 = vadd.f32 %v684_v33, %v672_v41 }
  0xac   :  { %v698_v47 = vadd.f32 %v697_v34, %v685_v43 }
  0xad   :  { %v673_v36 = vpop.f32.mrf.mxu1 }
  0xb1   :  { %v686_v37 = vpop.f32.mrf.mxu2 }
  0xb2   :  { %v699_v38 = vpop.f32.mrf.mxu3 }
  0xc2   :  { %v710_v39 = vpop.f32.mrf.mxu0 }
  0xc3   :  { %v711_v49 = vadd.f32 %v710_v39, %v698_v47 }
  0xc5   :  { %v723_v40 = vpop.f32.mrf.mxu1 }
  0xc6   :  { %v724_v51 = vadd.f32 %v723_v40, %v711_v49 }
  0xc9   :  { %v736_v42 = vpop.f32.mrf.mxu2 }
  0xca   :  { %v749_v44 = vpop.f32.mrf.mxu3  ;;  %v712_v45 = vpop.f32.mrf.mxu0  ;;  %v737_v52 = vadd.f32 %v736_v42, %v724_v51 }
  0xcc   :  { %v750_v53 = vadd.f32 %v749_v44, %v737_v52 }
  0xcd   :  { %v725_v46 = vpop.f32.mrf.mxu1 }
  0xd1   :  { %v738_v48 = vpop.f32.mrf.mxu2 }
  0xd2   :  { %v751_v50 = vpop.f32.mrf.mxu3 }
  0xe2   :  { %v762_v54 = vpop.f32.mrf.mxu0 }
  0xe3   :  { %v763_v55 = vadd.f32 %v762_v54, %v750_v53 }
  0xe5   :  { %v772_v56 = vpack.c.bf16 %v763_v55, %v763_v55  ;;  %v780_v57 = vrot.slane %v763_v55, 4  ;;  %v786_v58 = vmul.f32 %v763_v55, %v763_v55 }
  0xe7   :  { %773 = vst [vmem:[%s1243_s2] sm:$0xf] %v772_v56  ;;  %v781_v59 = vadd.f32 %v780_v57, %v763_v55  ;;  %v787_v60 = vrot.slane %v786_v58, 4 }
  0xe9   :  { %v782_v61 = vrot.slane %v781_v59, 2  ;;  %v788_v62 = vadd.f32 %v787_v60, %v786_v58 }
  0xea   :  { %v764_v63 = vpop.f32.mrf.mxu0 }
  0xeb   :  { %v783_v0 = vadd.f32 %v782_v61, %v781_v59  ;;  %v789_v1 = vrot.slane %v788_v62, 2 }
  0xed   :  { %v784_v2 = vrot.slane %v783_v0, 1  ;;  %v790_v3 = vadd.f32 %v789_v1, %v788_v62 }
  0xef   :  { %v791_v4 = vrot.slane %v790_v3, 1  ;;  %v785_v5 = vadd.f32 %v784_v2, %v783_v0 }
  0xf1   :  { %v792_v6 = vadd.f32 %v791_v4, %v790_v3 }
  0xf3   :  { %v794_v7 = vsel %vm793_vm0, %v785_v5, %v792_v6 }
  0xf4   :  { %795 = vst [vmem:[%s1244_s3] sm:$0x3] %v794_v7 }
  0xf5   :  { %804 = vsyncpa [#allocation4], 1 }

// kernel: resnet_backbone_forward.58
= control target key start
LH: loop header
LB: loop body
LE: loop exit
PB: predicated region body
PF: predicated region fallthrough
CT: control target
= control target key end

     0   :  { %9 = vsyncpa [#allocation4], 0  ;;  %s1901_s0 = inlined_call_operand.vmem [shape: bf16[2,1152], index: 0, kind: input, shape index: {}]   ;;  %s1902_s1 = inlined_call_operand.hbm [shape: bf16[1152,256], index: 1, kind: input, shape index: {}]   ;;  %s1903_s2 = inlined_call_operand.vmem [shape: bf16[2,256], index: 2, kind: output, shape index: {0}]   ;;  %s1904_s3 = inlined_call_operand.vmem [shape: f32[1,2,256], index: 3, kind: output, shape index: {1}]  }
   0x1   :  { %11 = vsyncpa [#allocation4 + $0x1], 0  ;;  %s1724_s12 = smov 0   ;;  %s1726_s13 = smov 0  }
   0x2   :  { %s1728_s14 = smov 0   ;;  %s1730_s15 = smov 0  }
   0x3   :  { %s1732_s16 = smov 0   ;;  %s1734_s17 = smov 0  }
   0x4 LB: > { %s1187_s18 = sadd.s32 4294967295, %s1698_s17   ;;  %s32_s19 = sadd.s32 1, %s1694_s16  ;;  %s1698_s17 = sphi %s1734_s17, %s17_s17   ;;  %s1694_s16 = sphi %s1732_s16, %s1910_s16   ;;  %s1690_s15 = sphi %s1730_s15, %s1909_s15   ;;  %s1686_s14 = sphi %s1728_s14, %s1908_s14   ;;  %s1682_s13 = sphi %s1726_s13, %s1907_s13   ;;  %s1678_s12 = sphi %s1724_s12, %s1906_s12  }
   0x5   : > { %p34_p0 = scmp.ge.s32.totalorder %s32_s19, 2  ;;  %s73_s20 = sadd.s32 1, %s1686_s14 }
   0x6   : > { %p80_p1 = scmp.ne.s32.totalorder %s1686_s14, %s1682_s13  ;;  %p81_p2 = scmp.eq.s32.totalorder %s1698_s17, 0 }
   0x7   : > { %s1912_s19 = smov (%p34_p0, %s32_s19), 0  ;;  %p86_p4 = scmp.ne.s32.totalorder %s1682_s13, %s1678_s12 }
   0x8   : > { %p82_p3 = por %p81_p2, %p80_p1  ;;  %s69_s21 = ssub.s32 %s1694_s16, %s1912_s19 }
   0x9   : > { %p87_p5 = scmp.eq.s32.totalorder %s1187_s18, 0  ;;  %p71_p6 = scmp.eq.s32.totalorder %s69_s21, 0 }
   0xa   : > { %p1565_p8 = scmp.lt.s32.totalorder %s1698_s17, 2  ;;  %s178_s24 = sand.u32 1, %s1686_s14  }
   0xb   : > { %p1763_p7 = por %p87_p5, %p86_p4  ;;  %s1192_s25 = sshll.u32 %s1694_s16, 2 }
   0xc   : > { %s1769_s23 = scalar_select %p71_p6, %s1686_s14, %s73_s20  }
   0xd   : > { %s1557_s26 = smul.u32 576, %s178_s24  ;;  %s189_s29 = scalar_lea.hbm %s1902_s1, %s1192_s25 }
   0xe   : > { %p1562_p9 = pnand %p1565_p8, %p82_p3  ;;  %s190_s30 = sshll.u32 %s189_s29, 4  ;;  %s191_s30 = int_to_ptr.hbm [resolvable:$true] %s190_s30 }
   0xf   : > { %s182_s4 = scalar_lea.vmem [#allocation3], %s1557_s26  ;;  %p1193_p10 = scmp.ge.s32.totalorder %s1698_s17, 1 }
  0x10   : > { %s192_s5 = sshll.u32 %s182_s4, 4  ;;  %s179_s6 = scalar_lea.sflag [#allocation4], %s178_s24  ;;  %s193_s5 = int_to_ptr.vmem [resolvable:$true] %s192_s5 }
  0x11   : > { %s1700_s7 = smov 128   ;;  %s1701_s8 = smov 64  }
  0x12   : > { %s1702_s9 = smov 4   ;;  %p200_p11 = scmp.lt.s32.totalorder %s1698_s17, 3 }
  0x13   : > { %1564 = dma.hbm_to_vmem [thread:$0]  (!%p1562_p9), %s191_s30, 9216, %s193_s5, %s179_s6, %s1700_s7, %s1701_s8, %s1702_s9  }
  0x14   : > { %p201_p12 = pnand %p1193_p10, %p200_p11 }
  0x15   : > { %s206_s10 = sand.u32 (!%p201_p12), 1, %s1682_s13  }
  0x16   : > { %204 = sbr.rel (%p201_p12) target bundleno = 280 (0x118), region = 28  ;;  %s207_s12 = scalar_lea.sflag (!%p201_p12), [#allocation4], %s206_s10 }
  0x17   : > { %s1558_s11 = smul.u32 (!%p201_p12), 576, %s206_s10 }
  0x19   : > { %s1779_s18 = scalar_lea.vmem (!%p201_p12), [#allocation3], %s1558_s11 }
  0x1b   : > { %1673 = dma.done.wait (%p1763_p7), %s207_s12, 9216  }
  0x1c   : > { %1675 = vsyncadd (%p1763_p7), %s207_s12, 4294958080  ;;  %v1492_v0 = vld [vmem:[%s1779_s18 + $0x38] sm:$0xff]  ;;  %v1491_v4 = vld [vmem:[%s1779_s18 + $0x30] sm:$0xff]  ;;  %p264_p13 = scmp.lt.s32.totalorder %s1690_s15, 1  ;;  %vm1015_vm1 = vcmask 1041408   ;;  %vm1031_vm2 = vcmask 1040384  }
  0x1d   : > { %v1508_v1 = vld [vmem:[%s1779_s18 + $0xb8] sm:$0xff]  ;;  %884 = vmatpush.bf16.msra.mxu0 %v1492_v0  ;;  %v1507_v5 = vld [vmem:[%s1779_s18 + $0xb0] sm:$0xff]  ;;  %v1490_v8 = vld [vmem:[%s1779_s18 + $0x28] sm:$0xff] }
  0x1e   : > { %v1516_v2 = vld [vmem:[%s1779_s18 + $0xf8] sm:$0xff]  ;;  %910 = vmatpush.bf16.msra.mxu2 %v1508_v1  ;;  %v1515_v6 = vld [vmem:[%s1779_s18 + $0xf0] sm:$0xff]  ;;  %v1506_v9 = vld [vmem:[%s1779_s18 + $0xa8] sm:$0xff]  ;;  %s1914_s15 = smov (!%p264_p13, %s1690_s15), 1 }
  0x1f   : > { %v1500_v3 = vld [vmem:[%s1779_s18 + $0x78] sm:$0xff]  ;;  %923 = vmatpush.bf16.msra.mxu3 %v1516_v2  ;;  %v1499_v7 = vld [vmem:[%s1779_s18 + $0x70] sm:$0xff]  ;;  %v1514_v10 = vld [vmem:[%s1779_s18 + $0xe8] sm:$0xff]  ;;  %s268_s27 = scalar_lea.vmem %s1903_s2, %s1914_s15  ;;  %s1194_s28 = sshll.u32 %s1914_s15, 1 }
  0x20   : > { %897 = vmatpush.bf16.msra.mxu1 %v1500_v3  ;;  %v1498_v11 = vld [vmem:[%s1779_s18 + $0x68] sm:$0xff]  ;;  %v1489_v12 = vld [vmem:[%s1779_s18 + $0x20] sm:$0xff]  ;;  %v1488_v16 = vld [vmem:[%s1779_s18 + $0x18] sm:$0xff]  ;;  %s276_s4 = scalar_lea.vmem %s1904_s3, %s1194_s28 }
  0x21   : > { %885 = vmatpush.bf16.msra.mxu0 %v1491_v4  ;;  %v1505_v13 = vld [vmem:[%s1779_s18 + $0xa0] sm:$0xff]  ;;  %v1504_v17 = vld [vmem:[%s1779_s18 + $0x98] sm:$0xff]  ;;  %v1487_v21 = vld [vmem:[%s1779_s18 + $0x10] sm:$0xff] }
  0x22   : > { %911 = vmatpush.bf16.msra.mxu2 %v1507_v5  ;;  %v1513_v14 = vld [vmem:[%s1779_s18 + $0xe0] sm:$0xff]  ;;  %v1512_v18 = vld [vmem:[%s1779_s18 + $0xd8] sm:$0xff]  ;;  %v1503_v22 = vld [vmem:[%s1779_s18 + $0x90] sm:$0xff] }
  0x23   : > { %924 = vmatpush.bf16.msra.mxu3 %v1515_v6  ;;  %v1497_v15 = vld [vmem:[%s1779_s18 + $0x60] sm:$0xff]  ;;  %v1496_v19 = vld [vmem:[%s1779_s18 + $0x58] sm:$0xff]  ;;  %v1511_v23 = vld [vmem:[%s1779_s18 + $0xd0] sm:$0xff] }
  0x24   : > { %898 = vmatpush.bf16.msra.mxu1 %v1499_v7  ;;  %v284_v20 = vld [vmem:[%s1901_s0] sm:$0xff]  ;;  %v1486_v25 = vld [vmem:[%s1779_s18 + $0x8] sm:$0xff]  ;;  %v1485_v29 = vld [vmem:[%s1779_s18] sm:$0xff] }
  0x25   : > { %886 = vmatpush.bf16.msra.mxu0 %v1490_v8  ;;  %431 = vst [vmem:[#allocation1] ss:$9 sm:$0xff] %v284_v20  ;;  %v1495_v24 = vld [vmem:[%s1779_s18 + $0x50] sm:$0xff]  ;;  %v1502_v26 = vld [vmem:[%s1779_s18 + $0x88] sm:$0xff]  ;;  %v1501_v30 = vld [vmem:[%s1779_s18 + $0x80] sm:$0xff] }
  0x26   : > { %912 = vmatpush.bf16.msra.mxu2 %v1506_v9  ;;  %v1510_v27 = vld [vmem:[%s1779_s18 + $0xc8] sm:$0xff]  ;;  %v1524_v31 = vld [vmem:[%s1779_s18 + $0x138] sm:$0xff]  ;;  %v1509_v33 = vld [vmem:[%s1779_s18 + $0xc0] sm:$0xff] }
  0x27   : > { %925 = vmatpush.bf16.msra.mxu3 %v1514_v10  ;;  %v1494_v28 = vld [vmem:[%s1779_s18 + $0x48] sm:$0xff]  ;;  %v1540_v32 = vld [vmem:[%s1779_s18 + $0x1b8] sm:$0xff]  ;;  %v1493_v34 = vld [vmem:[%s1779_s18 + $0x40] sm:$0xff] }
  0x28   : > { %899 = vmatpush.bf16.msra.mxu1 %v1498_v11  ;;  %v1548_v35 = vld [vmem:[%s1779_s18 + $0x1f8] sm:$0xff]  ;;  %v1523_v37 = vld [vmem:[%s1779_s18 + $0x130] sm:$0xff]  ;;  %v1522_v50 = vld [vmem:[%s1779_s18 + $0x128] sm:$0xff] }
  0x29   : > { %887 = vmatpush.bf16.msra.mxu0 %v1489_v12  ;;  %v1532_v36 = vld [vmem:[%s1779_s18 + $0x178] sm:$0xff]  ;;  %v1539_v38 = vld [vmem:[%s1779_s18 + $0x1b0] sm:$0xff]  ;;  %v1538_v51 = vld [vmem:[%s1779_s18 + $0x1a8] sm:$0xff] }
  0x2a   : > { %913 = vmatpush.bf16.msra.mxu2 %v1505_v13  ;;  %v1547_v39 = vld [vmem:[%s1779_s18 + $0x1f0] sm:$0xff]  ;;  %v285_v46 = vld [vmem:[%s1901_s0 + $0x8] sm:$0x1]  ;;  %v1546_v52 = vld [vmem:[%s1779_s18 + $0x1e8] sm:$0xff] }
  0x2b   : > { %926 = vmatpush.bf16.msra.mxu3 %v1513_v14  ;;  %v1531_v40 = vld [vmem:[%s1779_s18 + $0x170] sm:$0xff]  ;;  %v1530_v53 = vld [vmem:[%s1779_s18 + $0x168] sm:$0xff]  ;;  %v1521_v54 = vld [vmem:[%s1779_s18 + $0x120] sm:$0xff] }
  0x2c   : > { %900 = vmatpush.bf16.msra.mxu1 %v1497_v15  ;;  %v434_v41 = vld [vmem:[#allocation1 + $0x12] sm:$0xff]  ;;  %v432_v42 = vld [vmem:[#allocation1] sm:$0xff]  ;;  %v433_v44 = vld [vmem:[#allocation1 + $0x9] sm:$0xff] }
  0x2d   : > { %888 = vmatpush.bf16.msra.mxu0 %v1488_v16  ;;  %v435_v43 = vld [vmem:[#allocation1 + $0x1b] sm:$0xff]  ;;  %v1833_v47 = vld [vmem:[#allocation1 + $0x24] sm:$0xff]  ;;  %v1837_v49 = vld [vmem:[#allocation1 + $0x2d] sm:$0xff] }
  0x2e   : > { %914 = vmatpush.bf16.msra.mxu2 %v1504_v17  ;;  %v1828_v45 = vld [vmem:[#allocation1 + $0x36] sm:$0xff]  ;;  %v1835_v48 = vld [vmem:[#allocation1 + $0x3f] sm:$0xff]  ;;  %v1537_v55 = vld [vmem:[%s1779_s18 + $0x1a0] sm:$0xff] }
  0x2f   : > { %927 = vmatpush.bf16.msra.mxu3 %v1512_v18  ;;  %441 = vst [vmem:[#allocation1] ss:$9 sm:$0xff] %v285_v46  ;;  %v1545_v56 = vld [vmem:[%s1779_s18 + $0x1e0] sm:$0xff]  ;;  %v1520_v58 = vld [vmem:[%s1779_s18 + $0x118] sm:$0xff]  ;;  %v1519_v62 = vld [vmem:[%s1779_s18 + $0x110] sm:$0xff]  ;;  %v1009_v46 = vlaneseq }
  0x30   : > { %901 = vmatpush.bf16.msra.mxu1 %v1496_v19  ;;  %v1529_v57 = vld [vmem:[%s1779_s18 + $0x160] sm:$0xff]  ;;  %v1536_v59 = vld [vmem:[%s1779_s18 + $0x198] sm:$0xff]  ;;  %v1535_v63 = vld [vmem:[%s1779_s18 + $0x190] sm:$0xff] }
  0x31   : > { %889 = vmatpush.bf16.msra.mxu0 %v1487_v21  ;;  %v1544_v60 = vld [vmem:[%s1779_s18 + $0x1d8] sm:$0xff]  ;;  %v1543_v0 = vld [vmem:[%s1779_s18 + $0x1d0] sm:$0xff]  ;;  %v1518_v2 = vld [vmem:[%s1779_s18 + $0x108] sm:$0xff] }
  0x32   : > { %915 = vmatpush.bf16.msra.mxu2 %v1503_v22  ;;  %v1528_v61 = vld [vmem:[%s1779_s18 + $0x158] sm:$0xff]  ;;  %v1527_v1 = vld [vmem:[%s1779_s18 + $0x150] sm:$0xff]  ;;  %v1534_v3 = vld [vmem:[%s1779_s18 + $0x188] sm:$0xff] }
  0x33   : > { %928 = vmatpush.bf16.msra.mxu3 %v1511_v23  ;;  %v1542_v4 = vld [vmem:[%s1779_s18 + $0x1c8] sm:$0xff]  ;;  %v1517_v6 = vld [vmem:[%s1779_s18 + $0x100] sm:$0xff]  ;;  %v1556_v8 = vld [vmem:[%s1779_s18 + $0x238] sm:$0xff] }
  0x34   : > { %902 = vmatpush.bf16.msra.mxu1 %v1495_v24  ;;  %v1526_v5 = vld [vmem:[%s1779_s18 + $0x148] sm:$0xff]  ;;  %v1533_v7 = vld [vmem:[%s1779_s18 + $0x180] sm:$0xff]  ;;  %v1555_v11 = vld [vmem:[%s1779_s18 + $0x230] sm:$0xff] }
  0x35   : > { %890 = vmatpush.bf16.msra.mxu0 %v1486_v25  ;;  %v1541_v9 = vld [vmem:[%s1779_s18 + $0x1c0] sm:$0xff]  ;;  %v1554_v12 = vld [vmem:[%s1779_s18 + $0x228] sm:$0xff]  ;;  %v1552_v14 = vld [vmem:[%s1779_s18 + $0x218] sm:$0xff]  ;;  %v1703_v25 = vmov 0.0  }
  0x36   : > { %916 = vmatpush.bf16.msra.mxu2 %v1502_v26  ;;  %v1525_v10 = vld [vmem:[%s1779_s18 + $0x140] sm:$0xff]  ;;  %v1551_v15 = vld [vmem:[%s1779_s18 + $0x210] sm:$0xff]  ;;  %v1550_v16 = vld [vmem:[%s1779_s18 + $0x208] sm:$0xff]  ;;  %282 = vst [vmem:[#allocation2] sm:$0x3] %v1703_v25 }
  0x37   : > { %929 = vmatpush.bf16.msra.mxu3 %v1510_v27  ;;  %v1553_v13 = vld [vmem:[%s1779_s18 + $0x220] sm:$0xff]  ;;  %v442_v18 = vld [vmem:[#allocation1] sm:$0xff] }
  0x38   : > { %903 = vmatpush.bf16.msra.mxu1 %v1494_v28  ;;  %v1549_v17 = vld [vmem:[%s1779_s18 + $0x200] sm:$0xff] }
  0x39   : > { %891 = vmatpush.bf16.msra.mxu0 %v1485_v29 }
  0x3a   : > { %917 = vmatpush.bf16.msra.mxu2 %v1501_v30 }
  0x3b   : > { %930 = vmatpush.bf16.msra.mxu3 %v1509_v33 }
  0x3c   : > { %904 = vmatpush.bf16.msra.mxu1 %v1493_v34  ;;  %892 = vmatmul.bf16.vlgmr.msra.gmra.mxu0 %v432_v42 }
  0x3d   : > { %936 = vmatpush.bf16.msrb.mxu0 %v1524_v31  ;;  %918 = vmatmul.bf16.vlgmr.msra.gmra.mxu2 %v434_v41 }
  0x3e   : > { %962 = vmatpush.bf16.msrb.mxu2 %v1540_v32  ;;  %931 = vmatmul.bf16.vlgmr.msra.gmra.mxu3 %v435_v43  ;;  %v283_v43 = vld [vmem:[#allocation2] sm:$0x3] }
  0x3f   : > { %975 = vmatpush.bf16.msrb.mxu3 %v1548_v35  ;;  %905 = vmatmul.bf16.vlgmr.msra.gmra.mxu1 %v433_v44 }
  0x40   : > { %949 = vmatpush.bf16.msrb.mxu1 %v1532_v36 }
  0x41   : > { %937 = vmatpush.bf16.msrb.mxu0 %v1523_v37 }
  0x42   : > { %963 = vmatpush.bf16.msrb.mxu2 %v1539_v38 }
  0x43   : > { %976 = vmatpush.bf16.msrb.mxu3 %v1547_v39 }
  0x44   : > { %950 = vmatpush.bf16.msrb.mxu1 %v1531_v40 }
  0x45   : > { %938 = vmatpush.bf16.msrb.mxu0 %v1522_v50 }
  0x46   : > { %964 = vmatpush.bf16.msrb.mxu2 %v1538_v51 }
  0x47   : > { %977 = vmatpush.bf16.msrb.mxu3 %v1546_v52 }
  0x48   : > { %951 = vmatpush.bf16.msrb.mxu1 %v1530_v53 }
  0x49   : > { %939 = vmatpush.bf16.msrb.mxu0 %v1521_v54 }
  0x4a   : > { %965 = vmatpush.bf16.msrb.mxu2 %v1537_v55 }
  0x4b   : > { %978 = vmatpush.bf16.msrb.mxu3 %v1545_v56 }
  0x4c   : > { %952 = vmatpush.bf16.msrb.mxu1 %v1529_v57 }
  0x4d   : > { %940 = vmatpush.bf16.msrb.mxu0 %v1520_v58 }
  0x4e   : > { %966 = vmatpush.bf16.msrb.mxu2 %v1536_v59 }
  0x4f   : > { %979 = vmatpush.bf16.msrb.mxu3 %v1544_v60 }
  0x50   : > { %953 = vmatpush.bf16.msrb.mxu1 %v1528_v61 }
  0x51   : > { %941 = vmatpush.bf16.msrb.mxu0 %v1519_v62 }
  0x52   : > { %967 = vmatpush.bf16.msrb.mxu2 %v1535_v63 }
  0x53   : > { %980 = vmatpush.bf16.msrb.mxu3 %v1543_v0 }
  0x54   : > { %954 = vmatpush.bf16.msrb.mxu1 %v1527_v1 }
  0x55   : > { %942 = vmatpush.bf16.msrb.mxu0 %v1518_v2 }
  0x56   : > { %968 = vmatpush.bf16.msrb.mxu2 %v1534_v3 }
  0x57   : > { %981 = vmatpush.bf16.msrb.mxu3 %v1542_v4 }
  0x58   : > { %955 = vmatpush.bf16.msrb.mxu1 %v1526_v5 }
  0x59   : > { %943 = vmatpush.bf16.msrb.mxu0 %v1517_v6 }
  0x5a   : > { %969 = vmatpush.bf16.msrb.mxu2 %v1533_v7 }
  0x5b   : > { %982 = vmatpush.bf16.msrb.mxu3 %v1541_v9 }
  0x5c   : > { %956 = vmatpush.bf16.msrb.mxu1 %v1525_v10  ;;  %944 = vmatmul.bf16.vlgmr.msrb.gmra.mxu0 %v1833_v47 }
  0x5d   : > { %988 = vmatpush.bf16.msra.mxu0 %v1556_v8  ;;  %970 = vmatmul.bf16.vlgmr.msrb.gmra.mxu2 %v1828_v45 }
  0x5e   : > { %983 = vmatmul.bf16.vlgmr.msrb.gmra.mxu3 %v1835_v48  ;;  %v1010_v48 = vshrl.u32 %v1009_v46, 7 }
  0x5f   : > { %957 = vmatmul.bf16.vlgmr.msrb.gmra.mxu1 %v1837_v49 }
  0x60   : > { %vm1013_vm0 = vcmp.lt.s32.totalorder %v1010_v48, 2 }
  0x61   : > { %989 = vmatpush.bf16.msra.mxu0 %v1555_v11 }
  0x65   : > { %990 = vmatpush.bf16.msra.mxu0 %v1554_v12 }
  0x69   : > { %991 = vmatpush.bf16.msra.mxu0 %v1553_v13 }
  0x6d   : > { %992 = vmatpush.bf16.msra.mxu0 %v1552_v14 }
  0x71   : > { %993 = vmatpush.bf16.msra.mxu0 %v1551_v15 }
  0x75   : > { %994 = vmatpush.bf16.msra.mxu0 %v1550_v16 }
  0x79   : > { %995 = vmatpush.bf16.msra.mxu0 %v1549_v17 }
  0x7c   : > { %996 = vmatmul.bf16.vlgmr.msra.gmra.mxu0 %v442_v18 }
  0xb9   : > { %v893_v19 = vpop.f32.mrf.mxu0 }
  0xbc   : > { %v906_v20 = vpop.f32.mrf.mxu1 }
  0xbd   : > { %v907_v30 = vadd.f32 %v906_v20, %v893_v19 }
  0xc0   : > { %v919_v21 = vpop.f32.mrf.mxu2 }
  0xc1   : > { %v932_v22 = vpop.f32.mrf.mxu3  ;;  %v895_v23 = vpop.f32.mrf.mxu0  ;;  %v920_v32 = vadd.f32 %v919_v21, %v907_v30 }
  0xc3   : > { %v933_v36 = vadd.f32 %v932_v22, %v920_v32 }
  0xc4   : > { %v908_v24 = vpop.f32.mrf.mxu1 }
  0xc8   : > { %v921_v26 = vpop.f32.mrf.mxu2 }
  0xc9   : > { %v934_v27 = vpop.f32.mrf.mxu3 }
  0xd9   : > { %v945_v28 = vpop.f32.mrf.mxu0 }
  0xda   : > { %v946_v38 = vadd.f32 %v945_v28, %v933_v36 }
  0xdc   : > { %v958_v29 = vpop.f32.mrf.mxu1 }
  0xdd   : > { %v959_v40 = vadd.f32 %v958_v29, %v946_v38 }
  0xe0   : > { %v971_v31 = vpop.f32.mrf.mxu2 }
  0xe1   : > { %v984_v33 = vpop.f32.mrf.mxu3  ;;  %v947_v34 = vpop.f32.mrf.mxu0  ;;  %v972_v41 = vadd.f32 %v971_v31, %v959_v40 }
  0xe3   : > { %v985_v42 = vadd.f32 %v984_v33, %v972_v41 }
  0xe4   : > { %v960_v35 = vpop.f32.mrf.mxu1 }
  0xe8   : > { %v973_v37 = vpop.f32.mrf.mxu2 }
  0xe9   : > { %v986_v39 = vpop.f32.mrf.mxu3 }
  0xf9   : > { %v997_v44 = vpop.f32.mrf.mxu0 }
  0xfa   : > { %v998_v45 = vadd.f32 %v997_v44, %v985_v42 }
  0xfc   : > { %v1001_v47 = vadd.f32 %v998_v45, %v283_v43 }
  0xfe   : > { %1002 = vst [vmem:[#allocation2] sm:$0x3] %v1001_v47 }
 0x101   : > { %v999_v49 = vpop.f32.mrf.mxu0 }
 0x105   : > { %v1006_v50 = vld [vmem:[#allocation2] sm:$0x3] }
 0x106   : > { %v1007_v51 = vpack.c.bf16 %v1006_v50, %v1006_v50  ;;  %v1014_v52 = vsel %vm1013_vm0, %v1006_v50, 0.0 }
 0x107   : > { %v1016_v53 = vsel %vm1015_vm1, %v1014_v52, 0.0  ;;  %v1023_v54 = vmul.f32 %v1014_v52, %v1014_v52 }
 0x108   : > { %1008 = vst [vmem:[%s268_s27] sm:$0x1] %v1007_v51  ;;  %v1017_v55 = vrot.slane %v1016_v53, 4 }
 0x109   : > { %v1024_v56 = vsel %vm1015_vm1, %v1023_v54, 0.0 }
 0x10a   : > { %v1018_v57 = vadd.f32 %v1017_v55, %v1016_v53  ;;  %v1025_v58 = vrot.slane %v1024_v56, 4 }
 0x10c   : > { %v1019_v59 = vrot.slane %v1018_v57, 2  ;;  %v1026_v60 = vadd.f32 %v1025_v58, %v1024_v56 }
 0x10e   : > { %v1020_v61 = vadd.f32 %v1019_v59, %v1018_v57  ;;  %v1027_v62 = vrot.slane %v1026_v60, 2 }
 0x110   : > { %v1021_v63 = vrot.slane %v1020_v61, 1  ;;  %v1028_v0 = vadd.f32 %v1027_v62, %v1026_v60 }
 0x112   : > { %v1029_v1 = vrot.slane %v1028_v0, 1  ;;  %v1022_v2 = vadd.f32 %v1021_v63, %v1020_v61 }
 0x114   : > { %v1030_v3 = vadd.f32 %v1029_v1, %v1028_v0 }
 0x116   : > { %v1032_v4 = vsel %vm1031_vm2, %v1022_v2, %v1030_v3 }
 0x117   : > { %1033 = vst [vmem:[%s276_s4] sm:$0x3] %v1032_v4 }
 0x118 PF: > { %s17_s17 = sadd.s32 1, %s1698_s17   ;;  %s1906_s12 = smov %s1682_s13 }
 0x119   : > { %p14_p0 = scmp.ge.s32.totalorder %s17_s17, 4   ;;  %s1907_s13 = smov %s1686_s14 }
 0x11a   : > { %s1908_s14 = smov %s1769_s23  ;;  %s1909_s15 = smov %s1694_s16 }
 0x11b   : > { %s1910_s16 = smov %s1912_s19  ;;  %16 = sbr.rel (!%p14_p0) target bundleno = 4 (0x4), region = 91 }
 0x120   :  { %1081 = vsyncpa [#allocation4], 1 }
 0x121   :  { %1083 = vsyncpa [#allocation4 + $0x1], 1 }

// kernel: resnet_backbone_forward.66
= control target key start
LH: loop header
LB: loop body
LE: loop exit
PB: predicated region body
PF: predicated region fallthrough
CT: control target
= control target key end

     0   :  { %vm24_vm0 = vcmask 1041408   ;;  %vm49_vm1 = vcmask 1040384   ;;  %s99_s0 = inlined_call_operand.vmem [shape: bf16[2,256], index: 0, kind: input, shape index: {}]   ;;  %s100_s2 = inlined_call_operand.vmem [shape: f32[1,256], index: 2, kind: input, shape index: {}]   ;;  %s101_s3 = inlined_call_operand.vmem [shape: f32[1,256], index: 3, kind: input, shape index: {}]   ;;  %s102_s1 = inlined_call_operand.vmem [shape: bf16[2,256], index: 1, kind: input, shape index: {}]   ;;  %s103_s4 = inlined_call_operand.vmem [shape: bf16[2,256], index: 4, kind: output, shape index: {}]  }
   0x1   :  { %v17_v0 = vld [vmem:[%s99_s0] sm:$0x3] }
   0x2   :  { %v19_v1 = vld [vmem:[%s100_s2] sm:$0x3]  ;;  %v18_v5 = vunpack.c.l.bf16 %v17_v0 }
   0x3   :  { %v28_v2 = vld [vmem:[%s101_s3] sm:$0x3]  ;;  %v21_v3 = vperm.slane %v19_v1, 0  ;;  %v22_v4 = vperm.slane %v19_v1, 1 }
   0x4   :  { %v30_v6 = vperm.slane %v28_v2, 0  ;;  %v31_v7 = vperm.slane %v28_v2, 1  ;;  %v36_v9 = vld [vmem:[%s102_s1] sm:$0x3] }
   0x5   :  { %v23_v8 = vrot.slane %v22_v4, 6  ;;  %v37_v14 = vunpack.c.l.bf16 %v36_v9 }
   0x6   :  { %v32_v10 = vrot.slane %v31_v7, 6 }
   0x7   :  { %v25_v11 = vsel %vm24_vm0, %v21_v3, %v23_v8 }
   0x8   :  { %v27_v12 = vmul.f32 %v25_v11, %v18_v5  ;;  %v33_v13 = vsel %vm24_vm0, %v30_v6, %v32_v10 }
   0xa   :  { %v35_v15 = vadd.f32 %v33_v13, %v27_v12 }
   0xc   :  { %v38_v16 = vadd.f32 %v37_v14, %v35_v15 }
   0xe   :  { %v39_v17 = vmax.f32 %v38_v16, 0.0 }
  0x10   :  { %41 = vst [vmem:[#allocation1] ss:$4 sm:$0xff] %v39_v17 }
  0x17   :  { %v42_v18 = vld.sshfl [vmem:[#allocation1] sm:$0xff pattern:$0x73625140]  ;;  %v43_v19 = vld.sshfl [vmem:[#allocation1 + $0x8] sm:$0xff pattern:$0x73625140] }
  0x18   :  { %v46_v20 = vpack.c.bf16 %v43_v19, %v42_v18 }
  0x1a   :  { %v48_v21 = vrot.slane %v46_v20, 3 }
  0x1c   :  { %v52_v22 = vsel %vm49_vm1, %v46_v20, %v48_v21 }
  0x1d   :  { %54 = vst [vmem:[%s103_s4] sm:$0x3] %v52_v22 }

// kernel: resnet_backbone_forward.62
= control target key start
LH: loop header
LB: loop body
LE: loop exit
PB: predicated region body
PF: predicated region fallthrough
CT: control target
= control target key end

     0   :  { %vm30_vm0 = vcmask 1041408   ;;  %vm71_vm1 = vcmask 1040384   ;;  %s141_s0 = inlined_call_operand.vmem [shape: bf16[2,256], index: 0, kind: input, shape index: {}]   ;;  %s142_s1 = inlined_call_operand.vmem [shape: bf16[2,256], index: 1, kind: input, shape index: {}]   ;;  %s143_s2 = inlined_call_operand.vmem [shape: f32[1,256], index: 2, kind: input, shape index: {}]   ;;  %s144_s3 = inlined_call_operand.vmem [shape: f32[1,256], index: 3, kind: input, shape index: {}]   ;;  %s145_s4 = inlined_call_operand.vmem [shape: f32[1,256], index: 4, kind: input, shape index: {}]   ;;  %s146_s5 = inlined_call_operand.vmem [shape: f32[1,256], index: 5, kind: input, shape index: {}]   ;;  %s147_s6 = inlined_call_operand.vmem [shape: bf16[2,256], index: 6, kind: output, shape index: {}]  }
   0x1   :  { %v23_v0 = vld [vmem:[%s141_s0] sm:$0x3] }
   0x2   :  { %v25_v1 = vld [vmem:[%s143_s2] sm:$0x3]  ;;  %v24_v6 = vunpack.c.l.bf16 %v23_v0 }
   0x3   :  { %v34_v2 = vld [vmem:[%s144_s3] sm:$0x3]  ;;  %v27_v3 = vperm.slane %v25_v1, 0  ;;  %v28_v4 = vperm.slane %v25_v1, 1 }
   0x4   :  { %v42_v5 = vld [vmem:[%s142_s1] sm:$0x3]  ;;  %v36_v7 = vperm.slane %v34_v2, 0  ;;  %v37_v8 = vperm.slane %v34_v2, 1 }
   0x5   :  { %v44_v9 = vld [vmem:[%s145_s4] sm:$0x3]  ;;  %v29_v11 = vrot.slane %v28_v4, 6  ;;  %v43_v15 = vunpack.c.l.bf16 %v42_v5 }
   0x6   :  { %v52_v10 = vld [vmem:[%s146_s5] sm:$0x3]  ;;  %v46_v12 = vperm.slane %v44_v9, 0  ;;  %v47_v13 = vperm.slane %v44_v9, 1  ;;  %v38_v14 = vrot.slane %v37_v8, 6 }
   0x7   :  { %v54_v16 = vperm.slane %v52_v10, 0  ;;  %v55_v17 = vperm.slane %v52_v10, 1  ;;  %v31_v18 = vsel %vm30_vm0, %v27_v3, %v29_v11 }
   0x8   :  { %v48_v19 = vrot.slane %v47_v13, 6  ;;  %v33_v20 = vmul.f32 %v31_v18, %v24_v6  ;;  %v39_v21 = vsel %vm30_vm0, %v36_v7, %v38_v14 }
   0x9   :  { %v56_v22 = vrot.slane %v55_v17, 6 }
   0xa   :  { %v49_v23 = vsel %vm30_vm0, %v46_v12, %v48_v19  ;;  %v41_v24 = vadd.f32 %v39_v21, %v33_v20 }
   0xb   :  { %v51_v25 = vmul.f32 %v49_v23, %v43_v15  ;;  %v57_v26 = vsel %vm30_vm0, %v54_v16, %v56_v22 }
   0xd   :  { %v59_v27 = vadd.f32 %v57_v26, %v51_v25 }
   0xf   :  { %v60_v28 = vadd.f32 %v59_v27, %v41_v24 }
  0x11   :  { %v61_v29 = vmax.f32 %v60_v28, 0.0 }
  0x13   :  { %63 = vst [vmem:[#allocation1] ss:$4 sm:$0xff] %v61_v29 }
  0x1a   :  { %v64_v30 = vld.sshfl [vmem:[#allocation1] sm:$0xff pattern:$0x73625140]  ;;  %v65_v31 = vld.sshfl [vmem:[#allocation1 + $0x8] sm:$0xff pattern:$0x73625140] }
  0x1b   :  { %v68_v32 = vpack.c.bf16 %v65_v31, %v64_v30 }
  0x1d   :  { %v70_v33 = vrot.slane %v68_v32, 3 }
  0x1f   :  { %v74_v34 = vsel %vm71_vm1, %v68_v32, %v70_v33 }
  0x20   :  { %76 = vst [vmem:[%s147_s6] sm:$0x3] %v74_v34 }

// kernel: resnet_backbone_forward.60
= control target key start
LH: loop header
LB: loop body
LE: loop exit
PB: predicated region body
PF: predicated region fallthrough
CT: control target
= control target key end

     0   :  { %9 = vsyncpa [#allocation4], 0  ;;  %s1982_s0 = inlined_call_operand.vmem [shape: bf16[2,2304], index: 0, kind: input, shape index: {}]   ;;  %s1983_s1 = inlined_call_operand.hbm [shape: bf16[2304,256], index: 1, kind: input, shape index: {}]   ;;  %s1984_s2 = inlined_call_operand.vmem [shape: bf16[2,256], index: 2, kind: output, shape index: {0}]   ;;  %s1985_s3 = inlined_call_operand.vmem [shape: f32[1,2,256], index: 3, kind: output, shape index: {1}]  }
   0x1   :  { %11 = vsyncpa [#allocation4 + $0x1], 0  ;;  %s1760_s12 = smov 0   ;;  %s1762_s13 = smov 0  }
   0x2   :  { %s1764_s14 = smov 0   ;;  %s1766_s15 = smov 0  }
   0x3   :  { %s1768_s16 = smov 0   ;;  %s1770_s17 = smov 0  }
   0x4   :  { %s1772_s18 = smov 0   ;;  %s1774_s19 = smov 0  }
   0x5 LB: > { %s1188_s20 = sadd.s32 4294967295, %s1734_s19   ;;  %s29_s21 = sadd.s32 1, %s1726_s17  ;;  %s1734_s19 = sphi %s1774_s19, %s17_s19   ;;  %s1730_s18 = sphi %s1772_s18, %s1997_s18   ;;  %s1726_s17 = sphi %s1770_s17, %s1996_s17   ;;  %s1722_s16 = sphi %s1768_s16, %s1995_s16   ;;  %s1718_s15 = sphi %s1766_s15, %s1994_s15   ;;  %s1714_s14 = sphi %s1764_s14, %s1993_s14   ;;  %s1710_s13 = sphi %s1762_s13, %s1992_s13   ;;  %s1706_s12 = sphi %s1760_s12, %s1991_s12  }
   0x6   : > { %p30_p0 = scmp.ge.s32.totalorder %s29_s21, 2  ;;  %s32_s22 = sadd.s32 1, %s1730_s18 }
   0x7   : > { %s73_s23 = sadd.s32 1, %s1714_s14  ;;  %p80_p1 = scmp.ne.s32.totalorder %s1714_s14, %s1710_s13 }
   0x8   : > { %s1999_s21 = smov (%p30_p0, %s29_s21), 0  ;;  %s2001_s22 = smov (!%p30_p0, %s32_s22), %s1730_s18 }
   0x9   : > { %s68_s24 = ssub.s32 %s1726_s17, %s1999_s21  ;;  %p81_p2 = scmp.eq.s32.totalorder %s1734_s19, 0 }
   0xa   : > { %p34_p3 = scmp.ge.s32.totalorder %s2001_s22, 2  ;;  %p86_p4 = scmp.ne.s32.totalorder %s1710_s13, %s1706_s12 }
   0xb   : > { %p82_p5 = por %p81_p2, %p80_p1  ;;  %p87_p6 = scmp.eq.s32.totalorder %s1188_s20, 0 }
   0xc   : > { %s2003_s22 = smov (%p34_p3, %s2001_s22), 0  ;;  %p1569_p8 = scmp.lt.s32.totalorder %s1734_s19, 4 }
   0xd   : > { %1987 = sst [smem:[#allocation6_spill]] %s2003_s22  ;;  %p1813_p7 = por %p87_p6, %p86_p4 }
   0xe   : > { %s69_s26 = ssub.s32 %s1730_s18, %s2003_s22  ;;  %s178_s28 = sand.u32 1, %s1714_s14  }
   0xf   : > { %s70_s27 = sor.u32 %s69_s26, %s68_s24  ;;  %s1561_s29 = smul.u32 576, %s178_s28 }
  0x10   : > { %p71_p9 = scmp.eq.s32.totalorder %s70_s27, 0  ;;  %p1821_p10 = pnand %p1569_p8, %p82_p5 }
  0x11   : > { %s1488_s5 = smul.u32 288, %s1726_s17  ;;  %s182_s6 = scalar_lea.vmem [#allocation3], %s1561_s29 }
  0x12   : > { %s1826_s4 = scalar_select %p71_p9, %s1714_s14, %s73_s23  }
  0x13   : > { %s192_s7 = sshll.u32 %s182_s6, 4  ;;  %s187_s8 = sadd.s32 %s1730_s18, %s1488_s5  ;;  %s193_s7 = int_to_ptr.vmem [resolvable:$true] %s192_s7 }
  0x14   : > { %s1193_s9 = sshll.u32 %s187_s8, 2  ;;  %p1194_p11 = scmp.ge.s32.totalorder %s1734_s19, 1 }
  0x15   : > { %s189_s12 = scalar_lea.hbm %s1983_s1, %s1193_s9  ;;  %s179_s24 = scalar_lea.sflag [#allocation4], %s178_s28 }
  0x16   : > { %s190_s20 = sshll.u32 %s189_s12, 4  ;;  %s1736_s26 = smov 128   ;;  %s191_s20 = int_to_ptr.hbm [resolvable:$true] %s190_s20 }
  0x17   : > { %s1737_s27 = smov 64   ;;  %s1738_s22 = smov 4  }
  0x18   : > { %1568 = dma.hbm_to_vmem [thread:$0]  (!%p1821_p10), %s191_s20, 9216, %s193_s7, %s179_s24, %s1736_s26, %s1737_s27, %s1738_s22  }
  0x19   : > { %p200_p12 = scmp.lt.s32.totalorder %s1734_s19, 5 }
  0x1b   : > { %p201_p13 = pnand %p1194_p11, %p200_p12 }
  0x1c   : > { %s206_s23 = sand.u32 (!%p201_p13), 1, %s1710_s13  }
  0x1d   : > { %204 = sbr.rel (%p201_p13) target bundleno = 300 (0x12c), region = 28  ;;  %s207_s5 = scalar_lea.sflag (!%p201_p13), [#allocation4], %s206_s23 }
  0x1e   : > { %s1562_s29 = smul.u32 (!%p201_p13), 576, %s206_s23 }
  0x20   : > { %s1838_s6 = scalar_lea.vmem (!%p201_p13), [#allocation3], %s1562_s29 }
  0x22   : > { %1701 = dma.done.wait (%p1813_p7), %s207_s5, 9216  }
  0x23   : > { %1703 = vsyncadd (%p1813_p7), %s207_s5, 4294958080  ;;  %s252_s28 = smul.u32 9, %s1718_s15  ;;  %p264_p0 = scmp.lt.s32.totalorder %s1722_s16, 1 }
  0x24   : > { %p1196_p2 = scmp.ne.s32.totalorder %s1718_s15, 0 }
  0x25   : > { %p255_p1 = scmp.lt.s32.totalorder %s252_s28, 17  ;;  %s2005_s16 = smov (!%p264_p0, %s1722_s16), 1 }
  0x26   : > { %s268_s7 = scalar_lea.vmem %s1984_s2, %s2005_s16  ;;  %s1195_s8 = sshll.u32 %s2005_s16, 1 }
  0x27   : > { %s2007_s28 = smov (!%p255_p1, %s252_s28), 17  ;;  %s1862_s20 = scalar_lea.vmem %s1985_s3, %s1195_s8 }
  0x28   : > { %s1857_s25 = scalar_lea.vmem %s1982_s0, %s2007_s28  ;;  %281 = sbr.rel (%p1196_p2) target bundleno = 47 (0x2f), region = 36 }
  0x2d   : > { %v1739_v0 = vmov 0.0  }
  0x2e   : > { %282 = vst [vmem:[#allocation2] sm:$0x3] %v1739_v0 }
  0x2f PF: > { %v1496_v1 = vld [vmem:[%s1838_s6 + $0x38] sm:$0xff]  ;;  %v1495_v5 = vld [vmem:[%s1838_s6 + $0x30] sm:$0xff]  ;;  %v1494_v9 = vld [vmem:[%s1838_s6 + $0x28] sm:$0xff]  ;;  %p1485_p3 = scmp.ne.s32.totalorder %s1718_s15, 1 }
  0x30   : > { %v1512_v2 = vld [vmem:[%s1838_s6 + $0xb8] sm:$0xff]  ;;  %884 = vmatpush.bf16.msra.mxu0 %v1496_v1  ;;  %v1511_v6 = vld [vmem:[%s1838_s6 + $0xb0] sm:$0xff]  ;;  %v1510_v10 = vld [vmem:[%s1838_s6 + $0xa8] sm:$0xff] }
  0x31   : > { %v1520_v3 = vld [vmem:[%s1838_s6 + $0xf8] sm:$0xff]  ;;  %910 = vmatpush.bf16.msra.mxu2 %v1512_v2  ;;  %v1519_v7 = vld [vmem:[%s1838_s6 + $0xf0] sm:$0xff]  ;;  %v1518_v11 = vld [vmem:[%s1838_s6 + $0xe8] sm:$0xff] }
  0x32   : > { %v1504_v4 = vld [vmem:[%s1838_s6 + $0x78] sm:$0xff]  ;;  %923 = vmatpush.bf16.msra.mxu3 %v1520_v3  ;;  %v1503_v8 = vld [vmem:[%s1838_s6 + $0x70] sm:$0xff]  ;;  %v1502_v12 = vld [vmem:[%s1838_s6 + $0x68] sm:$0xff] }
  0x33   : > { %897 = vmatpush.bf16.msra.mxu1 %v1504_v4  ;;  %v1493_v13 = vld [vmem:[%s1838_s6 + $0x20] sm:$0xff]  ;;  %v1492_v17 = vld [vmem:[%s1838_s6 + $0x18] sm:$0xff]  ;;  %v1491_v22 = vld [vmem:[%s1838_s6 + $0x10] sm:$0xff] }
  0x34   : > { %885 = vmatpush.bf16.msra.mxu0 %v1495_v5  ;;  %v1509_v14 = vld [vmem:[%s1838_s6 + $0xa0] sm:$0xff]  ;;  %v1508_v18 = vld [vmem:[%s1838_s6 + $0x98] sm:$0xff]  ;;  %v1507_v23 = vld [vmem:[%s1838_s6 + $0x90] sm:$0xff] }
  0x35   : > { %911 = vmatpush.bf16.msra.mxu2 %v1511_v6  ;;  %v1517_v15 = vld [vmem:[%s1838_s6 + $0xe0] sm:$0xff]  ;;  %v1516_v19 = vld [vmem:[%s1838_s6 + $0xd8] sm:$0xff]  ;;  %v1515_v24 = vld [vmem:[%s1838_s6 + $0xd0] sm:$0xff] }
  0x36   : > { %924 = vmatpush.bf16.msra.mxu3 %v1519_v7  ;;  %v1501_v16 = vld [vmem:[%s1838_s6 + $0x60] sm:$0xff]  ;;  %v1500_v20 = vld [vmem:[%s1838_s6 + $0x58] sm:$0xff]  ;;  %v1499_v25 = vld [vmem:[%s1838_s6 + $0x50] sm:$0xff] }
  0x37   : > { %898 = vmatpush.bf16.msra.mxu1 %v1503_v8  ;;  %v284_v21 = vld [vmem:[%s1857_s25] sm:$0xff]  ;;  %v1490_v26 = vld [vmem:[%s1838_s6 + $0x8] sm:$0xff]  ;;  %v1489_v30 = vld [vmem:[%s1838_s6] sm:$0xff] }
  0x38   : > { %886 = vmatpush.bf16.msra.mxu0 %v1494_v9  ;;  %431 = vst [vmem:[#allocation1] ss:$9 sm:$0xff] %v284_v21  ;;  %v1506_v27 = vld [vmem:[%s1838_s6 + $0x88] sm:$0xff]  ;;  %v1505_v31 = vld [vmem:[%s1838_s6 + $0x80] sm:$0xff]  ;;  %v1528_v32 = vld [vmem:[%s1838_s6 + $0x138] sm:$0xff] }
  0x39   : > { %912 = vmatpush.bf16.msra.mxu2 %v1510_v10  ;;  %v1514_v28 = vld [vmem:[%s1838_s6 + $0xc8] sm:$0xff]  ;;  %v1544_v33 = vld [vmem:[%s1838_s6 + $0x1b8] sm:$0xff]  ;;  %v1513_v34 = vld [vmem:[%s1838_s6 + $0xc0] sm:$0xff] }
  0x3a   : > { %925 = vmatpush.bf16.msra.mxu3 %v1518_v11  ;;  %v1498_v29 = vld [vmem:[%s1838_s6 + $0x48] sm:$0xff]  ;;  %v1497_v35 = vld [vmem:[%s1838_s6 + $0x40] sm:$0xff]  ;;  %v1552_v36 = vld [vmem:[%s1838_s6 + $0x1f8] sm:$0xff] }
  0x3b   : > { %899 = vmatpush.bf16.msra.mxu1 %v1502_v12  ;;  %v1536_v37 = vld [vmem:[%s1838_s6 + $0x178] sm:$0xff]  ;;  %v1527_v38 = vld [vmem:[%s1838_s6 + $0x130] sm:$0xff]  ;;  %v1526_v51 = vld [vmem:[%s1838_s6 + $0x128] sm:$0xff] }
  0x3c   : > { %887 = vmatpush.bf16.msra.mxu0 %v1493_v13  ;;  %v1543_v39 = vld [vmem:[%s1838_s6 + $0x1b0] sm:$0xff]  ;;  %v285_v47 = vld [vmem:[%s1857_s25 + $0x8] sm:$0x1]  ;;  %v1542_v52 = vld [vmem:[%s1838_s6 + $0x1a8] sm:$0xff] }
  0x3d   : > { %913 = vmatpush.bf16.msra.mxu2 %v1509_v14  ;;  %v1551_v40 = vld [vmem:[%s1838_s6 + $0x1f0] sm:$0xff]  ;;  %v1550_v53 = vld [vmem:[%s1838_s6 + $0x1e8] sm:$0xff]  ;;  %v1525_v55 = vld [vmem:[%s1838_s6 + $0x120] sm:$0xff] }
  0x3e   : > { %926 = vmatpush.bf16.msra.mxu3 %v1517_v15  ;;  %v1535_v41 = vld [vmem:[%s1838_s6 + $0x170] sm:$0xff]  ;;  %v1534_v54 = vld [vmem:[%s1838_s6 + $0x168] sm:$0xff]  ;;  %v1541_v56 = vld [vmem:[%s1838_s6 + $0x1a0] sm:$0xff] }
  0x3f   : > { %900 = vmatpush.bf16.msra.mxu1 %v1501_v16  ;;  %v434_v42 = vld [vmem:[#allocation1 + $0x12] sm:$0xff]  ;;  %v432_v43 = vld [vmem:[#allocation1] sm:$0xff]  ;;  %v433_v45 = vld [vmem:[#allocation1 + $0x9] sm:$0xff] }
  0x40   : > { %888 = vmatpush.bf16.msra.mxu0 %v1492_v17  ;;  %v435_v44 = vld [vmem:[#allocation1 + $0x1b] sm:$0xff]  ;;  %v1909_v48 = vld [vmem:[#allocation1 + $0x24] sm:$0xff]  ;;  %v1913_v50 = vld [vmem:[#allocation1 + $0x2d] sm:$0xff] }
  0x41   : > { %914 = vmatpush.bf16.msra.mxu2 %v1508_v18  ;;  %v1906_v46 = vld [vmem:[#allocation1 + $0x36] sm:$0xff]  ;;  %v1911_v49 = vld [vmem:[#allocation1 + $0x3f] sm:$0xff]  ;;  %v1549_v57 = vld [vmem:[%s1838_s6 + $0x1e0] sm:$0xff] }
  0x42   : > { %927 = vmatpush.bf16.msra.mxu3 %v1516_v19  ;;  %441 = vst [vmem:[#allocation1] ss:$9 sm:$0xff] %v285_v47  ;;  %v1533_v58 = vld [vmem:[%s1838_s6 + $0x160] sm:$0xff]  ;;  %v1524_v59 = vld [vmem:[%s1838_s6 + $0x118] sm:$0xff]  ;;  %v1523_v63 = vld [vmem:[%s1838_s6 + $0x110] sm:$0xff] }
  0x43   : > { %901 = vmatpush.bf16.msra.mxu1 %v1500_v20  ;;  %v1540_v60 = vld [vmem:[%s1838_s6 + $0x198] sm:$0xff]  ;;  %v1539_v0 = vld [vmem:[%s1838_s6 + $0x190] sm:$0xff]  ;;  %v1522_v3 = vld [vmem:[%s1838_s6 + $0x108] sm:$0xff] }
  0x44   : > { %889 = vmatpush.bf16.msra.mxu0 %v1491_v22  ;;  %v1548_v61 = vld [vmem:[%s1838_s6 + $0x1d8] sm:$0xff]  ;;  %v1547_v1 = vld [vmem:[%s1838_s6 + $0x1d0] sm:$0xff]  ;;  %v1538_v4 = vld [vmem:[%s1838_s6 + $0x188] sm:$0xff] }
  0x45   : > { %915 = vmatpush.bf16.msra.mxu2 %v1507_v23  ;;  %v1532_v62 = vld [vmem:[%s1838_s6 + $0x158] sm:$0xff]  ;;  %v1531_v2 = vld [vmem:[%s1838_s6 + $0x150] sm:$0xff]  ;;  %v1546_v5 = vld [vmem:[%s1838_s6 + $0x1c8] sm:$0xff] }
  0x46   : > { %928 = vmatpush.bf16.msra.mxu3 %v1515_v24  ;;  %v1530_v6 = vld [vmem:[%s1838_s6 + $0x148] sm:$0xff]  ;;  %v1521_v7 = vld [vmem:[%s1838_s6 + $0x100] sm:$0xff]  ;;  %v1560_v9 = vld [vmem:[%s1838_s6 + $0x238] sm:$0xff] }
  0x47   : > { %902 = vmatpush.bf16.msra.mxu1 %v1499_v25  ;;  %v1537_v8 = vld [vmem:[%s1838_s6 + $0x180] sm:$0xff]  ;;  %v1559_v12 = vld [vmem:[%s1838_s6 + $0x230] sm:$0xff]  ;;  %v1558_v13 = vld [vmem:[%s1838_s6 + $0x228] sm:$0xff] }
  0x48   : > { %890 = vmatpush.bf16.msra.mxu0 %v1490_v26  ;;  %v1545_v10 = vld [vmem:[%s1838_s6 + $0x1c0] sm:$0xff]  ;;  %v1556_v15 = vld [vmem:[%s1838_s6 + $0x218] sm:$0xff]  ;;  %v1555_v16 = vld [vmem:[%s1838_s6 + $0x210] sm:$0xff] }
  0x49   : > { %916 = vmatpush.bf16.msra.mxu2 %v1506_v27  ;;  %v1529_v11 = vld [vmem:[%s1838_s6 + $0x140] sm:$0xff]  ;;  %v1554_v17 = vld [vmem:[%s1838_s6 + $0x208] sm:$0xff]  ;;  %v442_v19 = vld [vmem:[#allocation1] sm:$0xff] }
  0x4a   : > { %929 = vmatpush.bf16.msra.mxu3 %v1514_v28  ;;  %v1557_v14 = vld [vmem:[%s1838_s6 + $0x220] sm:$0xff] }
  0x4b   : > { %903 = vmatpush.bf16.msra.mxu1 %v1498_v29  ;;  %v1553_v18 = vld [vmem:[%s1838_s6 + $0x200] sm:$0xff] }
  0x4c   : > { %891 = vmatpush.bf16.msra.mxu0 %v1489_v30 }
  0x4d   : > { %917 = vmatpush.bf16.msra.mxu2 %v1505_v31 }
  0x4e   : > { %930 = vmatpush.bf16.msra.mxu3 %v1513_v34 }
  0x4f   : > { %904 = vmatpush.bf16.msra.mxu1 %v1497_v35  ;;  %892 = vmatmul.bf16.vlgmr.msra.gmra.mxu0 %v432_v43  ;;  %v283_v43 = vld [vmem:[#allocation2] sm:$0x3] }
  0x50   : > { %936 = vmatpush.bf16.msrb.mxu0 %v1528_v32  ;;  %918 = vmatmul.bf16.vlgmr.msra.gmra.mxu2 %v434_v42 }
  0x51   : > { %962 = vmatpush.bf16.msrb.mxu2 %v1544_v33  ;;  %931 = vmatmul.bf16.vlgmr.msra.gmra.mxu3 %v435_v44 }
  0x52   : > { %975 = vmatpush.bf16.msrb.mxu3 %v1552_v36  ;;  %905 = vmatmul.bf16.vlgmr.msra.gmra.mxu1 %v433_v45 }
  0x53   : > { %949 = vmatpush.bf16.msrb.mxu1 %v1536_v37 }
  0x54   : > { %937 = vmatpush.bf16.msrb.mxu0 %v1527_v38 }
  0x55   : > { %963 = vmatpush.bf16.msrb.mxu2 %v1543_v39 }
  0x56   : > { %976 = vmatpush.bf16.msrb.mxu3 %v1551_v40 }
  0x57   : > { %950 = vmatpush.bf16.msrb.mxu1 %v1535_v41 }
  0x58   : > { %938 = vmatpush.bf16.msrb.mxu0 %v1526_v51 }
  0x59   : > { %964 = vmatpush.bf16.msrb.mxu2 %v1542_v52 }
  0x5a   : > { %977 = vmatpush.bf16.msrb.mxu3 %v1550_v53 }
  0x5b   : > { %951 = vmatpush.bf16.msrb.mxu1 %v1534_v54 }
  0x5c   : > { %939 = vmatpush.bf16.msrb.mxu0 %v1525_v55 }
  0x5d   : > { %965 = vmatpush.bf16.msrb.mxu2 %v1541_v56 }
  0x5e   : > { %978 = vmatpush.bf16.msrb.mxu3 %v1549_v57 }
  0x5f   : > { %952 = vmatpush.bf16.msrb.mxu1 %v1533_v58 }
  0x60   : > { %940 = vmatpush.bf16.msrb.mxu0 %v1524_v59 }
  0x61   : > { %966 = vmatpush.bf16.msrb.mxu2 %v1540_v60 }
  0x62   : > { %979 = vmatpush.bf16.msrb.mxu3 %v1548_v61 }
  0x63   : > { %953 = vmatpush.bf16.msrb.mxu1 %v1532_v62 }
  0x64   : > { %941 = vmatpush.bf16.msrb.mxu0 %v1523_v63 }
  0x65   : > { %967 = vmatpush.bf16.msrb.mxu2 %v1539_v0 }
  0x66   : > { %980 = vmatpush.bf16.msrb.mxu3 %v1547_v1 }
  0x67   : > { %954 = vmatpush.bf16.msrb.mxu1 %v1531_v2 }
  0x68   : > { %942 = vmatpush.bf16.msrb.mxu0 %v1522_v3 }
  0x69   : > { %968 = vmatpush.bf16.msrb.mxu2 %v1538_v4 }
  0x6a   : > { %981 = vmatpush.bf16.msrb.mxu3 %v1546_v5 }
  0x6b   : > { %955 = vmatpush.bf16.msrb.mxu1 %v1530_v6 }
  0x6c   : > { %943 = vmatpush.bf16.msrb.mxu0 %v1521_v7 }
  0x6d   : > { %969 = vmatpush.bf16.msrb.mxu2 %v1537_v8 }
  0x6e   : > { %982 = vmatpush.bf16.msrb.mxu3 %v1545_v10 }
  0x6f   : > { %956 = vmatpush.bf16.msrb.mxu1 %v1529_v11  ;;  %944 = vmatmul.bf16.vlgmr.msrb.gmra.mxu0 %v1909_v48 }
  0x70   : > { %988 = vmatpush.bf16.msra.mxu0 %v1560_v9  ;;  %970 = vmatmul.bf16.vlgmr.msrb.gmra.mxu2 %v1906_v46 }
  0x71   : > { %983 = vmatmul.bf16.vlgmr.msrb.gmra.mxu3 %v1911_v49 }
  0x72   : > { %957 = vmatmul.bf16.vlgmr.msrb.gmra.mxu1 %v1913_v50 }
  0x74   : > { %989 = vmatpush.bf16.msra.mxu0 %v1559_v12 }
  0x78   : > { %990 = vmatpush.bf16.msra.mxu0 %v1558_v13 }
  0x7c   : > { %991 = vmatpush.bf16.msra.mxu0 %v1557_v14 }
  0x80   : > { %992 = vmatpush.bf16.msra.mxu0 %v1556_v15 }
  0x84   : > { %993 = vmatpush.bf16.msra.mxu0 %v1555_v16 }
  0x88   : > { %994 = vmatpush.bf16.msra.mxu0 %v1554_v17 }
  0x8c   : > { %995 = vmatpush.bf16.msra.mxu0 %v1553_v18 }
  0x8f   : > { %996 = vmatmul.bf16.vlgmr.msra.gmra.mxu0 %v442_v19 }
  0xcc   : > { %v893_v20 = vpop.f32.mrf.mxu0 }
  0xcf   : > { %v906_v21 = vpop.f32.mrf.mxu1 }
  0xd0   : > { %v907_v30 = vadd.f32 %v906_v21, %v893_v20 }
  0xd3   : > { %v919_v22 = vpop.f32.mrf.mxu2 }
  0xd4   : > { %v932_v23 = vpop.f32.mrf.mxu3  ;;  %v895_v24 = vpop.f32.mrf.mxu0  ;;  %v920_v32 = vadd.f32 %v919_v22, %v907_v30 }
  0xd6   : > { %v933_v36 = vadd.f32 %v932_v23, %v920_v32 }
  0xd7   : > { %v908_v25 = vpop.f32.mrf.mxu1 }
  0xdb   : > { %v921_v26 = vpop.f32.mrf.mxu2 }
  0xdc   : > { %v934_v27 = vpop.f32.mrf.mxu3 }
  0xec   : > { %v945_v28 = vpop.f32.mrf.mxu0 }
  0xed   : > { %v946_v38 = vadd.f32 %v945_v28, %v933_v36 }
  0xef   : > { %v958_v29 = vpop.f32.mrf.mxu1 }
  0xf0   : > { %v959_v40 = vadd.f32 %v958_v29, %v946_v38 }
  0xf3   : > { %v971_v31 = vpop.f32.mrf.mxu2 }
  0xf4   : > { %v984_v33 = vpop.f32.mrf.mxu3  ;;  %v947_v34 = vpop.f32.mrf.mxu0  ;;  %v972_v41 = vadd.f32 %v971_v31, %v959_v40 }
  0xf6   : > { %v985_v42 = vadd.f32 %v984_v33, %v972_v41 }
  0xf7   : > { %v960_v35 = vpop.f32.mrf.mxu1 }
  0xfb   : > { %v973_v37 = vpop.f32.mrf.mxu2 }
  0xfc   : > { %v986_v39 = vpop.f32.mrf.mxu3 }
 0x10c   : > { %v997_v44 = vpop.f32.mrf.mxu0 }
 0x10d   : > { %v998_v45 = vadd.f32 %v997_v44, %v985_v42 }
 0x10f   : > { %v1001_v46 = vadd.f32 %v998_v45, %v283_v43 }
 0x110   : > { %1006 = sbr.rel (%p1485_p3) target bundleno = 300 (0x12c), region = 40 }
 0x111   : > { %1002 = vst [vmem:[#allocation2] sm:$0x3] %v1001_v46 }
 0x114   : > { %v999_v47 = vpop.f32.mrf.mxu0 }
 0x115   : > { %v1010_v49 = vlaneseq  ;;  %vm1016_vm0 = vcmask 1041408   ;;  %vm1032_vm2 = vcmask 1040384  }
 0x117   : > { %v1011_v51 = vshrl.u32 %v1010_v49, 7 }
 0x118   : > { %v1007_v48 = vld [vmem:[#allocation2] sm:$0x3] }
 0x119   : > { %v1008_v50 = vpack.c.bf16 %v1007_v48, %v1007_v48  ;;  %vm1014_vm1 = vcmp.lt.s32.totalorder %v1011_v51, 2 }
 0x11a   : > { %v1015_v52 = vsel %vm1014_vm1, %v1007_v48, 0.0 }
 0x11b   : > { %1009 = vst [vmem:[%s268_s7] sm:$0x1] %v1008_v50  ;;  %v1017_v53 = vsel %vm1016_vm0, %v1015_v52, 0.0  ;;  %v1024_v54 = vmul.f32 %v1015_v52, %v1015_v52 }
 0x11c   : > { %v1018_v55 = vrot.slane %v1017_v53, 4 }
 0x11d   : > { %v1025_v56 = vsel %vm1016_vm0, %v1024_v54, 0.0 }
 0x11e   : > { %v1019_v57 = vadd.f32 %v1018_v55, %v1017_v53  ;;  %v1026_v58 = vrot.slane %v1025_v56, 4 }
 0x120   : > { %v1020_v59 = vrot.slane %v1019_v57, 2  ;;  %v1027_v60 = vadd.f32 %v1026_v58, %v1025_v56 }
 0x122   : > { %v1021_v61 = vadd.f32 %v1020_v59, %v1019_v57  ;;  %v1028_v62 = vrot.slane %v1027_v60, 2 }
 0x124   : > { %v1022_v63 = vrot.slane %v1021_v61, 1  ;;  %v1029_v0 = vadd.f32 %v1028_v62, %v1027_v60 }
 0x126   : > { %v1023_v1 = vadd.f32 %v1022_v63, %v1021_v61  ;;  %v1030_v2 = vrot.slane %v1029_v0, 1 }
 0x128   : > { %v1031_v3 = vadd.f32 %v1030_v2, %v1029_v0 }
 0x12a   : > { %v1033_v4 = vsel %vm1032_vm2, %v1023_v1, %v1031_v3 }
 0x12b   : > { %1034 = vst [vmem:[%s1862_s20] sm:$0x3] %v1033_v4 }
 0x12c PF: > { %s17_s19 = sadd.s32 1, %s1734_s19   ;;  %s1990_s27 = sld [smem:[#allocation6_spill]] }
 0x12d   : > { %p14_p4 = scmp.ge.s32.totalorder %s17_s19, 6   ;;  %s1991_s12 = smov %s1710_s13 }
 0x12e   : > { %s1992_s13 = smov %s1714_s14  ;;  %s1993_s14 = smov %s1826_s4 }
 0x12f   : > { %s1994_s15 = smov %s1726_s17  ;;  %s1995_s16 = smov %s1730_s18 }
 0x130   : > { %s1996_s17 = smov %s1999_s21  ;;  %16 = sbr.rel (!%p14_p4) target bundleno = 5 (0x5), region = 91 }
 0x132   : > { %s1997_s18 = smov %s1990_s27 }
 0x135   :  { %1082 = vsyncpa [#allocation4], 1 }
 0x136   :  { %1084 = vsyncpa [#allocation4 + $0x1], 1 }

// kernel: resnet_backbone_forward.68
= control target key start
LH: loop header
LB: loop body
LE: loop exit
PB: predicated region body
PF: predicated region fallthrough
CT: control target
= control target key end

     0   :  { %vm25_vm0 = vcmask 1041408   ;;  %vm27_vm1 = vcmask 1045508   ;;  %vm29_vm2 = vcmask 1043456   ;;  %vm65_vm3 = vcmask 1040384   ;;  %s117_s0 = inlined_call_operand.vmem [shape: bf16[2,512], index: 0, kind: input, shape index: {}]   ;;  %s118_s1 = inlined_call_operand.vmem [shape: f32[1,512], index: 1, kind: input, shape index: {}]   ;;  %s119_s2 = inlined_call_operand.vmem [shape: f32[1,512], index: 2, kind: input, shape index: {}]   ;;  %s120_s3 = inlined_call_operand.vmem [shape: bf16[2,512], index: 3, kind: output, shape index: {}]  }
   0x1   :  { %v16_v0 = vld [vmem:[%s118_s1] sm:$0xf]  ;;  %vm69_vm4 = vcmask 1042434  }
   0x2   :  { %v33_v1 = vld [vmem:[%s119_s2] sm:$0xf]  ;;  %v18_v3 = vperm.slane %v16_v0, 0  ;;  %v19_v4 = vperm.slane %v16_v0, 1  ;;  %v20_v5 = vperm.slane %v16_v0, 2  ;;  %v21_v6 = vperm.slane %v16_v0, 3 }
   0x3   :  { %v14_v2 = vld [vmem:[%s117_s0] sm:$0xf]  ;;  %v35_v7 = vperm.slane %v33_v1, 0  ;;  %v36_v8 = vperm.slane %v33_v1, 1  ;;  %v37_v9 = vperm.slane %v33_v1, 2  ;;  %v38_v12 = vperm.slane %v33_v1, 3 }
   0x4   :  { %v22_v10 = vrot.slane %v19_v4, 6  ;;  %v23_v11 = vrot.slane %v20_v5, 4  ;;  %v15_v13 = vunpack.c.l.bf16 %v14_v2  ;;  %v24_v14 = vrot.slane %v21_v6, 2 }
   0x5   :  { %v39_v15 = vrot.slane %v36_v8, 6  ;;  %v40_v16 = vrot.slane %v37_v9, 4  ;;  %v41_v18 = vrot.slane %v38_v12, 2 }
   0x6   :  { %v26_v17 = vsel %vm25_vm0, %v18_v3, %v22_v10  ;;  %v28_v19 = vsel %vm27_vm1, %v23_v11, %v24_v14 }
   0x7   :  { %v42_v20 = vsel %vm25_vm0, %v35_v7, %v39_v15  ;;  %v30_v21 = vsel %vm29_vm2, %v26_v17, %v28_v19  ;;  %v43_v22 = vsel %vm27_vm1, %v40_v16, %v41_v18 }
   0x8   :  { %v32_v23 = vmul.f32 %v30_v21, %v15_v13  ;;  %v44_v24 = vsel %vm29_vm2, %v42_v20, %v43_v22 }
   0xa   :  { %v46_v25 = vadd.f32 %v44_v24, %v32_v23 }
   0xc   :  { %v47_v26 = vmax.f32 %v46_v25, 0.0 }
   0xe   :  { %49 = vst [vmem:[#allocation1] ss:$4 sm:$0xff] %v47_v26 }
  0x15   :  { %v50_v27 = vld.sshfl [vmem:[#allocation1] sm:$0xff pattern:$0x73625140]  ;;  %v51_v28 = vld.sshfl [vmem:[#allocation1 + $0x8] sm:$0xff pattern:$0x73625140] }
  0x16   :  { %v52_v29 = vld.sshfl [vmem:[#allocation1 + $0x10] sm:$0xff pattern:$0x73625140]  ;;  %v53_v30 = vld.sshfl [vmem:[#allocation1 + $0x18] sm:$0xff pattern:$0x73625140]  ;;  %v58_v31 = vpack.c.bf16 %v51_v28, %v50_v27 }
  0x17   :  { %v59_v32 = vpack.c.bf16 %v53_v30, %v52_v29 }
  0x18   :  { %v62_v33 = vrot.slane %v58_v31, 3 }
  0x19   :  { %v63_v34 = vrot.slane %v59_v32, 6  ;;  %v64_v35 = vrot.slane %v59_v32, 1 }
  0x1a   :  { %v68_v36 = vsel %vm65_vm3, %v58_v31, %v62_v33 }
  0x1b   :  { %v72_v37 = vsel %vm69_vm4, %v63_v34, %v64_v35 }
  0x1c   :  { %v73_v38 = vsel %vm25_vm0, %v68_v36, %v72_v37 }
  0x1d   :  { %75 = vst [vmem:[%s120_s3] sm:$0xf] %v73_v38 }

// kernel: resnet_backbone_forward.70
= control target key start
LH: loop header
LB: loop body
LE: loop exit
PB: predicated region body
PF: predicated region fallthrough
CT: control target
= control target key end

     0   :  { %9 = vsyncpa [#allocation4], 0  ;;  %s1293_s0 = inlined_call_operand.vmem [shape: bf16[2,256], index: 0, kind: input, shape index: {}]   ;;  %s1294_s1 = inlined_call_operand.hbm [shape: bf16[256,512], index: 1, kind: input, shape index: {}]   ;;  %s1295_s2 = inlined_call_operand.vmem [shape: bf16[2,512], index: 2, kind: output, shape index: {0}]   ;;  %s1296_s3 = inlined_call_operand.vmem [shape: f32[1,2,512], index: 3, kind: output, shape index: {1}]  }
   0x1   :  { %11 = vsyncpa [#allocation4 + $0x1], 0  ;;  %s1121_s12 = smov 0   ;;  %s1123_s13 = smov 0  }
   0x2   :  { %s1125_s14 = smov 0   ;;  %s1127_s15 = smov 0  }
   0x3   :  { %s1129_s16 = smov 0   ;;  %s1131_s17 = smov 0  }
   0x4 LB: > { %s780_s18 = sadd.s32 4294967295, %s1095_s17   ;;  %s32_s19 = sadd.s32 1, %s1091_s16  ;;  %s1095_s17 = sphi %s1131_s17, %s17_s17   ;;  %s1091_s16 = sphi %s1129_s16, %s1303_s16   ;;  %s1087_s15 = sphi %s1127_s15, %s1302_s15   ;;  %s1083_s14 = sphi %s1125_s14, %s1301_s14   ;;  %s1079_s13 = sphi %s1123_s13, %s1300_s13   ;;  %s1075_s12 = sphi %s1121_s12, %s1299_s12  }
   0x5   : > { %p34_p0 = scmp.ge.s32.totalorder %s32_s19, 2  ;;  %s73_s20 = sadd.s32 1, %s1083_s14 }
   0x6   : > { %p80_p1 = scmp.ne.s32.totalorder %s1083_s14, %s1079_s13  ;;  %p81_p2 = scmp.eq.s32.totalorder %s1095_s17, 0 }
   0x7   : > { %s1305_s19 = smov (%p34_p0, %s32_s19), 0  ;;  %p86_p4 = scmp.ne.s32.totalorder %s1079_s13, %s1075_s12 }
   0x8   : > { %p1157_p3 = por %p81_p2, %p80_p1  ;;  %s69_s22 = ssub.s32 %s1091_s16, %s1305_s19 }
   0x9   : > { %p87_p5 = scmp.eq.s32.totalorder %s780_s18, 0  ;;  %p71_p6 = scmp.eq.s32.totalorder %s69_s22, 0 }
   0xa   : > { %p962_p8 = scmp.lt.s32.totalorder %s1095_s17, 2  ;;  %s178_s25 = sand.u32 1, %s1083_s14  }
   0xb   : > { %p1164_p7 = por %p87_p5, %p86_p4  ;;  %s923_s26 = sshll.u32 %s1091_s16, 3 }
   0xc   : > { %s1170_s24 = scalar_select %p71_p6, %s1083_s14, %s73_s20  }
   0xd   : > { %s785_s27 = sshll.u32 %s178_s25, 8  ;;  %s190_s30 = scalar_lea.hbm %s1294_s1, %s923_s26 }
   0xe   : > { %s191_s4 = sshll.u32 %s190_s30, 4  ;;  %s182_s5 = scalar_lea.vmem [#allocation3], %s785_s27  ;;  %s192_s4 = int_to_ptr.hbm [resolvable:$true] %s191_s4 }
   0xf   : > { %s193_s6 = sshll.u32 %s182_s5, 4  ;;  %p959_p9 = pnand %p962_p8, %p1157_p3  ;;  %s194_s6 = int_to_ptr.vmem [resolvable:$true] %s193_s6 }
  0x10   : > { %p788_p10 = scmp.ge.s32.totalorder %s1095_s17, 1  ;;  %s179_s7 = scalar_lea.sflag [#allocation4], %s178_s25 }
  0x11   : > { %s1097_s8 = smov 256   ;;  %s1098_s9 = smov 128  }
  0x12   : > { %s1099_s10 = smov 8   ;;  %p201_p11 = scmp.lt.s32.totalorder %s1095_s17, 3 }
  0x13   : > { %961 = dma.hbm_to_vmem [thread:$0]  (!%p959_p9), %s192_s4, 4096, %s194_s6, %s179_s7, %s1097_s8, %s1098_s9, %s1099_s10  }
  0x14   : > { %p202_p12 = pnand %p788_p10, %p201_p11 }
  0x15   : > { %s207_s11 = sand.u32 (!%p202_p12), 1, %s1079_s13  }
  0x16   : > { %205 = sbr.rel (%p202_p12) target bundleno = 249 (0xf9), region = 28  ;;  %s789_s12 = sshll.u32 (!%p202_p12), %s207_s11, 8 }
  0x17   : > { %s208_s18 = scalar_lea.sflag (!%p202_p12), [#allocation4], %s207_s11  ;;  %s1182_s20 = scalar_lea.vmem (!%p202_p12), [#allocation3], %s789_s12 }
  0x1b   : > { %1070 = dma.done.wait (%p1164_p7), %s208_s18, 4096  }
  0x1c   : > { %1072 = vsyncadd (%p1164_p7), %s208_s18, 4294963200  ;;  %v851_v0 = vld [vmem:[%s1182_s20 + $0x70] sm:$0xf]  ;;  %v939_v1 = vld [vmem:[%s1182_s20 + $0x74] sm:$0xf0]  ;;  %vm546_vm0 = vcmask 1041408  }
  0x1d   : > { %v915_v2 = vld [vmem:[%s1182_s20 + $0xf0] sm:$0xf]  ;;  %v852_v3 = vor.u32 %v939_v1, %v851_v0  ;;  %v955_v4 = vld [vmem:[%s1182_s20 + $0xf4] sm:$0xf0]  ;;  %v938_v5 = vld [vmem:[%s1182_s20 + $0x74] sm:$0xf] }
  0x1e   : > { %v853_v6 = vld [vmem:[%s1182_s20 + $0x78] sm:$0xf0]  ;;  %v916_v7 = vor.u32 %v955_v4, %v915_v2  ;;  %v954_v9 = vld [vmem:[%s1182_s20 + $0xf4] sm:$0xf]  ;;  %v843_v11 = vld [vmem:[%s1182_s20 + $0x60] sm:$0xf] }
  0x1f   : > { %v856_v8 = vor.u32 %v938_v5, %v853_v6  ;;  %v917_v10 = vld [vmem:[%s1182_s20 + $0xf8] sm:$0xf0]  ;;  %491 = vmatpush.bf16.msra.mxu0 %v852_v3  ;;  %v937_v13 = vld [vmem:[%s1182_s20 + $0x64] sm:$0xf0]  ;;  %v907_v14 = vld [vmem:[%s1182_s20 + $0xe0] sm:$0xf] }
  0x20   : > { %v920_v12 = vor.u32 %v954_v9, %v917_v10  ;;  %v953_v15 = vld [vmem:[%s1182_s20 + $0xe4] sm:$0xf0]  ;;  %504 = vmatpush.bf16.msra.mxu1 %v916_v7  ;;  %v844_v16 = vor.u32 %v937_v13, %v843_v11  ;;  %v936_v18 = vld [vmem:[%s1182_s20 + $0x64] sm:$0xf]  ;;  %v845_v19 = vld [vmem:[%s1182_s20 + $0x68] sm:$0xf0] }
  0x21   : > { %517 = vmatpush.bf16.msra.mxu2 %v856_v8  ;;  %v908_v17 = vor.u32 %v953_v15, %v907_v14  ;;  %v952_v20 = vld [vmem:[%s1182_s20 + $0xe4] sm:$0xf]  ;;  %v848_v21 = vor.u32 %v936_v18, %v845_v19  ;;  %v909_v22 = vld [vmem:[%s1182_s20 + $0xe8] sm:$0xf0]  ;;  %v835_v23 = vld [vmem:[%s1182_s20 + $0x50] sm:$0xf] }
  0x22   : > { %530 = vmatpush.bf16.msra.mxu3 %v920_v12  ;;  %v935_v24 = vld [vmem:[%s1182_s20 + $0x54] sm:$0xf0]  ;;  %v912_v25 = vor.u32 %v952_v20, %v909_v22  ;;  %v899_v26 = vld [vmem:[%s1182_s20 + $0xd0] sm:$0xf]  ;;  %v934_v28 = vld [vmem:[%s1182_s20 + $0x54] sm:$0xf] }
  0x23   : > { %v951_v27 = vld [vmem:[%s1182_s20 + $0xd4] sm:$0xf0]  ;;  %492 = vmatpush.bf16.msra.mxu0 %v844_v16  ;;  %v836_v29 = vor.u32 %v935_v24, %v835_v23  ;;  %v837_v30 = vld [vmem:[%s1182_s20 + $0x58] sm:$0xf0]  ;;  %v950_v31 = vld [vmem:[%s1182_s20 + $0xd4] sm:$0xf] }
  0x24   : > { %v901_v32 = vld [vmem:[%s1182_s20 + $0xd8] sm:$0xf0]  ;;  %505 = vmatpush.bf16.msra.mxu1 %v908_v17  ;;  %v900_v33 = vor.u32 %v951_v27, %v899_v26  ;;  %v840_v34 = vor.u32 %v934_v28, %v837_v30  ;;  %v827_v35 = vld [vmem:[%s1182_s20 + $0x40] sm:$0xf]  ;;  %v933_v36 = vld [vmem:[%s1182_s20 + $0x44] sm:$0xf0] }
  0x25   : > { %518 = vmatpush.bf16.msra.mxu2 %v848_v21  ;;  %v891_v37 = vld [vmem:[%s1182_s20 + $0xc0] sm:$0xf]  ;;  %v904_v38 = vor.u32 %v950_v31, %v901_v32  ;;  %v949_v39 = vld [vmem:[%s1182_s20 + $0xc4] sm:$0xf0]  ;;  %v932_v40 = vld [vmem:[%s1182_s20 + $0x44] sm:$0xf]  ;;  %v828_v44 = vor.u32 %v933_v36, %v827_v35 }
  0x26   : > { %531 = vmatpush.bf16.msra.mxu3 %v912_v25  ;;  %v829_v41 = vld [vmem:[%s1182_s20 + $0x48] sm:$0xf0]  ;;  %v948_v42 = vld [vmem:[%s1182_s20 + $0xc4] sm:$0xf]  ;;  %v892_v45 = vor.u32 %v949_v39, %v891_v37  ;;  %v819_v47 = vld [vmem:[%s1182_s20 + $0x30] sm:$0xf] }
  0x27   : > { %v893_v43 = vld [vmem:[%s1182_s20 + $0xc8] sm:$0xf0]  ;;  %493 = vmatpush.bf16.msra.mxu0 %v836_v29  ;;  %v832_v46 = vor.u32 %v932_v40, %v829_v41  ;;  %v931_v48 = vld [vmem:[%s1182_s20 + $0x34] sm:$0xf0]  ;;  %v883_v49 = vld [vmem:[%s1182_s20 + $0xb0] sm:$0xf] }
  0x28   : > { %506 = vmatpush.bf16.msra.mxu1 %v900_v33  ;;  %v896_v50 = vor.u32 %v948_v42, %v893_v43  ;;  %v947_v51 = vld [vmem:[%s1182_s20 + $0xb4] sm:$0xf0]  ;;  %v930_v52 = vld [vmem:[%s1182_s20 + $0x34] sm:$0xf]  ;;  %v821_v53 = vld [vmem:[%s1182_s20 + $0x38] sm:$0xf0]  ;;  %v820_v56 = vor.u32 %v931_v48, %v819_v47 }
  0x29   : > { %519 = vmatpush.bf16.msra.mxu2 %v840_v34  ;;  %v946_v54 = vld [vmem:[%s1182_s20 + $0xb4] sm:$0xf]  ;;  %v885_v55 = vld [vmem:[%s1182_s20 + $0xb8] sm:$0xf0]  ;;  %v884_v57 = vor.u32 %v947_v51, %v883_v49  ;;  %v824_v58 = vor.u32 %v930_v52, %v821_v53  ;;  %v811_v59 = vld [vmem:[%s1182_s20 + $0x20] sm:$0xf]  ;;  %v570_v51 = vlaneseq }
  0x2a   : > { %532 = vmatpush.bf16.msra.mxu3 %v904_v38  ;;  %v929_v60 = vld [vmem:[%s1182_s20 + $0x24] sm:$0xf0]  ;;  %v875_v61 = vld [vmem:[%s1182_s20 + $0xa0] sm:$0xf]  ;;  %v888_v62 = vor.u32 %v946_v54, %v885_v55  ;;  %v928_v0 = vld [vmem:[%s1182_s20 + $0x24] sm:$0xf] }
  0x2b   : > { %494 = vmatpush.bf16.msra.mxu0 %v828_v44  ;;  %v945_v63 = vld [vmem:[%s1182_s20 + $0xa4] sm:$0xf0]  ;;  %v813_v1 = vld [vmem:[%s1182_s20 + $0x28] sm:$0xf0]  ;;  %v944_v2 = vld [vmem:[%s1182_s20 + $0xa4] sm:$0xf]  ;;  %v812_v4 = vor.u32 %v929_v60, %v811_v59 }
  0x2c   : > { %507 = vmatpush.bf16.msra.mxu1 %v892_v45  ;;  %v877_v3 = vld [vmem:[%s1182_s20 + $0xa8] sm:$0xf0]  ;;  %v803_v5 = vld [vmem:[%s1182_s20 + $0x10] sm:$0xf]  ;;  %v876_v6 = vor.u32 %v945_v63, %v875_v61  ;;  %v816_v7 = vor.u32 %v928_v0, %v813_v1  ;;  %v927_v8 = vld [vmem:[%s1182_s20 + $0x14] sm:$0xf0] }
  0x2d   : > { %520 = vmatpush.bf16.msra.mxu2 %v832_v46  ;;  %v867_v9 = vld [vmem:[%s1182_s20 + $0x90] sm:$0xf]  ;;  %v943_v10 = vld [vmem:[%s1182_s20 + $0x94] sm:$0xf0]  ;;  %v880_v11 = vor.u32 %v944_v2, %v877_v3  ;;  %v926_v12 = vld [vmem:[%s1182_s20 + $0x14] sm:$0xf]  ;;  %v804_v17 = vor.u32 %v927_v8, %v803_v5 }
  0x2e   : > { %533 = vmatpush.bf16.msra.mxu3 %v896_v50  ;;  %v805_v13 = vld [vmem:[%s1182_s20 + $0x18] sm:$0xf0]  ;;  %v292_v14 = vld [vmem:[%s1293_s0] sm:$0x3]  ;;  %v868_v18 = vor.u32 %v943_v10, %v867_v9  ;;  %v795_v20 = vld [vmem:[%s1182_s20] sm:$0xf] }
  0x2f   : > { %495 = vmatpush.bf16.msra.mxu0 %v820_v56  ;;  %v942_v15 = vld [vmem:[%s1182_s20 + $0x94] sm:$0xf]  ;;  %v869_v16 = vld [vmem:[%s1182_s20 + $0x98] sm:$0xf0]  ;;  %326 = vst [vmem:[#allocation1] ss:$9 sm:$0xff] %v292_v14  ;;  %v808_v19 = vor.u32 %v926_v12, %v805_v13 }
  0x30   : > { %508 = vmatpush.bf16.msra.mxu1 %v884_v57  ;;  %v925_v21 = vld [vmem:[%s1182_s20 + $0x4] sm:$0xf0]  ;;  %v859_v22 = vld [vmem:[%s1182_s20 + $0x80] sm:$0xf]  ;;  %v872_v23 = vor.u32 %v942_v15, %v869_v16  ;;  %v924_v25 = vld [vmem:[%s1182_s20 + $0x4] sm:$0xf] }
  0x31   : > { %521 = vmatpush.bf16.msra.mxu2 %v824_v58  ;;  %v941_v24 = vld [vmem:[%s1182_s20 + $0x84] sm:$0xf0]  ;;  %v797_v26 = vld [vmem:[%s1182_s20 + $0x8] sm:$0xf0]  ;;  %v940_v27 = vld [vmem:[%s1182_s20 + $0x84] sm:$0xf]  ;;  %v796_v29 = vor.u32 %v925_v21, %v795_v20 }
  0x32   : > { %534 = vmatpush.bf16.msra.mxu3 %v888_v62  ;;  %v861_v28 = vld [vmem:[%s1182_s20 + $0x88] sm:$0xf0]  ;;  %v860_v30 = vor.u32 %v941_v24, %v859_v22  ;;  %v800_v31 = vor.u32 %v924_v25, %v797_v26  ;;  %v1100_v35 = vmov 0.0   ;;  %s790_s23 = sshll.u32 %s1087_s15, 1  ;;  %vm564_vm1 = vcmask 1040384  }
  0x33   : > { %496 = vmatpush.bf16.msra.mxu0 %v812_v4  ;;  %v864_v32 = vor.u32 %v940_v27, %v861_v28  ;;  %290 = vst [vmem:[#allocation2] sm:$0xf] %v1100_v35  ;;  %p269_p13 = scmp.lt.s32.totalorder %s790_s23, 3  ;;  %v571_v55 = vshrl.u32 %v570_v51, 7 }
  0x34   : > { %509 = vmatpush.bf16.msra.mxu1 %v876_v6 }
  0x35   : > { %522 = vmatpush.bf16.msra.mxu2 %v816_v7  ;;  %s1307_s23 = smov (!%p269_p13, %s790_s23), 3  ;;  %vm574_vm2 = vcmp.lt.s32.totalorder %v571_v55, 2 }
  0x36   : > { %535 = vmatpush.bf16.msra.mxu3 %v880_v11  ;;  %v327_v33 = vld [vmem:[#allocation1] sm:$0xff]  ;;  %v328_v34 = vld [vmem:[#allocation1 + $0x9] sm:$0xff]  ;;  %s273_s27 = scalar_lea.vmem %s1295_s2, %s1307_s23  ;;  %s792_s15 = sshll.u32 %s1307_s23, 1 }
  0x37   : > { %497 = vmatpush.bf16.msra.mxu0 %v804_v17  ;;  %s283_s30 = scalar_lea.vmem %s1296_s3, %s792_s15 }
  0x38   : > { %510 = vmatpush.bf16.msra.mxu1 %v868_v18 }
  0x39   : > { %523 = vmatpush.bf16.msra.mxu2 %v808_v19 }
  0x3a   : > { %536 = vmatpush.bf16.msra.mxu3 %v872_v23  ;;  %v291_v44 = vld [vmem:[#allocation2] sm:$0xf] }
  0x3b   : > { %498 = vmatpush.bf16.msra.mxu0 %v796_v29 }
  0x3c   : > { %511 = vmatpush.bf16.msra.mxu1 %v860_v30 }
  0x3d   : > { %524 = vmatpush.bf16.msra.mxu2 %v800_v31 }
  0x3e   : > { %537 = vmatpush.bf16.msra.mxu3 %v864_v32  ;;  %499 = vmatmul.bf16.vlgmr.msra.gmra.mxu0 %v327_v33 }
  0x3f   : > { %512 = vmatmul.bf16.vlgmr.msra.gmra.mxu1 %v328_v34 }
  0x40   : > { %525 = vmatmul.bf16.vlgmr.msra.gmra.mxu2 %v327_v33 }
  0x41   : > { %538 = vmatmul.bf16.vlgmr.msra.gmra.mxu3 %v328_v34 }
  0xbb   : > { %v500_v36 = vpop.f32.mrf.mxu0 }
  0xbc   : > { %v513_v37 = vpop.f32.mrf.mxu1 }
  0xbd   : > { %v514_v41 = vadd.f32 %v513_v37, %v500_v36 }
  0xc3   : > { %v526_v38 = vpop.f32.mrf.mxu2  ;;  %v502_v40 = vpop.f32.mrf.mxu0 }
  0xc4   : > { %v539_v39 = vpop.f32.mrf.mxu3  ;;  %v515_v43 = vpop.f32.mrf.mxu1 }
  0xc5   : > { %v540_v42 = vadd.f32 %v539_v39, %v526_v38 }
  0xc7   : > { %v545_v45 = vrot.slane %v540_v42, 6 }
  0xc9   : > { %v547_v46 = vsel %vm546_vm0, %v514_v41, %v545_v45 }
  0xca   : > { %v549_v47 = vadd.f32 %v547_v46, %v291_v44 }
  0xcb   : > { %v528_v48 = vpop.f32.mrf.mxu2 }
  0xcc   : > { %550 = vst [vmem:[#allocation2] sm:$0xf] %v549_v47  ;;  %v541_v49 = vpop.f32.mrf.mxu3 }
  0xd3   : > { %v554_v50 = vld [vmem:[#allocation2] sm:$0xf] }
  0xd4   : > { %556 = vst [vmem:[#allocation1] ss:$4 sm:$0xff] %v554_v50 }
  0xdb   : > { %v557_v52 = vld.sshfl [vmem:[#allocation1] sm:$0xff pattern:$0x73625140]  ;;  %v558_v53 = vld.sshfl [vmem:[#allocation1 + $0x8] sm:$0xff pattern:$0x73625140] }
  0xdc   : > { %v561_v54 = vpack.c.bf16 %v558_v53, %v557_v52  ;;  %575 = vst [vmem:[#allocation1] ss:$4 sm:$0xff] %v554_v50 }
  0xde   : > { %v563_v56 = vrot.slane %v561_v54, 3 }
  0xe0   : > { %v567_v57 = vsel %vm564_vm1, %v561_v54, %v563_v56 }
  0xe1   : > { %569 = vst [vmem:[%s273_s27] sm:$0x3] %v567_v57 }
  0xe3   : > { %v576_v58 = vld.sshfl [vmem:[#allocation1] sm:$0xff pattern:$0x73625140]  ;;  %v577_v59 = vld.sshfl [vmem:[#allocation1 + $0x8] sm:$0xff pattern:$0x73625140] }
  0xe4   : > { %v580_v60 = vsel %vm574_vm2, %v576_v58, 0.0  ;;  %v581_v61 = vsel %vm574_vm2, %v577_v59, 0.0 }
  0xe5   : > { %v582_v62 = vsel %vm546_vm0, %v580_v60, 0.0  ;;  %v589_v63 = vsel %vm546_vm0, %v581_v61, 0.0  ;;  %v596_v0 = vmul.f32 %v580_v60, %v580_v60  ;;  %v597_v1 = vmul.f32 %v581_v61, %v581_v61 }
  0xe6   : > { %v583_v2 = vrot.slane %v582_v62, 4  ;;  %v590_v3 = vrot.slane %v589_v63, 4 }
  0xe7   : > { %v598_v4 = vsel %vm546_vm0, %v596_v0, 0.0  ;;  %v605_v5 = vsel %vm546_vm0, %v597_v1, 0.0 }
  0xe8   : > { %v584_v6 = vadd.f32 %v583_v2, %v582_v62  ;;  %v591_v7 = vadd.f32 %v590_v3, %v589_v63  ;;  %v599_v8 = vrot.slane %v598_v4, 4  ;;  %v606_v9 = vrot.slane %v605_v5, 4 }
  0xea   : > { %v585_v10 = vrot.slane %v584_v6, 2  ;;  %v592_v11 = vrot.slane %v591_v7, 2  ;;  %v600_v12 = vadd.f32 %v599_v8, %v598_v4  ;;  %v607_v13 = vadd.f32 %v606_v9, %v605_v5 }
  0xec   : > { %v586_v14 = vadd.f32 %v585_v10, %v584_v6  ;;  %v593_v15 = vadd.f32 %v592_v11, %v591_v7  ;;  %v601_v16 = vrot.slane %v600_v12, 2  ;;  %v608_v17 = vrot.slane %v607_v13, 2 }
  0xee   : > { %v594_v18 = vrot.slane %v593_v15, 1  ;;  %v602_v19 = vadd.f32 %v601_v16, %v600_v12  ;;  %v609_v20 = vadd.f32 %v608_v17, %v607_v13  ;;  %v587_v21 = vrot.slane %v586_v14, 1 }
  0xf0   : > { %v603_v22 = vrot.slane %v602_v19, 1  ;;  %v610_v23 = vrot.slane %v609_v20, 1  ;;  %v595_v24 = vadd.f32 %v594_v18, %v593_v15  ;;  %v588_v27 = vadd.f32 %v587_v21, %v586_v14 }
  0xf2   : > { %v604_v25 = vadd.f32 %v603_v22, %v602_v19  ;;  %v611_v26 = vadd.f32 %v610_v23, %v609_v20 }
  0xf4   : > { %v613_v28 = vsel %vm564_vm1, %v595_v24, %v611_v26  ;;  %v612_v30 = vsel %vm564_vm1, %v588_v27, %v604_v25 }
  0xf5   : > { %v616_v29 = vrot.slane %v613_v28, 6 }
  0xf7   : > { %v617_v31 = vsel %vm546_vm0, %v612_v30, %v616_v29 }
  0xf8   : > { %619 = vst [vmem:[%s283_s30] sm:$0xf] %v617_v31 }
  0xf9 PF: > { %s17_s17 = sadd.s32 1, %s1095_s17   ;;  %s1299_s12 = smov %s1079_s13 }
  0xfa   : > { %p14_p0 = scmp.ge.s32.totalorder %s17_s17, 4   ;;  %s1300_s13 = smov %s1083_s14 }
  0xfb   : > { %s1301_s14 = smov %s1170_s24  ;;  %s1302_s15 = smov %s1091_s16 }
  0xfc   : > { %s1303_s16 = smov %s1305_s19  ;;  %16 = sbr.rel (!%p14_p0) target bundleno = 4 (0x4), region = 91 }
 0x101   :  { %673 = vsyncpa [#allocation4], 1 }
 0x102   :  { %675 = vsyncpa [#allocation4 + $0x1], 1 }

// kernel: resnet_backbone_forward.71
= control target key start
LH: loop header
LB: loop body
LE: loop exit
PB: predicated region body
PF: predicated region fallthrough
CT: control target
= control target key end

     0   :  { %vm34_vm0 = vcmask 1041408   ;;  %vm36_vm1 = vcmask 1045508   ;;  %vm38_vm2 = vcmask 1043456   ;;  %vm105_vm3 = vcmask 1040384   ;;  %s189_s0 = inlined_call_operand.vmem [shape: bf16[2,512], index: 0, kind: input, shape index: {}]   ;;  %s190_s2 = inlined_call_operand.vmem [shape: f32[1,512], index: 2, kind: input, shape index: {}]   ;;  %s191_s3 = inlined_call_operand.vmem [shape: f32[1,512], index: 3, kind: input, shape index: {}]   ;;  %s192_s4 = inlined_call_operand.vmem [shape: f32[1,512], index: 4, kind: input, shape index: {}]   ;;  %s193_s1 = inlined_call_operand.vmem [shape: bf16[2,512], index: 1, kind: input, shape index: {}]   ;;  %s194_s5 = inlined_call_operand.vmem [shape: f32[1,512], index: 5, kind: input, shape index: {}]   ;;  %s195_s6 = inlined_call_operand.vmem [shape: bf16[2,512], index: 6, kind: output, shape index: {}]  }
   0x1   :  { %v23_v0 = vld [vmem:[%s189_s0] sm:$0xf]  ;;  %vm109_vm4 = vcmask 1042434  }
   0x2   :  { %v25_v1 = vld [vmem:[%s190_s2] sm:$0xf]  ;;  %v24_v11 = vunpack.c.l.bf16 %v23_v0 }
   0x3   :  { %v42_v2 = vld [vmem:[%s191_s3] sm:$0xf]  ;;  %v27_v3 = vperm.slane %v25_v1, 0  ;;  %v28_v4 = vperm.slane %v25_v1, 1  ;;  %v29_v5 = vperm.slane %v25_v1, 2  ;;  %v30_v6 = vperm.slane %v25_v1, 3 }
   0x4   :  { %v44_v7 = vperm.slane %v42_v2, 0  ;;  %v45_v8 = vperm.slane %v42_v2, 1  ;;  %v46_v9 = vperm.slane %v42_v2, 2  ;;  %v58_v10 = vld [vmem:[%s192_s4] sm:$0xf]  ;;  %v47_v14 = vperm.slane %v42_v2, 3 }
   0x5   :  { %v31_v12 = vrot.slane %v28_v4, 6  ;;  %v32_v13 = vrot.slane %v29_v5, 4  ;;  %v33_v15 = vrot.slane %v30_v6, 2  ;;  %v56_v18 = vld [vmem:[%s193_s1] sm:$0xf]  ;;  %v60_v19 = vperm.slane %v58_v10, 0 }
   0x6   :  { %v48_v16 = vrot.slane %v45_v8, 6  ;;  %v49_v17 = vrot.slane %v46_v9, 4  ;;  %v50_v21 = vrot.slane %v47_v14, 2  ;;  %v61_v22 = vperm.slane %v58_v10, 1  ;;  %v72_v24 = vld [vmem:[%s194_s5] sm:$0xf] }
   0x7   :  { %v35_v20 = vsel %vm34_vm0, %v27_v3, %v31_v12  ;;  %v62_v23 = vperm.slane %v58_v10, 2  ;;  %v37_v25 = vsel %vm36_vm1, %v32_v13, %v33_v15  ;;  %v63_v27 = vperm.slane %v58_v10, 3 }
   0x8   :  { %v51_v26 = vsel %vm34_vm0, %v44_v7, %v48_v16  ;;  %v39_v28 = vsel %vm38_vm2, %v35_v20, %v37_v25  ;;  %v52_v29 = vsel %vm36_vm1, %v49_v17, %v50_v21  ;;  %v64_v30 = vrot.slane %v61_v22, 6 }
   0x9   :  { %v65_v31 = vrot.slane %v62_v23, 4  ;;  %v57_v32 = vunpack.c.l.bf16 %v56_v18  ;;  %v66_v33 = vrot.slane %v63_v27, 2  ;;  %v74_v34 = vperm.slane %v72_v24, 0 }
   0xa   :  { %v75_v35 = vperm.slane %v72_v24, 1  ;;  %v41_v36 = vmul.f32 %v39_v28, %v24_v11  ;;  %v67_v37 = vsel %vm34_vm0, %v60_v19, %v64_v30  ;;  %v76_v38 = vperm.slane %v72_v24, 2 }
   0xb   :  { %v77_v39 = vperm.slane %v72_v24, 3  ;;  %v53_v40 = vsel %vm38_vm2, %v51_v26, %v52_v29  ;;  %v68_v41 = vsel %vm36_vm1, %v65_v31, %v66_v33 }
   0xc   :  { %v78_v42 = vrot.slane %v75_v35, 6  ;;  %v69_v43 = vsel %vm38_vm2, %v67_v37, %v68_v41  ;;  %v79_v44 = vrot.slane %v76_v38, 4  ;;  %v55_v48 = vadd.f32 %v53_v40, %v41_v36 }
   0xd   :  { %v80_v45 = vrot.slane %v77_v39, 2  ;;  %v71_v46 = vmul.f32 %v69_v43, %v57_v32 }
   0xe   :  { %v81_v47 = vsel %vm34_vm0, %v74_v34, %v78_v42 }
   0xf   :  { %v82_v49 = vsel %vm36_vm1, %v79_v44, %v80_v45 }
  0x10   :  { %v83_v50 = vsel %vm38_vm2, %v81_v47, %v82_v49 }
  0x11   :  { %v85_v51 = vadd.f32 %v83_v50, %v71_v46 }
  0x13   :  { %v86_v52 = vadd.f32 %v85_v51, %v55_v48 }
  0x15   :  { %v87_v53 = vmax.f32 %v86_v52, 0.0 }
  0x17   :  { %89 = vst [vmem:[#allocation1] ss:$4 sm:$0xff] %v87_v53 }
  0x1e   :  { %v90_v54 = vld.sshfl [vmem:[#allocation1] sm:$0xff pattern:$0x73625140]  ;;  %v91_v55 = vld.sshfl [vmem:[#allocation1 + $0x8] sm:$0xff pattern:$0x73625140] }
  0x1f   :  { %v92_v56 = vld.sshfl [vmem:[#allocation1 + $0x10] sm:$0xff pattern:$0x73625140]  ;;  %v93_v57 = vld.sshfl [vmem:[#allocation1 + $0x18] sm:$0xff pattern:$0x73625140]  ;;  %v98_v58 = vpack.c.bf16 %v91_v55, %v90_v54 }
  0x20   :  { %v99_v59 = vpack.c.bf16 %v93_v57, %v92_v56 }
  0x21   :  { %v102_v60 = vrot.slane %v98_v58, 3 }
  0x22   :  { %v103_v61 = vrot.slane %v99_v59, 6  ;;  %v104_v62 = vrot.slane %v99_v59, 1 }
  0x23   :  { %v108_v63 = vsel %vm105_vm3, %v98_v58, %v102_v60 }
  0x24   :  { %v112_v0 = vsel %vm109_vm4, %v103_v61, %v104_v62 }
  0x25   :  { %v113_v1 = vsel %vm34_vm0, %v108_v63, %v112_v0 }
  0x26   :  { %115 = vst [vmem:[%s195_s6] sm:$0xf] %v113_v1 }

// kernel: resnet_backbone_forward.67
= control target key start
LH: loop header
LB: loop body
LE: loop exit
PB: predicated region body
PF: predicated region fallthrough
CT: control target
= control target key end

     0   :  { %9 = vsyncpa [#allocation4], 0  ;;  %s3057_s0 = inlined_call_operand.vmem [shape: bf16[2,2304], index: 0, kind: input, shape index: {}]   ;;  %s3058_s1 = inlined_call_operand.hbm [shape: bf16[2304,512], index: 1, kind: input, shape index: {}]   ;;  %s3059_s2 = inlined_call_operand.vmem [shape: bf16[2,512], index: 2, kind: output, shape index: {0}]   ;;  %s3060_s3 = inlined_call_operand.vmem [shape: f32[1,2,512], index: 3, kind: output, shape index: {1}]  }
   0x1   :  { %11 = vsyncpa [#allocation4 + $0x1], 0  ;;  %s2587_s12 = smov 0   ;;  %s2589_s13 = smov 0  }
   0x2   :  { %s2591_s14 = smov 0   ;;  %s2593_s15 = smov 0  }
   0x3   :  { %s2595_s16 = smov 0   ;;  %s2597_s17 = smov 0  }
   0x4   :  { %s2599_s18 = smov 0   ;;  %s2601_s19 = smov 0  }
   0x5 LB: > { %s1652_s20 = sadd.s32 4294967295, %s2561_s19   ;;  %s29_s21 = sadd.s32 1, %s2553_s17  ;;  %s2561_s19 = sphi %s2601_s19, %s17_s19   ;;  %s2557_s18 = sphi %s2599_s18, %s3072_s18   ;;  %s2553_s17 = sphi %s2597_s17, %s3071_s17   ;;  %s2549_s16 = sphi %s2595_s16, %s3070_s16   ;;  %s2545_s15 = sphi %s2593_s15, %s3069_s15   ;;  %s2541_s14 = sphi %s2591_s14, %s3068_s14   ;;  %s2537_s13 = sphi %s2589_s13, %s3067_s13   ;;  %s2533_s12 = sphi %s2587_s12, %s3066_s12  }
   0x6   : > { %p30_p0 = scmp.ge.s32.totalorder %s29_s21, 2  ;;  %s32_s22 = sadd.s32 1, %s2557_s18 }
   0x7   : > { %s73_s23 = sadd.s32 1, %s2541_s14  ;;  %p80_p1 = scmp.ne.s32.totalorder %s2541_s14, %s2537_s13 }
   0x8   : > { %s3074_s21 = smov (%p30_p0, %s29_s21), 0  ;;  %s3076_s22 = smov (!%p30_p0, %s32_s22), %s2557_s18 }
   0x9   : > { %s68_s24 = ssub.s32 %s2553_s17, %s3074_s21  ;;  %p81_p2 = scmp.eq.s32.totalorder %s2561_s19, 0 }
   0xa   : > { %p34_p3 = scmp.ge.s32.totalorder %s3076_s22, 2  ;;  %p86_p4 = scmp.ne.s32.totalorder %s2537_s13, %s2533_s12 }
   0xb   : > { %p2638_p5 = por %p81_p2, %p80_p1  ;;  %p87_p6 = scmp.eq.s32.totalorder %s1652_s20, 0 }
   0xc   : > { %s3078_s22 = smov (%p34_p3, %s3076_s22), 0  ;;  %p2396_p8 = scmp.lt.s32.totalorder %s2561_s19, 4 }
   0xd   : > { %3063 = sst [smem:[#allocation6_spill]] %s3078_s22  ;;  %p2644_p7 = por %p87_p6, %p86_p4 }
   0xe   : > { %s69_s27 = ssub.s32 %s2557_s18, %s3078_s22  ;;  %s178_s29 = sand.u32 1, %s2541_s14  }
   0xf   : > { %s70_s28 = sor.u32 %s69_s27, %s68_s24  ;;  %s2388_s30 = smul.u32 1152, %s178_s29 }
  0x10   : > { %p71_p9 = scmp.eq.s32.totalorder %s70_s28, 0  ;;  %s1656_s4 = sshll.u32 %s2557_s18, 1 }
  0x11   : > { %s2243_s6 = smul.u32 576, %s2553_s17  ;;  %s182_s7 = scalar_lea.vmem [#allocation3], %s2388_s30 }
  0x12   : > { %s2654_s5 = scalar_select %p71_p9, %s2541_s14, %s73_s23  }
  0x13   : > { %s193_s8 = sshll.u32 %s182_s7, 4  ;;  %p2393_p10 = pnand %p2396_p8, %p2638_p5  ;;  %s194_s8 = int_to_ptr.vmem [resolvable:$true] %s193_s8 }
  0x14   : > { %s188_s9 = sadd.s32 %s2243_s6, %s1656_s4  ;;  %s179_s27 = scalar_lea.sflag [#allocation4], %s178_s29 }
  0x15   : > { %s1658_s10 = sshll.u32 %s188_s9, 2  ;;  %s2563_s28 = smov 256  }
  0x16   : > { %s190_s20 = scalar_lea.hbm %s3058_s1, %s1658_s10  ;;  %s2564_s23 = smov 128  }
  0x17   : > { %s191_s24 = sshll.u32 %s190_s20, 4  ;;  %s2565_s22 = smov 8   ;;  %s192_s24 = int_to_ptr.hbm [resolvable:$true] %s191_s24 }
  0x18   : > { %2395 = dma.hbm_to_vmem [thread:$0]  (!%p2393_p10), %s192_s24, 18432, %s194_s8, %s179_s27, %s2563_s28, %s2564_s23, %s2565_s22  }
  0x19   : > { %p1659_p11 = scmp.ge.s32.totalorder %s2561_s19, 1  ;;  %p201_p12 = scmp.lt.s32.totalorder %s2561_s19, 5 }
  0x1b   : > { %p202_p13 = pnand %p1659_p11, %p201_p12 }
  0x1c   : > { %s207_s25 = sand.u32 (!%p202_p13), 1, %s2537_s13  }
  0x1d   : > { %205 = sbr.rel (%p202_p13) target bundleno = 387 (0x183), region = 28  ;;  %s208_s4 = scalar_lea.sflag (!%p202_p13), [#allocation4], %s207_s25 }
  0x1e   : > { %s2389_s30 = smul.u32 (!%p202_p13), 1152, %s207_s25 }
  0x20   : > { %s2665_s6 = scalar_lea.vmem (!%p202_p13), [#allocation3], %s2389_s30 }
  0x22   : > { %2528 = dma.done.wait (%p2644_p7), %s208_s4, 18432  }
  0x23   : > { %2530 = vsyncadd (%p2644_p7), %s208_s4, 4294948864  ;;  %s255_s29 = smul.u32 9, %s2545_s15  ;;  %s1660_s22 = sshll.u32 %s2549_s16, 1 }
  0x24   : > { %p269_p0 = scmp.lt.s32.totalorder %s1660_s22, 3  ;;  %p1663_p2 = scmp.ne.s32.totalorder %s2545_s15, 0 }
  0x25   : > { %p258_p1 = scmp.lt.s32.totalorder %s255_s29, 17 }
  0x26   : > { %s3080_s22 = smov (!%p269_p0, %s1660_s22), 3  ;;  %289 = sbr.rel (%p1663_p2) target bundleno = 45 (0x2d), region = 36 }
  0x27   : > { %s3082_s29 = smov (!%p258_p1, %s255_s29), 17  ;;  %s273_s9 = scalar_lea.vmem %s3059_s2, %s3080_s22 }
  0x28   : > { %s1662_s10 = sshll.u32 %s3080_s22, 1  ;;  %s2683_s26 = scalar_lea.vmem %s3057_s0, %s3082_s29 }
  0x29   : > { %s2688_s16 = scalar_lea.vmem %s3060_s3, %s1662_s10 }
  0x2b   : > { %v2566_v0 = vmov 0.0  }
  0x2c   : > { %290 = vst [vmem:[#allocation2] sm:$0xf] %v2566_v0 }
  0x2d PF: > { %v1722_v1 = vld [vmem:[%s2665_s6 + $0x70] sm:$0xf]  ;;  %v2259_v2 = vld [vmem:[%s2665_s6 + $0x74] sm:$0xf0]  ;;  %v1714_v12 = vld [vmem:[%s2665_s6 + $0x60] sm:$0xf] }
  0x2e   : > { %v1786_v3 = vld [vmem:[%s2665_s6 + $0xf0] sm:$0xf]  ;;  %v1723_v4 = vor.u32 %v2259_v2, %v1722_v1  ;;  %v2275_v5 = vld [vmem:[%s2665_s6 + $0xf4] sm:$0xf0]  ;;  %v2257_v14 = vld [vmem:[%s2665_s6 + $0x64] sm:$0xf0] }
  0x2f   : > { %v1850_v6 = vld [vmem:[%s2665_s6 + $0x170] sm:$0xf]  ;;  %v2291_v7 = vld [vmem:[%s2665_s6 + $0x174] sm:$0xf0]  ;;  %v1787_v8 = vor.u32 %v2275_v5, %v1786_v3  ;;  %v1778_v15 = vld [vmem:[%s2665_s6 + $0xe0] sm:$0xf]  ;;  %v1715_v17 = vor.u32 %v2257_v14, %v1714_v12 }
  0x30   : > { %v1851_v9 = vor.u32 %v2291_v7, %v1850_v6  ;;  %v1914_v10 = vld [vmem:[%s2665_s6 + $0x1f0] sm:$0xf]  ;;  %v2307_v11 = vld [vmem:[%s2665_s6 + $0x1f4] sm:$0xf0]  ;;  %1180 = vmatpush.bf16.msra.mxu0 %v1723_v4  ;;  %v2273_v16 = vld [vmem:[%s2665_s6 + $0xe4] sm:$0xf0] }
  0x31   : > { %v1915_v13 = vor.u32 %v2307_v11, %v1914_v10  ;;  %1193 = vmatpush.bf16.msra.mxu1 %v1787_v8  ;;  %v1779_v18 = vor.u32 %v2273_v16, %v1778_v15  ;;  %v1842_v19 = vld [vmem:[%s2665_s6 + $0x160] sm:$0xf]  ;;  %v2289_v20 = vld [vmem:[%s2665_s6 + $0x164] sm:$0xf0]  ;;  %v1706_v24 = vld [vmem:[%s2665_s6 + $0x50] sm:$0xf] }
  0x32   : > { %1206 = vmatpush.bf16.msra.mxu2 %v1851_v9  ;;  %v1906_v21 = vld [vmem:[%s2665_s6 + $0x1e0] sm:$0xf]  ;;  %v1843_v22 = vor.u32 %v2289_v20, %v1842_v19  ;;  %v2305_v23 = vld [vmem:[%s2665_s6 + $0x1e4] sm:$0xf0]  ;;  %v2255_v25 = vld [vmem:[%s2665_s6 + $0x54] sm:$0xf0] }
  0x33   : > { %1219 = vmatpush.bf16.msra.mxu3 %v1915_v13  ;;  %v1907_v26 = vor.u32 %v2305_v23, %v1906_v21  ;;  %v1770_v27 = vld [vmem:[%s2665_s6 + $0xd0] sm:$0xf]  ;;  %v2271_v28 = vld [vmem:[%s2665_s6 + $0xd4] sm:$0xf0]  ;;  %v1707_v30 = vor.u32 %v2255_v25, %v1706_v24  ;;  %v1698_v36 = vld [vmem:[%s2665_s6 + $0x40] sm:$0xf] }
  0x34   : > { %v1834_v29 = vld [vmem:[%s2665_s6 + $0x150] sm:$0xf]  ;;  %1181 = vmatpush.bf16.msra.mxu0 %v1715_v17  ;;  %v2287_v31 = vld [vmem:[%s2665_s6 + $0x154] sm:$0xf0]  ;;  %v1771_v34 = vor.u32 %v2271_v28, %v1770_v27  ;;  %v2253_v37 = vld [vmem:[%s2665_s6 + $0x44] sm:$0xf0] }
  0x35   : > { %v1898_v32 = vld [vmem:[%s2665_s6 + $0x1d0] sm:$0xf]  ;;  %v2303_v33 = vld [vmem:[%s2665_s6 + $0x1d4] sm:$0xf0]  ;;  %1194 = vmatpush.bf16.msra.mxu1 %v1779_v18  ;;  %v1835_v35 = vor.u32 %v2287_v31, %v1834_v29  ;;  %v1762_v38 = vld [vmem:[%s2665_s6 + $0xc0] sm:$0xf]  ;;  %v1699_v45 = vor.u32 %v2253_v37, %v1698_v36 }
  0x36   : > { %1207 = vmatpush.bf16.msra.mxu2 %v1843_v22  ;;  %v1899_v39 = vor.u32 %v2303_v33, %v1898_v32  ;;  %v2269_v40 = vld [vmem:[%s2665_s6 + $0xc4] sm:$0xf0]  ;;  %v1826_v41 = vld [vmem:[%s2665_s6 + $0x140] sm:$0xf]  ;;  %v1690_v48 = vld [vmem:[%s2665_s6 + $0x30] sm:$0xf] }
  0x37   : > { %1220 = vmatpush.bf16.msra.mxu3 %v1907_v26  ;;  %v2285_v42 = vld [vmem:[%s2665_s6 + $0x144] sm:$0xf0]  ;;  %v1890_v43 = vld [vmem:[%s2665_s6 + $0x1c0] sm:$0xf]  ;;  %v1763_v46 = vor.u32 %v2269_v40, %v1762_v38  ;;  %v2251_v49 = vld [vmem:[%s2665_s6 + $0x34] sm:$0xf0] }
  0x38   : > { %v2301_v44 = vld [vmem:[%s2665_s6 + $0x1c4] sm:$0xf0]  ;;  %1182 = vmatpush.bf16.msra.mxu0 %v1707_v30  ;;  %v1827_v47 = vor.u32 %v2285_v42, %v1826_v41  ;;  %v1754_v50 = vld [vmem:[%s2665_s6 + $0xb0] sm:$0xf]  ;;  %v2267_v52 = vld [vmem:[%s2665_s6 + $0xb4] sm:$0xf0]  ;;  %v1691_v57 = vor.u32 %v2251_v49, %v1690_v48 }
  0x39   : > { %1195 = vmatpush.bf16.msra.mxu1 %v1771_v34  ;;  %v1891_v51 = vor.u32 %v2301_v44, %v1890_v43  ;;  %v1818_v53 = vld [vmem:[%s2665_s6 + $0x130] sm:$0xf]  ;;  %v2283_v54 = vld [vmem:[%s2665_s6 + $0x134] sm:$0xf0]  ;;  %v1755_v58 = vor.u32 %v2267_v52, %v1754_v50  ;;  %v1682_v60 = vld [vmem:[%s2665_s6 + $0x20] sm:$0xf] }
  0x3a   : > { %1208 = vmatpush.bf16.msra.mxu2 %v1835_v35  ;;  %v1882_v55 = vld [vmem:[%s2665_s6 + $0x1b0] sm:$0xf]  ;;  %v2299_v56 = vld [vmem:[%s2665_s6 + $0x1b4] sm:$0xf0]  ;;  %v1819_v59 = vor.u32 %v2283_v54, %v1818_v53  ;;  %v2249_v61 = vld [vmem:[%s2665_s6 + $0x24] sm:$0xf0] }
  0x3b   : > { %1221 = vmatpush.bf16.msra.mxu3 %v1899_v39  ;;  %v1746_v62 = vld [vmem:[%s2665_s6 + $0xa0] sm:$0xf]  ;;  %v1883_v63 = vor.u32 %v2299_v56, %v1882_v55  ;;  %v2265_v0 = vld [vmem:[%s2665_s6 + $0xa4] sm:$0xf0]  ;;  %v1683_v5 = vor.u32 %v2249_v61, %v1682_v60  ;;  %v1674_v8 = vld [vmem:[%s2665_s6 + $0x10] sm:$0xf] }
  0x3c   : > { %1183 = vmatpush.bf16.msra.mxu0 %v1699_v45  ;;  %v1810_v1 = vld [vmem:[%s2665_s6 + $0x120] sm:$0xf]  ;;  %v2281_v2 = vld [vmem:[%s2665_s6 + $0x124] sm:$0xf0]  ;;  %v1747_v6 = vor.u32 %v2265_v0, %v1746_v62  ;;  %v2247_v9 = vld [vmem:[%s2665_s6 + $0x14] sm:$0xf0] }
  0x3d   : > { %1196 = vmatpush.bf16.msra.mxu1 %v1763_v46  ;;  %v1874_v3 = vld [vmem:[%s2665_s6 + $0x1a0] sm:$0xf]  ;;  %v2297_v4 = vld [vmem:[%s2665_s6 + $0x1a4] sm:$0xf0]  ;;  %v1811_v7 = vor.u32 %v2281_v2, %v1810_v1  ;;  %v1738_v10 = vld [vmem:[%s2665_s6 + $0x90] sm:$0xf]  ;;  %v1675_v17 = vor.u32 %v2247_v9, %v1674_v8 }
  0x3e   : > { %1209 = vmatpush.bf16.msra.mxu2 %v1827_v47  ;;  %v1875_v11 = vor.u32 %v2297_v4, %v1874_v3  ;;  %v2263_v12 = vld [vmem:[%s2665_s6 + $0x94] sm:$0xf0]  ;;  %v1802_v13 = vld [vmem:[%s2665_s6 + $0x110] sm:$0xf]  ;;  %v1666_v18 = vld [vmem:[%s2665_s6] sm:$0xf] }
  0x3f   : > { %1222 = vmatpush.bf16.msra.mxu3 %v1891_v51  ;;  %v2279_v14 = vld [vmem:[%s2665_s6 + $0x114] sm:$0xf0]  ;;  %v1866_v15 = vld [vmem:[%s2665_s6 + $0x190] sm:$0xf]  ;;  %v2245_v19 = vld [vmem:[%s2665_s6 + $0x4] sm:$0xf0]  ;;  %v1739_v20 = vor.u32 %v2263_v12, %v1738_v10 }
  0x40   : > { %1184 = vmatpush.bf16.msra.mxu0 %v1691_v57  ;;  %v2295_v16 = vld [vmem:[%s2665_s6 + $0x194] sm:$0xf0]  ;;  %v1803_v21 = vor.u32 %v2279_v14, %v1802_v13  ;;  %v1730_v22 = vld [vmem:[%s2665_s6 + $0x80] sm:$0xf]  ;;  %v2261_v23 = vld [vmem:[%s2665_s6 + $0x84] sm:$0xf0]  ;;  %v1667_v32 = vor.u32 %v2245_v19, %v1666_v18 }
  0x41   : > { %1197 = vmatpush.bf16.msra.mxu1 %v1755_v58  ;;  %v1794_v24 = vld [vmem:[%s2665_s6 + $0x100] sm:$0xf]  ;;  %v1867_v25 = vor.u32 %v2295_v16, %v1866_v15  ;;  %v2277_v26 = vld [vmem:[%s2665_s6 + $0x104] sm:$0xf0]  ;;  %v1978_v27 = vld [vmem:[%s2665_s6 + $0x270] sm:$0xf]  ;;  %v1731_v36 = vor.u32 %v2261_v23, %v1730_v22 }
  0x42   : > { %1210 = vmatpush.bf16.msra.mxu2 %v1819_v59  ;;  %v2323_v28 = vld [vmem:[%s2665_s6 + $0x274] sm:$0xf0]  ;;  %v2042_v29 = vld [vmem:[%s2665_s6 + $0x2f0] sm:$0xf]  ;;  %v1858_v34 = vld [vmem:[%s2665_s6 + $0x180] sm:$0xf]  ;;  %v1795_v37 = vor.u32 %v2277_v26, %v1794_v24 }
  0x43   : > { %1223 = vmatpush.bf16.msra.mxu3 %v1883_v63  ;;  %v2339_v30 = vld [vmem:[%s2665_s6 + $0x2f4] sm:$0xf0]  ;;  %v2106_v31 = vld [vmem:[%s2665_s6 + $0x370] sm:$0xf]  ;;  %v2293_v35 = vld [vmem:[%s2665_s6 + $0x184] sm:$0xf0]  ;;  %v1979_v40 = vor.u32 %v2323_v28, %v1978_v27 }
  0x44   : > { %1185 = vmatpush.bf16.msra.mxu0 %v1683_v5  ;;  %v2355_v33 = vld [vmem:[%s2665_s6 + $0x374] sm:$0xf0]  ;;  %v2170_v38 = vld [vmem:[%s2665_s6 + $0x3f0] sm:$0xf]  ;;  %v2043_v41 = vor.u32 %v2339_v30, %v2042_v29  ;;  %v1970_v42 = vld [vmem:[%s2665_s6 + $0x260] sm:$0xf]  ;;  %v1859_v44 = vor.u32 %v2293_v35, %v1858_v34 }
  0x45   : > { %1198 = vmatpush.bf16.msra.mxu1 %v1747_v6  ;;  %v2371_v39 = vld [vmem:[%s2665_s6 + $0x3f4] sm:$0xf0]  ;;  %v2107_v43 = vor.u32 %v2355_v33, %v2106_v31  ;;  %v2321_v45 = vld [vmem:[%s2665_s6 + $0x264] sm:$0xf0]  ;;  %v2034_v46 = vld [vmem:[%s2665_s6 + $0x2e0] sm:$0xf] }
  0x46   : > { %1211 = vmatpush.bf16.msra.mxu2 %v1811_v7  ;;  %v2337_v47 = vld [vmem:[%s2665_s6 + $0x2e4] sm:$0xf0]  ;;  %v2171_v48 = vor.u32 %v2371_v39, %v2170_v38  ;;  %v2098_v49 = vld [vmem:[%s2665_s6 + $0x360] sm:$0xf]  ;;  %v1971_v53 = vor.u32 %v2321_v45, %v1970_v42  ;;  %v1962_v55 = vld [vmem:[%s2665_s6 + $0x250] sm:$0xf] }
  0x47   : > { %1224 = vmatpush.bf16.msra.mxu3 %v1875_v11  ;;  %v2353_v50 = vld [vmem:[%s2665_s6 + $0x364] sm:$0xf0]  ;;  %v2162_v51 = vld [vmem:[%s2665_s6 + $0x3e0] sm:$0xf]  ;;  %v2035_v54 = vor.u32 %v2337_v47, %v2034_v46  ;;  %v2319_v56 = vld [vmem:[%s2665_s6 + $0x254] sm:$0xf0] }
  0x48   : > { %1186 = vmatpush.bf16.msra.mxu0 %v1675_v17  ;;  %v2369_v52 = vld [vmem:[%s2665_s6 + $0x3e4] sm:$0xf0]  ;;  %v292_v57 = vld [vmem:[%s2683_s26] sm:$0xff]  ;;  %v2099_v58 = vor.u32 %v2353_v50, %v2098_v49  ;;  %v2026_v59 = vld [vmem:[%s2665_s6 + $0x2d0] sm:$0xf]  ;;  %v1963_v2 = vor.u32 %v2319_v56, %v1962_v55  ;;  %vm1417_vm0 = vcmask 1041408  }
  0x49   : > { %1199 = vmatpush.bf16.msra.mxu1 %v1739_v20  ;;  %v2335_v60 = vld [vmem:[%s2665_s6 + $0x2d4] sm:$0xf0]  ;;  %439 = vst [vmem:[#allocation1] ss:$9 sm:$0xff] %v292_v57  ;;  %v2163_v61 = vor.u32 %v2369_v52, %v2162_v51  ;;  %v2090_v62 = vld [vmem:[%s2665_s6 + $0x350] sm:$0xf] }
  0x4a   : > { %1212 = vmatpush.bf16.msra.mxu2 %v1803_v21  ;;  %v2351_v63 = vld [vmem:[%s2665_s6 + $0x354] sm:$0xf0]  ;;  %v2154_v0 = vld [vmem:[%s2665_s6 + $0x3d0] sm:$0xf]  ;;  %v2027_v3 = vor.u32 %v2335_v60, %v2026_v59  ;;  %v1954_v4 = vld [vmem:[%s2665_s6 + $0x240] sm:$0xf] }
  0x4b   : > { %1225 = vmatpush.bf16.msra.mxu3 %v1867_v25  ;;  %v2367_v1 = vld [vmem:[%s2665_s6 + $0x3d4] sm:$0xf0]  ;;  %v2091_v5 = vor.u32 %v2351_v63, %v2090_v62  ;;  %v2317_v6 = vld [vmem:[%s2665_s6 + $0x244] sm:$0xf0]  ;;  %v2018_v7 = vld [vmem:[%s2665_s6 + $0x2c0] sm:$0xf] }
  0x4c   : > { %1187 = vmatpush.bf16.msra.mxu0 %v1667_v32  ;;  %v2333_v8 = vld [vmem:[%s2665_s6 + $0x2c4] sm:$0xf0]  ;;  %v2155_v9 = vor.u32 %v2367_v1, %v2154_v0  ;;  %v2082_v10 = vld [vmem:[%s2665_s6 + $0x340] sm:$0xf]  ;;  %v1946_v14 = vld [vmem:[%s2665_s6 + $0x230] sm:$0xf]  ;;  %v1955_v16 = vor.u32 %v2317_v6, %v1954_v4 }
  0x4d   : > { %1200 = vmatpush.bf16.msra.mxu1 %v1731_v36  ;;  %v2349_v11 = vld [vmem:[%s2665_s6 + $0x344] sm:$0xf0]  ;;  %v2146_v12 = vld [vmem:[%s2665_s6 + $0x3c0] sm:$0xf]  ;;  %v2315_v15 = vld [vmem:[%s2665_s6 + $0x234] sm:$0xf0]  ;;  %v2019_v17 = vor.u32 %v2333_v8, %v2018_v7 }
  0x4e   : > { %1213 = vmatpush.bf16.msra.mxu2 %v1795_v37  ;;  %v2365_v13 = vld [vmem:[%s2665_s6 + $0x3c4] sm:$0xf0]  ;;  %v2083_v21 = vor.u32 %v2349_v11, %v2082_v10  ;;  %v2010_v22 = vld [vmem:[%s2665_s6 + $0x2b0] sm:$0xf]  ;;  %v2331_v23 = vld [vmem:[%s2665_s6 + $0x2b4] sm:$0xf0]  ;;  %v1947_v30 = vor.u32 %v2315_v15, %v1946_v14 }
  0x4f   : > { %1226 = vmatpush.bf16.msra.mxu3 %v1859_v44  ;;  %v2147_v25 = vor.u32 %v2365_v13, %v2146_v12  ;;  %v2074_v26 = vld [vmem:[%s2665_s6 + $0x330] sm:$0xf]  ;;  %v2347_v27 = vld [vmem:[%s2665_s6 + $0x334] sm:$0xf0]  ;;  %v2011_v31 = vor.u32 %v2331_v23, %v2010_v22  ;;  %v1938_v32 = vld [vmem:[%s2665_s6 + $0x220] sm:$0xf] }
  0x50   : > { %1232 = vmatpush.bf16.msrb.mxu0 %v1979_v40  ;;  %v2790_v18 = vld [vmem:[#allocation1 + $0x12] sm:$0xff]  ;;  %v2792_v19 = vld [vmem:[#allocation1] sm:$0xff]  ;;  %v2799_v24 = vld [vmem:[#allocation1 + $0x9] sm:$0xff]  ;;  %v2075_v33 = vor.u32 %v2347_v27, %v2074_v26  ;;  %p2240_p3 = scmp.ne.s32.totalorder %s2545_s15, 1 }
  0x51   : > { %1245 = vmatpush.bf16.msrb.mxu1 %v2043_v41  ;;  %v2794_v20 = vld [vmem:[#allocation1 + $0x1b] sm:$0xff]  ;;  %1188 = vmatmul.bf16.vlgmr.msra.gmra.mxu0 %v2792_v19  ;;  %v2363_v29 = vld [vmem:[%s2665_s6 + $0x3b4] sm:$0xf0]  ;;  %v2313_v34 = vld [vmem:[%s2665_s6 + $0x224] sm:$0xf0] }
  0x52   : > { %1258 = vmatpush.bf16.msrb.mxu2 %v2107_v43  ;;  %1227 = vmatmul.bf16.vlgmr.msra.gmra.mxu3 %v2794_v20  ;;  %v2138_v28 = vld [vmem:[%s2665_s6 + $0x3b0] sm:$0xf]  ;;  %v2002_v35 = vld [vmem:[%s2665_s6 + $0x2a0] sm:$0xf]  ;;  %v2329_v36 = vld [vmem:[%s2665_s6 + $0x2a4] sm:$0xf0]  ;;  %v1939_v44 = vor.u32 %v2313_v34, %v1938_v32 }
  0x53   : > { %1271 = vmatpush.bf16.msrb.mxu3 %v2171_v48  ;;  %1214 = vmatmul.bf16.vlgmr.msra.gmra.mxu2 %v2790_v18  ;;  %v2139_v37 = vor.u32 %v2363_v29, %v2138_v28  ;;  %v2066_v38 = vld [vmem:[%s2665_s6 + $0x320] sm:$0xf]  ;;  %v2345_v39 = vld [vmem:[%s2665_s6 + $0x324] sm:$0xf0]  ;;  %v1930_v42 = vld [vmem:[%s2665_s6 + $0x210] sm:$0xf]  ;;  %v2003_v45 = vor.u32 %v2329_v36, %v2002_v35 }
  0x54   : > { %1233 = vmatpush.bf16.msrb.mxu0 %v1971_v53  ;;  %1201 = vmatmul.bf16.vlgmr.msra.gmra.mxu1 %v2799_v24  ;;  %v2130_v40 = vld [vmem:[%s2665_s6 + $0x3a0] sm:$0xf]  ;;  %v2361_v41 = vld [vmem:[%s2665_s6 + $0x3a4] sm:$0xf0]  ;;  %v2311_v43 = vld [vmem:[%s2665_s6 + $0x214] sm:$0xf0]  ;;  %v2067_v49 = vor.u32 %v2345_v39, %v2066_v38 }
  0x55   : > { %1246 = vmatpush.bf16.msrb.mxu1 %v2035_v54  ;;  %v1994_v46 = vld [vmem:[%s2665_s6 + $0x290] sm:$0xf]  ;;  %v2327_v47 = vld [vmem:[%s2665_s6 + $0x294] sm:$0xf0]  ;;  %v2131_v53 = vor.u32 %v2361_v41, %v2130_v40  ;;  %v293_v55 = vld [vmem:[%s2683_s26 + $0x8] sm:$0x1]  ;;  %v1931_v59 = vor.u32 %v2311_v43, %v1930_v42 }
  0x56   : > { %1259 = vmatpush.bf16.msrb.mxu2 %v2099_v58  ;;  %v2058_v48 = vld [vmem:[%s2665_s6 + $0x310] sm:$0xf]  ;;  %v2343_v50 = vld [vmem:[%s2665_s6 + $0x314] sm:$0xf0]  ;;  %v2829_v56 = vld [vmem:[#allocation1 + $0x2d] sm:$0xff]  ;;  %v1995_v60 = vor.u32 %v2327_v47, %v1994_v46 }
  0x57   : > { %1272 = vmatpush.bf16.msrb.mxu3 %v2163_v61  ;;  %v2822_v51 = vld [vmem:[#allocation1 + $0x36] sm:$0xff]  ;;  %v2824_v52 = vld [vmem:[#allocation1 + $0x24] sm:$0xff]  ;;  %v1922_v61 = vld [vmem:[%s2665_s6 + $0x200] sm:$0xf]  ;;  %v2059_v0 = vor.u32 %v2343_v50, %v2058_v48 }
  0x58   : > { %1234 = vmatpush.bf16.msrb.mxu0 %v1963_v2  ;;  %v2826_v54 = vld [vmem:[#allocation1 + $0x3f] sm:$0xff]  ;;  %v2309_v62 = vld [vmem:[%s2665_s6 + $0x204] sm:$0xf0]  ;;  %v1986_v63 = vld [vmem:[%s2665_s6 + $0x280] sm:$0xf] }
  0x59   : > { %1247 = vmatpush.bf16.msrb.mxu1 %v2027_v3  ;;  %v2122_v57 = vld [vmem:[%s2665_s6 + $0x390] sm:$0xf]  ;;  %v2359_v58 = vld [vmem:[%s2665_s6 + $0x394] sm:$0xf0]  ;;  %449 = vst [vmem:[#allocation1] ss:$9 sm:$0xff] %v293_v55  ;;  %v1923_v11 = vor.u32 %v2309_v62, %v1922_v61 }
  0x5a   : > { %1260 = vmatpush.bf16.msrb.mxu2 %v2091_v5  ;;  %v2325_v1 = vld [vmem:[%s2665_s6 + $0x284] sm:$0xf0]  ;;  %v2050_v2 = vld [vmem:[%s2665_s6 + $0x300] sm:$0xf]  ;;  %v2123_v4 = vor.u32 %v2359_v58, %v2122_v57  ;;  %v2234_v5 = vld [vmem:[%s2665_s6 + $0x470] sm:$0xf] }
  0x5b   : > { %1273 = vmatpush.bf16.msrb.mxu3 %v2155_v9  ;;  %v2341_v3 = vld [vmem:[%s2665_s6 + $0x304] sm:$0xf0]  ;;  %v2387_v6 = vld [vmem:[%s2665_s6 + $0x474] sm:$0xf0]  ;;  %v2258_v7 = vld [vmem:[%s2665_s6 + $0x74] sm:$0xf]  ;;  %v1987_v12 = vor.u32 %v2325_v1, %v1986_v63 }
  0x5c   : > { %1235 = vmatpush.bf16.msrb.mxu0 %v1955_v16  ;;  %v1724_v8 = vld [vmem:[%s2665_s6 + $0x78] sm:$0xf0]  ;;  %v2274_v9 = vld [vmem:[%s2665_s6 + $0xf4] sm:$0xf]  ;;  %v2114_v13 = vld [vmem:[%s2665_s6 + $0x380] sm:$0xf]  ;;  %v2051_v15 = vor.u32 %v2341_v3, %v2050_v2  ;;  %v2235_v16 = vor.u32 %v2387_v6, %v2234_v5 }
  0x5d   : > { %1248 = vmatpush.bf16.msrb.mxu1 %v2019_v17  ;;  %v1788_v10 = vld [vmem:[%s2665_s6 + $0xf8] sm:$0xf0]  ;;  %v2357_v14 = vld [vmem:[%s2665_s6 + $0x384] sm:$0xf0]  ;;  %v2290_v17 = vld [vmem:[%s2665_s6 + $0x174] sm:$0xf]  ;;  %v1727_v22 = vor.u32 %v2258_v7, %v1724_v8 }
  0x5e   : > { %1261 = vmatpush.bf16.msrb.mxu2 %v2083_v21  ;;  %v1852_v21 = vld [vmem:[%s2665_s6 + $0x178] sm:$0xf0]  ;;  %v1791_v23 = vor.u32 %v2274_v9, %v1788_v10  ;;  %v2385_v26 = vld [vmem:[%s2665_s6 + $0x464] sm:$0xf0]  ;;  %v2256_v27 = vld [vmem:[%s2665_s6 + $0x64] sm:$0xf]  ;;  %v2115_v28 = vor.u32 %v2357_v14, %v2114_v13 }
  0x5f   : > { %1274 = vmatpush.bf16.msrb.mxu3 %v2147_v25  ;;  %v2226_v25 = vld [vmem:[%s2665_s6 + $0x460] sm:$0xf]  ;;  %v1716_v29 = vld [vmem:[%s2665_s6 + $0x68] sm:$0xf0]  ;;  %v1855_v32 = vor.u32 %v2290_v17, %v1852_v21  ;;  %v2288_v34 = vld [vmem:[%s2665_s6 + $0x164] sm:$0xf] }
  0x60   : > { %1236 = vmatpush.bf16.msrb.mxu0 %v1947_v30  ;;  %v2272_v30 = vld [vmem:[%s2665_s6 + $0xe4] sm:$0xf]  ;;  %v1844_v35 = vld [vmem:[%s2665_s6 + $0x168] sm:$0xf0]  ;;  %v1719_v36 = vor.u32 %v2256_v27, %v1716_v29  ;;  %v2218_v38 = vld [vmem:[%s2665_s6 + $0x450] sm:$0xf] }
  0x61   : > { %1249 = vmatpush.bf16.msrb.mxu1 %v2011_v31  ;;  %v1780_v31 = vld [vmem:[%s2665_s6 + $0xe8] sm:$0xf0]  ;;  %v2383_v39 = vld [vmem:[%s2665_s6 + $0x454] sm:$0xf0]  ;;  %v2254_v40 = vld [vmem:[%s2665_s6 + $0x54] sm:$0xf] }
  0x62   : > { %1262 = vmatpush.bf16.msrb.mxu2 %v2075_v33  ;;  %v2227_v33 = vor.u32 %v2385_v26, %v2226_v25  ;;  %v1708_v41 = vld [vmem:[%s2665_s6 + $0x58] sm:$0xf0]  ;;  %v2270_v42 = vld [vmem:[%s2665_s6 + $0xd4] sm:$0xf]  ;;  %v2210_v50 = vld [vmem:[%s2665_s6 + $0x440] sm:$0xf] }
  0x63   : > { %1275 = vmatpush.bf16.msrb.mxu3 %v2139_v37  ;;  %v1783_v37 = vor.u32 %v2272_v30, %v1780_v31  ;;  %v1772_v43 = vld [vmem:[%s2665_s6 + $0xd8] sm:$0xf0]  ;;  %v2286_v46 = vld [vmem:[%s2665_s6 + $0x154] sm:$0xf]  ;;  %v1711_v48 = vor.u32 %v2254_v40, %v1708_v41  ;;  %v2252_v55 = vld [vmem:[%s2665_s6 + $0x44] sm:$0xf] }
  0x64   : > { %1237 = vmatpush.bf16.msrb.mxu0 %v1939_v44  ;;  %v1847_v44 = vor.u32 %v2288_v34, %v1844_v35  ;;  %v1836_v47 = vld [vmem:[%s2665_s6 + $0x158] sm:$0xf0]  ;;  %v1700_v57 = vld [vmem:[%s2665_s6 + $0x48] sm:$0xf0]  ;;  %v2268_v58 = vld [vmem:[%s2665_s6 + $0xc4] sm:$0xf] }
  0x65   : > { %1250 = vmatpush.bf16.msrb.mxu1 %v2003_v45  ;;  %v2219_v45 = vor.u32 %v2383_v39, %v2218_v38  ;;  %v2284_v62 = vld [vmem:[%s2665_s6 + $0x144] sm:$0xf]  ;;  %v1828_v63 = vld [vmem:[%s2665_s6 + $0x148] sm:$0xf0]  ;;  %v2202_v2 = vld [vmem:[%s2665_s6 + $0x430] sm:$0xf] }
  0x66   : > { %1263 = vmatpush.bf16.msrb.mxu2 %v2067_v49  ;;  %v1775_v49 = vor.u32 %v2270_v42, %v1772_v43  ;;  %v2379_v3 = vld [vmem:[%s2665_s6 + $0x434] sm:$0xf0]  ;;  %v1692_v5 = vld [vmem:[%s2665_s6 + $0x38] sm:$0xf0]  ;;  %v2266_v6 = vld [vmem:[%s2665_s6 + $0xb4] sm:$0xf]  ;;  %v1831_v8 = vor.u32 %v2284_v62, %v1828_v63 }
  0x67   : > { %1276 = vmatpush.bf16.msrb.mxu3 %v2131_v53  ;;  %v2381_v53 = vld [vmem:[%s2665_s6 + $0x444] sm:$0xf0]  ;;  %v1756_v7 = vld [vmem:[%s2665_s6 + $0xb8] sm:$0xf0]  ;;  %v2203_v9 = vor.u32 %v2379_v3, %v2202_v2  ;;  %v2282_v10 = vld [vmem:[%s2665_s6 + $0x134] sm:$0xf] }
  0x68   : > { %1238 = vmatpush.bf16.msrb.mxu0 %v1931_v59  ;;  %v1764_v59 = vld [vmem:[%s2665_s6 + $0xc8] sm:$0xf0]  ;;  %v2211_v61 = vor.u32 %v2381_v53, %v2210_v50  ;;  %v1759_v13 = vor.u32 %v2266_v6, %v1756_v7  ;;  %v2194_v14 = vld [vmem:[%s2665_s6 + $0x420] sm:$0xf]  ;;  %v2264_v21 = vld [vmem:[%s2665_s6 + $0xa4] sm:$0xf] }
  0x69   : > { %1251 = vmatpush.bf16.msrb.mxu1 %v1995_v60  ;;  %v1839_v60 = vor.u32 %v2286_v46, %v1836_v47  ;;  %v1767_v1 = vor.u32 %v2268_v58, %v1764_v59  ;;  %v1684_v17 = vld [vmem:[%s2665_s6 + $0x28] sm:$0xf0]  ;;  %v2280_v26 = vld [vmem:[%s2665_s6 + $0x124] sm:$0xf]  ;;  %v2186_v30 = vld [vmem:[%s2665_s6 + $0x410] sm:$0xf] }
  0x6a   : > { %1264 = vmatpush.bf16.msrb.mxu2 %v2059_v0  ;;  %v1703_v0 = vor.u32 %v2252_v55, %v1700_v57  ;;  %v1812_v27 = vld [vmem:[%s2665_s6 + $0x128] sm:$0xf0]  ;;  %v2375_v31 = vld [vmem:[%s2665_s6 + $0x414] sm:$0xf0]  ;;  %v2262_v34 = vld [vmem:[%s2665_s6 + $0x94] sm:$0xf] }
  0x6b   : > { %1277 = vmatpush.bf16.msrb.mxu3 %v2123_v4  ;;  %v2250_v4 = vld [vmem:[%s2665_s6 + $0x34] sm:$0xf]  ;;  %v1740_v35 = vld [vmem:[%s2665_s6 + $0x98] sm:$0xf0]  ;;  %v2178_v40 = vld [vmem:[%s2665_s6 + $0x400] sm:$0xf] }
  0x6c   : > { %1239 = vmatpush.bf16.msrb.mxu0 %v1923_v11  ;;  %v1820_v11 = vld [vmem:[%s2665_s6 + $0x138] sm:$0xf0]  ;;  %v2278_v38 = vld [vmem:[%s2665_s6 + $0x114] sm:$0xf]  ;;  %v1743_v42 = vor.u32 %v2262_v34, %v1740_v35  ;;  %v2373_v43 = vld [vmem:[%s2665_s6 + $0x404] sm:$0xf0] }
  0x6d   : > { %1252 = vmatpush.bf16.msrb.mxu1 %v1987_v12  ;;  %v1695_v12 = vor.u32 %v2250_v4, %v1692_v5  ;;  %v1804_v39 = vld [vmem:[%s2665_s6 + $0x118] sm:$0xf0]  ;;  %v2260_v46 = vld [vmem:[%s2665_s6 + $0x84] sm:$0xf]  ;;  %v1732_v47 = vld [vmem:[%s2665_s6 + $0x88] sm:$0xf0]  ;;  %v2179_v57 = vor.u32 %v2373_v43, %v2178_v40 }
  0x6e   : > { %1265 = vmatpush.bf16.msrb.mxu2 %v2051_v15  ;;  %v2377_v15 = vld [vmem:[%s2665_s6 + $0x424] sm:$0xf0]  ;;  %v1916_v50 = vld [vmem:[%s2665_s6 + $0x1f8] sm:$0xf0]  ;;  %v2322_v53 = vld [vmem:[%s2665_s6 + $0x274] sm:$0xf] }
  0x6f   : > { %1278 = vmatpush.bf16.msrb.mxu3 %v2115_v28  ;;  %1240 = vmatmul.bf16.vlgmr.msrb.gmra.mxu0 %v2824_v52  ;;  %v2195_v25 = vor.u32 %v2377_v15, %v2194_v14  ;;  %v1980_v55 = vld [vmem:[%s2665_s6 + $0x278] sm:$0xf0]  ;;  %v2338_v58 = vld [vmem:[%s2665_s6 + $0x2f4] sm:$0xf]  ;;  %v2276_v62 = vld [vmem:[%s2665_s6 + $0x104] sm:$0xf] }
  0x70   : > { %1284 = vmatpush.bf16.msra.mxu0 %v2235_v16  ;;  %1253 = vmatmul.bf16.vlgmr.msrb.gmra.mxu1 %v2829_v56  ;;  %v2248_v16 = vld [vmem:[%s2665_s6 + $0x24] sm:$0xf]  ;;  %v2044_v59 = vld [vmem:[%s2665_s6 + $0x2f8] sm:$0xf0]  ;;  %v1796_v63 = vld [vmem:[%s2665_s6 + $0x108] sm:$0xf0] }
  0x71   : > { %1297 = vmatpush.bf16.msra.mxu1 %v1727_v22  ;;  %1266 = vmatmul.bf16.vlgmr.msrb.gmra.mxu2 %v2822_v51  ;;  %v1748_v22 = vld [vmem:[%s2665_s6 + $0xa8] sm:$0xf0]  ;;  %v1687_v28 = vor.u32 %v2248_v16, %v1684_v17  ;;  %v2354_v2 = vld [vmem:[%s2665_s6 + $0x374] sm:$0xf]  ;;  %v2108_v3 = vld [vmem:[%s2665_s6 + $0x378] sm:$0xf0]  ;;  %v2047_v5 = vor.u32 %v2338_v58, %v2044_v59 }
  0x72   : > { %1310 = vmatpush.bf16.msra.mxu2 %v1791_v23  ;;  %1279 = vmatmul.bf16.vlgmr.msrb.gmra.mxu3 %v2826_v54  ;;  %v1823_v23 = vor.u32 %v2282_v10, %v1820_v11  ;;  %v1751_v29 = vor.u32 %v2264_v21, %v1748_v22  ;;  %v2304_v4 = vld [vmem:[%s2665_s6 + $0x1e4] sm:$0xf]  ;;  %v1908_v6 = vld [vmem:[%s2665_s6 + $0x1e8] sm:$0xf0]  ;;  %v1799_v10 = vor.u32 %v2276_v62, %v1796_v63  ;;  %v2302_v21 = vld [vmem:[%s2665_s6 + $0x1d4] sm:$0xf] }
  0x73   : > { %1323 = vmatpush.bf16.msra.mxu3 %v1855_v32  ;;  %v2246_v32 = vld [vmem:[%s2665_s6 + $0x14] sm:$0xf]  ;;  %v2320_v7 = vld [vmem:[%s2665_s6 + $0x264] sm:$0xf]  ;;  %v1911_v14 = vor.u32 %v2304_v4, %v1908_v6  ;;  %v2100_v17 = vld [vmem:[%s2665_s6 + $0x368] sm:$0xf0] }
  0x74   : > { %1285 = vmatpush.bf16.msra.mxu0 %v2227_v33  ;;  %v1676_v33 = vld [vmem:[%s2665_s6 + $0x18] sm:$0xf0]  ;;  %v2336_v11 = vld [vmem:[%s2665_s6 + $0x2e4] sm:$0xf]  ;;  %v2084_v43 = vld [vmem:[%s2665_s6 + $0x348] sm:$0xf0] }
  0x75   : > { %1298 = vmatpush.bf16.msra.mxu1 %v1719_v36  ;;  %v1815_v36 = vor.u32 %v2280_v26, %v1812_v27  ;;  %v1679_v41 = vor.u32 %v2246_v32, %v1676_v33  ;;  %v2352_v16 = vld [vmem:[%s2665_s6 + $0x364] sm:$0xf]  ;;  %v1964_v26 = vld [vmem:[%s2665_s6 + $0x258] sm:$0xf0]  ;;  %v2334_v27 = vld [vmem:[%s2665_s6 + $0x2d4] sm:$0xf] }
  0x76   : > { %1311 = vmatpush.bf16.msra.mxu2 %v1783_v37  ;;  %v2187_v37 = vor.u32 %v2375_v31, %v2186_v30  ;;  %v2350_v32 = vld [vmem:[%s2665_s6 + $0x354] sm:$0xf]  ;;  %v2092_v33 = vld [vmem:[%s2665_s6 + $0x358] sm:$0xf0]  ;;  %v2300_v34 = vld [vmem:[%s2665_s6 + $0x1c4] sm:$0xf] }
  0x77   : > { %1324 = vmatpush.bf16.msra.mxu3 %v1847_v44  ;;  %v2244_v44 = vld [vmem:[%s2665_s6 + $0x4] sm:$0xf]  ;;  %v2076_v58 = vld [vmem:[%s2665_s6 + $0x338] sm:$0xf0]  ;;  %v1940_v63 = vld [vmem:[%s2665_s6 + $0x228] sm:$0xf0] }
  0x78   : > { %1286 = vmatpush.bf16.msra.mxu0 %v2219_v45  ;;  %v1668_v45 = vld [vmem:[%s2665_s6 + $0x8] sm:$0xf0]  ;;  %v2296_v59 = vld [vmem:[%s2665_s6 + $0x1a4] sm:$0xf] }
  0x79   : > { %1299 = vmatpush.bf16.msra.mxu1 %v1711_v48  ;;  %v2306_v48 = vld [vmem:[%s2665_s6 + $0x1f4] sm:$0xf]  ;;  %v2312_v62 = vld [vmem:[%s2665_s6 + $0x224] sm:$0xf]  ;;  %v2068_v6 = vld [vmem:[%s2665_s6 + $0x328] sm:$0xf0] }
  0x7a   : > { %1312 = vmatpush.bf16.msra.mxu2 %v1775_v49  ;;  %v1807_v49 = vor.u32 %v2278_v38, %v1804_v39  ;;  %v2020_v38 = vld [vmem:[%s2665_s6 + $0x2c8] sm:$0xf0]  ;;  %v2095_v39 = vor.u32 %v2350_v32, %v2092_v33  ;;  %v1943_v4 = vor.u32 %v2312_v62, %v1940_v63  ;;  %v2172_v32 = vld [vmem:[%s2665_s6 + $0x3f8] sm:$0xf0]  ;;  %v2378_v62 = vld [vmem:[%s2665_s6 + $0x434] sm:$0xf] }
  0x7b   : > { %1325 = vmatpush.bf16.msra.mxu3 %v1839_v60  ;;  %v1671_v60 = vor.u32 %v2244_v44, %v1668_v45  ;;  %v2298_v44 = vld [vmem:[%s2665_s6 + $0x1b4] sm:$0xf] }
  0x7c   : > { %1287 = vmatpush.bf16.msra.mxu0 %v2211_v61  ;;  %v1735_v61 = vor.u32 %v2260_v46, %v1732_v47  ;;  %v2314_v46 = vld [vmem:[%s2665_s6 + $0x234] sm:$0xf]  ;;  %v1948_v47 = vld [vmem:[%s2665_s6 + $0x238] sm:$0xf0] }
  0x7d   : > { %1300 = vmatpush.bf16.msra.mxu1 %v1703_v0  ;;  %v1919_v0 = vor.u32 %v2306_v48, %v1916_v50  ;;  %v2330_v48 = vld [vmem:[%s2665_s6 + $0x2b4] sm:$0xf] }
  0x7e   : > { %1313 = vmatpush.bf16.msra.mxu2 %v1767_v1  ;;  %v1983_v1 = vor.u32 %v2322_v53, %v1980_v55  ;;  %v1951_v55 = vor.u32 %v2314_v46, %v1948_v47  ;;  %v2366_v47 = vld [vmem:[%s2665_s6 + $0x3d4] sm:$0xf] }
  0x7f   : > { %1326 = vmatpush.bf16.msra.mxu3 %v1831_v8  ;;  %v1972_v8 = vld [vmem:[%s2665_s6 + $0x268] sm:$0xf0] }
  0x80   : > { %1288 = vmatpush.bf16.msra.mxu0 %v2203_v9  ;;  %v2921_v9 = vld [vmem:[#allocation1] sm:$0xff]  ;;  %v1975_v15 = vor.u32 %v2320_v7, %v1972_v8 }
  0x81   : > { %1301 = vmatpush.bf16.msra.mxu1 %v1695_v12  ;;  %v2036_v12 = vld [vmem:[%s2665_s6 + $0x2e8] sm:$0xf0]  ;;  %v2294_v7 = vld [vmem:[%s2665_s6 + $0x194] sm:$0xf] }
  0x82   : > { %1314 = vmatpush.bf16.msra.mxu2 %v1759_v13  ;;  %v2111_v13 = vor.u32 %v2354_v2, %v2108_v3  ;;  %v2039_v22 = vor.u32 %v2336_v11, %v2036_v12  ;;  %v2310_v11 = vld [vmem:[%s2665_s6 + $0x214] sm:$0xf]  ;;  %v1932_v12 = vld [vmem:[%s2665_s6 + $0x218] sm:$0xf0] }
  0x83   : > { %1327 = vmatpush.bf16.msra.mxu3 %v1823_v23  ;;  %v1900_v23 = vld [vmem:[%s2665_s6 + $0x1d8] sm:$0xf0] }
  0x84   : > { %1289 = vmatpush.bf16.msra.mxu0 %v2195_v25  ;;  %v2318_v25 = vld [vmem:[%s2665_s6 + $0x254] sm:$0xf]  ;;  %v1903_v30 = vor.u32 %v2302_v21, %v1900_v23  ;;  %v1935_v21 = vor.u32 %v2310_v11, %v1932_v12  ;;  %v2292_v23 = vld [vmem:[%s2665_s6 + $0x184] sm:$0xf]  ;;  %v2188_v11 = vld [vmem:[%s2665_s6 + $0x418] sm:$0xf0] }
  0x85   : > { %1302 = vmatpush.bf16.msra.mxu1 %v1687_v28  ;;  %v2028_v28 = vld [vmem:[%s2665_s6 + $0x2d8] sm:$0xf0]  ;;  %v1967_v31 = vor.u32 %v2318_v25, %v1964_v26  ;;  %v1860_v25 = vld [vmem:[%s2665_s6 + $0x188] sm:$0xf0] }
  0x86   : > { %1315 = vmatpush.bf16.msra.mxu2 %v1751_v29  ;;  %v2103_v29 = vor.u32 %v2352_v16, %v2100_v17  ;;  %v2031_v35 = vor.u32 %v2334_v27, %v2028_v28  ;;  %v2342_v16 = vld [vmem:[%s2665_s6 + $0x314] sm:$0xf]  ;;  %v2308_v27 = vld [vmem:[%s2665_s6 + $0x204] sm:$0xf]  ;;  %v1924_v28 = vld [vmem:[%s2665_s6 + $0x208] sm:$0xf0] }
  0x87   : > { %1328 = vmatpush.bf16.msra.mxu3 %v1815_v36  ;;  %v1892_v36 = vld [vmem:[%s2665_s6 + $0x1c8] sm:$0xf0] }
  0x88   : > { %1290 = vmatpush.bf16.msra.mxu0 %v2187_v37  ;;  %v1956_v37 = vld [vmem:[%s2665_s6 + $0x248] sm:$0xf0]  ;;  %v1895_v40 = vor.u32 %v2300_v34, %v1892_v36  ;;  %v2386_v34 = vld [vmem:[%s2665_s6 + $0x474] sm:$0xf]  ;;  %v1863_v36 = vor.u32 %v2292_v23, %v1860_v25 }
  0x89   : > { %1303 = vmatpush.bf16.msra.mxu1 %v1679_v41 }
  0x8a   : > { %1316 = vmatpush.bf16.msra.mxu2 %v1743_v42  ;;  %v2348_v42 = vld [vmem:[%s2665_s6 + $0x344] sm:$0xf] }
  0x8b   : > { %1329 = vmatpush.bf16.msra.mxu3 %v1807_v49  ;;  %v2012_v49 = vld [vmem:[%s2665_s6 + $0x2b8] sm:$0xf0]  ;;  %v2087_v50 = vor.u32 %v2348_v42, %v2084_v43  ;;  %v2164_v42 = vld [vmem:[%s2665_s6 + $0x3e8] sm:$0xf0] }
  0x8c   : > { %1291 = vmatpush.bf16.msra.mxu0 %v2179_v57  ;;  %v2346_v57 = vld [vmem:[%s2665_s6 + $0x334] sm:$0xf] }
  0x8d   : > { %1304 = vmatpush.bf16.msra.mxu1 %v1671_v60  ;;  %v2015_v60 = vor.u32 %v2330_v48, %v2012_v49  ;;  %v2079_v2 = vor.u32 %v2346_v57, %v2076_v58  ;;  %v2156_v48 = vld [vmem:[%s2665_s6 + $0x3d8] sm:$0xf0]  ;;  %v2382_v49 = vld [vmem:[%s2665_s6 + $0x454] sm:$0xf]  ;;  %v2364_v57 = vld [vmem:[%s2665_s6 + $0x3c4] sm:$0xf] }
  0x8e   : > { %1317 = vmatpush.bf16.msra.mxu2 %v1735_v61  ;;  %v1876_v61 = vld [vmem:[%s2665_s6 + $0x1a8] sm:$0xf0] }
  0x8f   : > { %1292 = vmatmul.bf16.vlgmr.msra.gmra.mxu0 %v2921_v9  ;;  %1330 = vmatpush.bf16.msra.mxu3 %v1799_v10  ;;  %v1879_v3 = vor.u32 %v2296_v59, %v1876_v61  ;;  %v1868_v10 = vld [vmem:[%s2665_s6 + $0x198] sm:$0xf0]  ;;  %v2148_v58 = vld [vmem:[%s2665_s6 + $0x3c8] sm:$0xf0] }
  0x90   : > { %1336 = vmatpush.bf16.msrb.mxu0 %v1919_v0  ;;  %1305 = vmatmul.bf16.vlgmr.msra.gmra.mxu1 %v2792_v19  ;;  %v2332_v19 = vld [vmem:[%s2665_s6 + $0x2c4] sm:$0xf]  ;;  %v1871_v17 = vor.u32 %v2294_v7, %v1868_v10  ;;  %v2212_v59 = vld [vmem:[%s2665_s6 + $0x448] sm:$0xf0]  ;;  %v2140_v61 = vld [vmem:[%s2665_s6 + $0x3b8] sm:$0xf0] }
  0x91   : > { %1349 = vmatpush.bf16.msrb.mxu1 %v1983_v1  ;;  %1318 = vmatmul.bf16.vlgmr.msra.gmra.mxu2 %v2799_v24  ;;  %v2316_v24 = vld [vmem:[%s2665_s6 + $0x244] sm:$0xf]  ;;  %v2023_v45 = vor.u32 %v2332_v19, %v2020_v38  ;;  %v2004_v1 = vld [vmem:[%s2665_s6 + $0x2a8] sm:$0xf0]  ;;  %v2358_v7 = vld [vmem:[%s2665_s6 + $0x394] sm:$0xf] }
  0x92   : > { %1362 = vmatpush.bf16.msrb.mxu2 %v2047_v5  ;;  %1331 = vmatmul.bf16.vlgmr.msra.gmra.mxu3 %v2790_v18  ;;  %v1959_v41 = vor.u32 %v2316_v24, %v1956_v37  ;;  %v1884_v18 = vld [vmem:[%s2665_s6 + $0x1b8] sm:$0xf0]  ;;  %v2328_v0 = vld [vmem:[%s2665_s6 + $0x2a4] sm:$0xf]  ;;  %v1927_v24 = vor.u32 %v2308_v27, %v1924_v28  ;;  %v2052_v19 = vld [vmem:[%s2665_s6 + $0x308] sm:$0xf0] }
  0x93   : > { %1375 = vmatpush.bf16.msrb.mxu3 %v2111_v13  ;;  %v1887_v53 = vor.u32 %v2298_v44, %v1884_v18  ;;  %v2344_v5 = vld [vmem:[%s2665_s6 + $0x324] sm:$0xf]  ;;  %v2007_v8 = vor.u32 %v2328_v0, %v2004_v1  ;;  %v2326_v13 = vld [vmem:[%s2665_s6 + $0x294] sm:$0xf] }
  0x94   : > { %1337 = vmatpush.bf16.msrb.mxu0 %v1911_v14  ;;  %v1996_v14 = vld [vmem:[%s2665_s6 + $0x298] sm:$0xf0]  ;;  %v2340_v37 = vld [vmem:[%s2665_s6 + $0x304] sm:$0xf]  ;;  %v2374_v10 = vld [vmem:[%s2665_s6 + $0x414] sm:$0xf] }
  0x95   : > { %1350 = vmatpush.bf16.msrb.mxu1 %v1975_v15  ;;  %v2071_v15 = vor.u32 %v2344_v5, %v2068_v6  ;;  %v1999_v26 = vor.u32 %v2326_v13, %v1996_v14  ;;  %v2055_v43 = vor.u32 %v2340_v37, %v2052_v19  ;;  %v2384_v44 = vld [vmem:[%s2665_s6 + $0x464] sm:$0xf]  ;;  %v2191_v13 = vor.u32 %v2374_v10, %v2188_v11 }
  0x96   : > { %1363 = vmatpush.bf16.msrb.mxu2 %v2039_v22  ;;  %v2060_v22 = vld [vmem:[%s2665_s6 + $0x318] sm:$0xf0]  ;;  %v2360_v1 = vld [vmem:[%s2665_s6 + $0x3a4] sm:$0xf] }
  0x97   : > { %1376 = vmatpush.bf16.msrb.mxu3 %v2103_v29  ;;  %v2324_v29 = vld [vmem:[%s2665_s6 + $0x284] sm:$0xf]  ;;  %v2063_v33 = vor.u32 %v2342_v16, %v2060_v22 }
  0x98   : > { %1338 = vmatpush.bf16.msrb.mxu0 %v1903_v30  ;;  %v1988_v30 = vld [vmem:[%s2665_s6 + $0x288] sm:$0xf0]  ;;  %v2356_v14 = vld [vmem:[%s2665_s6 + $0x384] sm:$0xf] }
  0x99   : > { %1351 = vmatpush.bf16.msrb.mxu1 %v1967_v31  ;;  %v2370_v31 = vld [vmem:[%s2665_s6 + $0x3f4] sm:$0xf]  ;;  %v1991_v38 = vor.u32 %v2324_v29, %v1988_v30  ;;  %v2372_v16 = vld [vmem:[%s2665_s6 + $0x404] sm:$0xf] }
  0x9a   : > { %1364 = vmatpush.bf16.msrb.mxu2 %v2031_v35  ;;  %v2236_v35 = vld [vmem:[%s2665_s6 + $0x478] sm:$0xf0] }
  0x9b   : > { %1377 = vmatpush.bf16.msrb.mxu3 %v2095_v39  ;;  %v2175_v39 = vor.u32 %v2370_v31, %v2172_v32 }
  0x9c   : > { %1339 = vmatpush.bf16.msrb.mxu0 %v1895_v40  ;;  %v2239_v40 = vor.u32 %v2386_v34, %v2236_v35 }
  0x9d   : > { %1352 = vmatpush.bf16.msrb.mxu1 %v1959_v41  ;;  %v2368_v41 = vld [vmem:[%s2665_s6 + $0x3e4] sm:$0xf] }
  0x9e   : > { %1365 = vmatpush.bf16.msrb.mxu2 %v2023_v45  ;;  %v2228_v45 = vld [vmem:[%s2665_s6 + $0x468] sm:$0xf0]  ;;  %v2167_v18 = vor.u32 %v2368_v41, %v2164_v42 }
  0x9f   : > { %1378 = vmatpush.bf16.msrb.mxu3 %v2087_v50  ;;  %v2231_v46 = vor.u32 %v2384_v44, %v2228_v45  ;;  %v2220_v50 = vld [vmem:[%s2665_s6 + $0x458] sm:$0xf0] }
  0xa0   : > { %1340 = vmatpush.bf16.msrb.mxu0 %v1887_v53  ;;  %v2159_v53 = vor.u32 %v2366_v47, %v2156_v48 }
  0xa1   : > { %1353 = vmatpush.bf16.msrb.mxu1 %v1951_v55  ;;  %v2223_v55 = vor.u32 %v2382_v49, %v2220_v50 }
  0xa2   : > { %1366 = vmatpush.bf16.msrb.mxu2 %v2015_v60  ;;  %v2362_v60 = vld [vmem:[%s2665_s6 + $0x3b4] sm:$0xf] }
  0xa3   : > { %1379 = vmatpush.bf16.msrb.mxu3 %v2079_v2  ;;  %v2143_v63 = vor.u32 %v2362_v60, %v2140_v61  ;;  %v2132_v2 = vld [vmem:[%s2665_s6 + $0x3a8] sm:$0xf0] }
  0xa4   : > { %1341 = vmatpush.bf16.msrb.mxu0 %v1879_v3  ;;  %v2376_v3 = vld [vmem:[%s2665_s6 + $0x424] sm:$0xf]  ;;  %v2135_v5 = vor.u32 %v2360_v1, %v2132_v2 }
  0xa5   : > { %1354 = vmatpush.bf16.msrb.mxu1 %v1943_v4  ;;  %v2196_v4 = vld [vmem:[%s2665_s6 + $0x428] sm:$0xf0] }
  0xa6   : > { %1367 = vmatpush.bf16.msrb.mxu2 %v2007_v8  ;;  %v2199_v6 = vor.u32 %v2376_v3, %v2196_v4  ;;  %v2124_v8 = vld [vmem:[%s2665_s6 + $0x398] sm:$0xf0] }
  0xa7   : > { %1380 = vmatpush.bf16.msrb.mxu3 %v2071_v15  ;;  %v2127_v12 = vor.u32 %v2358_v7, %v2124_v8  ;;  %v2116_v15 = vld [vmem:[%s2665_s6 + $0x388] sm:$0xf0] }
  0xa8   : > { %1342 = vmatpush.bf16.msrb.mxu0 %v1871_v17  ;;  %v2180_v17 = vld [vmem:[%s2665_s6 + $0x408] sm:$0xf0] }
  0xa9   : > { %1355 = vmatpush.bf16.msrb.mxu1 %v1935_v21  ;;  %v2119_v21 = vor.u32 %v2356_v14, %v2116_v15  ;;  %v2183_v22 = vor.u32 %v2372_v16, %v2180_v17 }
  0xaa   : > { %1368 = vmatpush.bf16.msrb.mxu2 %v1999_v26 }
  0xab   : > { %1381 = vmatpush.bf16.msrb.mxu3 %v2063_v33 }
  0xac   : > { %1343 = vmatpush.bf16.msrb.mxu0 %v1863_v36 }
  0xad   : > { %1356 = vmatpush.bf16.msrb.mxu1 %v1927_v24 }
  0xae   : > { %1369 = vmatpush.bf16.msrb.mxu2 %v1991_v38 }
  0xaf   : > { %1382 = vmatpush.bf16.msrb.mxu3 %v2055_v43  ;;  %1344 = vmatmul.bf16.vlgmr.msrb.gmra.mxu0 %v2794_v20  ;;  %v2380_v20 = vld [vmem:[%s2665_s6 + $0x444] sm:$0xf] }
  0xb0   : > { %1388 = vmatpush.bf16.msra.mxu0 %v2175_v39  ;;  %1357 = vmatmul.bf16.vlgmr.msrb.gmra.mxu1 %v2824_v52  ;;  %v2215_v52 = vor.u32 %v2380_v20, %v2212_v59 }
  0xb1   : > { %1401 = vmatpush.bf16.msra.mxu1 %v2239_v40  ;;  %1370 = vmatmul.bf16.vlgmr.msrb.gmra.mxu2 %v2829_v56  ;;  %v2151_v56 = vor.u32 %v2364_v57, %v2148_v58 }
  0xb2   : > { %1383 = vmatmul.bf16.vlgmr.msrb.gmra.mxu3 %v2822_v51  ;;  %v2204_v51 = vld [vmem:[%s2665_s6 + $0x438] sm:$0xf0] }
  0xb3   : > { %v2207_v0 = vor.u32 %v2378_v62, %v2204_v51 }
  0xb4   : > { %1389 = vmatpush.bf16.msra.mxu0 %v2167_v18 }
  0xb5   : > { %1402 = vmatpush.bf16.msra.mxu1 %v2231_v46 }
  0xb8   : > { %1390 = vmatpush.bf16.msra.mxu0 %v2159_v53 }
  0xb9   : > { %1403 = vmatpush.bf16.msra.mxu1 %v2223_v55 }
  0xbc   : > { %1391 = vmatpush.bf16.msra.mxu0 %v2151_v56 }
  0xbd   : > { %1404 = vmatpush.bf16.msra.mxu1 %v2215_v52 }
  0xc0   : > { %1392 = vmatpush.bf16.msra.mxu0 %v2143_v63 }
  0xc1   : > { %1405 = vmatpush.bf16.msra.mxu1 %v2207_v0 }
  0xc4   : > { %1393 = vmatpush.bf16.msra.mxu0 %v2135_v5  ;;  %v291_v5 = vld [vmem:[#allocation2] sm:$0xf] }
  0xc5   : > { %1406 = vmatpush.bf16.msra.mxu1 %v2199_v6 }
  0xc8   : > { %1394 = vmatpush.bf16.msra.mxu0 %v2127_v12 }
  0xc9   : > { %1407 = vmatpush.bf16.msra.mxu1 %v2191_v13 }
  0xcc   : > { %1395 = vmatpush.bf16.msra.mxu0 %v2119_v21 }
  0xcd   : > { %1408 = vmatpush.bf16.msra.mxu1 %v2183_v22 }
  0xce   : > { %v1189_v23 = vpop.f32.mrf.mxu0 }
  0xcf   : > { %1396 = vmatmul.bf16.vlgmr.msra.gmra.mxu0 %v2826_v54 }
  0xd0   : > { %1409 = vmatmul.bf16.vlgmr.msra.gmra.mxu1 %v2921_v9 }
  0xd1   : > { %v1202_v25 = vpop.f32.mrf.mxu1 }
  0xd2   : > { %v1203_v26 = vadd.f32 %v1202_v25, %v1189_v23 }
  0xd5   : > { %v1228_v29 = vpop.f32.mrf.mxu3 }
  0xd6   : > { %v1215_v27 = vpop.f32.mrf.mxu2  ;;  %v1191_v30 = vpop.f32.mrf.mxu0 }
  0xd7   : > { %v1216_v28 = vadd.f32 %v1215_v27, %v1203_v26 }
  0xd9   : > { %v1229_v31 = vadd.f32 %v1228_v29, %v1216_v28  ;;  %v1204_v32 = vpop.f32.mrf.mxu1 }
  0xdd   : > { %v1230_v34 = vpop.f32.mrf.mxu3 }
  0xde   : > { %v1217_v33 = vpop.f32.mrf.mxu2 }
  0xec   : > { %v1241_v35 = vpop.f32.mrf.mxu0 }
  0xed   : > { %v1242_v36 = vadd.f32 %v1241_v35, %v1229_v31  ;;  %v1254_v24 = vpop.f32.mrf.mxu1 }
  0xef   : > { %v1255_v37 = vadd.f32 %v1254_v24, %v1242_v36 }
  0xf4   : > { %v1267_v19 = vpop.f32.mrf.mxu2  ;;  %v1243_v54 = vpop.f32.mrf.mxu0 }
  0xf5   : > { %v1268_v38 = vadd.f32 %v1267_v19, %v1255_v37  ;;  %v1280_v39 = vpop.f32.mrf.mxu3  ;;  %v1256_v9 = vpop.f32.mrf.mxu1 }
  0xf7   : > { %v1281_v40 = vadd.f32 %v1280_v39, %v1268_v38 }
  0xfc   : > { %v1269_v41 = vpop.f32.mrf.mxu2 }
  0xfd   : > { %v1282_v42 = vpop.f32.mrf.mxu3 }
 0x10c   : > { %v1293_v43 = vpop.f32.mrf.mxu0 }
 0x10d   : > { %v1306_v44 = vpop.f32.mrf.mxu1  ;;  %v1294_v4 = vadd.f32 %v1293_v43, %v1281_v40 }
 0x114   : > { %v1319_v45 = vpop.f32.mrf.mxu2  ;;  %v1295_v18 = vpop.f32.mrf.mxu0 }
 0x115   : > { %v1332_v46 = vpop.f32.mrf.mxu3  ;;  %v1308_v47 = vpop.f32.mrf.mxu1  ;;  %v1320_v57 = vadd.f32 %v1319_v45, %v1306_v44 }
 0x117   : > { %v1333_v56 = vadd.f32 %v1332_v46, %v1320_v57 }
 0x11c   : > { %v1321_v48 = vpop.f32.mrf.mxu2 }
 0x11d   : > { %v1334_v49 = vpop.f32.mrf.mxu3 }
 0x12c   : > { %v1345_v50 = vpop.f32.mrf.mxu0 }
 0x12d   : > { %v1358_v53 = vpop.f32.mrf.mxu1  ;;  %v1346_v60 = vadd.f32 %v1345_v50, %v1333_v56 }
 0x12f   : > { %v1359_v62 = vadd.f32 %v1358_v53, %v1346_v60 }
 0x134   : > { %v1371_v55 = vpop.f32.mrf.mxu2  ;;  %v1347_v58 = vpop.f32.mrf.mxu0 }
 0x135   : > { %v1384_v20 = vpop.f32.mrf.mxu3  ;;  %v1360_v59 = vpop.f32.mrf.mxu1  ;;  %v1372_v51 = vadd.f32 %v1371_v55, %v1359_v62 }
 0x137   : > { %v1385_v63 = vadd.f32 %v1384_v20, %v1372_v51 }
 0x13c   : > { %v1373_v52 = vpop.f32.mrf.mxu2 }
 0x13d   : > { %v1386_v61 = vpop.f32.mrf.mxu3 }
 0x14c   : > { %v1397_v0 = vpop.f32.mrf.mxu0 }
 0x14d   : > { %v1398_v1 = vadd.f32 %v1397_v0, %v1385_v63  ;;  %v1410_v2 = vpop.f32.mrf.mxu1 }
 0x14f   : > { %v1411_v3 = vadd.f32 %v1410_v2, %v1398_v1 }
 0x151   : > { %v1416_v6 = vrot.slane %v1411_v3, 6 }
 0x152   : > { %1425 = sbr.rel (%p2240_p3) target bundleno = 387 (0x183), region = 40 }
 0x153   : > { %v1418_v7 = vsel %vm1417_vm0, %v1294_v4, %v1416_v6 }
 0x154   : > { %v1420_v8 = vadd.f32 %v1418_v7, %v291_v5  ;;  %v1399_v10 = vpop.f32.mrf.mxu0 }
 0x155   : > { %v1412_v11 = vpop.f32.mrf.mxu1 }
 0x156   : > { %1421 = vst [vmem:[#allocation2] sm:$0xf] %v1420_v8 }
 0x157   : > { %v1442_v13 = vlaneseq  ;;  %vm1436_vm1 = vcmask 1040384  }
 0x159   : > { %v1443_v17 = vshrl.u32 %v1442_v13, 7 }
 0x15b   : > { %vm1446_vm2 = vcmp.lt.s32.totalorder %v1443_v17, 2 }
 0x15d   : > { %v1426_v12 = vld [vmem:[#allocation2] sm:$0xf] }
 0x15e   : > { %1428 = vst [vmem:[#allocation1] ss:$4 sm:$0xff] %v1426_v12 }
 0x165   : > { %v1429_v14 = vld.sshfl [vmem:[#allocation1] sm:$0xff pattern:$0x73625140]  ;;  %v1430_v15 = vld.sshfl [vmem:[#allocation1 + $0x8] sm:$0xff pattern:$0x73625140] }
 0x166   : > { %1447 = vst [vmem:[#allocation1] ss:$4 sm:$0xff] %v1426_v12  ;;  %v1433_v16 = vpack.c.bf16 %v1430_v15, %v1429_v14 }
 0x168   : > { %v1435_v21 = vrot.slane %v1433_v16, 3 }
 0x16a   : > { %v1439_v22 = vsel %vm1436_vm1, %v1433_v16, %v1435_v21 }
 0x16b   : > { %1441 = vst [vmem:[%s273_s9] sm:$0x3] %v1439_v22 }
 0x16d   : > { %v1448_v23 = vld.sshfl [vmem:[#allocation1] sm:$0xff pattern:$0x73625140]  ;;  %v1449_v25 = vld.sshfl [vmem:[#allocation1 + $0x8] sm:$0xff pattern:$0x73625140] }
 0x16e   : > { %v1452_v26 = vsel %vm1446_vm2, %v1448_v23, 0.0  ;;  %v1453_v27 = vsel %vm1446_vm2, %v1449_v25, 0.0 }
 0x16f   : > { %v1454_v28 = vsel %vm1417_vm0, %v1452_v26, 0.0  ;;  %v1461_v29 = vsel %vm1417_vm0, %v1453_v27, 0.0  ;;  %v1468_v30 = vmul.f32 %v1452_v26, %v1452_v26  ;;  %v1469_v31 = vmul.f32 %v1453_v27, %v1453_v27 }
 0x170   : > { %v1455_v32 = vrot.slane %v1454_v28, 4  ;;  %v1462_v33 = vrot.slane %v1461_v29, 4 }
 0x171   : > { %v1470_v34 = vsel %vm1417_vm0, %v1468_v30, 0.0  ;;  %v1477_v35 = vsel %vm1417_vm0, %v1469_v31, 0.0 }
 0x172   : > { %v1456_v36 = vadd.f32 %v1455_v32, %v1454_v28  ;;  %v1463_v24 = vadd.f32 %v1462_v33, %v1461_v29  ;;  %v1471_v37 = vrot.slane %v1470_v34, 4  ;;  %v1478_v19 = vrot.slane %v1477_v35, 4 }
 0x174   : > { %v1457_v38 = vrot.slane %v1456_v36, 2  ;;  %v1464_v54 = vrot.slane %v1463_v24, 2  ;;  %v1472_v39 = vadd.f32 %v1471_v37, %v1470_v34  ;;  %v1479_v9 = vadd.f32 %v1478_v19, %v1477_v35 }
 0x176   : > { %v1458_v40 = vadd.f32 %v1457_v38, %v1456_v36  ;;  %v1465_v41 = vadd.f32 %v1464_v54, %v1463_v24  ;;  %v1473_v42 = vrot.slane %v1472_v39, 2  ;;  %v1480_v43 = vrot.slane %v1479_v9, 2 }
 0x178   : > { %v1466_v44 = vrot.slane %v1465_v41, 1  ;;  %v1474_v45 = vadd.f32 %v1473_v42, %v1472_v39  ;;  %v1481_v18 = vadd.f32 %v1480_v43, %v1479_v9  ;;  %v1459_v46 = vrot.slane %v1458_v40, 1 }
 0x17a   : > { %v1475_v47 = vrot.slane %v1474_v45, 1  ;;  %v1482_v48 = vrot.slane %v1481_v18, 1  ;;  %v1467_v49 = vadd.f32 %v1466_v44, %v1465_v41  ;;  %v1460_v55 = vadd.f32 %v1459_v46, %v1458_v40 }
 0x17c   : > { %v1476_v50 = vadd.f32 %v1475_v47, %v1474_v45  ;;  %v1483_v53 = vadd.f32 %v1482_v48, %v1481_v18 }
 0x17e   : > { %v1485_v57 = vsel %vm1436_vm1, %v1467_v49, %v1483_v53  ;;  %v1484_v20 = vsel %vm1436_vm1, %v1460_v55, %v1476_v50 }
 0x17f   : > { %v1488_v58 = vrot.slane %v1485_v57, 6 }
 0x181   : > { %v1489_v59 = vsel %vm1417_vm0, %v1484_v20, %v1488_v58 }
 0x182   : > { %1491 = vst [vmem:[%s2688_s16] sm:$0xf] %v1489_v59 }
 0x183 PF: > { %s17_s19 = sadd.s32 1, %s2561_s19   ;;  %s3065_s23 = sld [smem:[#allocation6_spill]] }
 0x184   : > { %p14_p4 = scmp.ge.s32.totalorder %s17_s19, 6   ;;  %s3066_s12 = smov %s2537_s13 }
 0x185   : > { %s3067_s13 = smov %s2541_s14  ;;  %s3068_s14 = smov %s2654_s5 }
 0x186   : > { %s3069_s15 = smov %s2553_s17  ;;  %s3070_s16 = smov %s2557_s18 }
 0x187   : > { %s3071_s17 = smov %s3074_s21  ;;  %16 = sbr.rel (!%p14_p4) target bundleno = 5 (0x5), region = 91 }
 0x189   : > { %s3072_s18 = smov %s3065_s23 }
 0x18c   :  { %1545 = vsyncpa [#allocation4], 1 }
 0x18d   :  { %1547 = vsyncpa [#allocation4 + $0x1], 1 }

// kernel: resnet_backbone_forward.75
= control target key start
LH: loop header
LB: loop body
LE: loop exit
PB: predicated region body
PF: predicated region fallthrough
CT: control target
= control target key end

     0   :  { %vm28_vm0 = vcmask 1041408   ;;  %vm30_vm1 = vcmask 1045508   ;;  %vm32_vm2 = vcmask 1043456   ;;  %vm71_vm3 = vcmask 1040384   ;;  %s131_s0 = inlined_call_operand.vmem [shape: bf16[2,512], index: 0, kind: input, shape index: {}]   ;;  %s132_s2 = inlined_call_operand.vmem [shape: f32[1,512], index: 2, kind: input, shape index: {}]   ;;  %s133_s3 = inlined_call_operand.vmem [shape: f32[1,512], index: 3, kind: input, shape index: {}]   ;;  %s134_s1 = inlined_call_operand.vmem [shape: bf16[2,512], index: 1, kind: input, shape index: {}]   ;;  %s135_s4 = inlined_call_operand.vmem [shape: bf16[2,512], index: 4, kind: output, shape index: {}]  }
   0x1   :  { %v19_v0 = vld [vmem:[%s132_s2] sm:$0xf]  ;;  %vm75_vm4 = vcmask 1042434  }
   0x2   :  { %v36_v1 = vld [vmem:[%s133_s3] sm:$0xf]  ;;  %v21_v3 = vperm.slane %v19_v0, 0  ;;  %v22_v4 = vperm.slane %v19_v0, 1  ;;  %v23_v5 = vperm.slane %v19_v0, 2  ;;  %v24_v6 = vperm.slane %v19_v0, 3 }
   0x3   :  { %v17_v2 = vld [vmem:[%s131_s0] sm:$0xf]  ;;  %v38_v7 = vperm.slane %v36_v1, 0  ;;  %v39_v8 = vperm.slane %v36_v1, 1  ;;  %v40_v9 = vperm.slane %v36_v1, 2  ;;  %v41_v12 = vperm.slane %v36_v1, 3 }
   0x4   :  { %v25_v10 = vrot.slane %v22_v4, 6  ;;  %v26_v11 = vrot.slane %v23_v5, 4  ;;  %v18_v13 = vunpack.c.l.bf16 %v17_v2  ;;  %v27_v14 = vrot.slane %v24_v6, 2  ;;  %v50_v19 = vld [vmem:[%s134_s1] sm:$0xf] }
   0x5   :  { %v42_v15 = vrot.slane %v39_v8, 6  ;;  %v43_v16 = vrot.slane %v40_v9, 4  ;;  %v44_v18 = vrot.slane %v41_v12, 2  ;;  %v51_v26 = vunpack.c.l.bf16 %v50_v19 }
   0x6   :  { %v29_v17 = vsel %vm28_vm0, %v21_v3, %v25_v10  ;;  %v31_v20 = vsel %vm30_vm1, %v26_v11, %v27_v14 }
   0x7   :  { %v45_v21 = vsel %vm28_vm0, %v38_v7, %v42_v15  ;;  %v33_v22 = vsel %vm32_vm2, %v29_v17, %v31_v20  ;;  %v46_v23 = vsel %vm30_vm1, %v43_v16, %v44_v18 }
   0x8   :  { %v35_v24 = vmul.f32 %v33_v22, %v18_v13  ;;  %v47_v25 = vsel %vm32_vm2, %v45_v21, %v46_v23 }
   0xa   :  { %v49_v27 = vadd.f32 %v47_v25, %v35_v24 }
   0xc   :  { %v52_v28 = vadd.f32 %v51_v26, %v49_v27 }
   0xe   :  { %v53_v29 = vmax.f32 %v52_v28, 0.0 }
  0x10   :  { %55 = vst [vmem:[#allocation1] ss:$4 sm:$0xff] %v53_v29 }
  0x17   :  { %v56_v30 = vld.sshfl [vmem:[#allocation1] sm:$0xff pattern:$0x73625140]  ;;  %v57_v31 = vld.sshfl [vmem:[#allocation1 + $0x8] sm:$0xff pattern:$0x73625140] }
  0x18   :  { %v58_v32 = vld.sshfl [vmem:[#allocation1 + $0x10] sm:$0xff pattern:$0x73625140]  ;;  %v59_v33 = vld.sshfl [vmem:[#allocation1 + $0x18] sm:$0xff pattern:$0x73625140]  ;;  %v64_v34 = vpack.c.bf16 %v57_v31, %v56_v30 }
  0x19   :  { %v65_v35 = vpack.c.bf16 %v59_v33, %v58_v32 }
  0x1a   :  { %v68_v36 = vrot.slane %v64_v34, 3 }
  0x1b   :  { %v69_v37 = vrot.slane %v65_v35, 6  ;;  %v70_v38 = vrot.slane %v65_v35, 1 }
  0x1c   :  { %v74_v39 = vsel %vm71_vm3, %v64_v34, %v68_v36 }
  0x1d   :  { %v78_v40 = vsel %vm75_vm4, %v69_v37, %v70_v38 }
  0x1e   :  { %v79_v41 = vsel %vm28_vm0, %v74_v39, %v78_v40 }
  0x1f   :  { %81 = vst [vmem:[%s135_s4] sm:$0xf] %v79_v41 }

// kernel: resnet_backbone_forward.69
= control target key start
LH: loop header
LB: loop body
LE: loop exit
PB: predicated region body
PF: predicated region fallthrough
CT: control target
= control target key end

     0   :  { %9 = vsyncpa [#allocation4], 0  ;;  %s3777_s0 = inlined_call_operand.vmem [shape: bf16[2,4608], index: 0, kind: input, shape index: {}]   ;;  %s3778_s1 = inlined_call_operand.hbm [shape: bf16[4608,512], index: 1, kind: input, shape index: {}]   ;;  %s3779_s2 = inlined_call_operand.vmem [shape: bf16[2,512], index: 2, kind: output, shape index: {0}]   ;;  %s3780_s3 = inlined_call_operand.vmem [shape: f32[1,2,512], index: 3, kind: output, shape index: {1}]  }
   0x1   :  { %11 = vsyncpa [#allocation4 + $0x1], 0  ;;  %s3199_s12 = smov 0   ;;  %s3201_s13 = smov 0  }
   0x2   :  { %s3203_s14 = smov 0   ;;  %s3205_s15 = smov 0  }
   0x3   :  { %s3207_s16 = smov 0   ;;  %s3209_s17 = smov 0  }
   0x4   :  { %s3211_s18 = smov 0   ;;  %s3213_s19 = smov 0  }
   0x5 LB: > { %s2024_s20 = sadd.s32 4294967295, %s3173_s19   ;;  %s29_s21 = sadd.s32 1, %s3165_s17  ;;  %s3173_s19 = sphi %s3213_s19, %s17_s19   ;;  %s3169_s18 = sphi %s3211_s18, %s3792_s18   ;;  %s3165_s17 = sphi %s3209_s17, %s3791_s17   ;;  %s3161_s16 = sphi %s3207_s16, %s3790_s16   ;;  %s3157_s15 = sphi %s3205_s15, %s3789_s15   ;;  %s3153_s14 = sphi %s3203_s14, %s3788_s14   ;;  %s3149_s13 = sphi %s3201_s13, %s3787_s13   ;;  %s3145_s12 = sphi %s3199_s12, %s3786_s12  }
   0x6   : > { %p30_p0 = scmp.ge.s32.totalorder %s29_s21, 3  ;;  %s32_s22 = sadd.s32 1, %s3169_s18 }
   0x7   : > { %s73_s23 = sadd.s32 1, %s3153_s14  ;;  %p80_p1 = scmp.ne.s32.totalorder %s3153_s14, %s3149_s13 }
   0x8   : > { %s3794_s21 = smov (%p30_p0, %s29_s21), 0  ;;  %s3796_s22 = smov (!%p30_p0, %s32_s22), %s3169_s18 }
   0x9   : > { %s68_s24 = ssub.s32 %s3165_s17, %s3794_s21  ;;  %p81_p2 = scmp.eq.s32.totalorder %s3173_s19, 0 }
   0xa   : > { %p34_p3 = scmp.ge.s32.totalorder %s3796_s22, 2  ;;  %p86_p4 = scmp.ne.s32.totalorder %s3149_s13, %s3145_s12 }
   0xb   : > { %p3250_p5 = por %p81_p2, %p80_p1  ;;  %p87_p6 = scmp.eq.s32.totalorder %s2024_s20, 0 }
   0xc   : > { %s3798_s22 = smov (%p34_p3, %s3796_s22), 0  ;;  %p3008_p8 = scmp.lt.s32.totalorder %s3173_s19, 6 }
   0xd   : > { %3783 = sst [smem:[#allocation6_spill]] %s3798_s22  ;;  %p3256_p7 = por %p87_p6, %p86_p4 }
   0xe   : > { %s69_s27 = ssub.s32 %s3169_s18, %s3798_s22  ;;  %s178_s29 = sand.u32 1, %s3153_s14  }
   0xf   : > { %s70_s28 = sor.u32 %s69_s27, %s68_s24  ;;  %s3000_s30 = smul.u32 1536, %s178_s29 }
  0x10   : > { %p71_p9 = scmp.eq.s32.totalorder %s70_s28, 0  ;;  %s2028_s4 = sshll.u32 %s3169_s18, 1 }
  0x11   : > { %s2807_s6 = smul.u32 768, %s3165_s17  ;;  %s182_s7 = scalar_lea.vmem [#allocation3], %s3000_s30 }
  0x12   : > { %s3266_s5 = scalar_select %p71_p9, %s3153_s14, %s73_s23  }
  0x13   : > { %s193_s8 = sshll.u32 %s182_s7, 4  ;;  %p3005_p10 = pnand %p3008_p8, %p3250_p5  ;;  %s194_s8 = int_to_ptr.vmem [resolvable:$true] %s193_s8 }
  0x14   : > { %s188_s9 = sadd.s32 %s2807_s6, %s2028_s4  ;;  %s179_s27 = scalar_lea.sflag [#allocation4], %s178_s29 }
  0x15   : > { %s2030_s10 = sshll.u32 %s188_s9, 2  ;;  %s3175_s28 = smov 256  }
  0x16   : > { %s190_s20 = scalar_lea.hbm %s3778_s1, %s2030_s10  ;;  %s3176_s23 = smov 128  }
  0x17   : > { %s191_s24 = sshll.u32 %s190_s20, 4  ;;  %s3177_s22 = smov 8   ;;  %s192_s24 = int_to_ptr.hbm [resolvable:$true] %s191_s24 }
  0x18   : > { %3007 = dma.hbm_to_vmem [thread:$0]  (!%p3005_p10), %s192_s24, 24576, %s194_s8, %s179_s27, %s3175_s28, %s3176_s23, %s3177_s22  }
  0x19   : > { %p2031_p11 = scmp.ge.s32.totalorder %s3173_s19, 1  ;;  %p201_p12 = scmp.lt.s32.totalorder %s3173_s19, 7 }
  0x1b   : > { %p202_p13 = pnand %p2031_p11, %p201_p12 }
  0x1c   : > { %s207_s25 = sand.u32 (!%p202_p13), 1, %s3149_s13  }
  0x1d   : > { %205 = sbr.rel (%p202_p13) target bundleno = 427 (0x1ab), region = 28  ;;  %s208_s4 = scalar_lea.sflag (!%p202_p13), [#allocation4], %s207_s25 }
  0x1e   : > { %s3001_s30 = smul.u32 (!%p202_p13), 1536, %s207_s25 }
  0x20   : > { %s3277_s6 = scalar_lea.vmem (!%p202_p13), [#allocation3], %s3001_s30 }
  0x22   : > { %3140 = dma.done.wait (%p3256_p7), %s208_s4, 24576  }
  0x23   : > { %3142 = vsyncadd (%p3256_p7), %s208_s4, 4294942720  ;;  %s255_s29 = smul.u32 12, %s3157_s15  ;;  %s2032_s22 = sshll.u32 %s3161_s16, 1 }
  0x24   : > { %p269_p0 = scmp.lt.s32.totalorder %s2032_s22, 3  ;;  %p2035_p2 = scmp.ne.s32.totalorder %s3157_s15, 0 }
  0x25   : > { %p258_p1 = scmp.lt.s32.totalorder %s255_s29, 35 }
  0x26   : > { %s3800_s22 = smov (!%p269_p0, %s2032_s22), 3  ;;  %289 = sbr.rel (%p2035_p2) target bundleno = 45 (0x2d), region = 36 }
  0x27   : > { %s3802_s29 = smov (!%p258_p1, %s255_s29), 35  ;;  %s273_s9 = scalar_lea.vmem %s3779_s2, %s3800_s22 }
  0x28   : > { %s2034_s10 = sshll.u32 %s3800_s22, 1  ;;  %s3295_s26 = scalar_lea.vmem %s3777_s0, %s3802_s29 }
  0x29   : > { %s3300_s16 = scalar_lea.vmem %s3780_s3, %s2034_s10 }
  0x2b   : > { %v3178_v0 = vmov 0.0  }
  0x2c   : > { %290 = vst [vmem:[#allocation2] sm:$0xf] %v3178_v0 }
  0x2d PF: > { %v2094_v1 = vld [vmem:[%s3277_s6 + $0x70] sm:$0xf]  ;;  %v2823_v2 = vld [vmem:[%s3277_s6 + $0x74] sm:$0xf0]  ;;  %v2086_v12 = vld [vmem:[%s3277_s6 + $0x60] sm:$0xf] }
  0x2e   : > { %v2158_v3 = vld [vmem:[%s3277_s6 + $0xf0] sm:$0xf]  ;;  %v2095_v4 = vor.u32 %v2823_v2, %v2094_v1  ;;  %v2839_v5 = vld [vmem:[%s3277_s6 + $0xf4] sm:$0xf0]  ;;  %v2821_v14 = vld [vmem:[%s3277_s6 + $0x64] sm:$0xf0] }
  0x2f   : > { %v2222_v6 = vld [vmem:[%s3277_s6 + $0x170] sm:$0xf]  ;;  %v2855_v7 = vld [vmem:[%s3277_s6 + $0x174] sm:$0xf0]  ;;  %v2159_v8 = vor.u32 %v2839_v5, %v2158_v3  ;;  %v2150_v15 = vld [vmem:[%s3277_s6 + $0xe0] sm:$0xf]  ;;  %v2087_v17 = vor.u32 %v2821_v14, %v2086_v12 }
  0x30   : > { %v2223_v9 = vor.u32 %v2855_v7, %v2222_v6  ;;  %v2286_v10 = vld [vmem:[%s3277_s6 + $0x1f0] sm:$0xf]  ;;  %v2871_v11 = vld [vmem:[%s3277_s6 + $0x1f4] sm:$0xf0]  ;;  %1474 = vmatpush.bf16.msra.mxu0 %v2095_v4  ;;  %v2837_v16 = vld [vmem:[%s3277_s6 + $0xe4] sm:$0xf0] }
  0x31   : > { %v2287_v13 = vor.u32 %v2871_v11, %v2286_v10  ;;  %1487 = vmatpush.bf16.msra.mxu1 %v2159_v8  ;;  %v2151_v18 = vor.u32 %v2837_v16, %v2150_v15  ;;  %v2214_v19 = vld [vmem:[%s3277_s6 + $0x160] sm:$0xf]  ;;  %v2853_v20 = vld [vmem:[%s3277_s6 + $0x164] sm:$0xf0]  ;;  %v2078_v24 = vld [vmem:[%s3277_s6 + $0x50] sm:$0xf] }
  0x32   : > { %1500 = vmatpush.bf16.msra.mxu2 %v2223_v9  ;;  %v2278_v21 = vld [vmem:[%s3277_s6 + $0x1e0] sm:$0xf]  ;;  %v2215_v22 = vor.u32 %v2853_v20, %v2214_v19  ;;  %v2869_v23 = vld [vmem:[%s3277_s6 + $0x1e4] sm:$0xf0]  ;;  %v2819_v25 = vld [vmem:[%s3277_s6 + $0x54] sm:$0xf0] }
  0x33   : > { %1513 = vmatpush.bf16.msra.mxu3 %v2287_v13  ;;  %v2279_v26 = vor.u32 %v2869_v23, %v2278_v21  ;;  %v2142_v27 = vld [vmem:[%s3277_s6 + $0xd0] sm:$0xf]  ;;  %v2835_v28 = vld [vmem:[%s3277_s6 + $0xd4] sm:$0xf0]  ;;  %v2079_v30 = vor.u32 %v2819_v25, %v2078_v24  ;;  %v2070_v36 = vld [vmem:[%s3277_s6 + $0x40] sm:$0xf] }
  0x34   : > { %v2206_v29 = vld [vmem:[%s3277_s6 + $0x150] sm:$0xf]  ;;  %1475 = vmatpush.bf16.msra.mxu0 %v2087_v17  ;;  %v2851_v31 = vld [vmem:[%s3277_s6 + $0x154] sm:$0xf0]  ;;  %v2143_v34 = vor.u32 %v2835_v28, %v2142_v27  ;;  %v2817_v37 = vld [vmem:[%s3277_s6 + $0x44] sm:$0xf0] }
  0x35   : > { %v2270_v32 = vld [vmem:[%s3277_s6 + $0x1d0] sm:$0xf]  ;;  %v2867_v33 = vld [vmem:[%s3277_s6 + $0x1d4] sm:$0xf0]  ;;  %1488 = vmatpush.bf16.msra.mxu1 %v2151_v18  ;;  %v2207_v35 = vor.u32 %v2851_v31, %v2206_v29  ;;  %v2134_v38 = vld [vmem:[%s3277_s6 + $0xc0] sm:$0xf]  ;;  %v2071_v45 = vor.u32 %v2817_v37, %v2070_v36 }
  0x36   : > { %1501 = vmatpush.bf16.msra.mxu2 %v2215_v22  ;;  %v2271_v39 = vor.u32 %v2867_v33, %v2270_v32  ;;  %v2833_v40 = vld [vmem:[%s3277_s6 + $0xc4] sm:$0xf0]  ;;  %v2198_v41 = vld [vmem:[%s3277_s6 + $0x140] sm:$0xf]  ;;  %v2062_v48 = vld [vmem:[%s3277_s6 + $0x30] sm:$0xf] }
  0x37   : > { %1514 = vmatpush.bf16.msra.mxu3 %v2279_v26  ;;  %v2849_v42 = vld [vmem:[%s3277_s6 + $0x144] sm:$0xf0]  ;;  %v2262_v43 = vld [vmem:[%s3277_s6 + $0x1c0] sm:$0xf]  ;;  %v2135_v46 = vor.u32 %v2833_v40, %v2134_v38  ;;  %v2815_v49 = vld [vmem:[%s3277_s6 + $0x34] sm:$0xf0] }
  0x38   : > { %v2865_v44 = vld [vmem:[%s3277_s6 + $0x1c4] sm:$0xf0]  ;;  %1476 = vmatpush.bf16.msra.mxu0 %v2079_v30  ;;  %v2199_v47 = vor.u32 %v2849_v42, %v2198_v41  ;;  %v2126_v50 = vld [vmem:[%s3277_s6 + $0xb0] sm:$0xf]  ;;  %v2831_v52 = vld [vmem:[%s3277_s6 + $0xb4] sm:$0xf0]  ;;  %v2063_v57 = vor.u32 %v2815_v49, %v2062_v48 }
  0x39   : > { %1489 = vmatpush.bf16.msra.mxu1 %v2143_v34  ;;  %v2263_v51 = vor.u32 %v2865_v44, %v2262_v43  ;;  %v2190_v53 = vld [vmem:[%s3277_s6 + $0x130] sm:$0xf]  ;;  %v2847_v54 = vld [vmem:[%s3277_s6 + $0x134] sm:$0xf0]  ;;  %v2127_v58 = vor.u32 %v2831_v52, %v2126_v50  ;;  %v2054_v60 = vld [vmem:[%s3277_s6 + $0x20] sm:$0xf] }
  0x3a   : > { %1502 = vmatpush.bf16.msra.mxu2 %v2207_v35  ;;  %v2254_v55 = vld [vmem:[%s3277_s6 + $0x1b0] sm:$0xf]  ;;  %v2863_v56 = vld [vmem:[%s3277_s6 + $0x1b4] sm:$0xf0]  ;;  %v2191_v59 = vor.u32 %v2847_v54, %v2190_v53  ;;  %v2813_v61 = vld [vmem:[%s3277_s6 + $0x24] sm:$0xf0] }
  0x3b   : > { %1515 = vmatpush.bf16.msra.mxu3 %v2271_v39  ;;  %v2118_v62 = vld [vmem:[%s3277_s6 + $0xa0] sm:$0xf]  ;;  %v2255_v63 = vor.u32 %v2863_v56, %v2254_v55  ;;  %v2829_v0 = vld [vmem:[%s3277_s6 + $0xa4] sm:$0xf0]  ;;  %v2055_v5 = vor.u32 %v2813_v61, %v2054_v60  ;;  %v2046_v8 = vld [vmem:[%s3277_s6 + $0x10] sm:$0xf] }
  0x3c   : > { %1477 = vmatpush.bf16.msra.mxu0 %v2071_v45  ;;  %v2182_v1 = vld [vmem:[%s3277_s6 + $0x120] sm:$0xf]  ;;  %v2845_v2 = vld [vmem:[%s3277_s6 + $0x124] sm:$0xf0]  ;;  %v2119_v6 = vor.u32 %v2829_v0, %v2118_v62  ;;  %v2811_v9 = vld [vmem:[%s3277_s6 + $0x14] sm:$0xf0] }
  0x3d   : > { %1490 = vmatpush.bf16.msra.mxu1 %v2135_v46  ;;  %v2246_v3 = vld [vmem:[%s3277_s6 + $0x1a0] sm:$0xf]  ;;  %v2861_v4 = vld [vmem:[%s3277_s6 + $0x1a4] sm:$0xf0]  ;;  %v2183_v7 = vor.u32 %v2845_v2, %v2182_v1  ;;  %v2110_v10 = vld [vmem:[%s3277_s6 + $0x90] sm:$0xf]  ;;  %v2047_v17 = vor.u32 %v2811_v9, %v2046_v8 }
  0x3e   : > { %1503 = vmatpush.bf16.msra.mxu2 %v2199_v47  ;;  %v2247_v11 = vor.u32 %v2861_v4, %v2246_v3  ;;  %v2827_v12 = vld [vmem:[%s3277_s6 + $0x94] sm:$0xf0]  ;;  %v2174_v13 = vld [vmem:[%s3277_s6 + $0x110] sm:$0xf]  ;;  %v2038_v18 = vld [vmem:[%s3277_s6] sm:$0xf] }
  0x3f   : > { %1516 = vmatpush.bf16.msra.mxu3 %v2263_v51  ;;  %v2843_v14 = vld [vmem:[%s3277_s6 + $0x114] sm:$0xf0]  ;;  %v2238_v15 = vld [vmem:[%s3277_s6 + $0x190] sm:$0xf]  ;;  %v2809_v19 = vld [vmem:[%s3277_s6 + $0x4] sm:$0xf0]  ;;  %v2111_v20 = vor.u32 %v2827_v12, %v2110_v10 }
  0x40   : > { %1478 = vmatpush.bf16.msra.mxu0 %v2063_v57  ;;  %v2859_v16 = vld [vmem:[%s3277_s6 + $0x194] sm:$0xf0]  ;;  %v2175_v21 = vor.u32 %v2843_v14, %v2174_v13  ;;  %v2102_v22 = vld [vmem:[%s3277_s6 + $0x80] sm:$0xf]  ;;  %v2825_v23 = vld [vmem:[%s3277_s6 + $0x84] sm:$0xf0]  ;;  %v2039_v32 = vor.u32 %v2809_v19, %v2038_v18 }
  0x41   : > { %1491 = vmatpush.bf16.msra.mxu1 %v2127_v58  ;;  %v2166_v24 = vld [vmem:[%s3277_s6 + $0x100] sm:$0xf]  ;;  %v2239_v25 = vor.u32 %v2859_v16, %v2238_v15  ;;  %v2841_v26 = vld [vmem:[%s3277_s6 + $0x104] sm:$0xf0]  ;;  %v2350_v29 = vld [vmem:[%s3277_s6 + $0x270] sm:$0xf]  ;;  %v2103_v36 = vor.u32 %v2825_v23, %v2102_v22 }
  0x42   : > { %1504 = vmatpush.bf16.msra.mxu2 %v2191_v59  ;;  %v2230_v27 = vld [vmem:[%s3277_s6 + $0x180] sm:$0xf]  ;;  %v2857_v28 = vld [vmem:[%s3277_s6 + $0x184] sm:$0xf0]  ;;  %v2887_v30 = vld [vmem:[%s3277_s6 + $0x274] sm:$0xf0]  ;;  %v2167_v37 = vor.u32 %v2841_v26, %v2166_v24 }
  0x43   : > { %1517 = vmatpush.bf16.msra.mxu3 %v2255_v63  ;;  %v2414_v31 = vld [vmem:[%s3277_s6 + $0x2f0] sm:$0xf]  ;;  %v2903_v33 = vld [vmem:[%s3277_s6 + $0x2f4] sm:$0xf0]  ;;  %v2231_v40 = vor.u32 %v2857_v28, %v2230_v27  ;;  %v2351_v41 = vor.u32 %v2887_v30, %v2350_v29  ;;  %v2342_v44 = vld [vmem:[%s3277_s6 + $0x260] sm:$0xf] }
  0x44   : > { %1479 = vmatpush.bf16.msra.mxu0 %v2055_v5  ;;  %v2478_v34 = vld [vmem:[%s3277_s6 + $0x370] sm:$0xf]  ;;  %v2919_v35 = vld [vmem:[%s3277_s6 + $0x374] sm:$0xf0]  ;;  %v2415_v42 = vor.u32 %v2903_v33, %v2414_v31  ;;  %v2885_v45 = vld [vmem:[%s3277_s6 + $0x264] sm:$0xf0] }
  0x45   : > { %1492 = vmatpush.bf16.msra.mxu1 %v2119_v6  ;;  %v2542_v38 = vld [vmem:[%s3277_s6 + $0x3f0] sm:$0xf]  ;;  %v2935_v39 = vld [vmem:[%s3277_s6 + $0x3f4] sm:$0xf0]  ;;  %v2479_v43 = vor.u32 %v2919_v35, %v2478_v34  ;;  %v2406_v46 = vld [vmem:[%s3277_s6 + $0x2e0] sm:$0xf]  ;;  %v2343_v53 = vor.u32 %v2885_v45, %v2342_v44 }
  0x46   : > { %1505 = vmatpush.bf16.msra.mxu2 %v2183_v7  ;;  %v2543_v47 = vor.u32 %v2935_v39, %v2542_v38  ;;  %v2901_v48 = vld [vmem:[%s3277_s6 + $0x2e4] sm:$0xf0]  ;;  %v2470_v49 = vld [vmem:[%s3277_s6 + $0x360] sm:$0xf]  ;;  %v2334_v54 = vld [vmem:[%s3277_s6 + $0x250] sm:$0xf] }
  0x47   : > { %1518 = vmatpush.bf16.msra.mxu3 %v2247_v11  ;;  %v2917_v50 = vld [vmem:[%s3277_s6 + $0x364] sm:$0xf0]  ;;  %v2534_v51 = vld [vmem:[%s3277_s6 + $0x3e0] sm:$0xf]  ;;  %v2883_v55 = vld [vmem:[%s3277_s6 + $0x254] sm:$0xf0]  ;;  %v2407_v56 = vor.u32 %v2901_v48, %v2406_v46 }
  0x48   : > { %1480 = vmatpush.bf16.msra.mxu0 %v2047_v17  ;;  %v2933_v52 = vld [vmem:[%s3277_s6 + $0x3e4] sm:$0xf0]  ;;  %v2471_v57 = vor.u32 %v2917_v50, %v2470_v49  ;;  %v2398_v58 = vld [vmem:[%s3277_s6 + $0x2d0] sm:$0xf]  ;;  %v2899_v59 = vld [vmem:[%s3277_s6 + $0x2d4] sm:$0xf0]  ;;  %v2335_v2 = vor.u32 %v2883_v55, %v2334_v54 }
  0x49   : > { %1493 = vmatpush.bf16.msra.mxu1 %v2111_v20  ;;  %v292_v60 = vld [vmem:[%s3295_s26] sm:$0xff]  ;;  %v2535_v61 = vor.u32 %v2933_v52, %v2534_v51  ;;  %v2462_v62 = vld [vmem:[%s3277_s6 + $0x350] sm:$0xf]  ;;  %v2399_v3 = vor.u32 %v2899_v59, %v2398_v58  ;;  %v2326_v5 = vld [vmem:[%s3277_s6 + $0x240] sm:$0xf]  ;;  %vm1789_vm0 = vcmask 1041408  }
  0x4a   : > { %1506 = vmatpush.bf16.msra.mxu2 %v2175_v21  ;;  %v2915_v63 = vld [vmem:[%s3277_s6 + $0x354] sm:$0xf0]  ;;  %487 = vst [vmem:[#allocation1] ss:$9 sm:$0xff] %v292_v60  ;;  %v2526_v0 = vld [vmem:[%s3277_s6 + $0x3d0] sm:$0xf] }
  0x4b   : > { %1519 = vmatpush.bf16.msra.mxu3 %v2239_v25  ;;  %v2931_v1 = vld [vmem:[%s3277_s6 + $0x3d4] sm:$0xf0]  ;;  %v2463_v4 = vor.u32 %v2915_v63, %v2462_v62  ;;  %v2881_v6 = vld [vmem:[%s3277_s6 + $0x244] sm:$0xf0]  ;;  %v2390_v7 = vld [vmem:[%s3277_s6 + $0x2c0] sm:$0xf] }
  0x4c   : > { %1481 = vmatpush.bf16.msra.mxu0 %v2039_v32  ;;  %v2527_v8 = vor.u32 %v2931_v1, %v2526_v0  ;;  %v2897_v9 = vld [vmem:[%s3277_s6 + $0x2c4] sm:$0xf0]  ;;  %v2454_v10 = vld [vmem:[%s3277_s6 + $0x340] sm:$0xf]  ;;  %v2318_v14 = vld [vmem:[%s3277_s6 + $0x230] sm:$0xf]  ;;  %v2327_v15 = vor.u32 %v2881_v6, %v2326_v5 }
  0x4d   : > { %1494 = vmatpush.bf16.msra.mxu1 %v2103_v36  ;;  %v2913_v11 = vld [vmem:[%s3277_s6 + $0x344] sm:$0xf0]  ;;  %v2518_v12 = vld [vmem:[%s3277_s6 + $0x3c0] sm:$0xf]  ;;  %v2879_v16 = vld [vmem:[%s3277_s6 + $0x234] sm:$0xf0]  ;;  %v2391_v19 = vor.u32 %v2897_v9, %v2390_v7 }
  0x4e   : > { %1507 = vmatpush.bf16.msra.mxu2 %v2167_v37  ;;  %v2929_v13 = vld [vmem:[%s3277_s6 + $0x3c4] sm:$0xf0]  ;;  %v2382_v17 = vld [vmem:[%s3277_s6 + $0x2b0] sm:$0xf]  ;;  %v2895_v18 = vld [vmem:[%s3277_s6 + $0x2b4] sm:$0xf0]  ;;  %v2455_v20 = vor.u32 %v2913_v11, %v2454_v10  ;;  %v2319_v30 = vor.u32 %v2879_v16, %v2318_v14 }
  0x4f   : > { %1520 = vmatpush.bf16.msra.mxu3 %v2231_v40  ;;  %v2519_v24 = vor.u32 %v2929_v13, %v2518_v12  ;;  %v2446_v25 = vld [vmem:[%s3277_s6 + $0x330] sm:$0xf]  ;;  %v2911_v26 = vld [vmem:[%s3277_s6 + $0x334] sm:$0xf0]  ;;  %v2383_v31 = vor.u32 %v2895_v18, %v2382_v17  ;;  %v2310_v33 = vld [vmem:[%s3277_s6 + $0x220] sm:$0xf] }
  0x50   : > { %1526 = vmatpush.bf16.msrb.mxu0 %v2351_v41  ;;  %v2510_v28 = vld [vmem:[%s3277_s6 + $0x3b0] sm:$0xf]  ;;  %v2927_v29 = vld [vmem:[%s3277_s6 + $0x3b4] sm:$0xf0]  ;;  %v2447_v32 = vor.u32 %v2911_v26, %v2446_v25  ;;  %v2877_v34 = vld [vmem:[%s3277_s6 + $0x224] sm:$0xf0] }
  0x51   : > { %1539 = vmatpush.bf16.msrb.mxu1 %v2415_v42  ;;  %v3404_v21 = vld [vmem:[#allocation1 + $0x12] sm:$0xff]  ;;  %v3406_v22 = vld [vmem:[#allocation1] sm:$0xff]  ;;  %v3413_v27 = vld [vmem:[#allocation1 + $0x9] sm:$0xff]  ;;  %v2511_v36 = vor.u32 %v2927_v29, %v2510_v28  ;;  %v2311_v42 = vor.u32 %v2877_v34, %v2310_v33  ;;  %p2804_p3 = scmp.ne.s32.totalorder %s3157_s15, 2 }
  0x52   : > { %1552 = vmatpush.bf16.msrb.mxu2 %v2479_v43  ;;  %v3408_v23 = vld [vmem:[#allocation1 + $0x1b] sm:$0xff]  ;;  %1482 = vmatmul.bf16.vlgmr.msra.gmra.mxu0 %v3406_v22  ;;  %v2374_v35 = vld [vmem:[%s3277_s6 + $0x2a0] sm:$0xf]  ;;  %v2893_v37 = vld [vmem:[%s3277_s6 + $0x2a4] sm:$0xf0] }
  0x53   : > { %1565 = vmatpush.bf16.msrb.mxu3 %v2543_v47  ;;  %1508 = vmatmul.bf16.vlgmr.msra.gmra.mxu2 %v3404_v21  ;;  %v2438_v38 = vld [vmem:[%s3277_s6 + $0x320] sm:$0xf]  ;;  %v2909_v39 = vld [vmem:[%s3277_s6 + $0x324] sm:$0xf0]  ;;  %v2302_v43 = vld [vmem:[%s3277_s6 + $0x210] sm:$0xf]  ;;  %v2375_v44 = vor.u32 %v2893_v37, %v2374_v35 }
  0x54   : > { %1527 = vmatpush.bf16.msrb.mxu0 %v2343_v53  ;;  %1521 = vmatmul.bf16.vlgmr.msra.gmra.mxu3 %v3408_v23  ;;  %v2502_v40 = vld [vmem:[%s3277_s6 + $0x3a0] sm:$0xf]  ;;  %v2925_v41 = vld [vmem:[%s3277_s6 + $0x3a4] sm:$0xf0]  ;;  %v2439_v45 = vor.u32 %v2909_v39, %v2438_v38  ;;  %v2875_v46 = vld [vmem:[%s3277_s6 + $0x214] sm:$0xf0] }
  0x55   : > { %1540 = vmatpush.bf16.msrb.mxu1 %v2407_v56  ;;  %v2366_v47 = vld [vmem:[%s3277_s6 + $0x290] sm:$0xf]  ;;  %v2891_v48 = vld [vmem:[%s3277_s6 + $0x294] sm:$0xf0]  ;;  %v2503_v49 = vor.u32 %v2925_v41, %v2502_v40  ;;  %v2294_v54 = vld [vmem:[%s3277_s6 + $0x200] sm:$0xf]  ;;  %v2303_v56 = vor.u32 %v2875_v46, %v2302_v43 }
  0x56   : > { %1553 = vmatpush.bf16.msrb.mxu2 %v2471_v57  ;;  %1495 = vmatmul.bf16.vlgmr.msra.gmra.mxu1 %v3413_v27  ;;  %v2430_v50 = vld [vmem:[%s3277_s6 + $0x310] sm:$0xf]  ;;  %v2907_v51 = vld [vmem:[%s3277_s6 + $0x314] sm:$0xf0]  ;;  %v2873_v55 = vld [vmem:[%s3277_s6 + $0x204] sm:$0xf0]  ;;  %v2367_v63 = vor.u32 %v2891_v48, %v2366_v47 }
  0x57   : > { %1566 = vmatpush.bf16.msrb.mxu3 %v2535_v61  ;;  %v2494_v52 = vld [vmem:[%s3277_s6 + $0x390] sm:$0xf]  ;;  %v2923_v53 = vld [vmem:[%s3277_s6 + $0x394] sm:$0xf0]  ;;  %v2358_v57 = vld [vmem:[%s3277_s6 + $0x280] sm:$0xf]  ;;  %v2431_v0 = vor.u32 %v2907_v51, %v2430_v50  ;;  %v2295_v10 = vor.u32 %v2873_v55, %v2294_v54 }
  0x58   : > { %1528 = vmatpush.bf16.msrb.mxu0 %v2335_v2  ;;  %v2889_v58 = vld [vmem:[%s3277_s6 + $0x284] sm:$0xf0]  ;;  %v2422_v59 = vld [vmem:[%s3277_s6 + $0x300] sm:$0xf]  ;;  %v293_v62 = vld [vmem:[%s3295_s26 + $0x8] sm:$0xf] }
  0x59   : > { %1541 = vmatpush.bf16.msrb.mxu1 %v2399_v3  ;;  %v2905_v60 = vld [vmem:[%s3277_s6 + $0x304] sm:$0xf0]  ;;  %v3445_v1 = vld [vmem:[#allocation1 + $0x24] sm:$0xff]  ;;  %v2486_v5 = vld [vmem:[%s3277_s6 + $0x380] sm:$0xf]  ;;  %v2359_v14 = vor.u32 %v2889_v58, %v2358_v57 }
  0x5a   : > { %1554 = vmatpush.bf16.msrb.mxu2 %v2463_v4  ;;  %v3442_v61 = vld [vmem:[#allocation1 + $0x36] sm:$0xff]  ;;  %v3447_v2 = vld [vmem:[#allocation1 + $0x3f] sm:$0xff]  ;;  %v3449_v3 = vld [vmem:[#allocation1 + $0x2d] sm:$0xff]  ;;  %v2495_v4 = vor.u32 %v2923_v53, %v2494_v52 }
  0x5b   : > { %1567 = vmatpush.bf16.msrb.mxu3 %v2527_v8  ;;  %v2921_v6 = vld [vmem:[%s3277_s6 + $0x384] sm:$0xf0]  ;;  %497 = vst [vmem:[#allocation1] ss:$9 sm:$0xff] %v293_v62  ;;  %v2606_v7 = vld [vmem:[%s3277_s6 + $0x470] sm:$0xf] }
  0x5c   : > { %1529 = vmatpush.bf16.msrb.mxu0 %v2327_v15  ;;  %v2951_v8 = vld [vmem:[%s3277_s6 + $0x474] sm:$0xf0]  ;;  %v2670_v9 = vld [vmem:[%s3277_s6 + $0x4f0] sm:$0xf]  ;;  %v2423_v15 = vor.u32 %v2905_v60, %v2422_v59  ;;  %v2487_v18 = vor.u32 %v2921_v6, %v2486_v5  ;;  %v2598_v25 = vld [vmem:[%s3277_s6 + $0x460] sm:$0xf] }
  0x5d   : > { %1542 = vmatpush.bf16.msrb.mxu1 %v2391_v19  ;;  %v2967_v11 = vld [vmem:[%s3277_s6 + $0x4f4] sm:$0xf0]  ;;  %v2734_v12 = vld [vmem:[%s3277_s6 + $0x570] sm:$0xf]  ;;  %v2607_v19 = vor.u32 %v2951_v8, %v2606_v7  ;;  %v2949_v26 = vld [vmem:[%s3277_s6 + $0x464] sm:$0xf0] }
  0x5e   : > { %1555 = vmatpush.bf16.msrb.mxu2 %v2455_v20  ;;  %v2983_v13 = vld [vmem:[%s3277_s6 + $0x574] sm:$0xf0]  ;;  %v2798_v16 = vld [vmem:[%s3277_s6 + $0x5f0] sm:$0xf]  ;;  %v2671_v20 = vor.u32 %v2967_v11, %v2670_v9  ;;  %v2662_v28 = vld [vmem:[%s3277_s6 + $0x4e0] sm:$0xf]  ;;  %v2599_v35 = vor.u32 %v2949_v26, %v2598_v25 }
  0x5f   : > { %1568 = vmatpush.bf16.msrb.mxu3 %v2519_v24  ;;  %v2999_v17 = vld [vmem:[%s3277_s6 + $0x5f4] sm:$0xf0]  ;;  %v2735_v24 = vor.u32 %v2983_v13, %v2734_v12  ;;  %v2790_v33 = vld [vmem:[%s3277_s6 + $0x5e0] sm:$0xf]  ;;  %v2997_v34 = vld [vmem:[%s3277_s6 + $0x5e4] sm:$0xf0] }
  0x60   : > { %1530 = vmatpush.bf16.msrb.mxu0 %v2319_v30  ;;  %v2799_v29 = vor.u32 %v2999_v17, %v2798_v16  ;;  %v2965_v30 = vld [vmem:[%s3277_s6 + $0x4e4] sm:$0xf0]  ;;  %v2590_v38 = vld [vmem:[%s3277_s6 + $0x450] sm:$0xf]  ;;  %v2947_v39 = vld [vmem:[%s3277_s6 + $0x454] sm:$0xf0]  ;;  %v2791_v41 = vor.u32 %v2997_v34, %v2790_v33 }
  0x61   : > { %1543 = vmatpush.bf16.msrb.mxu1 %v2383_v31  ;;  %v2726_v31 = vld [vmem:[%s3277_s6 + $0x560] sm:$0xf]  ;;  %v2654_v40 = vld [vmem:[%s3277_s6 + $0x4d0] sm:$0xf]  ;;  %v2995_v46 = vld [vmem:[%s3277_s6 + $0x5d4] sm:$0xf0]  ;;  %v2591_v47 = vor.u32 %v2947_v39, %v2590_v38 }
  0x62   : > { %1556 = vmatpush.bf16.msrb.mxu2 %v2447_v32  ;;  %v2981_v32 = vld [vmem:[%s3277_s6 + $0x564] sm:$0xf0]  ;;  %v2718_v43 = vld [vmem:[%s3277_s6 + $0x550] sm:$0xf]  ;;  %v2582_v50 = vld [vmem:[%s3277_s6 + $0x440] sm:$0xf] }
  0x63   : > { %1569 = vmatpush.bf16.msrb.mxu3 %v2511_v36  ;;  %v2663_v36 = vor.u32 %v2965_v30, %v2662_v28  ;;  %v2727_v37 = vor.u32 %v2981_v32, %v2726_v31  ;;  %v2945_v51 = vld [vmem:[%s3277_s6 + $0x444] sm:$0xf0]  ;;  %v2646_v52 = vld [vmem:[%s3277_s6 + $0x4c0] sm:$0xf]  ;;  %v2959_v6 = vld [vmem:[%s3277_s6 + $0x4b4] sm:$0xf0] }
  0x64   : > { %1531 = vmatpush.bf16.msrb.mxu0 %v2311_v42  ;;  %v2963_v42 = vld [vmem:[%s3277_s6 + $0x4d4] sm:$0xf0]  ;;  %v2961_v54 = vld [vmem:[%s3277_s6 + $0x4c4] sm:$0xf0]  ;;  %v2710_v55 = vld [vmem:[%s3277_s6 + $0x540] sm:$0xf]  ;;  %v2583_v59 = vor.u32 %v2945_v51, %v2582_v50 }
  0x65   : > { %1544 = vmatpush.bf16.msrb.mxu1 %v2375_v44  ;;  %v2979_v44 = vld [vmem:[%s3277_s6 + $0x554] sm:$0xf0]  ;;  %v2655_v48 = vor.u32 %v2963_v42, %v2654_v40  ;;  %v2774_v57 = vld [vmem:[%s3277_s6 + $0x5c0] sm:$0xf]  ;;  %v2993_v58 = vld [vmem:[%s3277_s6 + $0x5c4] sm:$0xf0]  ;;  %v2647_v60 = vor.u32 %v2961_v54, %v2646_v52 }
  0x66   : > { %1557 = vmatpush.bf16.msrb.mxu2 %v2439_v45  ;;  %v2782_v45 = vld [vmem:[%s3277_s6 + $0x5d0] sm:$0xf]  ;;  %v2775_v5 = vor.u32 %v2993_v58, %v2774_v57  ;;  %v2975_v8 = vld [vmem:[%s3277_s6 + $0x534] sm:$0xf0]  ;;  %v2630_v16 = vld [vmem:[%s3277_s6 + $0x4a0] sm:$0xf] }
  0x67   : > { %1570 = vmatpush.bf16.msrb.mxu3 %v2503_v49  ;;  %v2719_v49 = vor.u32 %v2979_v44, %v2718_v43  ;;  %v2783_v53 = vor.u32 %v2995_v46, %v2782_v45  ;;  %v2702_v7 = vld [vmem:[%s3277_s6 + $0x530] sm:$0xf]  ;;  %v2989_v25 = vld [vmem:[%s3277_s6 + $0x5a4] sm:$0xf0]  ;;  %v2939_v31 = vld [vmem:[%s3277_s6 + $0x414] sm:$0xf0] }
  0x68   : > { %1532 = vmatpush.bf16.msrb.mxu0 %v2303_v56  ;;  %v2977_v56 = vld [vmem:[%s3277_s6 + $0x544] sm:$0xf0]  ;;  %v2766_v9 = vld [vmem:[%s3277_s6 + $0x5b0] sm:$0xf]  ;;  %v2703_v13 = vor.u32 %v2975_v8, %v2702_v7  ;;  %v2955_v34 = vld [vmem:[%s3277_s6 + $0x494] sm:$0xf0] }
  0x69   : > { %1545 = vmatpush.bf16.msrb.mxu1 %v2367_v63  ;;  %v2711_v62 = vor.u32 %v2977_v56, %v2710_v55  ;;  %v2574_v63 = vld [vmem:[%s3277_s6 + $0x430] sm:$0xf]  ;;  %v2987_v38 = vld [vmem:[%s3277_s6 + $0x594] sm:$0xf0]  ;;  %v2550_v40 = vld [vmem:[%s3277_s6 + $0x400] sm:$0xf] }
  0x6a   : > { %1558 = vmatpush.bf16.msrb.mxu2 %v2431_v0  ;;  %v2943_v0 = vld [vmem:[%s3277_s6 + $0x434] sm:$0xf0]  ;;  %v2558_v30 = vld [vmem:[%s3277_s6 + $0x410] sm:$0xf]  ;;  %v2614_v44 = vld [vmem:[%s3277_s6 + $0x480] sm:$0xf] }
  0x6b   : > { %1571 = vmatpush.bf16.msrb.mxu3 %v2495_v4  ;;  %v2638_v4 = vld [vmem:[%s3277_s6 + $0x4b0] sm:$0xf]  ;;  %v2575_v11 = vor.u32 %v2943_v0, %v2574_v63  ;;  %v2559_v39 = vor.u32 %v2939_v31, %v2558_v30  ;;  %v2953_v45 = vld [vmem:[%s3277_s6 + $0x484] sm:$0xf0]  ;;  %v2678_v46 = vld [vmem:[%s3277_s6 + $0x500] sm:$0xf] }
  0x6c   : > { %1533 = vmatpush.bf16.msrb.mxu0 %v2295_v10  ;;  %v2991_v10 = vld [vmem:[%s3277_s6 + $0x5b4] sm:$0xf0]  ;;  %v2639_v12 = vor.u32 %v2959_v6, %v2638_v4  ;;  %v2622_v32 = vld [vmem:[%s3277_s6 + $0x490] sm:$0xf]  ;;  %v2985_v50 = vld [vmem:[%s3277_s6 + $0x584] sm:$0xf0]  ;;  %v2615_v58 = vor.u32 %v2953_v45, %v2614_v44 }
  0x6d   : > { %1546 = vmatpush.bf16.msrb.mxu1 %v2359_v14  ;;  %v2566_v14 = vld [vmem:[%s3277_s6 + $0x420] sm:$0xf]  ;;  %v2767_v17 = vor.u32 %v2991_v10, %v2766_v9  ;;  %v2623_v42 = vor.u32 %v2955_v34, %v2622_v32  ;;  %v2822_v51 = vld [vmem:[%s3277_s6 + $0x74] sm:$0xf]  ;;  %v2096_v52 = vld [vmem:[%s3277_s6 + $0x78] sm:$0xf0] }
  0x6e   : > { %1559 = vmatpush.bf16.msrb.mxu2 %v2423_v15  ;;  %v2941_v15 = vld [vmem:[%s3277_s6 + $0x424] sm:$0xf0]  ;;  %v2160_v55 = vld [vmem:[%s3277_s6 + $0xf8] sm:$0xf0]  ;;  %v2854_v56 = vld [vmem:[%s3277_s6 + $0x174] sm:$0xf]  ;;  %v2099_v0 = vor.u32 %v2822_v51, %v2096_v52 }
  0x6f   : > { %1572 = vmatpush.bf16.msrb.mxu3 %v2487_v18  ;;  %1534 = vmatmul.bf16.vlgmr.msrb.gmra.mxu0 %v3445_v1  ;;  %v2957_v18 = vld [vmem:[%s3277_s6 + $0x4a4] sm:$0xf0]  ;;  %v2567_v26 = vor.u32 %v2941_v15, %v2566_v14  ;;  %v2224_v57 = vld [vmem:[%s3277_s6 + $0x178] sm:$0xf0]  ;;  %v2820_v6 = vld [vmem:[%s3277_s6 + $0x64] sm:$0xf] }
  0x70   : > { %1578 = vmatpush.bf16.msra.mxu0 %v2607_v19  ;;  %1547 = vmatmul.bf16.vlgmr.msrb.gmra.mxu1 %v3449_v3  ;;  %v2694_v19 = vld [vmem:[%s3277_s6 + $0x520] sm:$0xf]  ;;  %v2631_v28 = vor.u32 %v2957_v18, %v2630_v16  ;;  %v2088_v7 = vld [vmem:[%s3277_s6 + $0x68] sm:$0xf0]  ;;  %v2836_v8 = vld [vmem:[%s3277_s6 + $0xe4] sm:$0xf] }
  0x71   : > { %1591 = vmatpush.bf16.msra.mxu1 %v2671_v20  ;;  %1560 = vmatmul.bf16.vlgmr.msrb.gmra.mxu2 %v3442_v61  ;;  %v2973_v20 = vld [vmem:[%s3277_s6 + $0x524] sm:$0xf0]  ;;  %v2152_v10 = vld [vmem:[%s3277_s6 + $0xe8] sm:$0xf0]  ;;  %v2868_v14 = vld [vmem:[%s3277_s6 + $0x1e4] sm:$0xf] }
  0x72   : > { %1604 = vmatpush.bf16.msra.mxu2 %v2735_v24  ;;  %1573 = vmatmul.bf16.vlgmr.msrb.gmra.mxu3 %v3447_v2  ;;  %v2758_v24 = vld [vmem:[%s3277_s6 + $0x5a0] sm:$0xf]  ;;  %v2280_v15 = vld [vmem:[%s3277_s6 + $0x1e8] sm:$0xf0]  ;;  %v2144_v30 = vld [vmem:[%s3277_s6 + $0xd8] sm:$0xf0] }
  0x73   : > { %1617 = vmatpush.bf16.msra.mxu3 %v2799_v29  ;;  %v2695_v29 = vor.u32 %v2973_v20, %v2694_v19  ;;  %v2759_v33 = vor.u32 %v2989_v25, %v2758_v24  ;;  %v3539_v16 = vld [vmem:[#allocation1 + $0x12] sm:$0xff]  ;;  %v3543_v18 = vld [vmem:[#allocation1 + $0x1b] sm:$0xff]  ;;  %v2091_v19 = vor.u32 %v2820_v6, %v2088_v7  ;;  %v2155_v20 = vor.u32 %v2836_v8, %v2152_v10  ;;  %v2208_v32 = vld [vmem:[%s3277_s6 + $0x158] sm:$0xf0] }
  0x74   : > { %1579 = vmatpush.bf16.msra.mxu0 %v2599_v35  ;;  %v2686_v35 = vld [vmem:[%s3277_s6 + $0x510] sm:$0xf]  ;;  %v2818_v25 = vld [vmem:[%s3277_s6 + $0x54] sm:$0xf]  ;;  %v2272_v34 = vld [vmem:[%s3277_s6 + $0x1d8] sm:$0xf0] }
  0x75   : > { %1592 = vmatpush.bf16.msra.mxu1 %v2663_v36  ;;  %v2971_v36 = vld [vmem:[%s3277_s6 + $0x514] sm:$0xf0]  ;;  %v2850_v31 = vld [vmem:[%s3277_s6 + $0x154] sm:$0xf]  ;;  %v2200_v44 = vld [vmem:[%s3277_s6 + $0x148] sm:$0xf0] }
  0x76   : > { %1605 = vmatpush.bf16.msra.mxu2 %v2727_v37  ;;  %v2750_v37 = vld [vmem:[%s3277_s6 + $0x590] sm:$0xf]  ;;  %v2687_v43 = vor.u32 %v2971_v36, %v2686_v35  ;;  %v2864_v45 = vld [vmem:[%s3277_s6 + $0x1c4] sm:$0xf]  ;;  %v2064_v51 = vld [vmem:[%s3277_s6 + $0x38] sm:$0xf0] }
  0x77   : > { %1618 = vmatpush.bf16.msra.mxu3 %v2791_v41  ;;  %v2937_v41 = vld [vmem:[%s3277_s6 + $0x404] sm:$0xf0]  ;;  %v2830_v52 = vld [vmem:[%s3277_s6 + $0xb4] sm:$0xf]  ;;  %v2120_v6 = vld [vmem:[%s3277_s6 + $0xa8] sm:$0xf0] }
  0x78   : > { %1580 = vmatpush.bf16.msra.mxu0 %v2591_v47  ;;  %v2751_v47 = vor.u32 %v2987_v38, %v2750_v37  ;;  %v2551_v54 = vor.u32 %v2937_v41, %v2550_v40  ;;  %v2211_v37 = vor.u32 %v2850_v31, %v2208_v32  ;;  %v2816_v38 = vld [vmem:[%s3277_s6 + $0x44] sm:$0xf]  ;;  %v2184_v8 = vld [vmem:[%s3277_s6 + $0x128] sm:$0xf0] }
  0x79   : > { %1593 = vmatpush.bf16.msra.mxu1 %v2655_v48  ;;  %v2969_v48 = vld [vmem:[%s3277_s6 + $0x504] sm:$0xf0]  ;;  %v2832_v40 = vld [vmem:[%s3277_s6 + $0xc4] sm:$0xf]  ;;  %v2248_v10 = vld [vmem:[%s3277_s6 + $0x1a8] sm:$0xf0] }
  0x7a   : > { %1606 = vmatpush.bf16.msra.mxu2 %v2719_v49  ;;  %v2742_v49 = vld [vmem:[%s3277_s6 + $0x580] sm:$0xf]  ;;  %v2844_v7 = vld [vmem:[%s3277_s6 + $0x124] sm:$0xf] }
  0x7b   : > { %1619 = vmatpush.bf16.msra.mxu3 %v2783_v53  ;;  %v2838_v53 = vld [vmem:[%s3277_s6 + $0xf4] sm:$0xf]  ;;  %v2743_v63 = vor.u32 %v2985_v50, %v2742_v49  ;;  %v2808_v32 = vld [vmem:[%s3277_s6 + $0x4] sm:$0xf] }
  0x7c   : > { %1581 = vmatpush.bf16.msra.mxu0 %v2583_v59  ;;  %v2679_v59 = vor.u32 %v2969_v48, %v2678_v46  ;;  %v2163_v4 = vor.u32 %v2838_v53, %v2160_v55  ;;  %v2264_v46 = vld [vmem:[%s3277_s6 + $0x1c8] sm:$0xf0]  ;;  %v2814_v50 = vld [vmem:[%s3277_s6 + $0x34] sm:$0xf] }
  0x7d   : > { %1594 = vmatpush.bf16.msra.mxu1 %v2647_v60  ;;  %v2870_v60 = vld [vmem:[%s3277_s6 + $0x1f4] sm:$0xf]  ;;  %v2267_v53 = vor.u32 %v2864_v45, %v2264_v46 }
  0x7e   : > { %1607 = vmatpush.bf16.msra.mxu2 %v2711_v62  ;;  %v2288_v62 = vld [vmem:[%s3277_s6 + $0x1f8] sm:$0xf0]  ;;  %v2846_v55 = vld [vmem:[%s3277_s6 + $0x134] sm:$0xf] }
  0x7f   : > { %1620 = vmatpush.bf16.msra.mxu3 %v2775_v5  ;;  %v2227_v5 = vor.u32 %v2854_v56, %v2224_v57  ;;  %v2291_v9 = vor.u32 %v2870_v60, %v2288_v62  ;;  %v2192_v56 = vld [vmem:[%s3277_s6 + $0x138] sm:$0xf0]  ;;  %v2862_v57 = vld [vmem:[%s3277_s6 + $0x1b4] sm:$0xf] }
  0x80   : > { %1582 = vmatpush.bf16.msra.mxu0 %v2575_v11  ;;  %v2852_v11 = vld [vmem:[%s3277_s6 + $0x164] sm:$0xf]  ;;  %v2195_v62 = vor.u32 %v2846_v55, %v2192_v56  ;;  %v2902_v45 = vld [vmem:[%s3277_s6 + $0x2f4] sm:$0xf] }
  0x81   : > { %1595 = vmatpush.bf16.msra.mxu1 %v2639_v12  ;;  %v2216_v12 = vld [vmem:[%s3277_s6 + $0x168] sm:$0xf0] }
  0x82   : > { %1608 = vmatpush.bf16.msra.mxu2 %v2703_v13  ;;  %v3535_v13 = vld [vmem:[#allocation1] sm:$0xff]  ;;  %v2219_v24 = vor.u32 %v2852_v11, %v2216_v12 }
  0x83   : > { %1621 = vmatpush.bf16.msra.mxu3 %v2767_v17  ;;  %v3541_v17 = vld [vmem:[#allocation1 + $0x9] sm:$0xff] }
  0x84   : > { %1583 = vmatpush.bf16.msra.mxu0 %v2567_v26  ;;  %v2080_v26 = vld [vmem:[%s3277_s6 + $0x58] sm:$0xf0] }
  0x85   : > { %1596 = vmatpush.bf16.msra.mxu1 %v2631_v28  ;;  %v2834_v28 = vld [vmem:[%s3277_s6 + $0xd4] sm:$0xf]  ;;  %v2083_v35 = vor.u32 %v2818_v25, %v2080_v26  ;;  %v2112_v25 = vld [vmem:[%s3277_s6 + $0x98] sm:$0xf0] }
  0x86   : > { %1609 = vmatpush.bf16.msra.mxu2 %v2695_v29  ;;  %v2283_v29 = vor.u32 %v2868_v14, %v2280_v15  ;;  %v2147_v36 = vor.u32 %v2834_v28, %v2144_v30  ;;  %v2187_v14 = vor.u32 %v2844_v7, %v2184_v8  ;;  %v2810_v15 = vld [vmem:[%s3277_s6 + $0x14] sm:$0xf]  ;;  %v2176_v28 = vld [vmem:[%s3277_s6 + $0x118] sm:$0xf0] }
  0x87   : > { %1622 = vmatpush.bf16.msra.mxu3 %v2759_v33  ;;  %v2866_v33 = vld [vmem:[%s3277_s6 + $0x1d4] sm:$0xf]  ;;  %v2240_v30 = vld [vmem:[%s3277_s6 + $0x198] sm:$0xf0] }
  0x88   : > { %1584 = vmatpush.bf16.msra.mxu0 %v2559_v39  ;;  %v2072_v39 = vld [vmem:[%s3277_s6 + $0x48] sm:$0xf0]  ;;  %v2275_v41 = vor.u32 %v2866_v33, %v2272_v34  ;;  %v2842_v26 = vld [vmem:[%s3277_s6 + $0x114] sm:$0xf] }
  0x89   : > { %1597 = vmatpush.bf16.msra.mxu1 %v2623_v42  ;;  %v2136_v42 = vld [vmem:[%s3277_s6 + $0xc8] sm:$0xf0] }
  0x8a   : > { %1610 = vmatpush.bf16.msra.mxu2 %v2687_v43  ;;  %v2848_v43 = vld [vmem:[%s3277_s6 + $0x144] sm:$0xf]  ;;  %v2139_v48 = vor.u32 %v2832_v40, %v2136_v42  ;;  %v2040_v33 = vld [vmem:[%s3277_s6 + $0x8] sm:$0xf0] }
  0x8b   : > { %1623 = vmatpush.bf16.msra.mxu3 %v2751_v47  ;;  %v2075_v47 = vor.u32 %v2816_v38, %v2072_v39  ;;  %v2203_v49 = vor.u32 %v2848_v43, %v2200_v44  ;;  %v2840_v38 = vld [vmem:[%s3277_s6 + $0x104] sm:$0xf]  ;;  %v2168_v40 = vld [vmem:[%s3277_s6 + $0x108] sm:$0xf0]  ;;  %v2886_v43 = vld [vmem:[%s3277_s6 + $0x274] sm:$0xf]  ;;  %v2043_v46 = vor.u32 %v2808_v32, %v2040_v33 }
  0x8c   : > { %1585 = vmatpush.bf16.msra.mxu0 %v2551_v54  ;;  %v2128_v54 = vld [vmem:[%s3277_s6 + $0xb8] sm:$0xf0]  ;;  %v2232_v42 = vld [vmem:[%s3277_s6 + $0x188] sm:$0xf0] }
  0x8d   : > { %1598 = vmatpush.bf16.msra.mxu1 %v2615_v58  ;;  %v2256_v58 = vld [vmem:[%s3277_s6 + $0x1b8] sm:$0xf0]  ;;  %v2131_v60 = vor.u32 %v2830_v52, %v2128_v54  ;;  %v2934_v52 = vld [vmem:[%s3277_s6 + $0x3f4] sm:$0xf]  ;;  %v2392_v32 = vld [vmem:[%s3277_s6 + $0x2c8] sm:$0xf0] }
  0x8e   : > { %1611 = vmatpush.bf16.msra.mxu2 %v2679_v59  ;;  %v2067_v59 = vor.u32 %v2814_v50, %v2064_v51  ;;  %v2352_v44 = vld [vmem:[%s3277_s6 + $0x278] sm:$0xf0]  ;;  %v2171_v51 = vor.u32 %v2840_v38, %v2168_v40  ;;  %v2456_v33 = vld [vmem:[%s3277_s6 + $0x348] sm:$0xf0]  ;;  %v2878_v38 = vld [vmem:[%s3277_s6 + $0x234] sm:$0xf] }
  0x8f   : > { %1624 = vmatpush.bf16.msra.mxu3 %v2743_v63  ;;  %1586 = vmatmul.bf16.vlgmr.msra.gmra.mxu0 %v3535_v13  ;;  %v2812_v63 = vld [vmem:[%s3277_s6 + $0x24] sm:$0xf]  ;;  %v2355_v55 = vor.u32 %v2886_v43, %v2352_v44  ;;  %v2894_v40 = vld [vmem:[%s3277_s6 + $0x2b4] sm:$0xf]  ;;  %v2448_v44 = vld [vmem:[%s3277_s6 + $0x338] sm:$0xf0] }
  0x90   : > { %1630 = vmatpush.bf16.msrb.mxu0 %v2099_v0  ;;  %1599 = vmatmul.bf16.vlgmr.msra.gmra.mxu1 %v3541_v17  ;;  %v2056_v0 = vld [vmem:[%s3277_s6 + $0x28] sm:$0xf0]  ;;  %v2910_v43 = vld [vmem:[%s3277_s6 + $0x334] sm:$0xf] }
  0x91   : > { %1643 = vmatpush.bf16.msrb.mxu1 %v2163_v4  ;;  %1612 = vmatmul.bf16.vlgmr.msra.gmra.mxu2 %v3539_v16  ;;  %v2828_v4 = vld [vmem:[%s3277_s6 + $0xa4] sm:$0xf]  ;;  %v2059_v11 = vor.u32 %v2812_v63, %v2056_v0  ;;  %v2408_v63 = vld [vmem:[%s3277_s6 + $0x2e8] sm:$0xf0] }
  0x92   : > { %1656 = vmatpush.bf16.msrb.mxu2 %v2227_v5  ;;  %1625 = vmatmul.bf16.vlgmr.msra.gmra.mxu3 %v3543_v18  ;;  %v2259_v5 = vor.u32 %v2862_v57, %v2256_v58  ;;  %v2123_v12 = vor.u32 %v2828_v4, %v2120_v6  ;;  %v2884_v58 = vld [vmem:[%s3277_s6 + $0x264] sm:$0xf]  ;;  %v2472_v4 = vld [vmem:[%s3277_s6 + $0x368] sm:$0xf0] }
  0x93   : > { %1669 = vmatpush.bf16.msrb.mxu3 %v2291_v9  ;;  %v2860_v9 = vld [vmem:[%s3277_s6 + $0x1a4] sm:$0xf]  ;;  %v2536_v6 = vld [vmem:[%s3277_s6 + $0x3e8] sm:$0xf0] }
  0x94   : > { %1631 = vmatpush.bf16.msrb.mxu0 %v2091_v19  ;;  %v2048_v19 = vld [vmem:[%s3277_s6 + $0x18] sm:$0xf0]  ;;  %v2916_v0 = vld [vmem:[%s3277_s6 + $0x364] sm:$0xf] }
  0x95   : > { %1644 = vmatpush.bf16.msrb.mxu1 %v2155_v20  ;;  %v2826_v20 = vld [vmem:[%s3277_s6 + $0x94] sm:$0xf]  ;;  %v2051_v31 = vor.u32 %v2810_v15, %v2048_v19  ;;  %v2400_v15 = vld [vmem:[%s3277_s6 + $0x2d8] sm:$0xf0] }
  0x96   : > { %1657 = vmatpush.bf16.msrb.mxu2 %v2219_v24  ;;  %v2251_v24 = vor.u32 %v2860_v9, %v2248_v10  ;;  %v2115_v34 = vor.u32 %v2826_v20, %v2112_v25  ;;  %v2475_v9 = vor.u32 %v2916_v0, %v2472_v4  ;;  %v2882_v10 = vld [vmem:[%s3277_s6 + $0x254] sm:$0xf]  ;;  %v2464_v20 = vld [vmem:[%s3277_s6 + $0x358] sm:$0xf0] }
  0x97   : > { %1670 = vmatpush.bf16.msrb.mxu3 %v2283_v29  ;;  %v2858_v29 = vld [vmem:[%s3277_s6 + $0x194] sm:$0xf]  ;;  %v2528_v25 = vld [vmem:[%s3277_s6 + $0x3d8] sm:$0xf0] }
  0x98   : > { %1632 = vmatpush.bf16.msrb.mxu0 %v2083_v35  ;;  %v2179_v35 = vor.u32 %v2842_v26, %v2176_v28  ;;  %v2243_v39 = vor.u32 %v2858_v29, %v2240_v30  ;;  %v2914_v19 = vld [vmem:[%s3277_s6 + $0x354] sm:$0xf]  ;;  %v2328_v30 = vld [vmem:[%s3277_s6 + $0x248] sm:$0xf0]  ;;  %v2304_v0 = vld [vmem:[%s3277_s6 + $0x218] sm:$0xf0] }
  0x99   : > { %1645 = vmatpush.bf16.msrb.mxu1 %v2147_v36  ;;  %v2824_v36 = vld [vmem:[%s3277_s6 + $0x84] sm:$0xf]  ;;  %v2467_v29 = vor.u32 %v2914_v19, %v2464_v20  ;;  %v2890_v4 = vld [vmem:[%s3277_s6 + $0x294] sm:$0xf] }
  0x9a   : > { %1658 = vmatpush.bf16.msrb.mxu2 %v2211_v37  ;;  %v2104_v37 = vld [vmem:[%s3277_s6 + $0x88] sm:$0xf0]  ;;  %v2888_v20 = vld [vmem:[%s3277_s6 + $0x284] sm:$0xf] }
  0x9b   : > { %1671 = vmatpush.bf16.msrb.mxu3 %v2275_v41  ;;  %v2856_v41 = vld [vmem:[%s3277_s6 + $0x184] sm:$0xf]  ;;  %v2107_v50 = vor.u32 %v2824_v36, %v2104_v37 }
  0x9c   : > { %1633 = vmatpush.bf16.msrb.mxu0 %v2075_v47  ;;  %v2416_v47 = vld [vmem:[%s3277_s6 + $0x2f8] sm:$0xf0]  ;;  %v2235_v54 = vor.u32 %v2856_v41, %v2232_v42 }
  0x9d   : > { %1646 = vmatpush.bf16.msrb.mxu1 %v2139_v48  ;;  %v2918_v48 = vld [vmem:[%s3277_s6 + $0x374] sm:$0xf]  ;;  %v2419_v56 = vor.u32 %v2902_v45, %v2416_v47  ;;  %v2384_v42 = vld [vmem:[%s3277_s6 + $0x2b8] sm:$0xf0] }
  0x9e   : > { %1659 = vmatpush.bf16.msrb.mxu2 %v2203_v49  ;;  %v2480_v49 = vld [vmem:[%s3277_s6 + $0x378] sm:$0xf0]  ;;  %v2926_v45 = vld [vmem:[%s3277_s6 + $0x3b4] sm:$0xf] }
  0x9f   : > { %1672 = vmatpush.bf16.msrb.mxu3 %v2267_v53  ;;  %v2544_v53 = vld [vmem:[%s3277_s6 + $0x3f8] sm:$0xf0]  ;;  %v2483_v57 = vor.u32 %v2918_v48, %v2480_v49  ;;  %v2387_v48 = vor.u32 %v2894_v40, %v2384_v42  ;;  %v2451_v49 = vor.u32 %v2910_v43, %v2448_v44  ;;  %v2948_v42 = vld [vmem:[%s3277_s6 + $0x464] sm:$0xf]  ;;  %v2600_v43 = vld [vmem:[%s3277_s6 + $0x468] sm:$0xf0] }
  0xa0   : > { %1634 = vmatpush.bf16.msrb.mxu0 %v2067_v59  ;;  %v2344_v59 = vld [vmem:[%s3277_s6 + $0x268] sm:$0xf0]  ;;  %v2964_v44 = vld [vmem:[%s3277_s6 + $0x4e4] sm:$0xf] }
  0xa1   : > { %1647 = vmatpush.bf16.msrb.mxu1 %v2131_v60  ;;  %v2900_v60 = vld [vmem:[%s3277_s6 + $0x2e4] sm:$0xf]  ;;  %v2347_v7 = vor.u32 %v2884_v58, %v2344_v59  ;;  %v2504_v58 = vld [vmem:[%s3277_s6 + $0x3a8] sm:$0xf0] }
  0xa2   : > { %1660 = vmatpush.bf16.msrb.mxu2 %v2195_v62  ;;  %v2547_v62 = vor.u32 %v2934_v52, %v2544_v53  ;;  %v2411_v8 = vor.u32 %v2900_v60, %v2408_v63  ;;  %v2892_v52 = vld [vmem:[%s3277_s6 + $0x2a4] sm:$0xf]  ;;  %v2874_v63 = vld [vmem:[%s3277_s6 + $0x214] sm:$0xf] }
  0xa3   : > { %1673 = vmatpush.bf16.msrb.mxu3 %v2259_v5  ;;  %v2932_v5 = vld [vmem:[%s3277_s6 + $0x3e4] sm:$0xf] }
  0xa4   : > { %1635 = vmatpush.bf16.msrb.mxu0 %v2059_v11  ;;  %v2336_v11 = vld [vmem:[%s3277_s6 + $0x258] sm:$0xf0] }
  0xa5   : > { %1648 = vmatpush.bf16.msrb.mxu1 %v2123_v12  ;;  %v2898_v12 = vld [vmem:[%s3277_s6 + $0x2d4] sm:$0xf]  ;;  %v2339_v26 = vor.u32 %v2882_v10, %v2336_v11  ;;  %v2496_v10 = vld [vmem:[%s3277_s6 + $0x398] sm:$0xf0]  ;;  %v2307_v11 = vor.u32 %v2874_v63, %v2304_v0 }
  0xa6   : > { %1661 = vmatpush.bf16.msrb.mxu2 %v2187_v14  ;;  %v2539_v14 = vor.u32 %v2932_v5, %v2536_v6  ;;  %v2403_v28 = vor.u32 %v2898_v12, %v2400_v15  ;;  %v2368_v6 = vld [vmem:[%s3277_s6 + $0x298] sm:$0xf0]  ;;  %v2872_v12 = vld [vmem:[%s3277_s6 + $0x204] sm:$0xf] }
  0xa7   : > { %1674 = vmatpush.bf16.msrb.mxu3 %v2251_v24  ;;  %v2930_v24 = vld [vmem:[%s3277_s6 + $0x3d4] sm:$0xf]  ;;  %v2371_v15 = vor.u32 %v2890_v4, %v2368_v6  ;;  %v2784_v63 = vld [vmem:[%s3277_s6 + $0x5d8] sm:$0xf0]  ;;  %v2960_v6 = vld [vmem:[%s3277_s6 + $0x4c4] sm:$0xf] }
  0xa8   : > { %1636 = vmatpush.bf16.msrb.mxu0 %v2051_v31  ;;  %v2896_v31 = vld [vmem:[%s3277_s6 + $0x2c4] sm:$0xf] }
  0xa9   : > { %1649 = vmatpush.bf16.msrb.mxu1 %v2115_v34  ;;  %v2928_v34 = vld [vmem:[%s3277_s6 + $0x3c4] sm:$0xf]  ;;  %v2395_v36 = vor.u32 %v2896_v31, %v2392_v32  ;;  %v2608_v31 = vld [vmem:[%s3277_s6 + $0x478] sm:$0xf0] }
  0xaa   : > { %1662 = vmatpush.bf16.msrb.mxu2 %v2179_v35 }
  0xab   : > { %1675 = vmatpush.bf16.msrb.mxu3 %v2243_v39  ;;  %v2320_v39 = vld [vmem:[%s3277_s6 + $0x238] sm:$0xf0] }
  0xac   : > { %1637 = vmatpush.bf16.msrb.mxu0 %v2043_v46  ;;  %v2512_v46 = vld [vmem:[%s3277_s6 + $0x3b8] sm:$0xf0]  ;;  %v2323_v47 = vor.u32 %v2878_v38, %v2320_v39 }
  0xad   : > { %1650 = vmatpush.bf16.msrb.mxu1 %v2107_v50  ;;  %v2876_v50 = vld [vmem:[%s3277_s6 + $0x224] sm:$0xf]  ;;  %v2515_v53 = vor.u32 %v2926_v45, %v2512_v46  ;;  %v2664_v46 = vld [vmem:[%s3277_s6 + $0x4e8] sm:$0xf0] }
  0xae   : > { %1663 = vmatpush.bf16.msrb.mxu2 %v2171_v51  ;;  %v2312_v51 = vld [vmem:[%s3277_s6 + $0x228] sm:$0xf0] }
  0xaf   : > { %1676 = vmatpush.bf16.msrb.mxu3 %v2235_v54  ;;  %1638 = vmatmul.bf16.vlgmr.msrb.gmra.mxu0 %v3406_v22  ;;  %v2531_v22 = vor.u32 %v2930_v24, %v2528_v25  ;;  %v2376_v54 = vld [vmem:[%s3277_s6 + $0x2a8] sm:$0xf0]  ;;  %v2315_v59 = vor.u32 %v2876_v50, %v2312_v51  ;;  %v2904_v25 = vld [vmem:[%s3277_s6 + $0x304] sm:$0xf]  ;;  %v2603_v51 = vor.u32 %v2948_v42, %v2600_v43  ;;  %v2938_v43 = vld [vmem:[%s3277_s6 + $0x414] sm:$0xf] }
  0xb0   : > { %1682 = vmatpush.bf16.msra.mxu0 %v2355_v55  ;;  %1651 = vmatmul.bf16.vlgmr.msrb.gmra.mxu1 %v3413_v27  ;;  %v2520_v27 = vld [vmem:[%s3277_s6 + $0x3c8] sm:$0xf0]  ;;  %v2908_v55 = vld [vmem:[%s3277_s6 + $0x324] sm:$0xf]  ;;  %v2379_v60 = vor.u32 %v2892_v52, %v2376_v54  ;;  %v2667_v52 = vor.u32 %v2964_v44, %v2664_v46  ;;  %v2946_v54 = vld [vmem:[%s3277_s6 + $0x454] sm:$0xf] }
  0xb1   : > { %1695 = vmatpush.bf16.msra.mxu1 %v2419_v56  ;;  %1664 = vmatmul.bf16.vlgmr.msrb.gmra.mxu2 %v3404_v21  ;;  %v2880_v21 = vld [vmem:[%s3277_s6 + $0x244] sm:$0xf]  ;;  %v2523_v41 = vor.u32 %v2928_v34, %v2520_v27  ;;  %v2440_v56 = vld [vmem:[%s3277_s6 + $0x328] sm:$0xf0]  ;;  %v2736_v34 = vld [vmem:[%s3277_s6 + $0x578] sm:$0xf0] }
  0xb2   : > { %1708 = vmatpush.bf16.msra.mxu2 %v2483_v57  ;;  %1677 = vmatmul.bf16.vlgmr.msrb.gmra.mxu3 %v3408_v23  ;;  %v2912_v23 = vld [vmem:[%s3277_s6 + $0x344] sm:$0xf]  ;;  %v2331_v35 = vor.u32 %v2880_v21, %v2328_v30  ;;  %v2360_v24 = vld [vmem:[%s3277_s6 + $0x288] sm:$0xf0]  ;;  %v2950_v30 = vld [vmem:[%s3277_s6 + $0x474] sm:$0xf] }
  0xb3   : > { %1721 = vmatpush.bf16.msra.mxu3 %v2547_v62  ;;  %v2459_v37 = vor.u32 %v2912_v23, %v2456_v33  ;;  %v2924_v57 = vld [vmem:[%s3277_s6 + $0x3a4] sm:$0xf]  ;;  %v2443_v62 = vor.u32 %v2908_v55, %v2440_v56  ;;  %v2488_v21 = vld [vmem:[%s3277_s6 + $0x388] sm:$0xf0]  ;;  %v2672_v23 = vld [vmem:[%s3277_s6 + $0x4f8] sm:$0xf0]  ;;  %v2363_v27 = vor.u32 %v2888_v20, %v2360_v24  ;;  %v2611_v39 = vor.u32 %v2950_v30, %v2608_v31 }
  0xb4   : > { %1683 = vmatpush.bf16.msra.mxu0 %v2347_v7  ;;  %v2507_v5 = vor.u32 %v2924_v57, %v2504_v58  ;;  %v2906_v7 = vld [vmem:[%s3277_s6 + $0x314] sm:$0xf]  ;;  %v2792_v50 = vld [vmem:[%s3277_s6 + $0x5e8] sm:$0xf0]  ;;  %v2592_v55 = vld [vmem:[%s3277_s6 + $0x458] sm:$0xf0] }
  0xb5   : > { %1696 = vmatpush.bf16.msra.mxu1 %v2411_v8  ;;  %v2432_v8 = vld [vmem:[%s3277_s6 + $0x318] sm:$0xf0]  ;;  %v2982_v33 = vld [vmem:[%s3277_s6 + $0x574] sm:$0xf]  ;;  %v2595_v0 = vor.u32 %v2946_v54, %v2592_v55 }
  0xb6   : > { %1709 = vmatpush.bf16.msra.mxu2 %v2475_v9  ;;  %v2922_v9 = vld [vmem:[%s3277_s6 + $0x394] sm:$0xf]  ;;  %v2435_v19 = vor.u32 %v2906_v7, %v2432_v8  ;;  %v2656_v58 = vld [vmem:[%s3277_s6 + $0x4d8] sm:$0xf0]  ;;  %v2648_v7 = vld [vmem:[%s3277_s6 + $0x4c8] sm:$0xf0] }
  0xb7   : > { %1722 = vmatpush.bf16.msra.mxu3 %v2539_v14  ;;  %v2296_v14 = vld [vmem:[%s3277_s6 + $0x208] sm:$0xf0]  ;;  %v2962_v56 = vld [vmem:[%s3277_s6 + $0x4d4] sm:$0xf]  ;;  %v2976_v8 = vld [vmem:[%s3277_s6 + $0x544] sm:$0xf] }
  0xb8   : > { %1684 = vmatpush.bf16.msra.mxu0 %v2339_v26  ;;  %v2499_v26 = vor.u32 %v2922_v9, %v2496_v10  ;;  %v2299_v32 = vor.u32 %v2872_v12, %v2296_v14  ;;  %v2712_v9 = vld [vmem:[%s3277_s6 + $0x548] sm:$0xf0]  ;;  %v2992_v10 = vld [vmem:[%s3277_s6 + $0x5c4] sm:$0xf]  ;;  %v2651_v12 = vor.u32 %v2960_v6, %v2648_v7  ;;  %v2958_v20 = vld [vmem:[%s3277_s6 + $0x4b4] sm:$0xf] }
  0xb9   : > { %1697 = vmatpush.bf16.msra.mxu1 %v2403_v28  ;;  %v2424_v28 = vld [vmem:[%s3277_s6 + $0x308] sm:$0xf0]  ;;  %v2715_v14 = vor.u32 %v2976_v8, %v2712_v9  ;;  %v2560_v44 = vld [vmem:[%s3277_s6 + $0x418] sm:$0xf0] }
  0xba   : > { %1710 = vmatpush.bf16.msra.mxu2 %v2467_v29  ;;  %v2920_v29 = vld [vmem:[%s3277_s6 + $0x384] sm:$0xf]  ;;  %v2563_v54 = vor.u32 %v2938_v43, %v2560_v44  ;;  %v2744_v6 = vld [vmem:[%s3277_s6 + $0x588] sm:$0xf0] }
  0xbb   : > { %1723 = vmatpush.bf16.msra.mxu3 %v2531_v22  ;;  %v2966_v22 = vld [vmem:[%s3277_s6 + $0x4f4] sm:$0xf]  ;;  %v2491_v38 = vor.u32 %v2920_v29, %v2488_v21  ;;  %v2768_v21 = vld [vmem:[%s3277_s6 + $0x5b8] sm:$0xf0] }
  0xbc   : > { %1685 = vmatpush.bf16.msra.mxu0 %v2331_v35  ;;  %v2427_v35 = vor.u32 %v2904_v25, %v2424_v28  ;;  %v2675_v40 = vor.u32 %v2966_v22, %v2672_v23  ;;  %v2640_v25 = vld [vmem:[%s3277_s6 + $0x4b8] sm:$0xf0]  ;;  %v2990_v29 = vld [vmem:[%s3277_s6 + $0x5b4] sm:$0xf]  ;;  %v2568_v23 = vld [vmem:[%s3277_s6 + $0x428] sm:$0xf0] }
  0xbd   : > { %1698 = vmatpush.bf16.msra.mxu1 %v2395_v36  ;;  %v2998_v36 = vld [vmem:[%s3277_s6 + $0x5f4] sm:$0xf]  ;;  %v2704_v28 = vld [vmem:[%s3277_s6 + $0x538] sm:$0xf0]  ;;  %v2643_v31 = vor.u32 %v2958_v20, %v2640_v25 }
  0xbe   : > { %1711 = vmatpush.bf16.msra.mxu2 %v2459_v37  ;;  %v2800_v37 = vld [vmem:[%s3277_s6 + $0x5f8] sm:$0xf0] }
  0xbf   : > { %1724 = vmatpush.bf16.msra.mxu3 %v2523_v41  ;;  %v2739_v41 = vor.u32 %v2982_v33, %v2736_v34  ;;  %v2803_v45 = vor.u32 %v2998_v36, %v2800_v37  ;;  %v2956_v33 = vld [vmem:[%s3277_s6 + $0x4a4] sm:$0xf]  ;;  %v2771_v34 = vor.u32 %v2990_v29, %v2768_v21  ;;  %v2696_v36 = vld [vmem:[%s3277_s6 + $0x528] sm:$0xf0] }
  0xc0   : > { %1686 = vmatpush.bf16.msra.mxu0 %v2323_v47  ;;  %v2980_v47 = vld [vmem:[%s3277_s6 + $0x564] sm:$0xf] }
  0xc1   : > { %1699 = vmatpush.bf16.msra.mxu1 %v2387_v48  ;;  %v2728_v48 = vld [vmem:[%s3277_s6 + $0x568] sm:$0xf0]  ;;  %v2988_v37 = vld [vmem:[%s3277_s6 + $0x5a4] sm:$0xf] }
  0xc2   : > { %1712 = vmatpush.bf16.msra.mxu2 %v2451_v49  ;;  %v2996_v49 = vld [vmem:[%s3277_s6 + $0x5e4] sm:$0xf] }
  0xc3   : > { %1725 = vmatpush.bf16.msra.mxu3 %v2515_v53  ;;  %v2731_v53 = vor.u32 %v2980_v47, %v2728_v48  ;;  %v2795_v57 = vor.u32 %v2996_v49, %v2792_v50  ;;  %v2624_v48 = vld [vmem:[%s3277_s6 + $0x498] sm:$0xf0]  ;;  %v2970_v49 = vld [vmem:[%s3277_s6 + $0x514] sm:$0xf] }
  0xc4   : > { %1687 = vmatpush.bf16.msra.mxu0 %v2315_v59  ;;  %v2978_v59 = vld [vmem:[%s3277_s6 + $0x554] sm:$0xf]  ;;  %v2688_v50 = vld [vmem:[%s3277_s6 + $0x518] sm:$0xf0] }
  0xc5   : > { %1700 = vmatpush.bf16.msra.mxu1 %v2379_v60  ;;  %v2720_v60 = vld [vmem:[%s3277_s6 + $0x558] sm:$0xf0] }
  0xc6   : > { %1713 = vmatpush.bf16.msra.mxu2 %v2443_v62  ;;  %v2994_v62 = vld [vmem:[%s3277_s6 + $0x5d4] sm:$0xf]  ;;  %v2723_v4 = vor.u32 %v2978_v59, %v2720_v60  ;;  %v2952_v59 = vld [vmem:[%s3277_s6 + $0x484] sm:$0xf] }
  0xc7   : > { %1726 = vmatpush.bf16.msra.mxu3 %v2507_v5  ;;  %v2944_v5 = vld [vmem:[%s3277_s6 + $0x444] sm:$0xf] }
  0xc8   : > { %1688 = vmatpush.bf16.msra.mxu0 %v2307_v11 }
  0xc9   : > { %1701 = vmatpush.bf16.msra.mxu1 %v2371_v15  ;;  %v2942_v15 = vld [vmem:[%s3277_s6 + $0x434] sm:$0xf] }
  0xca   : > { %1714 = vmatpush.bf16.msra.mxu2 %v2435_v19  ;;  %v2576_v19 = vld [vmem:[%s3277_s6 + $0x438] sm:$0xf0] }
  0xcb   : > { %1727 = vmatpush.bf16.msra.mxu3 %v2499_v26  ;;  %v2974_v26 = vld [vmem:[%s3277_s6 + $0x534] sm:$0xf]  ;;  %v2579_v30 = vor.u32 %v2942_v15, %v2576_v19 }
  0xcc   : > { %1689 = vmatpush.bf16.msra.mxu0 %v2299_v32  ;;  %v2707_v22 = vor.u32 %v2974_v26, %v2704_v28  ;;  %v2940_v32 = vld [vmem:[%s3277_s6 + $0x424] sm:$0xf] }
  0xcd   : > { %1702 = vmatpush.bf16.msra.mxu1 %v2363_v27  ;;  %v2632_v27 = vld [vmem:[%s3277_s6 + $0x4a8] sm:$0xf0] }
  0xce   : > { %1715 = vmatpush.bf16.msra.mxu2 %v2427_v35  ;;  %v2972_v35 = vld [vmem:[%s3277_s6 + $0x524] sm:$0xf] }
  0xcf   : > { %1728 = vmatpush.bf16.msra.mxu3 %v2491_v38  ;;  %1690 = vmatmul.bf16.vlgmr.msra.gmra.mxu0 %v3445_v1  ;;  %v2584_v1 = vld [vmem:[%s3277_s6 + $0x448] sm:$0xf0]  ;;  %v2699_v42 = vor.u32 %v2972_v35, %v2696_v36 }
  0xd0   : > { %1734 = vmatpush.bf16.msrb.mxu0 %v2611_v39  ;;  %1703 = vmatmul.bf16.vlgmr.msra.gmra.mxu1 %v3449_v3  ;;  %v2776_v3 = vld [vmem:[%s3277_s6 + $0x5c8] sm:$0xf0]  ;;  %v2587_v11 = vor.u32 %v2944_v5, %v2584_v1  ;;  %v2571_v39 = vor.u32 %v2940_v32, %v2568_v23  ;;  %v2984_v1 = vld [vmem:[%s3277_s6 + $0x584] sm:$0xf] }
  0xd1   : > { %1747 = vmatpush.bf16.msrb.mxu1 %v2675_v40  ;;  %1716 = vmatmul.bf16.vlgmr.msra.gmra.mxu2 %v3442_v61  ;;  %v2659_v61 = vor.u32 %v2962_v56, %v2656_v58  ;;  %v2779_v24 = vor.u32 %v2992_v10, %v2776_v3  ;;  %v2760_v38 = vld [vmem:[%s3277_s6 + $0x5a8] sm:$0xf0]  ;;  %v1483_v40 = vpop.f32.mrf.mxu0  ;;  %v2691_v56 = vor.u32 %v2970_v49, %v2688_v50 }
  0xd2   : > { %1760 = vmatpush.bf16.msrb.mxu2 %v2739_v41  ;;  %1729 = vmatmul.bf16.vlgmr.msra.gmra.mxu3 %v3447_v2  ;;  %v2787_v2 = vor.u32 %v2994_v62, %v2784_v63  ;;  %v2635_v41 = vor.u32 %v2956_v33, %v2632_v27  ;;  %v2763_v47 = vor.u32 %v2988_v37, %v2760_v38  ;;  %v2552_v58 = vld [vmem:[%s3277_s6 + $0x408] sm:$0xf0] }
  0xd3   : > { %1773 = vmatpush.bf16.msrb.mxu3 %v2803_v45  ;;  %v2954_v45 = vld [vmem:[%s3277_s6 + $0x494] sm:$0xf]  ;;  %v1496_v46 = vpop.f32.mrf.mxu1  ;;  %v2616_v63 = vld [vmem:[%s3277_s6 + $0x488] sm:$0xf0] }
  0xd4   : > { %1735 = vmatpush.bf16.msrb.mxu0 %v2603_v51  ;;  %v1497_v51 = vadd.f32 %v1496_v46, %v1483_v40  ;;  %v2627_v55 = vor.u32 %v2954_v45, %v2624_v48  ;;  %v2619_v9 = vor.u32 %v2952_v59, %v2616_v63 }
  0xd5   : > { %1748 = vmatpush.bf16.msrb.mxu1 %v2667_v52  ;;  %v2986_v52 = vld [vmem:[%s3277_s6 + $0x594] sm:$0xf] }
  0xd6   : > { %1761 = vmatpush.bf16.msrb.mxu2 %v2731_v53  ;;  %v2752_v53 = vld [vmem:[%s3277_s6 + $0x598] sm:$0xf0]  ;;  %v1509_v60 = vpop.f32.mrf.mxu2 }
  0xd7   : > { %1774 = vmatpush.bf16.msrb.mxu3 %v2795_v57  ;;  %v2936_v57 = vld [vmem:[%s3277_s6 + $0x404] sm:$0xf]  ;;  %v2755_v62 = vor.u32 %v2986_v52, %v2752_v53  ;;  %v1522_v5 = vpop.f32.mrf.mxu3 }
  0xd8   : > { %1736 = vmatpush.bf16.msrb.mxu0 %v2595_v0  ;;  %v2968_v0 = vld [vmem:[%s3277_s6 + $0x504] sm:$0xf] }
  0xd9   : > { %1749 = vmatpush.bf16.msrb.mxu1 %v2659_v61  ;;  %v2680_v61 = vld [vmem:[%s3277_s6 + $0x508] sm:$0xf0]  ;;  %v1485_v8 = vpop.f32.mrf.mxu0 }
  0xda   : > { %1762 = vmatpush.bf16.msrb.mxu2 %v2723_v4  ;;  %v1510_v4 = vadd.f32 %v1509_v60, %v1497_v51  ;;  %v2683_v10 = vor.u32 %v2968_v0, %v2680_v61  ;;  %v291_v8 = vld [vmem:[#allocation2] sm:$0xf] }
  0xdb   : > { %1775 = vmatpush.bf16.msrb.mxu3 %v2787_v2  ;;  %v2555_v2 = vor.u32 %v2936_v57, %v2552_v58  ;;  %v1498_v3 = vpop.f32.mrf.mxu1 }
  0xdc   : > { %1737 = vmatpush.bf16.msrb.mxu0 %v2587_v11  ;;  %v1523_v7 = vadd.f32 %v1522_v5, %v1510_v4  ;;  %v2747_v11 = vor.u32 %v2984_v1, %v2744_v6 }
  0xdd   : > { %1750 = vmatpush.bf16.msrb.mxu1 %v2651_v12 }
  0xde   : > { %1763 = vmatpush.bf16.msrb.mxu2 %v2715_v14  ;;  %v1511_v12 = vpop.f32.mrf.mxu2 }
  0xdf   : > { %1776 = vmatpush.bf16.msrb.mxu3 %v2779_v24  ;;  %v1524_v14 = vpop.f32.mrf.mxu3 }
  0xe0   : > { %1738 = vmatpush.bf16.msrb.mxu0 %v2579_v30 }
  0xe1   : > { %1751 = vmatpush.bf16.msrb.mxu1 %v2643_v31 }
  0xe2   : > { %1764 = vmatpush.bf16.msrb.mxu2 %v2707_v22 }
  0xe3   : > { %1777 = vmatpush.bf16.msrb.mxu3 %v2771_v34 }
  0xe4   : > { %1739 = vmatpush.bf16.msrb.mxu0 %v2571_v39 }
  0xe5   : > { %1752 = vmatpush.bf16.msrb.mxu1 %v2635_v41 }
  0xe6   : > { %1765 = vmatpush.bf16.msrb.mxu2 %v2699_v42 }
  0xe7   : > { %1778 = vmatpush.bf16.msrb.mxu3 %v2763_v47 }
  0xe8   : > { %1740 = vmatpush.bf16.msrb.mxu0 %v2563_v54 }
  0xe9   : > { %1753 = vmatpush.bf16.msrb.mxu1 %v2627_v55 }
  0xea   : > { %1766 = vmatpush.bf16.msrb.mxu2 %v2691_v56 }
  0xeb   : > { %1779 = vmatpush.bf16.msrb.mxu3 %v2755_v62 }
  0xec   : > { %1741 = vmatpush.bf16.msrb.mxu0 %v2555_v2  ;;  %v1535_v15 = vpop.f32.mrf.mxu0 }
  0xed   : > { %1754 = vmatpush.bf16.msrb.mxu1 %v2619_v9  ;;  %v1536_v19 = vadd.f32 %v1535_v15, %v1523_v7  ;;  %v1548_v20 = vpop.f32.mrf.mxu1 }
  0xee   : > { %1767 = vmatpush.bf16.msrb.mxu2 %v2683_v10 }
  0xef   : > { %1780 = vmatpush.bf16.msrb.mxu3 %v2747_v11  ;;  %1742 = vmatmul.bf16.vlgmr.msrb.gmra.mxu0 %v3535_v13  ;;  %v1549_v24 = vadd.f32 %v1548_v20, %v1536_v19 }
  0xf0   : > { %1755 = vmatmul.bf16.vlgmr.msrb.gmra.mxu1 %v3541_v17 }
  0xf1   : > { %1768 = vmatmul.bf16.vlgmr.msrb.gmra.mxu2 %v3539_v16 }
  0xf2   : > { %1781 = vmatmul.bf16.vlgmr.msrb.gmra.mxu3 %v3543_v18 }
  0xf4   : > { %v1561_v25 = vpop.f32.mrf.mxu2  ;;  %v1537_v21 = vpop.f32.mrf.mxu0 }
  0xf5   : > { %v1562_v26 = vadd.f32 %v1561_v25, %v1549_v24  ;;  %v1574_v28 = vpop.f32.mrf.mxu3  ;;  %v1550_v30 = vpop.f32.mrf.mxu1 }
  0xf7   : > { %v1575_v29 = vadd.f32 %v1574_v28, %v1562_v26 }
  0xfc   : > { %v1563_v31 = vpop.f32.mrf.mxu2 }
  0xfd   : > { %v1576_v22 = vpop.f32.mrf.mxu3 }
 0x10c   : > { %v1587_v32 = vpop.f32.mrf.mxu0 }
 0x10d   : > { %v1588_v13 = vadd.f32 %v1587_v32, %v1575_v29  ;;  %v1600_v23 = vpop.f32.mrf.mxu1 }
 0x10f   : > { %v1601_v17 = vadd.f32 %v1600_v23, %v1588_v13 }
 0x114   : > { %v1613_v33 = vpop.f32.mrf.mxu2  ;;  %v1589_v18 = vpop.f32.mrf.mxu0 }
 0x115   : > { %v1614_v16 = vadd.f32 %v1613_v33, %v1601_v17  ;;  %v1626_v34 = vpop.f32.mrf.mxu3  ;;  %v1602_v27 = vpop.f32.mrf.mxu1 }
 0x117   : > { %v1627_v35 = vadd.f32 %v1626_v34, %v1614_v16 }
 0x11c   : > { %v1615_v36 = vpop.f32.mrf.mxu2 }
 0x11d   : > { %v1628_v37 = vpop.f32.mrf.mxu3 }
 0x12c   : > { %v1639_v38 = vpop.f32.mrf.mxu0 }
 0x12d   : > { %v1652_v39 = vpop.f32.mrf.mxu1 }
 0x12e   : > { %v1653_v48 = vadd.f32 %v1652_v39, %v1639_v38 }
 0x134   : > { %v1665_v40 = vpop.f32.mrf.mxu2  ;;  %v1641_v42 = vpop.f32.mrf.mxu0 }
 0x135   : > { %v1678_v41 = vpop.f32.mrf.mxu3  ;;  %v1654_v43 = vpop.f32.mrf.mxu1  ;;  %v1666_v51 = vadd.f32 %v1665_v40, %v1653_v48 }
 0x137   : > { %v1679_v54 = vadd.f32 %v1678_v41, %v1666_v51 }
 0x13c   : > { %v1667_v44 = vpop.f32.mrf.mxu2 }
 0x13d   : > { %v1680_v45 = vpop.f32.mrf.mxu3 }
 0x14c   : > { %v1691_v46 = vpop.f32.mrf.mxu0 }
 0x14d   : > { %v1704_v47 = vpop.f32.mrf.mxu1  ;;  %v1692_v57 = vadd.f32 %v1691_v46, %v1679_v54 }
 0x14f   : > { %v1705_v58 = vadd.f32 %v1704_v47, %v1692_v57 }
 0x154   : > { %v1717_v49 = vpop.f32.mrf.mxu2  ;;  %v1693_v52 = vpop.f32.mrf.mxu0 }
 0x155   : > { %v1730_v50 = vpop.f32.mrf.mxu3  ;;  %v1706_v53 = vpop.f32.mrf.mxu1  ;;  %v1718_v59 = vadd.f32 %v1717_v49, %v1705_v58 }
 0x157   : > { %v1731_v60 = vadd.f32 %v1730_v50, %v1718_v59 }
 0x15c   : > { %v1719_v55 = vpop.f32.mrf.mxu2 }
 0x15d   : > { %v1732_v56 = vpop.f32.mrf.mxu3 }
 0x16c   : > { %v1743_v62 = vpop.f32.mrf.mxu0 }
 0x16d   : > { %v1756_v63 = vpop.f32.mrf.mxu1  ;;  %v1744_v0 = vadd.f32 %v1743_v62, %v1731_v60 }
 0x16f   : > { %v1757_v61 = vadd.f32 %v1756_v63, %v1744_v0 }
 0x174   : > { %v1769_v4 = vpop.f32.mrf.mxu2  ;;  %v1745_v6 = vpop.f32.mrf.mxu0 }
 0x175   : > { %v1770_v5 = vadd.f32 %v1769_v4, %v1757_v61  ;;  %v1782_v1 = vpop.f32.mrf.mxu3  ;;  %v1758_v2 = vpop.f32.mrf.mxu1 }
 0x177   : > { %v1783_v7 = vadd.f32 %v1782_v1, %v1770_v5 }
 0x179   : > { %v1788_v9 = vrot.slane %v1783_v7, 6 }
 0x17a   : > { %1797 = sbr.rel (%p2804_p3) target bundleno = 427 (0x1ab), region = 40 }
 0x17b   : > { %v1790_v10 = vsel %vm1789_vm0, %v1627_v35, %v1788_v9 }
 0x17c   : > { %v1792_v3 = vadd.f32 %v1790_v10, %v291_v8  ;;  %v1771_v11 = vpop.f32.mrf.mxu2 }
 0x17d   : > { %v1784_v12 = vpop.f32.mrf.mxu3 }
 0x17e   : > { %1793 = vst [vmem:[#allocation2] sm:$0xf] %v1792_v3 }
 0x17f   : > { %v1814_v15 = vlaneseq  ;;  %vm1808_vm1 = vcmask 1040384  }
 0x181   : > { %v1815_v25 = vshrl.u32 %v1814_v15, 7 }
 0x183   : > { %vm1818_vm2 = vcmp.lt.s32.totalorder %v1815_v25, 2 }
 0x185   : > { %v1798_v14 = vld [vmem:[#allocation2] sm:$0xf] }
 0x186   : > { %1800 = vst [vmem:[#allocation1] ss:$4 sm:$0xff] %v1798_v14 }
 0x18d   : > { %v1801_v19 = vld.sshfl [vmem:[#allocation1] sm:$0xff pattern:$0x73625140]  ;;  %v1802_v20 = vld.sshfl [vmem:[#allocation1 + $0x8] sm:$0xff pattern:$0x73625140] }
 0x18e   : > { %1819 = vst [vmem:[#allocation1] ss:$4 sm:$0xff] %v1798_v14  ;;  %v1805_v24 = vpack.c.bf16 %v1802_v20, %v1801_v19 }
 0x190   : > { %v1807_v26 = vrot.slane %v1805_v24, 3 }
 0x192   : > { %v1811_v28 = vsel %vm1808_vm1, %v1805_v24, %v1807_v26 }
 0x193   : > { %1813 = vst [vmem:[%s273_s9] sm:$0x3] %v1811_v28 }
 0x195   : > { %v1820_v29 = vld.sshfl [vmem:[#allocation1] sm:$0xff pattern:$0x73625140]  ;;  %v1821_v21 = vld.sshfl [vmem:[#allocation1 + $0x8] sm:$0xff pattern:$0x73625140] }
 0x196   : > { %v1824_v30 = vsel %vm1818_vm2, %v1820_v29, 0.0  ;;  %v1825_v31 = vsel %vm1818_vm2, %v1821_v21, 0.0 }
 0x197   : > { %v1826_v22 = vsel %vm1789_vm0, %v1824_v30, 0.0  ;;  %v1833_v32 = vsel %vm1789_vm0, %v1825_v31, 0.0  ;;  %v1840_v13 = vmul.f32 %v1824_v30, %v1824_v30  ;;  %v1841_v23 = vmul.f32 %v1825_v31, %v1825_v31 }
 0x198   : > { %v1827_v17 = vrot.slane %v1826_v22, 4  ;;  %v1834_v33 = vrot.slane %v1833_v32, 4 }
 0x199   : > { %v1842_v16 = vsel %vm1789_vm0, %v1840_v13, 0.0  ;;  %v1849_v34 = vsel %vm1789_vm0, %v1841_v23, 0.0 }
 0x19a   : > { %v1828_v18 = vadd.f32 %v1827_v17, %v1826_v22  ;;  %v1835_v27 = vadd.f32 %v1834_v33, %v1833_v32  ;;  %v1843_v35 = vrot.slane %v1842_v16, 4  ;;  %v1850_v36 = vrot.slane %v1849_v34, 4 }
 0x19c   : > { %v1829_v37 = vrot.slane %v1828_v18, 2  ;;  %v1836_v38 = vrot.slane %v1835_v27, 2  ;;  %v1844_v39 = vadd.f32 %v1843_v35, %v1842_v16  ;;  %v1851_v40 = vadd.f32 %v1850_v36, %v1849_v34 }
 0x19e   : > { %v1830_v41 = vadd.f32 %v1829_v37, %v1828_v18  ;;  %v1837_v42 = vadd.f32 %v1836_v38, %v1835_v27  ;;  %v1845_v43 = vrot.slane %v1844_v39, 2  ;;  %v1852_v44 = vrot.slane %v1851_v40, 2 }
 0x1a0   : > { %v1838_v45 = vrot.slane %v1837_v42, 1  ;;  %v1846_v46 = vadd.f32 %v1845_v43, %v1844_v39  ;;  %v1853_v47 = vadd.f32 %v1852_v44, %v1851_v40  ;;  %v1831_v48 = vrot.slane %v1830_v41, 1 }
 0x1a2   : > { %v1847_v49 = vrot.slane %v1846_v46, 1  ;;  %v1854_v50 = vrot.slane %v1853_v47, 1  ;;  %v1839_v51 = vadd.f32 %v1838_v45, %v1837_v42  ;;  %v1832_v54 = vadd.f32 %v1831_v48, %v1830_v41 }
 0x1a4   : > { %v1848_v52 = vadd.f32 %v1847_v49, %v1846_v46  ;;  %v1855_v53 = vadd.f32 %v1854_v50, %v1853_v47 }
 0x1a6   : > { %v1857_v55 = vsel %vm1808_vm1, %v1839_v51, %v1855_v53  ;;  %v1856_v57 = vsel %vm1808_vm1, %v1832_v54, %v1848_v52 }
 0x1a7   : > { %v1860_v56 = vrot.slane %v1857_v55, 6 }
 0x1a9   : > { %v1861_v58 = vsel %vm1789_vm0, %v1856_v57, %v1860_v56 }
 0x1aa   : > { %1863 = vst [vmem:[%s3300_s16] sm:$0xf] %v1861_v58 }
 0x1ab PF: > { %s17_s19 = sadd.s32 1, %s3173_s19   ;;  %s3785_s23 = sld [smem:[#allocation6_spill]] }
 0x1ac   : > { %p14_p4 = scmp.ge.s32.totalorder %s17_s19, 8   ;;  %s3786_s12 = smov %s3149_s13 }
 0x1ad   : > { %s3787_s13 = smov %s3153_s14  ;;  %s3788_s14 = smov %s3266_s5 }
 0x1ae   : > { %s3789_s15 = smov %s3165_s17  ;;  %s3790_s16 = smov %s3169_s18 }
 0x1af   : > { %s3791_s17 = smov %s3794_s21  ;;  %16 = sbr.rel (!%p14_p4) target bundleno = 5 (0x5), region = 91 }
 0x1b1   : > { %s3792_s18 = smov %s3785_s23 }
 0x1b4   :  { %1917 = vsyncpa [#allocation4], 1 }
 0x1b5   :  { %1919 = vsyncpa [#allocation4 + $0x1], 1 }

</bundles_post_ra>
